<compile_context>
chip_gen: v7x
topology: tpu7x:2x2x1
jax: 0.10.0
libtpu: 0.0.40
codegen_flags: <defaults>
</compile_context>

<pallas_src>
import functools

import jax
import jax.numpy as jnp
import numpy as np
from jax.experimental import pallas as pl
from jax.experimental.pallas import tpu as pltpu

HALO = 5  # receptive-field radius of five chained 3x3 convs

_BLOCK_PARAMS = ("w11", "b11", "w12", "b12", "w13", "b13", "w14", "b14",
                 "w15", "b15", "bn12_s", "bn12_b", "bn13_s", "bn13_b",
                 "bn14_s", "bn14_b")
_EE_PARAMS = ("w0", "b0", "w1", "b1", "bn_s", "bn_b")


def _sigmoid(x):
    # sigmoid(x) = 0.5*(tanh(x/2)+1): tanh runs on the EUP slot.
    return 0.5 * (jnp.tanh(0.5 * x) + 1.0)


def _bn_relu(f, s_ref, t_ref):
    return jnp.maximum(f * s_ref[...] + t_ref[...], 0.0)


def _full_spec(a):
    nd = a.ndim
    return pl.BlockSpec(a.shape, lambda i, _nd=nd: (0,) * _nd)


def _round_up(n, m):
    return ((n + m - 1) // m) * m


# ----------------------------------------------------------------------------
# Tile choosers
# ----------------------------------------------------------------------------
def _pick_row_tile(H, W):
    """Row tile TH for the spatial block: TH | H, lane-dense output blocks
    (TH*W % 128 == 0) and >= 2 grid steps (megacore); else single tile."""
    divs = [t for t in range(1, H + 1) if H % t == 0]
    good = [t for t in divs if (t * W) % 128 == 0 and H // t >= 2]
    if good:
        capped = [t for t in good if t <= 32]
        return max(capped) if capped else min(good)
    return H


def _pick_hw_tile(hwp):
    for t in (4096, 2048, 1024, 512, 256, 128):
        if hwp % t == 0 and hwp // t >= 2:
            return t
    for t in (4096, 2048, 1024, 512, 256, 128):
        if hwp % t == 0:
            return t
    return hwp


def _pick_re_tile(hwp):
    for t in (8192, 4096, 2048, 1024, 512, 256, 128):
        if hwp % t == 0 and hwp // t >= 2:
            return t
    return hwp


# ----------------------------------------------------------------------------
# Kernel 1: Spatial dense block, row-tiled slabs with a 5-row halo.
# Slab layout: flat over padded rows (Wp = W + 2 columns per row), length NSp.
# ----------------------------------------------------------------------------
def _spatial_kernel(x_ref, row_ref, cmask_ref,
                    w11, b11, w12, b12, w13, b13, w14, b14, w15, b15,
                    bn12s, bn12b, bn13s, bn13b, bn14s, bn14b,
                    o_ref, *, H, W, TH, Wp, NSp):
    i = pl.program_id(0)
    rowg = row_ref[...] + i * TH                      # padded-row index, (1, NSp)
    mask = (cmask_ref[...] *
            ((rowg >= HALO) & (rowg < HALO + H)).astype(jnp.float32))

    def conv3(f, w_ref, b_ref):
        # 3x3 conv over the zero-padded slab: per row offset ky, one matmul of
        # the (3*Cin, NSp) [left|center|right] tap stack against (Cout, 3*Cin).
        # No per-tap masks: pad columns / out-of-image rows of f are already 0.
        acc = None
        for ky in range(3):
            off = (ky - 1) * Wp
            r = f if off == 0 else pltpu.roll(f, (-off) % NSp, 1)
            g = jnp.concatenate(
                [pltpu.roll(r, 1, 1), r, pltpu.roll(r, NSp - 1, 1)], axis=0)
            part = jnp.dot(w_ref[ky], g, preferred_element_type=jnp.float32)
            acc = part if acc is None else acc + part
        return acc + b_ref[...]

    x = x_ref[...]                                    # (L, NSp), true zeros at pads
    s11 = conv3(x, w11, b11)
    s12 = conv3(s11 * mask, w12, b12)
    a = _bn_relu(jnp.concatenate([s11, s12], 0), bn12s, bn12b)
    s13 = conv3(a * mask, w13, b13)
    a = _bn_relu(jnp.concatenate([s11, s12, s13], 0), bn13s, bn13b)
    s14 = conv3(a * mask, w14, b14)
    a = _bn_relu(jnp.concatenate([s11, s12, s13, s14], 0), bn14s, bn14b)
    out = conv3(a * mask, w15, b15)                   # (32, NSp)

    # strip the row halo and the pad columns -> lane-dense (32, TH*W) block
    for j in range(TH):
        src = (HALO + j) * Wp + 1
        o_ref[:, j * W:(j + 1) * W] = out[:, src:src + W]


def spatial_block(slabs, row_local, colmask, p, *, H, W, TH, Wp, NSp):
    NT, L, _ = slabs.shape
    hw = H * W
    args = [slabs, row_local, colmask] + [p[k] for k in _BLOCK_PARAMS]
    in_specs = ([pl.BlockSpec((None, L, NSp), lambda i: (i, 0, 0)),
                 _full_spec(row_local), _full_spec(colmask)]
                + [_full_spec(p[k]) for k in _BLOCK_PARAMS])
    kern = functools.partial(_spatial_kernel, H=H, W=W, TH=TH, Wp=Wp, NSp=NSp)
    return pl.pallas_call(
        kern,
        out_shape=jax.ShapeDtypeStruct((32, hw), jnp.float32),
        grid=(NT,),
        in_specs=in_specs,
        out_specs=pl.BlockSpec((32, TH * W), lambda i: (0, i)),
        compiler_params=pltpu.CompilerParams(
            dimension_semantics=("parallel",),
            vmem_limit_bytes=64 * 1024 * 1024),
    )(*args)


# ----------------------------------------------------------------------------
# Kernel 2: fused Spectral dense block + EE_Abu head, tiled over (padded) HW.
# ----------------------------------------------------------------------------
def _head_kernel(x_ref, x2_ref,
                 w11, b11, w12, b12, w13, b13, w14, b14, w15, b15,
                 bn12s, bn12b, bn13s, bn13b, bn14s, bn14b,
                 ew0, eb0, ew1, eb1, ebns, ebnb,
                 xo_ref, abu_ref, end_ref, *, hw, tn, padded):
    def pw(w_ref, b_ref, f):                  # 1x1 conv == per-pixel matmul
        return (jnp.dot(w_ref[...], f, preferred_element_type=jnp.float32)
                + b_ref[...])

    # --- Spectral dense block, fused per tile (x1 never hits HBM) ---
    x = x_ref[...]
    s11 = pw(w11, b11, x)
    s12 = pw(w12, b12, s11)
    a = _bn_relu(jnp.concatenate([s11, s12], 0), bn12s, bn12b)
    s13 = pw(w13, b13, a)
    a = _bn_relu(jnp.concatenate([s11, s12, s13], 0), bn13s, bn13b)
    s14 = pw(w14, b14, a)
    a = _bn_relu(jnp.concatenate([s11, s12, s13, s14], 0), bn14s, bn14b)
    x1 = pw(w15, b15, a)                                        # (32, TN)

    # --- EE_Abu head ---
    x3 = jnp.concatenate([x1, x2_ref[...]], 0)                  # (64, TN)
    xs = _sigmoid(pw(ew0, eb0, x3))                             # (L, TN)
    z = pw(ew1, eb1, xs) * ebns[...] + ebnb[...]                # (P, TN)
    z = z - jnp.max(z, axis=0, keepdims=True)
    ez = jnp.exp(z)
    abu = ez / jnp.sum(ez, axis=0, keepdims=True)               # exact softmax

    xo_ref[...] = xs
    abu_ref[...] = abu

    @pl.when(pl.program_id(0) == 0)
    def _():
        end_ref[...] = jnp.zeros_like(end_ref)

    if padded:  # padded tail pixels must not contribute to the Gram matrix
        lane = jax.lax.broadcasted_iota(jnp.int32, (1, tn), 1)
        xs = jnp.where(lane + pl.program_id(0) * tn < hw, xs, 0.0)

    # end += xs @ abu^T, contracting over the pixel (lane) axis.
    end_ref[...] += jax.lax.dot_general(
        xs, abu, (((1,), (1,)), ((), ())), preferred_element_type=jnp.float32)

    @pl.when(pl.program_id(0) == pl.num_programs(0) - 1)
    def _():
        e = end_ref[...]
        nrm = jnp.sqrt(jnp.sum(e * e, axis=0, keepdims=True))
        end_ref[...] = e / jnp.maximum(nrm, 1e-12)  # F.normalize(end, 2, dim=1)


def spectral_ee_head(x, x2, spe, ee, hw, tn):
    c, hwp = x.shape
    L = ee["w0"].shape[0]
    P = ee["w1"].shape[0]
    args = [x, x2] + [spe[k] for k in _BLOCK_PARAMS] + [ee[k] for k in _EE_PARAMS]
    in_specs = ([pl.BlockSpec((c, tn), lambda i: (0, i)),
                 pl.BlockSpec((32, tn), lambda i: (0, i))]
                + [_full_spec(spe[k]) for k in _BLOCK_PARAMS]
                + [_full_spec(ee[k]) for k in _EE_PARAMS])
    kern = functools.partial(_head_kernel, hw=hw, tn=tn, padded=(hwp != hw))
    return pl.pallas_call(
        kern,
        out_shape=(jax.ShapeDtypeStruct((L, hwp), jnp.float32),   # xo
                   jax.ShapeDtypeStruct((P, hwp), jnp.float32),   # abu
                   jax.ShapeDtypeStruct((L, P), jnp.float32)),    # end
        grid=(hwp // tn,),
        in_specs=in_specs,
        out_specs=(pl.BlockSpec((L, tn), lambda i: (0, i)),
                   pl.BlockSpec((P, tn), lambda i: (0, i)),
                   pl.BlockSpec((L, P), lambda i: (0, 0))),
        compiler_params=pltpu.CompilerParams(
            dimension_semantics=("arbitrary",),
            vmem_limit_bytes=64 * 1024 * 1024),
    )(*args)


# ----------------------------------------------------------------------------
# Kernel 3: re = end @ abu, tiled over HW (megacore-parallel, big tiles)
# ----------------------------------------------------------------------------
def _re_kernel(end_ref, abu_ref, re_ref):
    re_ref[...] = jnp.dot(end_ref[...], abu_ref[...],
                          preferred_element_type=jnp.float32)


def re_matmul(end, abu, tn):
    L, P = end.shape
    hwp = abu.shape[1]
    return pl.pallas_call(
        _re_kernel,
        out_shape=jax.ShapeDtypeStruct((L, hwp), jnp.float32),
        grid=(hwp // tn,),
        in_specs=[pl.BlockSpec((L, P), lambda i: (0, 0)),
                  pl.BlockSpec((P, tn), lambda i: (0, i))],
        out_specs=pl.BlockSpec((L, tn), lambda i: (0, i)),
        compiler_params=pltpu.CompilerParams(
            dimension_semantics=("parallel",)),
    )(end, abu)


# ----------------------------------------------------------------------------
# Weight re-layout (torch OIHW -> matmul layouts), hoisted out of the forward
# ----------------------------------------------------------------------------
def prepare_params(params):
    def col(v):
        return jnp.asarray(v, jnp.float32).reshape(-1, 1)

    def pw(w):        # (O, I, 1, 1) -> (O, I)
        return jnp.asarray(w, jnp.float32)[:, :, 0, 0]

    def k3(w):        # (O, I, 3, 3) -> (3, O, 3*I); [ky][o, kx*I + i]
        w = jnp.asarray(w, jnp.float32)
        o, i = w.shape[0], w.shape[1]
        return jnp.transpose(w, (2, 0, 3, 1)).reshape(3, o, 3 * i)

    def block(p, wfun):
        out = {}
        for s in ("11", "12", "13", "14", "15"):
            out["w" + s] = wfun(p["w" + s])
            out["b" + s] = col(p["b" + s])
        for s in ("12", "13", "14"):
            out["bn" + s + "_s"] = col(p["bn" + s + "_s"])
            out["bn" + s + "_b"] = col(p["bn" + s + "_b"])
        return out

    e = params["ee"]
    return {
        "spe": block(params["spe"], pw),
        "spa": block(params["spa"], k3),
        "ee": {"w0": pw(e["w0"]), "b0": col(e["b0"]),
               "w1": pw(e["w1"]), "b1": col(e["b1"]),
               "bn_s": col(e["bn_s"]), "bn_b": col(e["bn_b"])},
    }


# ----------------------------------------------------------------------------
# Full A2SN forward (Pallas path)
# ----------------------------------------------------------------------------
def a2sn_forward(x_nchw, prep):
    n, L, H, W = x_nchw.shape
    assert n == 1, "A2SN / EE_Abu squeeze the batch; batch must be 1"
    hw = H * W
    x_img = x_nchw[0]                    # (L, H, W)
    x = x_img.reshape(L, hw)             # (C, HW), lane-dense

    # ---- Spatial block: row-tiled slabs with 5-row halo + 1-col zero pad ----
    TH = _pick_row_tile(H, W)
    NT = H // TH
    Wp = W + 2
    R_ext = TH + 2 * HALO
    NS = R_ext * Wp
    NSp = _round_up(NS, 128)
    xpad = jnp.pad(x_img, ((0, 0), (HALO, HALO), (1, 1)))
    slabs = jnp.stack(
        [xpad[:, i * TH:i * TH + R_ext, :].reshape(L, NS) for i in range(NT)],
        axis=0)                                                  # (NT, L, NS)
    if NSp != NS:
        slabs = jnp.pad(slabs, ((0, 0), (0, 0), (0, NSp - NS)))
    flat = np.arange(NSp)
    row_local = jnp.asarray((flat // Wp).astype(np.int32).reshape(1, NSp))
    colmask = jnp.asarray(
        (((flat % Wp >= 1) & (flat % Wp <= W) & (flat < NS))
         .astype(np.float32)).reshape(1, NSp))
    x2 = spatial_block(slabs, row_local, colmask, prep["spa"],
                       H=H, W=W, TH=TH, Wp=Wp, NSp=NSp)          # (32, HW)

    # ---- fused Spectral + EE_Abu head over (padded) HW ----
    hwp = _round_up(hw, 128)
    if hwp != hw:
        x_p = jnp.pad(x, ((0, 0), (0, hwp - hw)))
        x2_p = jnp.pad(x2, ((0, 0), (0, hwp - hw)))
    else:
        x_p, x2_p = x, x2
    tn = _pick_hw_tile(hwp)
    xo, abu, end = spectral_ee_head(x_p, x2_p, prep["spe"], prep["ee"], hw, tn)
    re = re_matmul(end, abu, _pick_re_tile(hwp))
    if hwp != hw:
        xo, abu, re = xo[:, :hw], abu[:, :hw], re[:, :hw]
    return abu, end, re, xo


# ----------------------------------------------------------------------------
# Deterministic parameter init (torch OIHW layout; BN as eval scale/shift)
# ----------------------------------------------------------------------------
def init_params(key, L, P):
    keys = iter(jax.random.split(key, 64))

    def w(shape, scl=0.1):
        return (scl * jax.random.normal(next(keys), shape)).astype(jnp.float32)

    def bnp(c):
        s = (1.0 + 0.1 * jax.random.normal(next(keys), (c,))).astype(jnp.float32)
        b = (0.1 * jax.random.normal(next(keys), (c,))).astype(jnp.float32)
        return s, b

    def dense_block(cin, k):
        p = {}
        p["w11"], p["b11"] = w((8, cin, k, k)), w((8,))
        p["w12"], p["b12"] = w((8, 8, k, k)), w((8,))
        p["bn12_s"], p["bn12_b"] = bnp(16)
        p["w13"], p["b13"] = w((8, 16, k, k)), w((8,))
        p["bn13_s"], p["bn13_b"] = bnp(24)
        p["w14"], p["b14"] = w((8, 24, k, k)), w((8,))
        p["bn14_s"], p["bn14_b"] = bnp(32)
        p["w15"], p["b15"] = w((32, 32, k, k)), w((32,))
        return p

    ee = {
        "w0": w((L, 64, 1, 1)), "b0": w((L,)),
        "w1": w((P, L, 1, 1)), "b1": w((P,)),
    }
    ee["bn_s"], ee["bn_b"] = bnp(P)
    return {"spe": dense_block(L, 1), "spa": dense_block(L, 3), "ee": ee}


# ----------------------------------------------------------------------------
# Pure-JAX reference (lax.conv based) used only for a numerical self-check
# ----------------------------------------------------------------------------
def reference_forward(x, params):
    HI = jax.lax.Precision.HIGHEST

    def conv(x, w, b, pad):
        y = jax.lax.conv_general_dilated(
            x, w, (1, 1), [(pad, pad), (pad, pad)],
            dimension_numbers=("NCHW", "OIHW", "NCHW"), precision=HI)
        return y + b[None, :, None, None]

    def bnrelu(x, s, t):
        return jnp.maximum(x * s[None, :, None, None] + t[None, :, None, None],
                           0.0)

    def dense_block(x, p, pad):
        x11 = conv(x, p["w11"], p["b11"], pad)
        x12 = conv(x11, p["w12"], p["b12"], pad)
        x13 = conv(bnrelu(jnp.concatenate([x11, x12], 1),
                          p["bn12_s"], p["bn12_b"]), p["w13"], p["b13"], pad)
        x14 = conv(bnrelu(jnp.concatenate([x11, x12, x13], 1),
                          p["bn13_s"], p["bn13_b"]), p["w14"], p["b14"], pad)
        x15 = bnrelu(jnp.concatenate([x11, x12, x13, x14], 1),
                     p["bn14_s"], p["bn14_b"])
        return conv(x15, p["w15"], p["b15"], pad)

    x1 = dense_block(x, params["spe"], 0)
    x2 = dense_block(x, params["spa"], 1)
    x3 = jnp.concatenate([x1, x2], 1)
    e = params["ee"]
    xs = jax.nn.sigmoid(conv(x3, e["w0"], e["b0"], 0))       # (1, L, H, W)
    z = conv(xs, e["w1"], e["b1"], 0)
    z = z * e["bn_s"][None, :, None, None] + e["bn_b"][None, :, None, None]
    abu = jax.nn.softmax(z, axis=1)                          # (1, P, H, W)
    n, L, H, W = xs.shape
    P = abu.shape[1]
    xm = xs.reshape(n, L, H * W)
    am = abu.reshape(n, P, H * W).transpose(0, 2, 1)         # (n, HW, P)
    end = jnp.einsum("nlh,nhp->nlp", xm, am, precision=HI)
    nrm = jnp.sqrt(jnp.sum(end * end, axis=1, keepdims=True))
    end = end / jnp.maximum(nrm, 1e-12)
    re = jnp.einsum("nlp,nhp->nlh", end, am, precision=HI)
    return am.transpose(0, 2, 1)[0], end[0], re[0], xm[0]


if __name__ == "__main__":
    L, P, H, W = 16, 8, 16, 16
    key = jax.random.PRNGKey(0)
    kx, kp = jax.random.split(key)
    x = jax.random.normal(kx, (1, L, H, W), dtype=jnp.float32)
    params = init_params(kp, L, P)
    prep = prepare_params(params)     # weight re-layout hoisted out of the jit

    fwd = jax.jit(a2sn_forward)
    abu, end, re, xo = jax.block_until_ready(fwd(x, prep))

    abu_r, end_r, re_r, xo_r = reference_forward(x, params)
    for got, ref, name in [(abu, abu_r, "abu"), (end, end_r, "end"),
                           (re, re_r, "re"), (xo, xo_r, "xo")]:
        np.testing.assert_allclose(np.asarray(got), np.asarray(ref),
                                   rtol=1e-2, atol=2e-3, err_msg=name)
    print("KERNEL_OK")
</pallas_src>

<mosaic_0001>
module attributes {stable_mosaic.version = 11 : i64} {
  func.func @_head_kernel(%arg0: i32, %arg1: memref<16x128xf32, #tpu.memory_space<vmem>>, %arg2: memref<32x128xf32, #tpu.memory_space<vmem>>, %arg3: memref<8x16xf32, #tpu.memory_space<vmem>>, %arg4: memref<8x1xf32, #tpu.memory_space<vmem>>, %arg5: memref<8x8xf32, #tpu.memory_space<vmem>>, %arg6: memref<8x1xf32, #tpu.memory_space<vmem>>, %arg7: memref<8x16xf32, #tpu.memory_space<vmem>>, %arg8: memref<8x1xf32, #tpu.memory_space<vmem>>, %arg9: memref<8x24xf32, #tpu.memory_space<vmem>>, %arg10: memref<8x1xf32, #tpu.memory_space<vmem>>, %arg11: memref<32x32xf32, #tpu.memory_space<vmem>>, %arg12: memref<32x1xf32, #tpu.memory_space<vmem>>, %arg13: memref<16x1xf32, #tpu.memory_space<vmem>>, %arg14: memref<16x1xf32, #tpu.memory_space<vmem>>, %arg15: memref<24x1xf32, #tpu.memory_space<vmem>>, %arg16: memref<24x1xf32, #tpu.memory_space<vmem>>, %arg17: memref<32x1xf32, #tpu.memory_space<vmem>>, %arg18: memref<32x1xf32, #tpu.memory_space<vmem>>, %arg19: memref<16x64xf32, #tpu.memory_space<vmem>>, %arg20: memref<16x1xf32, #tpu.memory_space<vmem>>, %arg21: memref<8x16xf32, #tpu.memory_space<vmem>>, %arg22: memref<8x1xf32, #tpu.memory_space<vmem>>, %arg23: memref<8x1xf32, #tpu.memory_space<vmem>>, %arg24: memref<8x1xf32, #tpu.memory_space<vmem>>, %arg25: memref<16x128xf32, #tpu.memory_space<vmem>>, %arg26: memref<8x128xf32, #tpu.memory_space<vmem>>, %arg27: memref<16x8xf32, #tpu.memory_space<vmem>>) attributes {dimension_semantics = [#tpu.dimension_semantics<arbitrary>], iteration_bounds = array<i64: 2>, scalar_prefetch = 0 : i64, scratch_operands = 0 : i64, tpu.core_type = #tpu.core_type<tc>, window_params = [{transform_indices = @transform_0, window_bounds = array<i64: 16, 128>}, {transform_indices = @transform_1, window_bounds = array<i64: 32, 128>}, {pipeline_mode = #tpu.pipeline_mode<synchronous>, transform_indices = @transform_2, window_bounds = array<i64: 8, 16>}, {pipeline_mode = #tpu.pipeline_mode<synchronous>, transform_indices = @transform_3, window_bounds = array<i64: 8, 1>}, {pipeline_mode = #tpu.pipeline_mode<synchronous>, transform_indices = @transform_4, window_bounds = array<i64: 8, 8>}, {pipeline_mode = #tpu.pipeline_mode<synchronous>, transform_indices = @transform_5, window_bounds = array<i64: 8, 1>}, {pipeline_mode = #tpu.pipeline_mode<synchronous>, transform_indices = @transform_6, window_bounds = array<i64: 8, 16>}, {pipeline_mode = #tpu.pipeline_mode<synchronous>, transform_indices = @transform_7, window_bounds = array<i64: 8, 1>}, {pipeline_mode = #tpu.pipeline_mode<synchronous>, transform_indices = @transform_8, window_bounds = array<i64: 8, 24>}, {pipeline_mode = #tpu.pipeline_mode<synchronous>, transform_indices = @transform_9, window_bounds = array<i64: 8, 1>}, {pipeline_mode = #tpu.pipeline_mode<synchronous>, transform_indices = @transform_10, window_bounds = array<i64: 32, 32>}, {pipeline_mode = #tpu.pipeline_mode<synchronous>, transform_indices = @transform_11, window_bounds = array<i64: 32, 1>}, {pipeline_mode = #tpu.pipeline_mode<synchronous>, transform_indices = @transform_12, window_bounds = array<i64: 16, 1>}, {pipeline_mode = #tpu.pipeline_mode<synchronous>, transform_indices = @transform_13, window_bounds = array<i64: 16, 1>}, {pipeline_mode = #tpu.pipeline_mode<synchronous>, transform_indices = @transform_14, window_bounds = array<i64: 24, 1>}, {pipeline_mode = #tpu.pipeline_mode<synchronous>, transform_indices = @transform_15, window_bounds = array<i64: 24, 1>}, {pipeline_mode = #tpu.pipeline_mode<synchronous>, transform_indices = @transform_16, window_bounds = array<i64: 32, 1>}, {pipeline_mode = #tpu.pipeline_mode<synchronous>, transform_indices = @transform_17, window_bounds = array<i64: 32, 1>}, {pipeline_mode = #tpu.pipeline_mode<synchronous>, transform_indices = @transform_18, window_bounds = array<i64: 16, 64>}, {pipeline_mode = #tpu.pipeline_mode<synchronous>, transform_indices = @transform_19, window_bounds = array<i64: 16, 1>}, {pipeline_mode = #tpu.pipeline_mode<synchronous>, transform_indices = @transform_20, window_bounds = array<i64: 8, 16>}, {pipeline_mode = #tpu.pipeline_mode<synchronous>, transform_indices = @transform_21, window_bounds = array<i64: 8, 1>}, {pipeline_mode = #tpu.pipeline_mode<synchronous>, transform_indices = @transform_22, window_bounds = array<i64: 8, 1>}, {pipeline_mode = #tpu.pipeline_mode<synchronous>, transform_indices = @transform_23, window_bounds = array<i64: 8, 1>}, {transform_indices = @transform_24, window_bounds = array<i64: 16, 128>}, {transform_indices = @transform_25, window_bounds = array<i64: 8, 128>}, {pipeline_mode = #tpu.pipeline_mode<synchronous>, transform_indices = @transform_26, window_bounds = array<i64: 16, 8>}]} {
    %c0 = arith.constant 0 : index
    %c0_0 = arith.constant 0 : index
    %0 = vector.load %arg1[%c0, %c0_0] : memref<16x128xf32, #tpu.memory_space<vmem>>, vector<16x128xf32>
    %c0_1 = arith.constant 0 : index
    %c0_2 = arith.constant 0 : index
    %1 = vector.load %arg3[%c0_1, %c0_2] : memref<8x16xf32, #tpu.memory_space<vmem>>, vector<8x16xf32>
    %cst = arith.constant dense<0.000000e+00> : vector<8x128xf32>
    %2 = tpu.matmul %1, %0, %cst {dimension_numbers = #tpu.dot_dimension_numbers<[1], [0], [0], [1], [0, 0, 1, 1], [], []>} : vector<8x16xf32>, vector<16x128xf32>, vector<8x128xf32> -> vector<8x128xf32>
    %c0_3 = arith.constant 0 : index
    %c0_4 = arith.constant 0 : index
    %3 = vector.load %arg4[%c0_3, %c0_4] : memref<8x1xf32, #tpu.memory_space<vmem>>, vector<8x1xf32>
    %4 = vector.broadcast %3 : vector<8x1xf32> to vector<8x128xf32>
    %5 = arith.addf %2, %4 : vector<8x128xf32>
    %c0_5 = arith.constant 0 : index
    %c0_6 = arith.constant 0 : index
    %6 = vector.load %arg5[%c0_5, %c0_6] : memref<8x8xf32, #tpu.memory_space<vmem>>, vector<8x8xf32>
    %cst_7 = arith.constant dense<0.000000e+00> : vector<8x128xf32>
    %7 = tpu.matmul %6, %5, %cst_7 {dimension_numbers = #tpu.dot_dimension_numbers<[1], [0], [0], [1], [0, 0, 1, 1], [], []>} : vector<8x8xf32>, vector<8x128xf32>, vector<8x128xf32> -> vector<8x128xf32>
    %c0_8 = arith.constant 0 : index
    %c0_9 = arith.constant 0 : index
    %8 = vector.load %arg6[%c0_8, %c0_9] : memref<8x1xf32, #tpu.memory_space<vmem>>, vector<8x1xf32>
    %9 = vector.broadcast %8 : vector<8x1xf32> to vector<8x128xf32>
    %10 = arith.addf %7, %9 : vector<8x128xf32>
    %11 = tpu.concatenate %5, %10 in 0 : vector<8x128xf32>, vector<8x128xf32> -> vector<16x128xf32>
    %c0_10 = arith.constant 0 : index
    %c0_11 = arith.constant 0 : index
    %12 = vector.load %arg13[%c0_10, %c0_11] : memref<16x1xf32, #tpu.memory_space<vmem>>, vector<16x1xf32>
    %13 = vector.broadcast %12 : vector<16x1xf32> to vector<16x128xf32>
    %14 = arith.mulf %11, %13 : vector<16x128xf32>
    %c0_12 = arith.constant 0 : index
    %c0_13 = arith.constant 0 : index
    %15 = vector.load %arg14[%c0_12, %c0_13] : memref<16x1xf32, #tpu.memory_space<vmem>>, vector<16x1xf32>
    %16 = vector.broadcast %15 : vector<16x1xf32> to vector<16x128xf32>
    %17 = arith.addf %14, %16 : vector<16x128xf32>
    %cst_14 = arith.constant 0.000000e+00 : f32
    %18 = vector.broadcast %cst_14 : f32 to vector<16x128xf32>
    %19 = arith.maximumf %17, %18 : vector<16x128xf32>
    %c0_15 = arith.constant 0 : index
    %c0_16 = arith.constant 0 : index
    %20 = vector.load %arg7[%c0_15, %c0_16] : memref<8x16xf32, #tpu.memory_space<vmem>>, vector<8x16xf32>
    %cst_17 = arith.constant dense<0.000000e+00> : vector<8x128xf32>
    %21 = tpu.matmul %20, %19, %cst_17 {dimension_numbers = #tpu.dot_dimension_numbers<[1], [0], [0], [1], [0, 0, 1, 1], [], []>} : vector<8x16xf32>, vector<16x128xf32>, vector<8x128xf32> -> vector<8x128xf32>
    %c0_18 = arith.constant 0 : index
    %c0_19 = arith.constant 0 : index
    %22 = vector.load %arg8[%c0_18, %c0_19] : memref<8x1xf32, #tpu.memory_space<vmem>>, vector<8x1xf32>
    %23 = vector.broadcast %22 : vector<8x1xf32> to vector<8x128xf32>
    %24 = arith.addf %21, %23 : vector<8x128xf32>
    %25 = tpu.concatenate %5, %10, %24 in 0 : vector<8x128xf32>, vector<8x128xf32>, vector<8x128xf32> -> vector<24x128xf32>
    %c0_20 = arith.constant 0 : index
    %c0_21 = arith.constant 0 : index
    %26 = vector.load %arg15[%c0_20, %c0_21] : memref<24x1xf32, #tpu.memory_space<vmem>>, vector<24x1xf32>
    %27 = vector.broadcast %26 : vector<24x1xf32> to vector<24x128xf32>
    %28 = arith.mulf %25, %27 : vector<24x128xf32>
    %c0_22 = arith.constant 0 : index
    %c0_23 = arith.constant 0 : index
    %29 = vector.load %arg16[%c0_22, %c0_23] : memref<24x1xf32, #tpu.memory_space<vmem>>, vector<24x1xf32>
    %30 = vector.broadcast %29 : vector<24x1xf32> to vector<24x128xf32>
    %31 = arith.addf %28, %30 : vector<24x128xf32>
    %cst_24 = arith.constant 0.000000e+00 : f32
    %32 = vector.broadcast %cst_24 : f32 to vector<24x128xf32>
    %33 = arith.maximumf %31, %32 : vector<24x128xf32>
    %c0_25 = arith.constant 0 : index
    %c0_26 = arith.constant 0 : index
    %34 = vector.load %arg9[%c0_25, %c0_26] : memref<8x24xf32, #tpu.memory_space<vmem>>, vector<8x24xf32>
    %cst_27 = arith.constant dense<0.000000e+00> : vector<8x128xf32>
    %35 = tpu.matmul %34, %33, %cst_27 {dimension_numbers = #tpu.dot_dimension_numbers<[1], [0], [0], [1], [0, 0, 1, 1], [], []>} : vector<8x24xf32>, vector<24x128xf32>, vector<8x128xf32> -> vector<8x128xf32>
    %c0_28 = arith.constant 0 : index
    %c0_29 = arith.constant 0 : index
    %36 = vector.load %arg10[%c0_28, %c0_29] : memref<8x1xf32, #tpu.memory_space<vmem>>, vector<8x1xf32>
    %37 = vector.broadcast %36 : vector<8x1xf32> to vector<8x128xf32>
    %38 = arith.addf %35, %37 : vector<8x128xf32>
    %39 = tpu.concatenate %5, %10, %24, %38 in 0 : vector<8x128xf32>, vector<8x128xf32>, vector<8x128xf32>, vector<8x128xf32> -> vector<32x128xf32>
    %c0_30 = arith.constant 0 : index
    %c0_31 = arith.constant 0 : index
    %40 = vector.load %arg17[%c0_30, %c0_31] : memref<32x1xf32, #tpu.memory_space<vmem>>, vector<32x1xf32>
    %41 = vector.broadcast %40 : vector<32x1xf32> to vector<32x128xf32>
    %42 = arith.mulf %39, %41 : vector<32x128xf32>
    %c0_32 = arith.constant 0 : index
    %c0_33 = arith.constant 0 : index
    %43 = vector.load %arg18[%c0_32, %c0_33] : memref<32x1xf32, #tpu.memory_space<vmem>>, vector<32x1xf32>
    %44 = vector.broadcast %43 : vector<32x1xf32> to vector<32x128xf32>
    %45 = arith.addf %42, %44 : vector<32x128xf32>
    %cst_34 = arith.constant 0.000000e+00 : f32
    %46 = vector.broadcast %cst_34 : f32 to vector<32x128xf32>
    %47 = arith.maximumf %45, %46 : vector<32x128xf32>
    %c0_35 = arith.constant 0 : index
    %c0_36 = arith.constant 0 : index
    %48 = vector.load %arg11[%c0_35, %c0_36] : memref<32x32xf32, #tpu.memory_space<vmem>>, vector<32x32xf32>
    %cst_37 = arith.constant dense<0.000000e+00> : vector<32x128xf32>
    %49 = tpu.matmul %48, %47, %cst_37 {dimension_numbers = #tpu.dot_dimension_numbers<[1], [0], [0], [1], [0, 0, 1, 1], [], []>} : vector<32x32xf32>, vector<32x128xf32>, vector<32x128xf32> -> vector<32x128xf32>
    %c0_38 = arith.constant 0 : index
    %c0_39 = arith.constant 0 : index
    %50 = vector.load %arg12[%c0_38, %c0_39] : memref<32x1xf32, #tpu.memory_space<vmem>>, vector<32x1xf32>
    %51 = vector.broadcast %50 : vector<32x1xf32> to vector<32x128xf32>
    %52 = arith.addf %49, %51 : vector<32x128xf32>
    %c0_40 = arith.constant 0 : index
    %c0_41 = arith.constant 0 : index
    %53 = vector.load %arg2[%c0_40, %c0_41] : memref<32x128xf32, #tpu.memory_space<vmem>>, vector<32x128xf32>
    %54 = tpu.concatenate %52, %53 in 0 : vector<32x128xf32>, vector<32x128xf32> -> vector<64x128xf32>
    %c0_42 = arith.constant 0 : index
    %c0_43 = arith.constant 0 : index
    %55 = vector.load %arg19[%c0_42, %c0_43] : memref<16x64xf32, #tpu.memory_space<vmem>>, vector<16x64xf32>
    %cst_44 = arith.constant dense<0.000000e+00> : vector<16x128xf32>
    %56 = tpu.matmul %55, %54, %cst_44 {dimension_numbers = #tpu.dot_dimension_numbers<[1], [0], [0], [1], [0, 0, 1, 1], [], []>} : vector<16x64xf32>, vector<64x128xf32>, vector<16x128xf32> -> vector<16x128xf32>
    %c0_45 = arith.constant 0 : index
    %c0_46 = arith.constant 0 : index
    %57 = vector.load %arg20[%c0_45, %c0_46] : memref<16x1xf32, #tpu.memory_space<vmem>>, vector<16x1xf32>
    %58 = vector.broadcast %57 : vector<16x1xf32> to vector<16x128xf32>
    %59 = arith.addf %56, %58 : vector<16x128xf32>
    %cst_47 = arith.constant 5.000000e-01 : f32
    %60 = vector.broadcast %cst_47 : f32 to vector<16x128xf32>
    %61 = arith.mulf %60, %59 : vector<16x128xf32>
    %62 = math.tanh %61 : vector<16x128xf32>
    %cst_48 = arith.constant 1.000000e+00 : f32
    %63 = vector.broadcast %cst_48 : f32 to vector<16x128xf32>
    %64 = arith.addf %62, %63 : vector<16x128xf32>
    %cst_49 = arith.constant 5.000000e-01 : f32
    %65 = vector.broadcast %cst_49 : f32 to vector<16x128xf32>
    %66 = arith.mulf %65, %64 : vector<16x128xf32>
    %c0_50 = arith.constant 0 : index
    %c0_51 = arith.constant 0 : index
    %67 = vector.load %arg21[%c0_50, %c0_51] : memref<8x16xf32, #tpu.memory_space<vmem>>, vector<8x16xf32>
    %cst_52 = arith.constant dense<0.000000e+00> : vector<8x128xf32>
    %68 = tpu.matmul %67, %66, %cst_52 {dimension_numbers = #tpu.dot_dimension_numbers<[1], [0], [0], [1], [0, 0, 1, 1], [], []>} : vector<8x16xf32>, vector<16x128xf32>, vector<8x128xf32> -> vector<8x128xf32>
    %c0_53 = arith.constant 0 : index
    %c0_54 = arith.constant 0 : index
    %69 = vector.load %arg22[%c0_53, %c0_54] : memref<8x1xf32, #tpu.memory_space<vmem>>, vector<8x1xf32>
    %70 = vector.broadcast %69 : vector<8x1xf32> to vector<8x128xf32>
    %71 = arith.addf %68, %70 : vector<8x128xf32>
    %c0_55 = arith.constant 0 : index
    %c0_56 = arith.constant 0 : index
    %72 = vector.load %arg23[%c0_55, %c0_56] : memref<8x1xf32, #tpu.memory_space<vmem>>, vector<8x1xf32>
    %73 = vector.broadcast %72 : vector<8x1xf32> to vector<8x128xf32>
    %74 = arith.mulf %71, %73 : vector<8x128xf32>
    %c0_57 = arith.constant 0 : index
    %c0_58 = arith.constant 0 : index
    %75 = vector.load %arg24[%c0_57, %c0_58] : memref<8x1xf32, #tpu.memory_space<vmem>>, vector<8x1xf32>
    %76 = vector.broadcast %75 : vector<8x1xf32> to vector<8x128xf32>
    %77 = arith.addf %74, %76 : vector<8x128xf32>
    %cst_59 = arith.constant dense<0xFF800000> : vector<128xf32>
    %78 = vector.multi_reduction <maximumf>, %77, %cst_59 [0] : vector<8x128xf32> to vector<128xf32>
    %79 = vector.shape_cast %78 : vector<128xf32> to vector<1x128xf32>
    %80 = vector.broadcast %79 : vector<1x128xf32> to vector<8x128xf32>
    %81 = arith.subf %77, %80 : vector<8x128xf32>
    %82 = math.exp %81 : vector<8x128xf32>
    %cst_60 = arith.constant dense<0.000000e+00> : vector<128xf32>
    %83 = vector.multi_reduction <add>, %82, %cst_60 [0] : vector<8x128xf32> to vector<128xf32>
    %84 = vector.shape_cast %83 : vector<128xf32> to vector<1x128xf32>
    %85 = vector.broadcast %84 : vector<1x128xf32> to vector<8x128xf32>
    %86 = arith.divf %82, %85 : vector<8x128xf32>
    %c0_61 = arith.constant 0 : index
    %c0_62 = arith.constant 0 : index
    %87 = vector.load %arg25[%c0_61, %c0_62] : memref<16x128xf32, #tpu.memory_space<vmem>>, vector<16x128xf32>
    tpu.vector_store %arg25[%c0_61, %c0_62], %66 {strides = array<i32>} : memref<16x128xf32, #tpu.memory_space<vmem>>, vector<16x128xf32>,
    %c0_63 = arith.constant 0 : index
    %c0_64 = arith.constant 0 : index
    %88 = vector.load %arg26[%c0_63, %c0_64] : memref<8x128xf32, #tpu.memory_space<vmem>>, vector<8x128xf32>
    tpu.vector_store %arg26[%c0_63, %c0_64], %86 {strides = array<i32>} : memref<8x128xf32, #tpu.memory_space<vmem>>, vector<8x128xf32>,
    %c0_i32 = arith.constant 0 : i32
    %89 = arith.cmpi eq, %arg0, %c0_i32 : i32
    %90 = arith.extui %89 : i1 to i32
    %c0_i32_65 = arith.constant 0 : i32
    %91 = arith.cmpi ne, %90, %c0_i32_65 : i32
    scf.if %91 {
      %cst_72 = arith.constant 0.000000e+00 : f32
      %99 = vector.broadcast %cst_72 : f32 to vector<16x8xf32>
      %c0_73 = arith.constant 0 : index
      %c0_74 = arith.constant 0 : index
      %100 = vector.load %arg27[%c0_73, %c0_74] : memref<16x8xf32, #tpu.memory_space<vmem>>, vector<16x8xf32>
      tpu.vector_store %arg27[%c0_73, %c0_74], %99 {strides = array<i32>} : memref<16x8xf32, #tpu.memory_space<vmem>>, vector<16x8xf32>,
    } else {
    }
    %c0_66 = arith.constant 0 : index
    %c0_67 = arith.constant 0 : index
    %92 = vector.load %arg27[%c0_66, %c0_67] : memref<16x8xf32, #tpu.memory_space<vmem>>, vector<16x8xf32>
    %cst_68 = arith.constant dense<0.000000e+00> : vector<16x8xf32>
    %93 = tpu.matmul %66, %86, %cst_68 {dimension_numbers = #tpu.dot_dimension_numbers<[1], [1], [0], [0], [0, 0, 1, 0], [], []>} : vector<16x128xf32>, vector<8x128xf32>, vector<16x8xf32> -> vector<16x8xf32>
    %94 = arith.addf %92, %93 : vector<16x8xf32>
    %c0_69 = arith.constant 0 : index
    %c0_70 = arith.constant 0 : index
    %95 = vector.load %arg27[%c0_69, %c0_70] : memref<16x8xf32, #tpu.memory_space<vmem>>, vector<16x8xf32>
    tpu.vector_store %arg27[%c0_69, %c0_70], %94 {strides = array<i32>} : memref<16x8xf32, #tpu.memory_space<vmem>>, vector<16x8xf32>,
    %c1_i32 = arith.constant 1 : i32
    %96 = arith.cmpi eq, %arg0, %c1_i32 : i32
    %97 = arith.extui %96 : i1 to i32
    %c0_i32_71 = arith.constant 0 : i32
    %98 = arith.cmpi ne, %97, %c0_i32_71 : i32
    scf.if %98 {
      %c0_72 = arith.constant 0 : index
      %c0_73 = arith.constant 0 : index
      %99 = vector.load %arg27[%c0_72, %c0_73] : memref<16x8xf32, #tpu.memory_space<vmem>>, vector<16x8xf32>
      %100 = arith.mulf %99, %99 : vector<16x8xf32>
      %cst_74 = arith.constant dense<0.000000e+00> : vector<8xf32>
      %101 = vector.multi_reduction <add>, %100, %cst_74 [0] : vector<16x8xf32> to vector<8xf32>
      %102 = vector.shape_cast %101 : vector<8xf32> to vector<1x8xf32>
      %103 = math.sqrt %102 : vector<1x8xf32>
      %cst_75 = arith.constant 9.99999996E-13 : f32
      %104 = vector.broadcast %cst_75 : f32 to vector<1x8xf32>
      %105 = arith.maximumf %103, %104 : vector<1x8xf32>
      %106 = vector.broadcast %105 : vector<1x8xf32> to vector<16x8xf32>
      %107 = arith.divf %99, %106 : vector<16x8xf32>
      %c0_76 = arith.constant 0 : index
      %c0_77 = arith.constant 0 : index
      %108 = vector.load %arg27[%c0_76, %c0_77] : memref<16x8xf32, #tpu.memory_space<vmem>>, vector<16x8xf32>
      tpu.vector_store %arg27[%c0_76, %c0_77], %107 {strides = array<i32>} : memref<16x8xf32, #tpu.memory_space<vmem>>, vector<16x8xf32>,
    } else {
    }
    return
  }
  func.func @transform_0(%arg0: i32) -> (i32, i32) {
    %c0_i32 = arith.constant 0 : i32
    %c0_i32_0 = arith.constant 0 : i32
    return %c0_i32, %arg0 : i32, i32
  }
  func.func @transform_1(%arg0: i32) -> (i32, i32) {
    %c0_i32 = arith.constant 0 : i32
    %c0_i32_0 = arith.constant 0 : i32
    return %c0_i32, %arg0 : i32, i32
  }
  func.func @transform_2(%arg0: i32) -> (i32, i32) {
    %c0_i32 = arith.constant 0 : i32
    %c0_i32_0 = arith.constant 0 : i32
    %c0_i32_1 = arith.constant 0 : i32
    return %c0_i32, %c0_i32_0 : i32, i32
  }
  func.func @transform_3(%arg0: i32) -> (i32, i32) {
    %c0_i32 = arith.constant 0 : i32
    %c0_i32_0 = arith.constant 0 : i32
    %c0_i32_1 = arith.constant 0 : i32
    return %c0_i32, %c0_i32_0 : i32, i32
  }
  func.func @transform_4(%arg0: i32) -> (i32, i32) {
    %c0_i32 = arith.constant 0 : i32
    %c0_i32_0 = arith.constant 0 : i32
    %c0_i32_1 = arith.constant 0 : i32
    return %c0_i32, %c0_i32_0 : i32, i32
  }
  func.func @transform_5(%arg0: i32) -> (i32, i32) {
    %c0_i32 = arith.constant 0 : i32
    %c0_i32_0 = arith.constant 0 : i32
    %c0_i32_1 = arith.constant 0 : i32
    return %c0_i32, %c0_i32_0 : i32, i32
  }
  func.func @transform_6(%arg0: i32) -> (i32, i32) {
    %c0_i32 = arith.constant 0 : i32
    %c0_i32_0 = arith.constant 0 : i32
    %c0_i32_1 = arith.constant 0 : i32
    return %c0_i32, %c0_i32_0 : i32, i32
  }
  func.func @transform_7(%arg0: i32) -> (i32, i32) {
    %c0_i32 = arith.constant 0 : i32
    %c0_i32_0 = arith.constant 0 : i32
    %c0_i32_1 = arith.constant 0 : i32
    return %c0_i32, %c0_i32_0 : i32, i32
  }
  func.func @transform_8(%arg0: i32) -> (i32, i32) {
    %c0_i32 = arith.constant 0 : i32
    %c0_i32_0 = arith.constant 0 : i32
    %c0_i32_1 = arith.constant 0 : i32
    return %c0_i32, %c0_i32_0 : i32, i32
  }
  func.func @transform_9(%arg0: i32) -> (i32, i32) {
    %c0_i32 = arith.constant 0 : i32
    %c0_i32_0 = arith.constant 0 : i32
    %c0_i32_1 = arith.constant 0 : i32
    return %c0_i32, %c0_i32_0 : i32, i32
  }
  func.func @transform_10(%arg0: i32) -> (i32, i32) {
    %c0_i32 = arith.constant 0 : i32
    %c0_i32_0 = arith.constant 0 : i32
    %c0_i32_1 = arith.constant 0 : i32
    return %c0_i32, %c0_i32_0 : i32, i32
  }
  func.func @transform_11(%arg0: i32) -> (i32, i32) {
    %c0_i32 = arith.constant 0 : i32
    %c0_i32_0 = arith.constant 0 : i32
    %c0_i32_1 = arith.constant 0 : i32
    return %c0_i32, %c0_i32_0 : i32, i32
  }
  func.func @transform_12(%arg0: i32) -> (i32, i32) {
    %c0_i32 = arith.constant 0 : i32
    %c0_i32_0 = arith.constant 0 : i32
    %c0_i32_1 = arith.constant 0 : i32
    return %c0_i32, %c0_i32_0 : i32, i32
  }
  func.func @transform_13(%arg0: i32) -> (i32, i32) {
    %c0_i32 = arith.constant 0 : i32
    %c0_i32_0 = arith.constant 0 : i32
    %c0_i32_1 = arith.constant 0 : i32
    return %c0_i32, %c0_i32_0 : i32, i32
  }
  func.func @transform_14(%arg0: i32) -> (i32, i32) {
    %c0_i32 = arith.constant 0 : i32
    %c0_i32_0 = arith.constant 0 : i32
    %c0_i32_1 = arith.constant 0 : i32
    return %c0_i32, %c0_i32_0 : i32, i32
  }
  func.func @transform_15(%arg0: i32) -> (i32, i32) {
    %c0_i32 = arith.constant 0 : i32
    %c0_i32_0 = arith.constant 0 : i32
    %c0_i32_1 = arith.constant 0 : i32
    return %c0_i32, %c0_i32_0 : i32, i32
  }
  func.func @transform_16(%arg0: i32) -> (i32, i32) {
    %c0_i32 = arith.constant 0 : i32
    %c0_i32_0 = arith.constant 0 : i32
    %c0_i32_1 = arith.constant 0 : i32
    return %c0_i32, %c0_i32_0 : i32, i32
  }
  func.func @transform_17(%arg0: i32) -> (i32, i32) {
    %c0_i32 = arith.constant 0 : i32
    %c0_i32_0 = arith.constant 0 : i32
    %c0_i32_1 = arith.constant 0 : i32
    return %c0_i32, %c0_i32_0 : i32, i32
  }
  func.func @transform_18(%arg0: i32) -> (i32, i32) {
    %c0_i32 = arith.constant 0 : i32
    %c0_i32_0 = arith.constant 0 : i32
    %c0_i32_1 = arith.constant 0 : i32
    return %c0_i32, %c0_i32_0 : i32, i32
  }
  func.func @transform_19(%arg0: i32) -> (i32, i32) {
    %c0_i32 = arith.constant 0 : i32
    %c0_i32_0 = arith.constant 0 : i32
    %c0_i32_1 = arith.constant 0 : i32
    return %c0_i32, %c0_i32_0 : i32, i32
  }
  func.func @transform_20(%arg0: i32) -> (i32, i32) {
    %c0_i32 = arith.constant 0 : i32
    %c0_i32_0 = arith.constant 0 : i32
    %c0_i32_1 = arith.constant 0 : i32
    return %c0_i32, %c0_i32_0 : i32, i32
  }
  func.func @transform_21(%arg0: i32) -> (i32, i32) {
    %c0_i32 = arith.constant 0 : i32
    %c0_i32_0 = arith.constant 0 : i32
    %c0_i32_1 = arith.constant 0 : i32
    return %c0_i32, %c0_i32_0 : i32, i32
  }
  func.func @transform_22(%arg0: i32) -> (i32, i32) {
    %c0_i32 = arith.constant 0 : i32
    %c0_i32_0 = arith.constant 0 : i32
    %c0_i32_1 = arith.constant 0 : i32
    return %c0_i32, %c0_i32_0 : i32, i32
  }
  func.func @transform_23(%arg0: i32) -> (i32, i32) {
    %c0_i32 = arith.constant 0 : i32
    %c0_i32_0 = arith.constant 0 : i32
    %c0_i32_1 = arith.constant 0 : i32
    return %c0_i32, %c0_i32_0 : i32, i32
  }
  func.func @transform_24(%arg0: i32) -> (i32, i32) {
    %c0_i32 = arith.constant 0 : i32
    %c0_i32_0 = arith.constant 0 : i32
    return %c0_i32, %arg0 : i32, i32
  }
  func.func @transform_25(%arg0: i32) -> (i32, i32) {
    %c0_i32 = arith.constant 0 : i32
    %c0_i32_0 = arith.constant 0 : i32
    return %c0_i32, %arg0 : i32, i32
  }
  func.func @transform_26(%arg0: i32) -> (i32, i32) {
    %c0_i32 = arith.constant 0 : i32
    %c0_i32_0 = arith.constant 0 : i32
    %c0_i32_1 = arith.constant 0 : i32
    return %c0_i32, %c0_i32_0 : i32, i32
  }
}

module attributes {stable_mosaic.version = 11 : i64} {
  func.func @_re_kernel(%arg0: i32, %arg1: memref<16x8xf32, #tpu.memory_space<vmem>>, %arg2: memref<8x128xf32, #tpu.memory_space<vmem>>, %arg3: memref<16x128xf32, #tpu.memory_space<vmem>>) attributes {dimension_semantics = [#tpu.dimension_semantics<parallel>], iteration_bounds = array<i64: 2>, scalar_prefetch = 0 : i64, scratch_operands = 0 : i64, tpu.core_type = #tpu.core_type<tc>, window_params = [{pipeline_mode = #tpu.pipeline_mode<synchronous>, transform_indices = @transform_0, window_bounds = array<i64: 16, 8>}, {transform_indices = @transform_1, window_bounds = array<i64: 8, 128>}, {transform_indices = @transform_2, window_bounds = array<i64: 16, 128>}]} {
    %c0 = arith.constant 0 : index
    %c0_0 = arith.constant 0 : index
    %0 = vector.load %arg1[%c0, %c0_0] : memref<16x8xf32, #tpu.memory_space<vmem>>, vector<16x8xf32>
    %c0_1 = arith.constant 0 : index
    %c0_2 = arith.constant 0 : index
    %1 = vector.load %arg2[%c0_1, %c0_2] : memref<8x128xf32, #tpu.memory_space<vmem>>, vector<8x128xf32>
    %cst = arith.constant dense<0.000000e+00> : vector<16x128xf32>
    %2 = tpu.matmul %0, %1, %cst {dimension_numbers = #tpu.dot_dimension_numbers<[1], [0], [0], [1], [0, 0, 1, 1], [], []>} : vector<16x8xf32>, vector<8x128xf32>, vector<16x128xf32> -> vector<16x128xf32>
    %c0_3 = arith.constant 0 : index
    %c0_4 = arith.constant 0 : index
    %3 = vector.load %arg3[%c0_3, %c0_4] : memref<16x128xf32, #tpu.memory_space<vmem>>, vector<16x128xf32>
    tpu.vector_store %arg3[%c0_3, %c0_4], %2 {strides = array<i32>} : memref<16x128xf32, #tpu.memory_space<vmem>>, vector<16x128xf32>,
    return
  }
  func.func @transform_0(%arg0: i32) -> (i32, i32) {
    %c0_i32 = arith.constant 0 : i32
    %c0_i32_0 = arith.constant 0 : i32
    %c0_i32_1 = arith.constant 0 : i32
    return %c0_i32, %c0_i32_0 : i32, i32
  }
  func.func @transform_1(%arg0: i32) -> (i32, i32) {
    %c0_i32 = arith.constant 0 : i32
    %c0_i32_0 = arith.constant 0 : i32
    return %c0_i32, %arg0 : i32, i32
  }
  func.func @transform_2(%arg0: i32) -> (i32, i32) {
    %c0_i32 = arith.constant 0 : i32
    %c0_i32_0 = arith.constant 0 : i32
    return %c0_i32, %arg0 : i32, i32
  }
}

module attributes {stable_mosaic.version = 11 : i64} {
  func.func @_spatial_kernel(%arg0: i32, %arg1: memref<1x16x384xf32, #tpu.memory_space<vmem>>, %arg2: memref<1x384xi32, #tpu.memory_space<vmem>>, %arg3: memref<1x384xf32, #tpu.memory_space<vmem>>, %arg4: memref<3x8x48xf32, #tpu.memory_space<vmem>>, %arg5: memref<8x1xf32, #tpu.memory_space<vmem>>, %arg6: memref<3x8x24xf32, #tpu.memory_space<vmem>>, %arg7: memref<8x1xf32, #tpu.memory_space<vmem>>, %arg8: memref<3x8x48xf32, #tpu.memory_space<vmem>>, %arg9: memref<8x1xf32, #tpu.memory_space<vmem>>, %arg10: memref<3x8x72xf32, #tpu.memory_space<vmem>>, %arg11: memref<8x1xf32, #tpu.memory_space<vmem>>, %arg12: memref<3x32x96xf32, #tpu.memory_space<vmem>>, %arg13: memref<32x1xf32, #tpu.memory_space<vmem>>, %arg14: memref<16x1xf32, #tpu.memory_space<vmem>>, %arg15: memref<16x1xf32, #tpu.memory_space<vmem>>, %arg16: memref<24x1xf32, #tpu.memory_space<vmem>>, %arg17: memref<24x1xf32, #tpu.memory_space<vmem>>, %arg18: memref<32x1xf32, #tpu.memory_space<vmem>>, %arg19: memref<32x1xf32, #tpu.memory_space<vmem>>, %arg20: memref<32x128xf32, #tpu.memory_space<vmem>>) attributes {dimension_semantics = [#tpu.dimension_semantics<parallel>], iteration_bounds = array<i64: 2>, scalar_prefetch = 0 : i64, scratch_operands = 0 : i64, tpu.core_type = #tpu.core_type<tc>, window_params = [{transform_indices = @transform_0, window_bounds = array<i64: 1, 16, 384>}, {pipeline_mode = #tpu.pipeline_mode<synchronous>, transform_indices = @transform_1, window_bounds = array<i64: 1, 384>}, {pipeline_mode = #tpu.pipeline_mode<synchronous>, transform_indices = @transform_2, window_bounds = array<i64: 1, 384>}, {pipeline_mode = #tpu.pipeline_mode<synchronous>, transform_indices = @transform_3, window_bounds = array<i64: 3, 8, 48>}, {pipeline_mode = #tpu.pipeline_mode<synchronous>, transform_indices = @transform_4, window_bounds = array<i64: 8, 1>}, {pipeline_mode = #tpu.pipeline_mode<synchronous>, transform_indices = @transform_5, window_bounds = array<i64: 3, 8, 24>}, {pipeline_mode = #tpu.pipeline_mode<synchronous>, transform_indices = @transform_6, window_bounds = array<i64: 8, 1>}, {pipeline_mode = #tpu.pipeline_mode<synchronous>, transform_indices = @transform_7, window_bounds = array<i64: 3, 8, 48>}, {pipeline_mode = #tpu.pipeline_mode<synchronous>, transform_indices = @transform_8, window_bounds = array<i64: 8, 1>}, {pipeline_mode = #tpu.pipeline_mode<synchronous>, transform_indices = @transform_9, window_bounds = array<i64: 3, 8, 72>}, {pipeline_mode = #tpu.pipeline_mode<synchronous>, transform_indices = @transform_10, window_bounds = array<i64: 8, 1>}, {pipeline_mode = #tpu.pipeline_mode<synchronous>, transform_indices = @transform_11, window_bounds = array<i64: 3, 32, 96>}, {pipeline_mode = #tpu.pipeline_mode<synchronous>, transform_indices = @transform_12, window_bounds = array<i64: 32, 1>}, {pipeline_mode = #tpu.pipeline_mode<synchronous>, transform_indices = @transform_13, window_bounds = array<i64: 16, 1>}, {pipeline_mode = #tpu.pipeline_mode<synchronous>, transform_indices = @transform_14, window_bounds = array<i64: 16, 1>}, {pipeline_mode = #tpu.pipeline_mode<synchronous>, transform_indices = @transform_15, window_bounds = array<i64: 24, 1>}, {pipeline_mode = #tpu.pipeline_mode<synchronous>, transform_indices = @transform_16, window_bounds = array<i64: 24, 1>}, {pipeline_mode = #tpu.pipeline_mode<synchronous>, transform_indices = @transform_17, window_bounds = array<i64: 32, 1>}, {pipeline_mode = #tpu.pipeline_mode<synchronous>, transform_indices = @transform_18, window_bounds = array<i64: 32, 1>}, {transform_indices = @transform_19, window_bounds = array<i64: 32, 128>}]} {
    %c0 = arith.constant 0 : index
    %c0_0 = arith.constant 0 : index
    %0 = vector.load %arg2[%c0, %c0_0] : memref<1x384xi32, #tpu.memory_space<vmem>>, vector<1x384xi32>
    %c8_i32 = arith.constant 8 : i32
    %1 = arith.muli %arg0, %c8_i32 : i32
    %2 = vector.broadcast %1 : i32 to vector<1x384xi32>
    %3 = arith.addi %0, %2 : vector<1x384xi32>
    %c0_1 = arith.constant 0 : index
    %c0_2 = arith.constant 0 : index
    %4 = vector.load %arg3[%c0_1, %c0_2] : memref<1x384xf32, #tpu.memory_space<vmem>>, vector<1x384xf32>
    %c5_i32 = arith.constant 5 : i32
    %5 = vector.broadcast %c5_i32 : i32 to vector<1x384xi32>
    %6 = arith.cmpi sge, %3, %5 : vector<1x384xi32>
    %c21_i32 = arith.constant 21 : i32
    %7 = vector.broadcast %c21_i32 : i32 to vector<1x384xi32>
    %8 = arith.cmpi slt, %3, %7 : vector<1x384xi32>
    %9 = arith.andi %6, %8 : vector<1x384xi1>
    %10 = arith.extui %9 : vector<1x384xi1> to vector<1x384xi32>
    %11 = arith.sitofp %10 : vector<1x384xi32> to vector<1x384xf32>
    %12 = arith.mulf %4, %11 : vector<1x384xf32>
    %c0_3 = arith.constant 0 : index
    %c0_4 = arith.constant 0 : index
    %c0_5 = arith.constant 0 : index
    %13 = vector.load %arg1[%c0_3, %c0_4, %c0_5] : memref<1x16x384xf32, #tpu.memory_space<vmem>>, vector<1x16x384xf32>
    %14 = vector.shape_cast %13 : vector<1x16x384xf32> to vector<16x384xf32>
    %c18_i32 = arith.constant 18 : i32
    %15 = tpu.dynamic_rotate %14 by %c18_i32 dim 1 : vector<16x384xf32>, i32 -> vector<16x384xf32>
    %c1_i32 = arith.constant 1 : i32
    %16 = tpu.dynamic_rotate %15 by %c1_i32 dim 1 : vector<16x384xf32>, i32 -> vector<16x384xf32>
    %c383_i32 = arith.constant 383 : i32
    %17 = tpu.dynamic_rotate %15 by %c383_i32 dim 1 : vector<16x384xf32>, i32 -> vector<16x384xf32>
    %18 = tpu.concatenate %16, %15, %17 in 0 : vector<16x384xf32>, vector<16x384xf32>, vector<16x384xf32> -> vector<48x384xf32>
    %c0_6 = arith.constant 0 : index
    %c0_7 = arith.constant 0 : index
    %c0_8 = arith.constant 0 : index
    %19 = vector.load %arg4[%c0_6, %c0_7, %c0_8] : memref<3x8x48xf32, #tpu.memory_space<vmem>>, vector<1x8x48xf32>
    %20 = vector.shape_cast %19 : vector<1x8x48xf32> to vector<8x48xf32>
    %cst = arith.constant dense<0.000000e+00> : vector<8x384xf32>
    %21 = tpu.matmul %20, %18, %cst {dimension_numbers = #tpu.dot_dimension_numbers<[1], [0], [0], [1], [0, 0, 1, 1], [], []>} : vector<8x48xf32>, vector<48x384xf32>, vector<8x384xf32> -> vector<8x384xf32>
    %c1_i32_9 = arith.constant 1 : i32
    %22 = tpu.dynamic_rotate %14 by %c1_i32_9 dim 1 : vector<16x384xf32>, i32 -> vector<16x384xf32>
    %c383_i32_10 = arith.constant 383 : i32
    %23 = tpu.dynamic_rotate %14 by %c383_i32_10 dim 1 : vector<16x384xf32>, i32 -> vector<16x384xf32>
    %24 = tpu.concatenate %22, %14, %23 in 0 : vector<16x384xf32>, vector<16x384xf32>, vector<16x384xf32> -> vector<48x384xf32>
    %c1 = arith.constant 1 : index
    %c0_11 = arith.constant 0 : index
    %c0_12 = arith.constant 0 : index
    %25 = vector.load %arg4[%c1, %c0_11, %c0_12] : memref<3x8x48xf32, #tpu.memory_space<vmem>>, vector<1x8x48xf32>
    %26 = vector.shape_cast %25 : vector<1x8x48xf32> to vector<8x48xf32>
    %cst_13 = arith.constant dense<0.000000e+00> : vector<8x384xf32>
    %27 = tpu.matmul %26, %24, %cst_13 {dimension_numbers = #tpu.dot_dimension_numbers<[1], [0], [0], [1], [0, 0, 1, 1], [], []>} : vector<8x48xf32>, vector<48x384xf32>, vector<8x384xf32> -> vector<8x384xf32>
    %28 = arith.addf %21, %27 : vector<8x384xf32>
    %c366_i32 = arith.constant 366 : i32
    %29 = tpu.dynamic_rotate %14 by %c366_i32 dim 1 : vector<16x384xf32>, i32 -> vector<16x384xf32>
    %c1_i32_14 = arith.constant 1 : i32
    %30 = tpu.dynamic_rotate %29 by %c1_i32_14 dim 1 : vector<16x384xf32>, i32 -> vector<16x384xf32>
    %c383_i32_15 = arith.constant 383 : i32
    %31 = tpu.dynamic_rotate %29 by %c383_i32_15 dim 1 : vector<16x384xf32>, i32 -> vector<16x384xf32>
    %32 = tpu.concatenate %30, %29, %31 in 0 : vector<16x384xf32>, vector<16x384xf32>, vector<16x384xf32> -> vector<48x384xf32>
    %c2 = arith.constant 2 : index
    %c0_16 = arith.constant 0 : index
    %c0_17 = arith.constant 0 : index
    %33 = vector.load %arg4[%c2, %c0_16, %c0_17] : memref<3x8x48xf32, #tpu.memory_space<vmem>>, vector<1x8x48xf32>
    %34 = vector.shape_cast %33 : vector<1x8x48xf32> to vector<8x48xf32>
    %cst_18 = arith.constant dense<0.000000e+00> : vector<8x384xf32>
    %35 = tpu.matmul %34, %32, %cst_18 {dimension_numbers = #tpu.dot_dimension_numbers<[1], [0], [0], [1], [0, 0, 1, 1], [], []>} : vector<8x48xf32>, vector<48x384xf32>, vector<8x384xf32> -> vector<8x384xf32>
    %36 = arith.addf %28, %35 : vector<8x384xf32>
    %c0_19 = arith.constant 0 : index
    %c0_20 = arith.constant 0 : index
    %37 = vector.load %arg5[%c0_19, %c0_20] : memref<8x1xf32, #tpu.memory_space<vmem>>, vector<8x1xf32>
    %38 = vector.broadcast %37 : vector<8x1xf32> to vector<8x384xf32>
    %39 = arith.addf %36, %38 : vector<8x384xf32>
    %40 = vector.broadcast %12 : vector<1x384xf32> to vector<8x384xf32>
    %41 = arith.mulf %39, %40 : vector<8x384xf32>
    %c18_i32_21 = arith.constant 18 : i32
    %42 = tpu.dynamic_rotate %41 by %c18_i32_21 dim 1 : vector<8x384xf32>, i32 -> vector<8x384xf32>
    %c1_i32_22 = arith.constant 1 : i32
    %43 = tpu.dynamic_rotate %42 by %c1_i32_22 dim 1 : vector<8x384xf32>, i32 -> vector<8x384xf32>
    %c383_i32_23 = arith.constant 383 : i32
    %44 = tpu.dynamic_rotate %42 by %c383_i32_23 dim 1 : vector<8x384xf32>, i32 -> vector<8x384xf32>
    %45 = tpu.concatenate %43, %42, %44 in 0 : vector<8x384xf32>, vector<8x384xf32>, vector<8x384xf32> -> vector<24x384xf32>
    %c0_24 = arith.constant 0 : index
    %c0_25 = arith.constant 0 : index
    %c0_26 = arith.constant 0 : index
    %46 = vector.load %arg6[%c0_24, %c0_25, %c0_26] : memref<3x8x24xf32, #tpu.memory_space<vmem>>, vector<1x8x24xf32>
    %47 = vector.shape_cast %46 : vector<1x8x24xf32> to vector<8x24xf32>
    %cst_27 = arith.constant dense<0.000000e+00> : vector<8x384xf32>
    %48 = tpu.matmul %47, %45, %cst_27 {dimension_numbers = #tpu.dot_dimension_numbers<[1], [0], [0], [1], [0, 0, 1, 1], [], []>} : vector<8x24xf32>, vector<24x384xf32>, vector<8x384xf32> -> vector<8x384xf32>
    %c1_i32_28 = arith.constant 1 : i32
    %49 = tpu.dynamic_rotate %41 by %c1_i32_28 dim 1 : vector<8x384xf32>, i32 -> vector<8x384xf32>
    %c383_i32_29 = arith.constant 383 : i32
    %50 = tpu.dynamic_rotate %41 by %c383_i32_29 dim 1 : vector<8x384xf32>, i32 -> vector<8x384xf32>
    %51 = tpu.concatenate %49, %41, %50 in 0 : vector<8x384xf32>, vector<8x384xf32>, vector<8x384xf32> -> vector<24x384xf32>
    %c1_30 = arith.constant 1 : index
    %c0_31 = arith.constant 0 : index
    %c0_32 = arith.constant 0 : index
    %52 = vector.load %arg6[%c1_30, %c0_31, %c0_32] : memref<3x8x24xf32, #tpu.memory_space<vmem>>, vector<1x8x24xf32>
    %53 = vector.shape_cast %52 : vector<1x8x24xf32> to vector<8x24xf32>
    %cst_33 = arith.constant dense<0.000000e+00> : vector<8x384xf32>
    %54 = tpu.matmul %53, %51, %cst_33 {dimension_numbers = #tpu.dot_dimension_numbers<[1], [0], [0], [1], [0, 0, 1, 1], [], []>} : vector<8x24xf32>, vector<24x384xf32>, vector<8x384xf32> -> vector<8x384xf32>
    %55 = arith.addf %48, %54 : vector<8x384xf32>
    %c366_i32_34 = arith.constant 366 : i32
    %56 = tpu.dynamic_rotate %41 by %c366_i32_34 dim 1 : vector<8x384xf32>, i32 -> vector<8x384xf32>
    %c1_i32_35 = arith.constant 1 : i32
    %57 = tpu.dynamic_rotate %56 by %c1_i32_35 dim 1 : vector<8x384xf32>, i32 -> vector<8x384xf32>
    %c383_i32_36 = arith.constant 383 : i32
    %58 = tpu.dynamic_rotate %56 by %c383_i32_36 dim 1 : vector<8x384xf32>, i32 -> vector<8x384xf32>
    %59 = tpu.concatenate %57, %56, %58 in 0 : vector<8x384xf32>, vector<8x384xf32>, vector<8x384xf32> -> vector<24x384xf32>
    %c2_37 = arith.constant 2 : index
    %c0_38 = arith.constant 0 : index
    %c0_39 = arith.constant 0 : index
    %60 = vector.load %arg6[%c2_37, %c0_38, %c0_39] : memref<3x8x24xf32, #tpu.memory_space<vmem>>, vector<1x8x24xf32>
    %61 = vector.shape_cast %60 : vector<1x8x24xf32> to vector<8x24xf32>
    %cst_40 = arith.constant dense<0.000000e+00> : vector<8x384xf32>
    %62 = tpu.matmul %61, %59, %cst_40 {dimension_numbers = #tpu.dot_dimension_numbers<[1], [0], [0], [1], [0, 0, 1, 1], [], []>} : vector<8x24xf32>, vector<24x384xf32>, vector<8x384xf32> -> vector<8x384xf32>
    %63 = arith.addf %55, %62 : vector<8x384xf32>
    %c0_41 = arith.constant 0 : index
    %c0_42 = arith.constant 0 : index
    %64 = vector.load %arg7[%c0_41, %c0_42] : memref<8x1xf32, #tpu.memory_space<vmem>>, vector<8x1xf32>
    %65 = vector.broadcast %64 : vector<8x1xf32> to vector<8x384xf32>
    %66 = arith.addf %63, %65 : vector<8x384xf32>
    %67 = tpu.concatenate %39, %66 in 0 : vector<8x384xf32>, vector<8x384xf32> -> vector<16x384xf32>
    %c0_43 = arith.constant 0 : index
    %c0_44 = arith.constant 0 : index
    %68 = vector.load %arg14[%c0_43, %c0_44] : memref<16x1xf32, #tpu.memory_space<vmem>>, vector<16x1xf32>
    %69 = vector.broadcast %68 : vector<16x1xf32> to vector<16x384xf32>
    %70 = arith.mulf %67, %69 : vector<16x384xf32>
    %c0_45 = arith.constant 0 : index
    %c0_46 = arith.constant 0 : index
    %71 = vector.load %arg15[%c0_45, %c0_46] : memref<16x1xf32, #tpu.memory_space<vmem>>, vector<16x1xf32>
    %72 = vector.broadcast %71 : vector<16x1xf32> to vector<16x384xf32>
    %73 = arith.addf %70, %72 : vector<16x384xf32>
    %cst_47 = arith.constant 0.000000e+00 : f32
    %74 = vector.broadcast %cst_47 : f32 to vector<16x384xf32>
    %75 = arith.maximumf %73, %74 : vector<16x384xf32>
    %76 = vector.broadcast %12 : vector<1x384xf32> to vector<16x384xf32>
    %77 = arith.mulf %75, %76 : vector<16x384xf32>
    %c18_i32_48 = arith.constant 18 : i32
    %78 = tpu.dynamic_rotate %77 by %c18_i32_48 dim 1 : vector<16x384xf32>, i32 -> vector<16x384xf32>
    %c1_i32_49 = arith.constant 1 : i32
    %79 = tpu.dynamic_rotate %78 by %c1_i32_49 dim 1 : vector<16x384xf32>, i32 -> vector<16x384xf32>
    %c383_i32_50 = arith.constant 383 : i32
    %80 = tpu.dynamic_rotate %78 by %c383_i32_50 dim 1 : vector<16x384xf32>, i32 -> vector<16x384xf32>
    %81 = tpu.concatenate %79, %78, %80 in 0 : vector<16x384xf32>, vector<16x384xf32>, vector<16x384xf32> -> vector<48x384xf32>
    %c0_51 = arith.constant 0 : index
    %c0_52 = arith.constant 0 : index
    %c0_53 = arith.constant 0 : index
    %82 = vector.load %arg8[%c0_51, %c0_52, %c0_53] : memref<3x8x48xf32, #tpu.memory_space<vmem>>, vector<1x8x48xf32>
    %83 = vector.shape_cast %82 : vector<1x8x48xf32> to vector<8x48xf32>
    %cst_54 = arith.constant dense<0.000000e+00> : vector<8x384xf32>
    %84 = tpu.matmul %83, %81, %cst_54 {dimension_numbers = #tpu.dot_dimension_numbers<[1], [0], [0], [1], [0, 0, 1, 1], [], []>} : vector<8x48xf32>, vector<48x384xf32>, vector<8x384xf32> -> vector<8x384xf32>
    %c1_i32_55 = arith.constant 1 : i32
    %85 = tpu.dynamic_rotate %77 by %c1_i32_55 dim 1 : vector<16x384xf32>, i32 -> vector<16x384xf32>
    %c383_i32_56 = arith.constant 383 : i32
    %86 = tpu.dynamic_rotate %77 by %c383_i32_56 dim 1 : vector<16x384xf32>, i32 -> vector<16x384xf32>
    %87 = tpu.concatenate %85, %77, %86 in 0 : vector<16x384xf32>, vector<16x384xf32>, vector<16x384xf32> -> vector<48x384xf32>
    %c1_57 = arith.constant 1 : index
    %c0_58 = arith.constant 0 : index
    %c0_59 = arith.constant 0 : index
    %88 = vector.load %arg8[%c1_57, %c0_58, %c0_59] : memref<3x8x48xf32, #tpu.memory_space<vmem>>, vector<1x8x48xf32>
    %89 = vector.shape_cast %88 : vector<1x8x48xf32> to vector<8x48xf32>
    %cst_60 = arith.constant dense<0.000000e+00> : vector<8x384xf32>
    %90 = tpu.matmul %89, %87, %cst_60 {dimension_numbers = #tpu.dot_dimension_numbers<[1], [0], [0], [1], [0, 0, 1, 1], [], []>} : vector<8x48xf32>, vector<48x384xf32>, vector<8x384xf32> -> vector<8x384xf32>
    %91 = arith.addf %84, %90 : vector<8x384xf32>
    %c366_i32_61 = arith.constant 366 : i32
    %92 = tpu.dynamic_rotate %77 by %c366_i32_61 dim 1 : vector<16x384xf32>, i32 -> vector<16x384xf32>
    %c1_i32_62 = arith.constant 1 : i32
    %93 = tpu.dynamic_rotate %92 by %c1_i32_62 dim 1 : vector<16x384xf32>, i32 -> vector<16x384xf32>
    %c383_i32_63 = arith.constant 383 : i32
    %94 = tpu.dynamic_rotate %92 by %c383_i32_63 dim 1 : vector<16x384xf32>, i32 -> vector<16x384xf32>
    %95 = tpu.concatenate %93, %92, %94 in 0 : vector<16x384xf32>, vector<16x384xf32>, vector<16x384xf32> -> vector<48x384xf32>
    %c2_64 = arith.constant 2 : index
    %c0_65 = arith.constant 0 : index
    %c0_66 = arith.constant 0 : index
    %96 = vector.load %arg8[%c2_64, %c0_65, %c0_66] : memref<3x8x48xf32, #tpu.memory_space<vmem>>, vector<1x8x48xf32>
    %97 = vector.shape_cast %96 : vector<1x8x48xf32> to vector<8x48xf32>
    %cst_67 = arith.constant dense<0.000000e+00> : vector<8x384xf32>
    %98 = tpu.matmul %97, %95, %cst_67 {dimension_numbers = #tpu.dot_dimension_numbers<[1], [0], [0], [1], [0, 0, 1, 1], [], []>} : vector<8x48xf32>, vector<48x384xf32>, vector<8x384xf32> -> vector<8x384xf32>
    %99 = arith.addf %91, %98 : vector<8x384xf32>
    %c0_68 = arith.constant 0 : index
    %c0_69 = arith.constant 0 : index
    %100 = vector.load %arg9[%c0_68, %c0_69] : memref<8x1xf32, #tpu.memory_space<vmem>>, vector<8x1xf32>
    %101 = vector.broadcast %100 : vector<8x1xf32> to vector<8x384xf32>
    %102 = arith.addf %99, %101 : vector<8x384xf32>
    %103 = tpu.concatenate %39, %66, %102 in 0 : vector<8x384xf32>, vector<8x384xf32>, vector<8x384xf32> -> vector<24x384xf32>
    %c0_70 = arith.constant 0 : index
    %c0_71 = arith.constant 0 : index
    %104 = vector.load %arg16[%c0_70, %c0_71] : memref<24x1xf32, #tpu.memory_space<vmem>>, vector<24x1xf32>
    %105 = vector.broadcast %104 : vector<24x1xf32> to vector<24x384xf32>
    %106 = arith.mulf %103, %105 : vector<24x384xf32>
    %c0_72 = arith.constant 0 : index
    %c0_73 = arith.constant 0 : index
    %107 = vector.load %arg17[%c0_72, %c0_73] : memref<24x1xf32, #tpu.memory_space<vmem>>, vector<24x1xf32>
    %108 = vector.broadcast %107 : vector<24x1xf32> to vector<24x384xf32>
    %109 = arith.addf %106, %108 : vector<24x384xf32>
    %cst_74 = arith.constant 0.000000e+00 : f32
    %110 = vector.broadcast %cst_74 : f32 to vector<24x384xf32>
    %111 = arith.maximumf %109, %110 : vector<24x384xf32>
    %112 = vector.broadcast %12 : vector<1x384xf32> to vector<24x384xf32>
    %113 = arith.mulf %111, %112 : vector<24x384xf32>
    %c18_i32_75 = arith.constant 18 : i32
    %114 = tpu.dynamic_rotate %113 by %c18_i32_75 dim 1 : vector<24x384xf32>, i32 -> vector<24x384xf32>
    %c1_i32_76 = arith.constant 1 : i32
    %115 = tpu.dynamic_rotate %114 by %c1_i32_76 dim 1 : vector<24x384xf32>, i32 -> vector<24x384xf32>
    %c383_i32_77 = arith.constant 383 : i32
    %116 = tpu.dynamic_rotate %114 by %c383_i32_77 dim 1 : vector<24x384xf32>, i32 -> vector<24x384xf32>
    %117 = tpu.concatenate %115, %114, %116 in 0 : vector<24x384xf32>, vector<24x384xf32>, vector<24x384xf32> -> vector<72x384xf32>
    %c0_78 = arith.constant 0 : index
    %c0_79 = arith.constant 0 : index
    %c0_80 = arith.constant 0 : index
    %118 = vector.load %arg10[%c0_78, %c0_79, %c0_80] : memref<3x8x72xf32, #tpu.memory_space<vmem>>, vector<1x8x72xf32>
    %119 = vector.shape_cast %118 : vector<1x8x72xf32> to vector<8x72xf32>
    %cst_81 = arith.constant dense<0.000000e+00> : vector<8x384xf32>
    %120 = tpu.matmul %119, %117, %cst_81 {dimension_numbers = #tpu.dot_dimension_numbers<[1], [0], [0], [1], [0, 0, 1, 1], [], []>} : vector<8x72xf32>, vector<72x384xf32>, vector<8x384xf32> -> vector<8x384xf32>
    %c1_i32_82 = arith.constant 1 : i32
    %121 = tpu.dynamic_rotate %113 by %c1_i32_82 dim 1 : vector<24x384xf32>, i32 -> vector<24x384xf32>
    %c383_i32_83 = arith.constant 383 : i32
    %122 = tpu.dynamic_rotate %113 by %c383_i32_83 dim 1 : vector<24x384xf32>, i32 -> vector<24x384xf32>
    %123 = tpu.concatenate %121, %113, %122 in 0 : vector<24x384xf32>, vector<24x384xf32>, vector<24x384xf32> -> vector<72x384xf32>
    %c1_84 = arith.constant 1 : index
    %c0_85 = arith.constant 0 : index
    %c0_86 = arith.constant 0 : index
    %124 = vector.load %arg10[%c1_84, %c0_85, %c0_86] : memref<3x8x72xf32, #tpu.memory_space<vmem>>, vector<1x8x72xf32>
    %125 = vector.shape_cast %124 : vector<1x8x72xf32> to vector<8x72xf32>
    %cst_87 = arith.constant dense<0.000000e+00> : vector<8x384xf32>
    %126 = tpu.matmul %125, %123, %cst_87 {dimension_numbers = #tpu.dot_dimension_numbers<[1], [0], [0], [1], [0, 0, 1, 1], [], []>} : vector<8x72xf32>, vector<72x384xf32>, vector<8x384xf32> -> vector<8x384xf32>
    %127 = arith.addf %120, %126 : vector<8x384xf32>
    %c366_i32_88 = arith.constant 366 : i32
    %128 = tpu.dynamic_rotate %113 by %c366_i32_88 dim 1 : vector<24x384xf32>, i32 -> vector<24x384xf32>
    %c1_i32_89 = arith.constant 1 : i32
    %129 = tpu.dynamic_rotate %128 by %c1_i32_89 dim 1 : vector<24x384xf32>, i32 -> vector<24x384xf32>
    %c383_i32_90 = arith.constant 383 : i32
    %130 = tpu.dynamic_rotate %128 by %c383_i32_90 dim 1 : vector<24x384xf32>, i32 -> vector<24x384xf32>
    %131 = tpu.concatenate %129, %128, %130 in 0 : vector<24x384xf32>, vector<24x384xf32>, vector<24x384xf32> -> vector<72x384xf32>
    %c2_91 = arith.constant 2 : index
    %c0_92 = arith.constant 0 : index
    %c0_93 = arith.constant 0 : index
    %132 = vector.load %arg10[%c2_91, %c0_92, %c0_93] : memref<3x8x72xf32, #tpu.memory_space<vmem>>, vector<1x8x72xf32>
    %133 = vector.shape_cast %132 : vector<1x8x72xf32> to vector<8x72xf32>
    %cst_94 = arith.constant dense<0.000000e+00> : vector<8x384xf32>
    %134 = tpu.matmul %133, %131, %cst_94 {dimension_numbers = #tpu.dot_dimension_numbers<[1], [0], [0], [1], [0, 0, 1, 1], [], []>} : vector<8x72xf32>, vector<72x384xf32>, vector<8x384xf32> -> vector<8x384xf32>
    %135 = arith.addf %127, %134 : vector<8x384xf32>
    %c0_95 = arith.constant 0 : index
    %c0_96 = arith.constant 0 : index
    %136 = vector.load %arg11[%c0_95, %c0_96] : memref<8x1xf32, #tpu.memory_space<vmem>>, vector<8x1xf32>
    %137 = vector.broadcast %136 : vector<8x1xf32> to vector<8x384xf32>
    %138 = arith.addf %135, %137 : vector<8x384xf32>
    %139 = tpu.concatenate %39, %66, %102, %138 in 0 : vector<8x384xf32>, vector<8x384xf32>, vector<8x384xf32>, vector<8x384xf32> -> vector<32x384xf32>
    %c0_97 = arith.constant 0 : index
    %c0_98 = arith.constant 0 : index
    %140 = vector.load %arg18[%c0_97, %c0_98] : memref<32x1xf32, #tpu.memory_space<vmem>>, vector<32x1xf32>
    %141 = vector.broadcast %140 : vector<32x1xf32> to vector<32x384xf32>
    %142 = arith.mulf %139, %141 : vector<32x384xf32>
    %c0_99 = arith.constant 0 : index
    %c0_100 = arith.constant 0 : index
    %143 = vector.load %arg19[%c0_99, %c0_100] : memref<32x1xf32, #tpu.memory_space<vmem>>, vector<32x1xf32>
    %144 = vector.broadcast %143 : vector<32x1xf32> to vector<32x384xf32>
    %145 = arith.addf %142, %144 : vector<32x384xf32>
    %cst_101 = arith.constant 0.000000e+00 : f32
    %146 = vector.broadcast %cst_101 : f32 to vector<32x384xf32>
    %147 = arith.maximumf %145, %146 : vector<32x384xf32>
    %148 = vector.broadcast %12 : vector<1x384xf32> to vector<32x384xf32>
    %149 = arith.mulf %147, %148 : vector<32x384xf32>
    %c18_i32_102 = arith.constant 18 : i32
    %150 = tpu.dynamic_rotate %149 by %c18_i32_102 dim 1 : vector<32x384xf32>, i32 -> vector<32x384xf32>
    %c1_i32_103 = arith.constant 1 : i32
    %151 = tpu.dynamic_rotate %150 by %c1_i32_103 dim 1 : vector<32x384xf32>, i32 -> vector<32x384xf32>
    %c383_i32_104 = arith.constant 383 : i32
    %152 = tpu.dynamic_rotate %150 by %c383_i32_104 dim 1 : vector<32x384xf32>, i32 -> vector<32x384xf32>
    %153 = tpu.concatenate %151, %150, %152 in 0 : vector<32x384xf32>, vector<32x384xf32>, vector<32x384xf32> -> vector<96x384xf32>
    %c0_105 = arith.constant 0 : index
    %c0_106 = arith.constant 0 : index
    %c0_107 = arith.constant 0 : index
    %154 = vector.load %arg12[%c0_105, %c0_106, %c0_107] : memref<3x32x96xf32, #tpu.memory_space<vmem>>, vector<1x32x96xf32>
    %155 = vector.shape_cast %154 : vector<1x32x96xf32> to vector<32x96xf32>
    %cst_108 = arith.constant dense<0.000000e+00> : vector<32x384xf32>
    %156 = tpu.matmul %155, %153, %cst_108 {dimension_numbers = #tpu.dot_dimension_numbers<[1], [0], [0], [1], [0, 0, 1, 1], [], []>} : vector<32x96xf32>, vector<96x384xf32>, vector<32x384xf32> -> vector<32x384xf32>
    %c1_i32_109 = arith.constant 1 : i32
    %157 = tpu.dynamic_rotate %149 by %c1_i32_109 dim 1 : vector<32x384xf32>, i32 -> vector<32x384xf32>
    %c383_i32_110 = arith.constant 383 : i32
    %158 = tpu.dynamic_rotate %149 by %c383_i32_110 dim 1 : vector<32x384xf32>, i32 -> vector<32x384xf32>
    %159 = tpu.concatenate %157, %149, %158 in 0 : vector<32x384xf32>, vector<32x384xf32>, vector<32x384xf32> -> vector<96x384xf32>
    %c1_111 = arith.constant 1 : index
    %c0_112 = arith.constant 0 : index
    %c0_113 = arith.constant 0 : index
    %160 = vector.load %arg12[%c1_111, %c0_112, %c0_113] : memref<3x32x96xf32, #tpu.memory_space<vmem>>, vector<1x32x96xf32>
    %161 = vector.shape_cast %160 : vector<1x32x96xf32> to vector<32x96xf32>
    %cst_114 = arith.constant dense<0.000000e+00> : vector<32x384xf32>
    %162 = tpu.matmul %161, %159, %cst_114 {dimension_numbers = #tpu.dot_dimension_numbers<[1], [0], [0], [1], [0, 0, 1, 1], [], []>} : vector<32x96xf32>, vector<96x384xf32>, vector<32x384xf32> -> vector<32x384xf32>
    %163 = arith.addf %156, %162 : vector<32x384xf32>
    %c366_i32_115 = arith.constant 366 : i32
    %164 = tpu.dynamic_rotate %149 by %c366_i32_115 dim 1 : vector<32x384xf32>, i32 -> vector<32x384xf32>
    %c1_i32_116 = arith.constant 1 : i32
    %165 = tpu.dynamic_rotate %164 by %c1_i32_116 dim 1 : vector<32x384xf32>, i32 -> vector<32x384xf32>
    %c383_i32_117 = arith.constant 383 : i32
    %166 = tpu.dynamic_rotate %164 by %c383_i32_117 dim 1 : vector<32x384xf32>, i32 -> vector<32x384xf32>
    %167 = tpu.concatenate %165, %164, %166 in 0 : vector<32x384xf32>, vector<32x384xf32>, vector<32x384xf32> -> vector<96x384xf32>
    %c2_118 = arith.constant 2 : index
    %c0_119 = arith.constant 0 : index
    %c0_120 = arith.constant 0 : index
    %168 = vector.load %arg12[%c2_118, %c0_119, %c0_120] : memref<3x32x96xf32, #tpu.memory_space<vmem>>, vector<1x32x96xf32>
    %169 = vector.shape_cast %168 : vector<1x32x96xf32> to vector<32x96xf32>
    %cst_121 = arith.constant dense<0.000000e+00> : vector<32x384xf32>
    %170 = tpu.matmul %169, %167, %cst_121 {dimension_numbers = #tpu.dot_dimension_numbers<[1], [0], [0], [1], [0, 0, 1, 1], [], []>} : vector<32x96xf32>, vector<96x384xf32>, vector<32x384xf32> -> vector<32x384xf32>
    %171 = arith.addf %163, %170 : vector<32x384xf32>
    %c0_122 = arith.constant 0 : index
    %c0_123 = arith.constant 0 : index
    %172 = vector.load %arg13[%c0_122, %c0_123] : memref<32x1xf32, #tpu.memory_space<vmem>>, vector<32x1xf32>
    %173 = vector.broadcast %172 : vector<32x1xf32> to vector<32x384xf32>
    %174 = arith.addf %171, %173 : vector<32x384xf32>
    %175 = vector.extract_strided_slice %174 {offsets = [0, 91], sizes = [32, 16], strides = [1, 1]} : vector<32x384xf32> to vector<32x16xf32>
    %c0_124 = arith.constant 0 : index
    %c0_125 = arith.constant 0 : index
    %176 = vector.load %arg20[%c0_124, %c0_125] : memref<32x128xf32, #tpu.memory_space<vmem>>, vector<32x16xf32>
    tpu.vector_store %arg20[%c0_124, %c0_125], %175 {strides = array<i32>} : memref<32x128xf32, #tpu.memory_space<vmem>>, vector<32x16xf32>,
    %177 = vector.extract_strided_slice %174 {offsets = [0, 109], sizes = [32, 16], strides = [1, 1]} : vector<32x384xf32> to vector<32x16xf32>
    %c0_126 = arith.constant 0 : index
    %c16 = arith.constant 16 : index
    %178 = vector.load %arg20[%c0_126, %c16] : memref<32x128xf32, #tpu.memory_space<vmem>>, vector<32x16xf32>
    tpu.vector_store %arg20[%c0_126, %c16], %177 {strides = array<i32>} : memref<32x128xf32, #tpu.memory_space<vmem>>, vector<32x16xf32>,
    %179 = vector.extract_strided_slice %174 {offsets = [0, 127], sizes = [32, 16], strides = [1, 1]} : vector<32x384xf32> to vector<32x16xf32>
    %c0_127 = arith.constant 0 : index
    %c32 = arith.constant 32 : index
    %180 = vector.load %arg20[%c0_127, %c32] : memref<32x128xf32, #tpu.memory_space<vmem>>, vector<32x16xf32>
    tpu.vector_store %arg20[%c0_127, %c32], %179 {strides = array<i32>} : memref<32x128xf32, #tpu.memory_space<vmem>>, vector<32x16xf32>,
    %181 = vector.extract_strided_slice %174 {offsets = [0, 145], sizes = [32, 16], strides = [1, 1]} : vector<32x384xf32> to vector<32x16xf32>
    %c0_128 = arith.constant 0 : index
    %c48 = arith.constant 48 : index
    %182 = vector.load %arg20[%c0_128, %c48] : memref<32x128xf32, #tpu.memory_space<vmem>>, vector<32x16xf32>
    tpu.vector_store %arg20[%c0_128, %c48], %181 {strides = array<i32>} : memref<32x128xf32, #tpu.memory_space<vmem>>, vector<32x16xf32>,
    %183 = vector.extract_strided_slice %174 {offsets = [0, 163], sizes = [32, 16], strides = [1, 1]} : vector<32x384xf32> to vector<32x16xf32>
    %c0_129 = arith.constant 0 : index
    %c64 = arith.constant 64 : index
    %184 = vector.load %arg20[%c0_129, %c64] : memref<32x128xf32, #tpu.memory_space<vmem>>, vector<32x16xf32>
    tpu.vector_store %arg20[%c0_129, %c64], %183 {strides = array<i32>} : memref<32x128xf32, #tpu.memory_space<vmem>>, vector<32x16xf32>,
    %185 = vector.extract_strided_slice %174 {offsets = [0, 181], sizes = [32, 16], strides = [1, 1]} : vector<32x384xf32> to vector<32x16xf32>
    %c0_130 = arith.constant 0 : index
    %c80 = arith.constant 80 : index
    %186 = vector.load %arg20[%c0_130, %c80] : memref<32x128xf32, #tpu.memory_space<vmem>>, vector<32x16xf32>
    tpu.vector_store %arg20[%c0_130, %c80], %185 {strides = array<i32>} : memref<32x128xf32, #tpu.memory_space<vmem>>, vector<32x16xf32>,
    %187 = vector.extract_strided_slice %174 {offsets = [0, 199], sizes = [32, 16], strides = [1, 1]} : vector<32x384xf32> to vector<32x16xf32>
    %c0_131 = arith.constant 0 : index
    %c96 = arith.constant 96 : index
    %188 = vector.load %arg20[%c0_131, %c96] : memref<32x128xf32, #tpu.memory_space<vmem>>, vector<32x16xf32>
    tpu.vector_store %arg20[%c0_131, %c96], %187 {strides = array<i32>} : memref<32x128xf32, #tpu.memory_space<vmem>>, vector<32x16xf32>,
    %189 = vector.extract_strided_slice %174 {offsets = [0, 217], sizes = [32, 16], strides = [1, 1]} : vector<32x384xf32> to vector<32x16xf32>
    %c0_132 = arith.constant 0 : index
    %c112 = arith.constant 112 : index
    %190 = vector.load %arg20[%c0_132, %c112] : memref<32x128xf32, #tpu.memory_space<vmem>>, vector<32x16xf32>
    tpu.vector_store %arg20[%c0_132, %c112], %189 {strides = array<i32>} : memref<32x128xf32, #tpu.memory_space<vmem>>, vector<32x16xf32>,
    return
  }
  func.func @transform_0(%arg0: i32) -> (i32, i32, i32) {
    %c0_i32 = arith.constant 0 : i32
    %c0_i32_0 = arith.constant 0 : i32
    %c0_i32_1 = arith.constant 0 : i32
    return %arg0, %c0_i32, %c0_i32_0 : i32, i32, i32
  }
  func.func @transform_1(%arg0: i32) -> (i32, i32) {
    %c0_i32 = arith.constant 0 : i32
    %c0_i32_0 = arith.constant 0 : i32
    %c0_i32_1 = arith.constant 0 : i32
    return %c0_i32, %c0_i32_0 : i32, i32
  }
  func.func @transform_2(%arg0: i32) -> (i32, i32) {
    %c0_i32 = arith.constant 0 : i32
    %c0_i32_0 = arith.constant 0 : i32
    %c0_i32_1 = arith.constant 0 : i32
    return %c0_i32, %c0_i32_0 : i32, i32
  }
  func.func @transform_3(%arg0: i32) -> (i32, i32, i32) {
    %c0_i32 = arith.constant 0 : i32
    %c0_i32_0 = arith.constant 0 : i32
    %c0_i32_1 = arith.constant 0 : i32
    %c0_i32_2 = arith.constant 0 : i32
    return %c0_i32, %c0_i32_0, %c0_i32_1 : i32, i32, i32
  }
  func.func @transform_4(%arg0: i32) -> (i32, i32) {
    %c0_i32 = arith.constant 0 : i32
    %c0_i32_0 = arith.constant 0 : i32
    %c0_i32_1 = arith.constant 0 : i32
    return %c0_i32, %c0_i32_0 : i32, i32
  }
  func.func @transform_5(%arg0: i32) -> (i32, i32, i32) {
    %c0_i32 = arith.constant 0 : i32
    %c0_i32_0 = arith.constant 0 : i32
    %c0_i32_1 = arith.constant 0 : i32
    %c0_i32_2 = arith.constant 0 : i32
    return %c0_i32, %c0_i32_0, %c0_i32_1 : i32, i32, i32
  }
  func.func @transform_6(%arg0: i32) -> (i32, i32) {
    %c0_i32 = arith.constant 0 : i32
    %c0_i32_0 = arith.constant 0 : i32
    %c0_i32_1 = arith.constant 0 : i32
    return %c0_i32, %c0_i32_0 : i32, i32
  }
  func.func @transform_7(%arg0: i32) -> (i32, i32, i32) {
    %c0_i32 = arith.constant 0 : i32
    %c0_i32_0 = arith.constant 0 : i32
    %c0_i32_1 = arith.constant 0 : i32
    %c0_i32_2 = arith.constant 0 : i32
    return %c0_i32, %c0_i32_0, %c0_i32_1 : i32, i32, i32
  }
  func.func @transform_8(%arg0: i32) -> (i32, i32) {
    %c0_i32 = arith.constant 0 : i32
    %c0_i32_0 = arith.constant 0 : i32
    %c0_i32_1 = arith.constant 0 : i32
    return %c0_i32, %c0_i32_0 : i32, i32
  }
  func.func @transform_9(%arg0: i32) -> (i32, i32, i32) {
    %c0_i32 = arith.constant 0 : i32
    %c0_i32_0 = arith.constant 0 : i32
    %c0_i32_1 = arith.constant 0 : i32
    %c0_i32_2 = arith.constant 0 : i32
    return %c0_i32, %c0_i32_0, %c0_i32_1 : i32, i32, i32
  }
  func.func @transform_10(%arg0: i32) -> (i32, i32) {
    %c0_i32 = arith.constant 0 : i32
    %c0_i32_0 = arith.constant 0 : i32
    %c0_i32_1 = arith.constant 0 : i32
    return %c0_i32, %c0_i32_0 : i32, i32
  }
  func.func @transform_11(%arg0: i32) -> (i32, i32, i32) {
    %c0_i32 = arith.constant 0 : i32
    %c0_i32_0 = arith.constant 0 : i32
    %c0_i32_1 = arith.constant 0 : i32
    %c0_i32_2 = arith.constant 0 : i32
    return %c0_i32, %c0_i32_0, %c0_i32_1 : i32, i32, i32
  }
  func.func @transform_12(%arg0: i32) -> (i32, i32) {
    %c0_i32 = arith.constant 0 : i32
    %c0_i32_0 = arith.constant 0 : i32
    %c0_i32_1 = arith.constant 0 : i32
    return %c0_i32, %c0_i32_0 : i32, i32
  }
  func.func @transform_13(%arg0: i32) -> (i32, i32) {
    %c0_i32 = arith.constant 0 : i32
    %c0_i32_0 = arith.constant 0 : i32
    %c0_i32_1 = arith.constant 0 : i32
    return %c0_i32, %c0_i32_0 : i32, i32
  }
  func.func @transform_14(%arg0: i32) -> (i32, i32) {
    %c0_i32 = arith.constant 0 : i32
    %c0_i32_0 = arith.constant 0 : i32
    %c0_i32_1 = arith.constant 0 : i32
    return %c0_i32, %c0_i32_0 : i32, i32
  }
  func.func @transform_15(%arg0: i32) -> (i32, i32) {
    %c0_i32 = arith.constant 0 : i32
    %c0_i32_0 = arith.constant 0 : i32
    %c0_i32_1 = arith.constant 0 : i32
    return %c0_i32, %c0_i32_0 : i32, i32
  }
  func.func @transform_16(%arg0: i32) -> (i32, i32) {
    %c0_i32 = arith.constant 0 : i32
    %c0_i32_0 = arith.constant 0 : i32
    %c0_i32_1 = arith.constant 0 : i32
    return %c0_i32, %c0_i32_0 : i32, i32
  }
  func.func @transform_17(%arg0: i32) -> (i32, i32) {
    %c0_i32 = arith.constant 0 : i32
    %c0_i32_0 = arith.constant 0 : i32
    %c0_i32_1 = arith.constant 0 : i32
    return %c0_i32, %c0_i32_0 : i32, i32
  }
  func.func @transform_18(%arg0: i32) -> (i32, i32) {
    %c0_i32 = arith.constant 0 : i32
    %c0_i32_0 = arith.constant 0 : i32
    %c0_i32_1 = arith.constant 0 : i32
    return %c0_i32, %c0_i32_0 : i32, i32
  }
  func.func @transform_19(%arg0: i32) -> (i32, i32) {
    %c0_i32 = arith.constant 0 : i32
    %c0_i32_0 = arith.constant 0 : i32
    return %c0_i32, %arg0 : i32, i32
  }
}

</mosaic_0001>

<bundles_post_ra>
// kernel: squeeze.3
= control target key start
LH: loop header
LB: loop body
LE: loop exit
PB: predicated region body
PF: predicated region fallthrough
CT: control target
= control target key end

     0   :  { %2 = vsyncpa [#allocation2], 0  ;;  %s946_s0 = inlined_call_operand.hbm [shape: f32[1,16,16,16], index: 0, kind: input, shape index: {}]   ;;  %s947_s1 = inlined_call_operand.hbm [shape: f32[16,256], index: 1, kind: output, shape index: {}]  }
   0x1   :  { %3 = vsyncpa [#allocation1], 0  ;;  %s775_s6 = smov [#allocation3]   ;;  %s727_s10 = scalar_lea.hbm %s946_s0, 4096 }
   0x2   :  { %s8_s7 = sshll.u32 %s775_s6, 4  ;;  %p728_p0 = scmp.ne.s32.totalorder %s946_s0, %s727_s10  ;;  %s9_s7 = int_to_ptr.vmem [resolvable:$true] %s8_s7 }
   0x3   :  { %p731_p1 = scmp.lt.u32.totalorder %s727_s10, %s946_s0 }
   0x5   :  { %p733_p2 = pnand %p731_p1, %p728_p0 }
   0x7   :  { %736 = shalt.err (!%p733_p2)
}
   0x8   :  { %s737_s15 = scalar_lea.vmem %s9_s7, 4096  ;;  %p742_p4 = scmp.lt.s32.totalorder %s9_s7, %s9_s7 }
   0x9   :  { %p738_p3 = scmp.ne.s32.totalorder %s9_s7, %s737_s15  ;;  %p743_p5 = scmp.lt.s32.totalorder %s737_s15, %s737_s15 }
   0xb   :  { %p744_p6 = por %p743_p5, %p742_p4 }
   0xd   :  { %p745_p7 = pnand %p744_p6, %p738_p3 }
   0xf   :  { %748 = shalt.err (!%p745_p7)
}
  0x10   :  { %11 = dma.hbm_to_vmem [thread:$0]  %s946_s0, 4096, %s9_s7, [#allocation1]  }
  0x11   :  { %771 = dma.done.wait [#allocation1], 4096  }
  0x12   :  { %772 = vsyncadd [#allocation1], 4294963200  ;;  %s116_s0 = smov 3  ;;  %s119_s18 = smov 12  ;;  %vm76_vm0 = vcmask 1043458   ;;  %vm81_vm1 = vcmask 1045508  }
  0x13   :  { %s124_s19 = smov 48  ;;  %s129_s20 = smov 192  ;;  %vm86_vm2 = vcmask 1047558   ;;  %v117_v0 = vld [vmem:[#allocation3 + $0x87] ss:$16 sm:%s116_s0]   ;;  %vm15_vm3 = vcmask 1047556  }
  0x14   :  { %s71_s21 = smov 3  ;;  %s74_s22 = smov 12  ;;  %v120_v1 = vld [vmem:[#allocation3 + $0x87] ss:$16 sm:%s119_s18]   ;;  %vm17_vm4 = vcmask 130048   ;;  %vm90_vm5 = vcmask 1048448  }
  0x15   :  { %s79_s23 = smov 48  ;;  %s84_s24 = smov 192  ;;  %v125_v2 = vld [vmem:[#allocation3 + $0x87] ss:$16 sm:%s124_s19]   ;;  %v122_v3 = vsel %vm76_vm0, %v120_v1, %v117_v0  ;;  %vm181_vm6 = vcmask 917248   ;;  %vm272_vm7 = vcmask 786048  }
  0x16   :  { %s139_s25 = smov 3  ;;  %s142_s26 = smov 12  ;;  %v130_v4 = vld [vmem:[#allocation3 + $0x87] ss:$16 sm:%s129_s20]   ;;  %v127_v7 = vsel %vm81_vm1, %v125_v2, %v122_v3  ;;  %vm363_vm8 = vcmask 654848   ;;  %vm454_vm9 = vcmask 523648  }
  0x17   :  { %s147_s27 = smov 48  ;;  %s152_s28 = smov 192  ;;  %v72_v5 = vld [vmem:[#allocation3 + $0x7] ss:$16 sm:%s71_s21]   ;;  %v140_v11 = vld [vmem:[#allocation3 + $0x8f] ss:$16 sm:%s139_s25]   ;;  %v132_v12 = vsel %vm86_vm2, %v130_v4, %v127_v7 }
  0x18   :  { %v75_v6 = vld [vmem:[#allocation3 + $0x7] ss:$16 sm:%s74_s22]   ;;  %v143_v14 = vld [vmem:[#allocation3 + $0x8f] ss:$16 sm:%s142_s26]   ;;  %s776_s29 = smov 112   ;;  %s93_s30 = smov 3 }
  0x19   :  { %v77_v8 = vsel %vm76_vm0, %v75_v6, %v72_v5  ;;  %v80_v9 = vld [vmem:[#allocation3 + $0x7] ss:$16 sm:%s79_s23]   ;;  %v148_v15 = vld [vmem:[#allocation3 + $0x8f] ss:$16 sm:%s147_s27]   ;;  %133 = vrot.lane.b32.xlu1 %v132_v12, %s776_s29  ;;  %v145_v18 = vsel %vm76_vm0, %v143_v14, %v140_v11  ;;  %s96_s2 = smov 12  ;;  %s101_s3 = smov 48 }
  0x1a   :  { %v85_v10 = vld [vmem:[#allocation3 + $0x7] ss:$16 sm:%s84_s24]   ;;  %v82_v13 = vsel %vm81_vm1, %v80_v9, %v77_v8  ;;  %v153_v16 = vld [vmem:[#allocation3 + $0x8f] ss:$16 sm:%s152_s28]   ;;  %v150_v19 = vsel %vm81_vm1, %v148_v15, %v145_v18  ;;  %s106_s4 = smov 192  ;;  %s184_s5 = smov 3 }
  0x1b   :  { %v87_v17 = vsel %vm86_vm2, %v85_v10, %v82_v13  ;;  %v94_v20 = vld [vmem:[#allocation3 + $0xf] ss:$16 sm:%s93_s30]   ;;  %v155_v22 = vsel %vm86_vm2, %v153_v16, %v150_v19  ;;  %v185_v27 = vld [vmem:[#allocation3 + $0xe] ss:$16 sm:%s184_s5]   ;;  %s187_s6 = smov 12  ;;  %s192_s7 = smov 48 }
  0x1c   :  { %88 = vrot.lane.b32.xlu0 %v87_v17, %s776_s29  ;;  %v97_v21 = vld [vmem:[#allocation3 + $0xf] ss:$16 sm:%s96_s2]   ;;  %v188_v29 = vld [vmem:[#allocation3 + $0xe] ss:$16 sm:%s187_s6]   ;;  %s197_s8 = smov 192  ;;  %s162_s9 = smov 3 }
  0x1d   :  { %v99_v23 = vsel %vm76_vm0, %v97_v21, %v94_v20  ;;  %v102_v24 = vld [vmem:[#allocation3 + $0xf] ss:$16 sm:%s101_s3]   ;;  %156 = vrot.lane.b32.xlu1 %v155_v22, %s776_s29  ;;  %v193_v30 = vld [vmem:[#allocation3 + $0xe] ss:$16 sm:%s192_s7]   ;;  %v190_v31 = vsel %vm76_vm0, %v188_v29, %v185_v27  ;;  %v163_v33 = vld [vmem:[#allocation3 + $0x6] ss:$16 sm:%s162_s9]  }
  0x1e   :  { %v107_v25 = vld [vmem:[#allocation3 + $0xf] ss:$16 sm:%s106_s4]   ;;  %v104_v26 = vsel %vm81_vm1, %v102_v24, %v99_v23  ;;  %v198_v32 = vld [vmem:[#allocation3 + $0xe] ss:$16 sm:%s197_s8]   ;;  %s165_s10 = smov 12  ;;  %s170_s11 = smov 48  ;;  %v195_v34 = vsel %vm81_vm1, %v193_v30, %v190_v31 }
  0x1f   :  { %v109_v28 = vsel %vm86_vm2, %v107_v25, %v104_v26  ;;  %v166_v35 = vld [vmem:[#allocation3 + $0x6] ss:$16 sm:%s165_s10]   ;;  %s175_s12 = smov 192  ;;  %s230_s13 = smov 3  ;;  %v200_v37 = vsel %vm86_vm2, %v198_v32, %v195_v34  ;;  %vm545_vm10 = vcmask 392448   ;;  %vm636_vm11 = vcmask 261248  }
  0x20   :  { %110 = vrot.lane.b32.xlu0 %v109_v28, %s776_s29  ;;  %v171_v36 = vld [vmem:[#allocation3 + $0x6] ss:$16 sm:%s170_s11]   ;;  %v168_v38 = vsel %vm76_vm0, %v166_v35, %v163_v33  ;;  %v231_v40 = vld [vmem:[#allocation3 + $0x8e] ss:$16 sm:%s230_s13]   ;;  %s233_s14 = smov 12  ;;  %s238_s15 = smov 48 }
  0x21   :  { %v176_v39 = vld [vmem:[#allocation3 + $0x6] ss:$16 sm:%s175_s12]   ;;  %s777_s16 = smov 96   ;;  %v173_v41 = vsel %vm81_vm1, %v171_v36, %v168_v38  ;;  %v234_v42 = vld [vmem:[#allocation3 + $0x8e] ss:$16 sm:%s233_s14]   ;;  %s243_s17 = smov 192 }
  0x22   :  { %201 = vrot.lane.b32.xlu1 %v200_v37, %s777_s16  ;;  %v239_v43 = vld [vmem:[#allocation3 + $0x8e] ss:$16 sm:%s238_s15]   ;;  %s207_s0 = smov 3  ;;  %v178_v44 = vsel %vm86_vm2, %v176_v39, %v173_v41  ;;  %v236_v45 = vsel %vm76_vm0, %v234_v42, %v231_v40  ;;  %s210_s18 = smov 12 }
  0x23   :  { %v244_v46 = vld [vmem:[#allocation3 + $0x8e] ss:$16 sm:%s243_s17]   ;;  %v208_v47 = vld [vmem:[#allocation3 + $0x86] ss:$16 sm:%s207_s0]   ;;  %s215_s19 = smov 48  ;;  %v241_v48 = vsel %vm81_vm1, %v239_v43, %v236_v45  ;;  %s220_s20 = smov 192 }
  0x24   :  { %179 = vrot.lane.b32.xlu0 %v178_v44, %s777_s16  ;;  %v211_v49 = vld [vmem:[#allocation3 + $0x86] ss:$16 sm:%s210_s18]   ;;  %v246_v51 = vsel %vm86_vm2, %v244_v46, %v241_v48  ;;  %s275_s21 = smov 3  ;;  %s278_s22 = smov 12 }
  0x25   :  { %v216_v50 = vld [vmem:[#allocation3 + $0x86] ss:$16 sm:%s215_s19]   ;;  %v213_v52 = vsel %vm76_vm0, %v211_v49, %v208_v47  ;;  %v276_v55 = vld [vmem:[#allocation3 + $0xd] ss:$16 sm:%s275_s21]   ;;  %s283_s23 = smov 48  ;;  %s288_s24 = smov 192 }
  0x26   :  { %v221_v53 = vld [vmem:[#allocation3 + $0x86] ss:$16 sm:%s220_s20]   ;;  %247 = vrot.lane.b32.xlu1 %v246_v51, %s777_s16  ;;  %v218_v54 = vsel %vm81_vm1, %v216_v50, %v213_v52  ;;  %v279_v56 = vld [vmem:[#allocation3 + $0xd] ss:$16 sm:%s278_s22]   ;;  %s253_s25 = smov 3  ;;  %s256_s26 = smov 12 }
  0x27   :  { %v223_v57 = vsel %vm86_vm2, %v221_v53, %v218_v54  ;;  %v281_v58 = vsel %vm76_vm0, %v279_v56, %v276_v55  ;;  %v284_v59 = vld [vmem:[#allocation3 + $0xd] ss:$16 sm:%s283_s23]   ;;  %v254_v62 = vld [vmem:[#allocation3 + $0x5] ss:$16 sm:%s253_s25]   ;;  %s261_s27 = smov 48  ;;  %s266_s28 = smov 192 }
  0x28   :  { %v289_v60 = vld [vmem:[#allocation3 + $0xd] ss:$16 sm:%s288_s24]   ;;  %224 = vrot.lane.b32.xlu0 %v223_v57, %s777_s16  ;;  %v286_v61 = vsel %vm81_vm1, %v284_v59, %v281_v58  ;;  %v257_v63 = vld [vmem:[#allocation3 + $0x5] ss:$16 sm:%s256_s26]   ;;  %s321_s29 = smov 3  ;;  %s324_s30 = smov 12 }
  0x29   :  { %v291_v0 = vsel %vm86_vm2, %v289_v60, %v286_v61  ;;  %v259_v1 = vsel %vm76_vm0, %v257_v63, %v254_v62  ;;  %v262_v2 = vld [vmem:[#allocation3 + $0x5] ss:$16 sm:%s261_s27]   ;;  %s778_s2 = smov 80   ;;  %v322_v5 = vld [vmem:[#allocation3 + $0x8d] ss:$16 sm:%s321_s29]   ;;  %s329_s3 = smov 48 }
  0x2a   :  { %v267_v3 = vld [vmem:[#allocation3 + $0x5] ss:$16 sm:%s266_s28]   ;;  %292 = vrot.lane.b32.xlu1 %v291_v0, %s778_s2  ;;  %v264_v4 = vsel %vm81_vm1, %v262_v2, %v259_v1  ;;  %v325_v6 = vld [vmem:[#allocation3 + $0x8d] ss:$16 sm:%s324_s30]   ;;  %s334_s4 = smov 192  ;;  %s298_s5 = smov 3 }
  0x2b   :  { %v269_v7 = vsel %vm86_vm2, %v267_v3, %v264_v4  ;;  %v327_v8 = vsel %vm76_vm0, %v325_v6, %v322_v5  ;;  %v330_v9 = vld [vmem:[#allocation3 + $0x8d] ss:$16 sm:%s329_s3]   ;;  %s301_s6 = smov 12  ;;  %v299_v12 = vld [vmem:[#allocation3 + $0x85] ss:$16 sm:%s298_s5]   ;;  %s306_s7 = smov 48 }
  0x2c   :  { %v335_v10 = vld [vmem:[#allocation3 + $0x8d] ss:$16 sm:%s334_s4]   ;;  %270 = vrot.lane.b32.xlu0 %v269_v7, %s778_s2  ;;  %v332_v11 = vsel %vm81_vm1, %v330_v9, %v327_v8  ;;  %v302_v13 = vld [vmem:[#allocation3 + $0x85] ss:$16 sm:%s301_s6]   ;;  %s311_s8 = smov 192  ;;  %s366_s9 = smov 3 }
  0x2d   :  { %v337_v14 = vsel %vm86_vm2, %v335_v10, %v332_v11  ;;  %v304_v15 = vsel %vm76_vm0, %v302_v13, %v299_v12  ;;  %v307_v16 = vld [vmem:[#allocation3 + $0x85] ss:$16 sm:%s306_s7]   ;;  %v367_v19 = vld [vmem:[#allocation3 + $0xc] ss:$16 sm:%s366_s9]   ;;  %s369_s10 = smov 12  ;;  %s374_s11 = smov 48 }
  0x2e   :  { %v312_v17 = vld [vmem:[#allocation3 + $0x85] ss:$16 sm:%s311_s8]   ;;  %338 = vrot.lane.b32.xlu1 %v337_v14, %s778_s2  ;;  %v309_v18 = vsel %vm81_vm1, %v307_v16, %v304_v15  ;;  %v370_v21 = vld [vmem:[#allocation3 + $0xc] ss:$16 sm:%s369_s10]   ;;  %s379_s12 = smov 192  ;;  %s344_s13 = smov 3 }
  0x2f   :  { %v314_v20 = vsel %vm86_vm2, %v312_v17, %v309_v18  ;;  %v375_v22 = vld [vmem:[#allocation3 + $0xc] ss:$16 sm:%s374_s11]   ;;  %v372_v23 = vsel %vm76_vm0, %v370_v21, %v367_v19  ;;  %v345_v25 = vld [vmem:[#allocation3 + $0x4] ss:$16 sm:%s344_s13]   ;;  %s347_s14 = smov 12  ;;  %s352_s15 = smov 48 }
  0x30   :  { %315 = vrot.lane.b32.xlu0 %v314_v20, %s778_s2  ;;  %v380_v24 = vld [vmem:[#allocation3 + $0xc] ss:$16 sm:%s379_s12]   ;;  %v377_v26 = vsel %vm81_vm1, %v375_v22, %v372_v23  ;;  %v348_v27 = vld [vmem:[#allocation3 + $0x4] ss:$16 sm:%s347_s14]   ;;  %s357_s16 = smov 192  ;;  %s412_s17 = smov 3 }
  0x31   :  { %v353_v28 = vld [vmem:[#allocation3 + $0x4] ss:$16 sm:%s352_s15]   ;;  %v382_v29 = vsel %vm86_vm2, %v380_v24, %v377_v26  ;;  %v350_v30 = vsel %vm76_vm0, %v348_v27, %v345_v25  ;;  %v413_v32 = vld [vmem:[#allocation3 + $0x8c] ss:$16 sm:%s412_s17]   ;;  %s415_s0 = smov 12  ;;  %s420_s18 = smov 48 }
  0x32   :  { %v358_v31 = vld [vmem:[#allocation3 + $0x4] ss:$16 sm:%s357_s16]   ;;  %s779_s19 = smov 64   ;;  %v355_v33 = vsel %vm81_vm1, %v353_v28, %v350_v30  ;;  %v416_v34 = vld [vmem:[#allocation3 + $0x8c] ss:$16 sm:%s415_s0]   ;;  %s425_s20 = smov 192 }
  0x33   :  { %383 = vrot.lane.b32.xlu1 %v382_v29, %s779_s19  ;;  %v421_v35 = vld [vmem:[#allocation3 + $0x8c] ss:$16 sm:%s420_s18]   ;;  %s389_s21 = smov 3  ;;  %v360_v36 = vsel %vm86_vm2, %v358_v31, %v355_v33  ;;  %v418_v37 = vsel %vm76_vm0, %v416_v34, %v413_v32  ;;  %s392_s22 = smov 12 }
  0x34   :  { %v426_v38 = vld [vmem:[#allocation3 + $0x8c] ss:$16 sm:%s425_s20]   ;;  %v390_v39 = vld [vmem:[#allocation3 + $0x84] ss:$16 sm:%s389_s21]   ;;  %s397_s23 = smov 48  ;;  %361 = vrot.lane.b32.xlu0 %v360_v36, %s779_s19  ;;  %v423_v40 = vsel %vm81_vm1, %v421_v35, %v418_v37  ;;  %s402_s24 = smov 192 }
  0x35   :  { %v393_v41 = vld [vmem:[#allocation3 + $0x84] ss:$16 sm:%s392_s22]   ;;  %v428_v43 = vsel %vm86_vm2, %v426_v38, %v423_v40  ;;  %s457_s25 = smov 3  ;;  %s460_s26 = smov 12 }
  0x36   :  { %v398_v42 = vld [vmem:[#allocation3 + $0x84] ss:$16 sm:%s397_s23]   ;;  %v395_v44 = vsel %vm76_vm0, %v393_v41, %v390_v39  ;;  %v458_v47 = vld [vmem:[#allocation3 + $0xb] ss:$16 sm:%s457_s25]   ;;  %s465_s27 = smov 48  ;;  %s470_s28 = smov 192 }
  0x37   :  { %v403_v45 = vld [vmem:[#allocation3 + $0x84] ss:$16 sm:%s402_s24]   ;;  %429 = vrot.lane.b32.xlu1 %v428_v43, %s779_s19  ;;  %v400_v46 = vsel %vm81_vm1, %v398_v42, %v395_v44  ;;  %v461_v48 = vld [vmem:[#allocation3 + $0xb] ss:$16 sm:%s460_s26]   ;;  %s435_s29 = smov 3  ;;  %s438_s30 = smov 12 }
  0x38   :  { %v405_v49 = vsel %vm86_vm2, %v403_v45, %v400_v46  ;;  %v463_v50 = vsel %vm76_vm0, %v461_v48, %v458_v47  ;;  %v466_v51 = vld [vmem:[#allocation3 + $0xb] ss:$16 sm:%s465_s27]   ;;  %v436_v54 = vld [vmem:[#allocation3 + $0x3] ss:$16 sm:%s435_s29]   ;;  %s443_s2 = smov 48  ;;  %s448_s3 = smov 192 }
  0x39   :  { %v471_v52 = vld [vmem:[#allocation3 + $0xb] ss:$16 sm:%s470_s28]   ;;  %406 = vrot.lane.b32.xlu0 %v405_v49, %s779_s19  ;;  %v468_v53 = vsel %vm81_vm1, %v466_v51, %v463_v50  ;;  %v439_v55 = vld [vmem:[#allocation3 + $0x3] ss:$16 sm:%s438_s30]   ;;  %s503_s4 = smov 3  ;;  %s506_s5 = smov 12 }
  0x3a   :  { %v473_v56 = vsel %vm86_vm2, %v471_v52, %v468_v53  ;;  %v441_v57 = vsel %vm76_vm0, %v439_v55, %v436_v54  ;;  %v444_v58 = vld [vmem:[#allocation3 + $0x3] ss:$16 sm:%s443_s2]   ;;  %s780_s6 = smov 48   ;;  %v504_v61 = vld [vmem:[#allocation3 + $0x8b] ss:$16 sm:%s503_s4]   ;;  %s511_s7 = smov 48 }
  0x3b   :  { %v449_v59 = vld [vmem:[#allocation3 + $0x3] ss:$16 sm:%s448_s3]   ;;  %474 = vrot.lane.b32.xlu1 %v473_v56, %s780_s6  ;;  %v446_v60 = vsel %vm81_vm1, %v444_v58, %v441_v57  ;;  %v507_v62 = vld [vmem:[#allocation3 + $0x8b] ss:$16 sm:%s506_s5]   ;;  %s516_s8 = smov 192  ;;  %s480_s9 = smov 3 }
  0x3c   :  { %v451_v63 = vsel %vm86_vm2, %v449_v59, %v446_v60  ;;  %v509_v0 = vsel %vm76_vm0, %v507_v62, %v504_v61  ;;  %v512_v1 = vld [vmem:[#allocation3 + $0x8b] ss:$16 sm:%s511_s7]   ;;  %s483_s10 = smov 12  ;;  %v481_v4 = vld [vmem:[#allocation3 + $0x83] ss:$16 sm:%s480_s9]   ;;  %s488_s11 = smov 48 }
  0x3d   :  { %v517_v2 = vld [vmem:[#allocation3 + $0x8b] ss:$16 sm:%s516_s8]   ;;  %452 = vrot.lane.b32.xlu0 %v451_v63, %s780_s6  ;;  %v514_v3 = vsel %vm81_vm1, %v512_v1, %v509_v0  ;;  %v484_v5 = vld [vmem:[#allocation3 + $0x83] ss:$16 sm:%s483_s10]   ;;  %s493_s12 = smov 192  ;;  %s548_s13 = smov 3 }
  0x3e   :  { %v519_v6 = vsel %vm86_vm2, %v517_v2, %v514_v3  ;;  %v486_v7 = vsel %vm76_vm0, %v484_v5, %v481_v4  ;;  %v489_v8 = vld [vmem:[#allocation3 + $0x83] ss:$16 sm:%s488_s11]   ;;  %v549_v11 = vld [vmem:[#allocation3 + $0xa] ss:$16 sm:%s548_s13]   ;;  %s551_s14 = smov 12  ;;  %s556_s15 = smov 48 }
  0x3f   :  { %v494_v9 = vld [vmem:[#allocation3 + $0x83] ss:$16 sm:%s493_s12]   ;;  %520 = vrot.lane.b32.xlu1 %v519_v6, %s780_s6  ;;  %v491_v10 = vsel %vm81_vm1, %v489_v8, %v486_v7  ;;  %v552_v13 = vld [vmem:[#allocation3 + $0xa] ss:$16 sm:%s551_s14]   ;;  %s561_s16 = smov 192  ;;  %s526_s17 = smov 3 }
  0x40   :  { %v496_v12 = vsel %vm86_vm2, %v494_v9, %v491_v10  ;;  %v557_v14 = vld [vmem:[#allocation3 + $0xa] ss:$16 sm:%s556_s15]   ;;  %v554_v15 = vsel %vm76_vm0, %v552_v13, %v549_v11  ;;  %v527_v17 = vld [vmem:[#allocation3 + $0x2] ss:$16 sm:%s526_s17]   ;;  %s529_s0 = smov 12  ;;  %s534_s18 = smov 48 }
  0x41   :  { %497 = vrot.lane.b32.xlu0 %v496_v12, %s780_s6  ;;  %v562_v16 = vld [vmem:[#allocation3 + $0xa] ss:$16 sm:%s561_s16]   ;;  %v559_v18 = vsel %vm81_vm1, %v557_v14, %v554_v15  ;;  %v530_v19 = vld [vmem:[#allocation3 + $0x2] ss:$16 sm:%s529_s0]   ;;  %s539_s19 = smov 192  ;;  %s594_s20 = smov 3 }
  0x42   :  { %v535_v20 = vld [vmem:[#allocation3 + $0x2] ss:$16 sm:%s534_s18]   ;;  %v564_v21 = vsel %vm86_vm2, %v562_v16, %v559_v18  ;;  %v532_v22 = vsel %vm76_vm0, %v530_v19, %v527_v17  ;;  %v595_v24 = vld [vmem:[#allocation3 + $0x8a] ss:$16 sm:%s594_s20]   ;;  %s597_s21 = smov 12  ;;  %s602_s22 = smov 48 }
  0x43   :  { %v540_v23 = vld [vmem:[#allocation3 + $0x2] ss:$16 sm:%s539_s19]   ;;  %s781_s23 = smov 32   ;;  %v537_v25 = vsel %vm81_vm1, %v535_v20, %v532_v22  ;;  %v598_v26 = vld [vmem:[#allocation3 + $0x8a] ss:$16 sm:%s597_s21]   ;;  %s607_s24 = smov 192 }
  0x44   :  { %565 = vrot.lane.b32.xlu1 %v564_v21, %s781_s23  ;;  %v603_v27 = vld [vmem:[#allocation3 + $0x8a] ss:$16 sm:%s602_s22]   ;;  %s571_s25 = smov 3  ;;  %v542_v28 = vsel %vm86_vm2, %v540_v23, %v537_v25  ;;  %v600_v29 = vsel %vm76_vm0, %v598_v26, %v595_v24  ;;  %s574_s26 = smov 12 }
  0x45   :  { %v608_v30 = vld [vmem:[#allocation3 + $0x8a] ss:$16 sm:%s607_s24]   ;;  %v572_v31 = vld [vmem:[#allocation3 + $0x82] ss:$16 sm:%s571_s25]   ;;  %s579_s27 = smov 48  ;;  %543 = vrot.lane.b32.xlu0 %v542_v28, %s781_s23  ;;  %v605_v32 = vsel %vm81_vm1, %v603_v27, %v600_v29  ;;  %s584_s28 = smov 192 }
  0x46   :  { %v575_v33 = vld [vmem:[#allocation3 + $0x82] ss:$16 sm:%s574_s26]   ;;  %v610_v35 = vsel %vm86_vm2, %v608_v30, %v605_v32  ;;  %s639_s29 = smov 3  ;;  %s642_s30 = smov 12 }
  0x47   :  { %v580_v34 = vld [vmem:[#allocation3 + $0x82] ss:$16 sm:%s579_s27]   ;;  %v577_v36 = vsel %vm76_vm0, %v575_v33, %v572_v31  ;;  %v640_v39 = vld [vmem:[#allocation3 + $0x9] ss:$16 sm:%s639_s29]   ;;  %s647_s2 = smov 48  ;;  %s652_s3 = smov 192 }
  0x48   :  { %v585_v37 = vld [vmem:[#allocation3 + $0x82] ss:$16 sm:%s584_s28]   ;;  %611 = vrot.lane.b32.xlu1 %v610_v35, %s781_s23  ;;  %v582_v38 = vsel %vm81_vm1, %v580_v34, %v577_v36  ;;  %v643_v40 = vld [vmem:[#allocation3 + $0x9] ss:$16 sm:%s642_s30]   ;;  %s617_s4 = smov 3  ;;  %s620_s5 = smov 12 }
  0x49   :  { %v587_v41 = vsel %vm86_vm2, %v585_v37, %v582_v38  ;;  %v645_v42 = vsel %vm76_vm0, %v643_v40, %v640_v39  ;;  %v648_v43 = vld [vmem:[#allocation3 + $0x9] ss:$16 sm:%s647_s2]   ;;  %v618_v46 = vld [vmem:[#allocation3 + $0x1] ss:$16 sm:%s617_s4]   ;;  %s625_s6 = smov 48  ;;  %s630_s7 = smov 192 }
  0x4a   :  { %v653_v44 = vld [vmem:[#allocation3 + $0x9] ss:$16 sm:%s652_s3]   ;;  %588 = vrot.lane.b32.xlu0 %v587_v41, %s781_s23  ;;  %v650_v45 = vsel %vm81_vm1, %v648_v43, %v645_v42  ;;  %v621_v47 = vld [vmem:[#allocation3 + $0x1] ss:$16 sm:%s620_s5]   ;;  %s685_s8 = smov 3  ;;  %s688_s9 = smov 12 }
  0x4b   :  { %v655_v48 = vsel %vm86_vm2, %v653_v44, %v650_v45  ;;  %v623_v49 = vsel %vm76_vm0, %v621_v47, %v618_v46  ;;  %v626_v50 = vld [vmem:[#allocation3 + $0x1] ss:$16 sm:%s625_s6]   ;;  %s782_s10 = smov 16   ;;  %v686_v53 = vld [vmem:[#allocation3 + $0x89] ss:$16 sm:%s685_s8]   ;;  %s693_s11 = smov 48 }
  0x4c   :  { %v631_v51 = vld [vmem:[#allocation3 + $0x1] ss:$16 sm:%s630_s7]   ;;  %656 = vrot.lane.b32.xlu1 %v655_v48, %s782_s10  ;;  %v628_v52 = vsel %vm81_vm1, %v626_v50, %v623_v49  ;;  %v689_v54 = vld [vmem:[#allocation3 + $0x89] ss:$16 sm:%s688_s9]   ;;  %s698_s12 = smov 192  ;;  %s662_s13 = smov 3 }
  0x4d   :  { %v13_v55 = vld [vmem:[#allocation3] ss:$8 sm:$0xf]   ;;  %v633_v56 = vsel %vm86_vm2, %v631_v51, %v628_v52  ;;  %v691_v57 = vsel %vm76_vm0, %v689_v54, %v686_v53  ;;  %v694_v58 = vld [vmem:[#allocation3 + $0x89] ss:$16 sm:%s693_s11]   ;;  %s665_s14 = smov 12 }
  0x4e   :  { %v699_v59 = vld [vmem:[#allocation3 + $0x89] ss:$16 sm:%s698_s12]   ;;  %634 = vrot.lane.b32.xlu0 %v633_v56, %s782_s10  ;;  %v696_v60 = vsel %vm81_vm1, %v694_v58, %v691_v57  ;;  %v663_v61 = vld [vmem:[#allocation3 + $0x81] ss:$16 sm:%s662_s13]   ;;  %s670_s15 = smov 48  ;;  %s675_s16 = smov 192 }
  0x4f   :  { %v666_v62 = vld [vmem:[#allocation3 + $0x81] ss:$16 sm:%s665_s14]   ;;  %v701_v63 = vsel %vm86_vm2, %v699_v59, %v696_v60  ;;  %v14_v4 = vld [vmem:[#allocation3] ss:$8 sm:$0xf0]   ;;  %s783_s17 = smov [#allocation0]  }
  0x50   :  { %v668_v0 = vsel %vm76_vm0, %v666_v62, %v663_v61  ;;  %v671_v1 = vld [vmem:[#allocation3 + $0x81] ss:$16 sm:%s670_s15]   ;;  %702 = vrot.lane.b32.xlu1 %v701_v63, %s782_s10  ;;  %v26_v5 = vld [vmem:[#allocation3 + $0x40] ss:$8 sm:$0xf]   ;;  %v16_v7 = vsel %vm15_vm3, %v14_v4, %v13_v55  ;;  %s711_s0 = sshll.u32 %s783_s17, 4  ;;  %s712_s0 = int_to_ptr.vmem [resolvable:$true] %s711_s0 }
  0x51   :  { %v676_v2 = vld [vmem:[#allocation3 + $0x81] ss:$16 sm:%s675_s16]   ;;  %v673_v3 = vsel %vm81_vm1, %v671_v1, %v668_v0  ;;  %v28_v8 = vld [vmem:[#allocation3 + $0x40] ss:$8 sm:$0xf0]   ;;  %s749_s18 = scalar_lea.vmem %s712_s0, 512  ;;  %p754_p9 = scmp.lt.s32.totalorder %s712_s0, %s712_s0 }
  0x52   :  { %v678_v6 = vsel %vm86_vm2, %v676_v2, %v673_v3  ;;  %v41_v9 = vld [vmem:[#allocation3 + $0x80] ss:$8 sm:$0xf]   ;;  %18 = vst.msk [vmem:[#allocation0] ss:$8 sm:$0x3] %vm17_vm4, %v16_v7   ;;  %v30_v10 = vsel %vm15_vm3, %v28_v8, %v26_v5  ;;  %p750_p8 = scmp.ne.s32.totalorder %s712_s0, %s749_s18  ;;  %p755_p10 = scmp.lt.s32.totalorder %s749_s18, %s749_s18 }
  0x53   :  { %679 = vrot.lane.b32.xlu0 %v678_v6, %s782_s10  ;;  %20 = vst.msk [vmem:[#allocation0 - $0xf] ss:$8 sm:$0xc] %vm17_vm4, %v16_v7   ;;  %22 = vst.msk [vmem:[#allocation0 - $0x1e] ss:$8 sm:$0x30] %vm17_vm4, %v16_v7  }
  0x54   :  { %24 = vst.msk [vmem:[#allocation0 - $0x2d] ss:$8 sm:$0xc0] %vm17_vm4, %v16_v7   ;;  %v43_v11 = vld [vmem:[#allocation3 + $0x80] ss:$8 sm:$0xf0]   ;;  %p756_p11 = por %p755_p10, %p754_p9 }
  0x55   :  { %v56_v12 = vld [vmem:[#allocation3 + $0xc0] ss:$8 sm:$0xf]   ;;  %33 = vst.msk [vmem:[#allocation0 + $0x4] ss:$8 sm:$0x3] %vm17_vm4, %v30_v10   ;;  %v45_v13 = vsel %vm15_vm3, %v43_v11, %v41_v9 }
  0x56   :  { %35 = vst.msk [vmem:[#allocation0 - $0xb] ss:$8 sm:$0xc] %vm17_vm4, %v30_v10   ;;  %37 = vst.msk [vmem:[#allocation0 - $0x1a] ss:$8 sm:$0x30] %vm17_vm4, %v30_v10   ;;  %p757_p12 = pnand %p756_p11, %p750_p8 }
  0x57   :  { %39 = vst.msk [vmem:[#allocation0 - $0x29] ss:$8 sm:$0xc0] %vm17_vm4, %v30_v10   ;;  %v58_v14 = vld [vmem:[#allocation3 + $0xc0] ss:$8 sm:$0xf0]  }
  0x58   :  { %48 = vst.msk [vmem:[#allocation0 + $0x10] ss:$8 sm:$0x3] %vm17_vm4, %v45_v13   ;;  %50 = vst.msk [vmem:[#allocation0 + $0x1] ss:$8 sm:$0xc] %vm17_vm4, %v45_v13   ;;  %v60_v15 = vsel %vm15_vm3, %v58_v14, %v56_v12 }
  0x59   :  { %52 = vst.msk [vmem:[#allocation0 - $0xe] ss:$8 sm:$0x30] %vm17_vm4, %v45_v13   ;;  %54 = vst.msk [vmem:[#allocation0 - $0x1d] ss:$8 sm:$0xc0] %vm17_vm4, %v45_v13  }
  0x5a   :  { %63 = vst.msk [vmem:[#allocation0 + $0x14] ss:$8 sm:$0x3] %vm17_vm4, %v60_v15   ;;  %65 = vst.msk [vmem:[#allocation0 + $0x5] ss:$8 sm:$0xc] %vm17_vm4, %v60_v15  }
  0x5b   :  { %67 = vst.msk [vmem:[#allocation0 - $0xa] ss:$8 sm:$0x30] %vm17_vm4, %v60_v15   ;;  %69 = vst.msk [vmem:[#allocation0 - $0x19] ss:$8 sm:$0xc0] %vm17_vm4, %v60_v15  }
  0x8b   :  { %v134_v16 = vpop.permute.xlu1 %133  }
  0x8c   :  { %137 = vst.msk [vmem:[#allocation0 + $0x10] sm:$0xff] %vm90_vm5, %v134_v16  }
  0x8e   :  { %v89_v17 = vpop.permute.xlu0 %88  }
  0x8f   :  { %91 = vst.msk [vmem:[#allocation0] sm:$0xff] %vm90_vm5, %v89_v17   ;;  %v157_v18 = vpop.permute.xlu1 %156  }
  0x90   :  { %160 = vst.msk [vmem:[#allocation0 + $0x18] sm:$0xff] %vm90_vm5, %v157_v18  }
  0x92   :  { %v111_v19 = vpop.permute.xlu0 %110  }
  0x93   :  { %114 = vst.msk [vmem:[#allocation0 + $0x8] sm:$0xff] %vm90_vm5, %v111_v19  }
  0x94   :  { %v202_v20 = vpop.permute.xlu1 %201  }
  0x95   :  { %205 = vst.msk [vmem:[#allocation0 + $0x8] sm:$0xff] %vm181_vm6, %v202_v20  }
  0x96   :  { %v180_v21 = vpop.permute.xlu0 %179  }
  0x97   :  { %182 = vst.msk [vmem:[#allocation0] sm:$0xff] %vm181_vm6, %v180_v21  }
  0x98   :  { %v248_v22 = vpop.permute.xlu1 %247  }
  0x99   :  { %251 = vst.msk [vmem:[#allocation0 + $0x18] sm:$0xff] %vm181_vm6, %v248_v22  }
  0x9a   :  { %v225_v23 = vpop.permute.xlu0 %224  }
  0x9b   :  { %228 = vst.msk [vmem:[#allocation0 + $0x10] sm:$0xff] %vm181_vm6, %v225_v23  }
  0x9c   :  { %v293_v24 = vpop.permute.xlu1 %292  }
  0x9d   :  { %296 = vst.msk [vmem:[#allocation0 + $0x8] sm:$0xff] %vm272_vm7, %v293_v24  }
  0x9e   :  { %v271_v25 = vpop.permute.xlu0 %270  }
  0x9f   :  { %273 = vst.msk [vmem:[#allocation0] sm:$0xff] %vm272_vm7, %v271_v25  }
  0xa0   :  { %v339_v26 = vpop.permute.xlu1 %338  }
  0xa1   :  { %342 = vst.msk [vmem:[#allocation0 + $0x18] sm:$0xff] %vm272_vm7, %v339_v26  }
  0xa2   :  { %v316_v27 = vpop.permute.xlu0 %315  }
  0xa3   :  { %319 = vst.msk [vmem:[#allocation0 + $0x10] sm:$0xff] %vm272_vm7, %v316_v27  }
  0xa5   :  { %v384_v28 = vpop.permute.xlu1 %383  }
  0xa6   :  { %387 = vst.msk [vmem:[#allocation0 + $0x8] sm:$0xff] %vm363_vm8, %v384_v28   ;;  %v362_v29 = vpop.permute.xlu0 %361  }
  0xa7   :  { %364 = vst.msk [vmem:[#allocation0] sm:$0xff] %vm363_vm8, %v362_v29  }
  0xa9   :  { %v430_v30 = vpop.permute.xlu1 %429  }
  0xaa   :  { %433 = vst.msk [vmem:[#allocation0 + $0x18] sm:$0xff] %vm363_vm8, %v430_v30  }
  0xab   :  { %v407_v31 = vpop.permute.xlu0 %406  }
  0xac   :  { %410 = vst.msk [vmem:[#allocation0 + $0x10] sm:$0xff] %vm363_vm8, %v407_v31  }
  0xad   :  { %v475_v32 = vpop.permute.xlu1 %474  }
  0xae   :  { %478 = vst.msk [vmem:[#allocation0 + $0x8] sm:$0xff] %vm454_vm9, %v475_v32  }
  0xaf   :  { %v453_v33 = vpop.permute.xlu0 %452  }
  0xb0   :  { %455 = vst.msk [vmem:[#allocation0] sm:$0xff] %vm454_vm9, %v453_v33  }
  0xb1   :  { %v521_v34 = vpop.permute.xlu1 %520  }
  0xb2   :  { %524 = vst.msk [vmem:[#allocation0 + $0x18] sm:$0xff] %vm454_vm9, %v521_v34  }
  0xb3   :  { %v498_v35 = vpop.permute.xlu0 %497  }
  0xb4   :  { %501 = vst.msk [vmem:[#allocation0 + $0x10] sm:$0xff] %vm454_vm9, %v498_v35  }
  0xb6   :  { %v566_v36 = vpop.permute.xlu1 %565  }
  0xb7   :  { %569 = vst.msk [vmem:[#allocation0 + $0x8] sm:$0xff] %vm545_vm10, %v566_v36   ;;  %v544_v37 = vpop.permute.xlu0 %543  }
  0xb8   :  { %546 = vst.msk [vmem:[#allocation0] sm:$0xff] %vm545_vm10, %v544_v37  }
  0xba   :  { %v612_v38 = vpop.permute.xlu1 %611  }
  0xbb   :  { %615 = vst.msk [vmem:[#allocation0 + $0x18] sm:$0xff] %vm545_vm10, %v612_v38  }
  0xbc   :  { %v589_v39 = vpop.permute.xlu0 %588  }
  0xbd   :  { %592 = vst.msk [vmem:[#allocation0 + $0x10] sm:$0xff] %vm545_vm10, %v589_v39  }
  0xbe   :  { %v657_v40 = vpop.permute.xlu1 %656  }
  0xbf   :  { %660 = vst.msk [vmem:[#allocation0 + $0x8] sm:$0xff] %vm636_vm11, %v657_v40  }
  0xc0   :  { %v635_v41 = vpop.permute.xlu0 %634  }
  0xc1   :  { %637 = vst.msk [vmem:[#allocation0] sm:$0xff] %vm636_vm11, %v635_v41  }
  0xc2   :  { %v703_v42 = vpop.permute.xlu1 %702  }
  0xc3   :  { %706 = vst.msk [vmem:[#allocation0 + $0x18] sm:$0xff] %vm636_vm11, %v703_v42  }
  0xc5   :  { %v680_v43 = vpop.permute.xlu0 %679  }
  0xc6   :  { %683 = vst.msk [vmem:[#allocation0 + $0x10] sm:$0xff] %vm636_vm11, %v680_v43  }
  0xc7   :  { %760 = shalt.err (!%p757_p12)
}
  0xc8   :  { %s761_s21 = scalar_lea.hbm %s947_s1, 512 }
  0xc9   :  { %p762_p13 = scmp.ne.s32.totalorder %s947_s1, %s761_s21  ;;  %p765_p0 = scmp.lt.u32.totalorder %s761_s21, %s947_s1 }
  0xcb   :  { %p767_p1 = pnand %p765_p0, %p762_p13 }
  0xcd   :  { %770 = shalt.err (!%p767_p1)
}
  0xce   :  { %714 = dma.vmem_to_hbm [thread:$0]  %s712_s0, 512, %s947_s1, [#allocation2]  }
  0xcf   :  { %773 = dma.done.wait [#allocation2], 512  }
  0xd0   :  { %774 = vsyncadd [#allocation2], 4294966784 }
  0xd1   :  { %716 = vsyncpa [#allocation1], 1 }
  0xd2   :  { %717 = vsyncpa [#allocation2], 1 }

// kernel: a2sn_forward.5
= control target key start
LH: loop header
LB: loop body
LE: loop exit
PB: predicated region body
PF: predicated region fallthrough
CT: control target
= control target key end

     0   :  { %7 = vsyncpa [#allocation3], 0  ;;  %s797_s0 = inlined_call_operand.hbm [shape: f32[16,8], index: 0, kind: input, shape index: {}]   ;;  %s798_s1 = inlined_call_operand.hbm [shape: f32[8,256], index: 1, kind: input, shape index: {}]   ;;  %s799_s2 = inlined_call_operand.hbm [shape: f32[16,256], index: 2, kind: output, shape index: {}]  }
   0x1   :  { %8 = vsyncpa [#allocation6], 0 }
   0x2   :  { %10 = vsyncpa [#allocation6 + $0x1], 0 }
   0x3   :  { %11 = vsyncpa [#allocation4], 0 }
   0x4   :  { %13 = vsyncpa [#allocation4 + $0x1], 0  ;;  %s598_s9 = smov 0   ;;  %s600_s10 = smov 0  }
   0x5   :  { %s602_s11 = smov 0   ;;  %s604_s12 = smov 0  }
   0x6 LB: > { %s619_s13 = sadd.s32 4294967295, %s573_s12   ;;  %s359_s14 = sadd.s32 4294967294, %s573_s12   ;;  %s573_s12 = sphi %s604_s12, %s819_s12   ;;  %s569_s11 = sphi %s602_s11, %s818_s11   ;;  %s565_s10 = sphi %s600_s10, %s817_s10   ;;  %s561_s9 = sphi %s598_s9, %s816_s9  }
   0x7   : > { %p60_p0 = scmp.ne.s32.totalorder %s565_s10, %s561_s9  ;;  %p800_p1 = scmp.eq.s32.totalorder %s619_s13, 0 }
   0x8   : > { %p90_p3 = scmp.eq.s32.totalorder %s359_s14, 1  ;;  %p360_p5 = scmp.ge.s32.totalorder %s573_s12, 1 }
   0x9   : > { %p628_p4 = por %p800_p1, %p60_p0  ;;  %p97_p7 = scmp.lt.s32.totalorder %s573_s12, 3 }
   0xa   : > { %p633_p6 = por %p90_p3, %p60_p0  ;;  %s575_s18 = smov [#allocation2]  }
   0xb   : > { %s803_s15 = scalar_select %p628_p4, 1, 0 }
   0xc   : > { %s804_s16 = scalar_select %p633_p6, 1, 0 }
   0xd   : > { %p638_p8 = pnand %p360_p5, %p97_p7  ;;  %s109_s19 = sshll.u32 %s575_s18, 4  ;;  %s642_s19 = int_to_ptr.vmem [resolvable:$true] %s109_s19 }
   0xe   : > { %s654_s21 = sadd.s32 1, %s573_s12   ;;  %s47_s22 = sadd.s32 1, %s569_s11 }
   0xf   : > { %s805_s17 = scalar_select %p638_p8, 1, 0 }
  0x10   : > { %p391_p9 = pneg %p638_p8  ;;  %s44_s23 = ssub.s32 %s573_s12, %s654_s21 }
  0x11   : > { %s445_s26 = scalar_lea.hbm %s797_s0, 256 }
  0x12   : > { %p649_p11 = pnand %p391_p9, %p800_p1  ;;  %p446_p12 = scmp.ne.s32.totalorder %s797_s0, %s445_s26 }
  0x13   : > { %p452_p5 = scmp.lt.u32.totalorder %s445_s26, %s797_s0 }
  0x14   : > { %p447_p13 = pneg %p649_p11 }
  0x16   : > { %p448_p0 = pnand %p447_p13, %p446_p12 }
  0x18   : > { %p449_p3 = pneg %p448_p0 }
  0x1a   : > { %p454_p7 = pnand %p452_p5, %p449_p3 }
  0x1c   : > { %457 = shalt.err (!%p454_p7)
}
  0x1d   : > { %s458_s3 = scalar_lea.vmem %s642_s19, 256  ;;  %p466_p2 = scmp.lt.s32.totalorder %s642_s19, %s642_s19 }
  0x1e   : > { %p459_p9 = scmp.ne.s32.totalorder %s642_s19, %s458_s3  ;;  %p467_p6 = scmp.lt.s32.totalorder %s458_s3, %s458_s3 }
  0x20   : > { %p461_p10 = pnand %p459_p9, %p447_p13  ;;  %p468_p4 = por %p467_p6, %p466_p2 }
  0x22   : > { %p462_p1 = pneg %p461_p10 }
  0x24   : > { %p469_p8 = pnand %p468_p4, %p462_p1 }
  0x26   : > { %472 = shalt.err (!%p469_p8)
}
  0x27   : > { %s576_s4 = smov 128   ;;  %s577_s5 = smov 8  }
  0x28   : > { %394 = dma.hbm_to_vmem [thread:$0]  (!%p649_p11), %s797_s0, 256, %s642_s19, [#allocation3], %s576_s4, %s576_s4, %s577_s5  }
  0x29   : > { %p45_p2 = scmp.eq.s32.totalorder %s44_s23, 0  ;;  %p54_p1 = scmp.ne.s32.totalorder %s569_s11, %s565_s10 }
  0x2a   : > { %p55_p4 = scmp.eq.s32.totalorder %s573_s12, 0  ;;  %p404_p6 = scmp.lt.s32.totalorder %s573_s12, 2 }
  0x2b   : > { %s685_s8 = scalar_select %p45_p2, %s569_s11, %s47_s22  }
  0x2c   : > { %p56_p8 = por %p55_p4, %p54_p1  ;;  %p807_p10 = scmp.eq.s32.totalorder %s619_s13, 1 }
  0x2d   : > { %s123_s18 = sand.u32 1, %s569_s11   ;;  %s364_s24 = sshll.u32 %s573_s12, 7 }
  0x2e   : > { %p689_p12 = por %p807_p10, %p54_p1  ;;  %s363_s25 = sshll.u32 %s123_s18, 3 }
  0x2f   : > { %s698_s27 = scalar_lea.hbm %s798_s1, %s364_s24  ;;  %s127_s19 = scalar_lea.vmem [#allocation5], %s363_s25 }
  0x30   : > { %s134_s22 = sshll.u32 %s127_s19, 4  ;;  %p700_p11 = pnand %p404_p6, %p56_p8  ;;  %s704_s22 = int_to_ptr.vmem [resolvable:$true] %s134_s22 }
  0x31   : > { %s124_s28 = scalar_lea.sflag [#allocation6], %s123_s18  ;;  %s473_s29 = scalar_lea.hbm %s698_s27, 128 }
  0x32   : > { %p474_p13 = scmp.ne.s32.totalorder %s698_s27, %s473_s29  ;;  %p475_p0 = pneg %p700_p11 }
  0x33   : > { %s478_s4 = scalar_lea.hbm %s798_s1, 256  ;;  %p479_p7 = scmp.lt.u32.totalorder %s698_s27, %s798_s1 }
  0x34   : > { %p476_p3 = pnand %p475_p0, %p474_p13  ;;  %p480_p9 = scmp.lt.u32.totalorder %s478_s4, %s473_s29 }
  0x35   : > { %p482_p1 = scmp.lt.u32.totalorder %s473_s29, %s698_s27 }
  0x36   : > { %p477_p5 = pneg %p476_p3  ;;  %p481_p2 = por %p480_p9, %p479_p7 }
  0x38   : > { %p483_p4 = por %p482_p1, %p481_p2 }
  0x3a   : > { %p484_p6 = pnand %p483_p4, %p477_p5 }
  0x3c   : > { %487 = shalt.err (!%p484_p6)
}
  0x3d   : > { %s488_s7 = scalar_lea.vmem %s704_s22, 128  ;;  %s578_s18 = smov [#allocation5]  }
  0x3e   : > { %p489_p8 = scmp.ne.s32.totalorder %s704_s22, %s488_s7  ;;  %s493_s24 = sshll.u32 %s578_s18, 4  ;;  %s494_s24 = int_to_ptr.vmem [resolvable:$false] %s493_s24 }
  0x3f   : > { %s495_s25 = scalar_lea.vmem %s494_s24, 256  ;;  %p496_p3 = scmp.lt.s32.totalorder %s704_s22, %s494_s24 }
  0x40   : > { %p491_p10 = pnand %p489_p8, %p475_p0  ;;  %p497_p7 = scmp.lt.s32.totalorder %s495_s25, %s488_s7 }
  0x42   : > { %p492_p13 = pneg %p491_p10  ;;  %p498_p9 = por %p497_p7, %p496_p3 }
  0x44   : > { %p499_p2 = pnand %p498_p9, %p492_p13 }
  0x46   : > { %502 = shalt.err (!%p499_p2)
}
  0x47   : > { %398 = dma.hbm_to_vmem [thread:$0]  (!%p700_p11), %s698_s27, 128, %s704_s22, %s124_s28  }
  0x48   : > { %p810_p5 = scmp.ne.s32.totalorder %s805_s17, 0 }
  0x49   : > { %p811_p0 = scmp.eq.s32.totalorder (!%p810_p5), %s619_s13, 0 }
  0x4a   : > { %143 = sbr.rel (%p810_p5) target bundleno = 318 (0x13e), region = 28 }
  0x51   : > { %548 = dma.done.wait (%p811_p0), [#allocation3], 256   ;;  %p812_p1 = pmov %p811_p0 }
  0x52   : > { %s738_s20 = sand.u32 1, %s565_s10   ;;  %p813_p4 = scmp.ne.s32.totalorder %s803_s15, 0 }
  0x53   : > { %550 = vsyncadd (%p812_p1), [#allocation3], 4294967040  ;;  %s367_s26 = sshll.u32 %s738_s20, 3  ;;  %s150_s19 = scalar_lea.sflag [#allocation6], %s738_s20 }
  0x54   : > { %s153_s23 = scalar_lea.vmem [#allocation5], %s367_s26 }
  0x55   : > { %552 = dma.done.wait (%p813_p4), %s150_s19, 128  }
  0x56   : > { %554 = vsyncadd (%p813_p4), %s150_s19, 4294967168  ;;  %vm177_vm0 = vcmask 64512   ;;  %v176_v0 = vld [vmem:[%s153_s23] sm:$0xff]  ;;  %v174_v1 = vld [vmem:[#allocation2] sm:$0xff]  ;;  %s368_s17 = sshll.u32 %s738_s20, 4  ;;  %s372_s28 = sshll.u32 %s619_s13, 7 }
  0x57   : > { %v175_v2 = vld [vmem:[#allocation2 + $0x8] sm:$0xff]  ;;  %378 = vmatprep.subr.mxu0 %v176_v0  ;;  %380 = vmatprep.mubr.msk.f32.mxu0 %vm177_vm0, %v174_v1  ;;  %s173_s27 = scalar_lea.vmem [#allocation7], %s368_s17  ;;  %s753_s30 = scalar_lea.hbm %s799_s2, %s372_s28 }
  0x58   : > { %379 = vmatpush3.msra.mxu0 %v176_v0  ;;  %s274_s22 = sshll.u32 %s173_s27, 4  ;;  %s262_s3 = scalar_lea.sflag [#allocation4], %s738_s20  ;;  %s748_s22 = int_to_ptr.vmem [resolvable:$true] %s274_s22 }
  0x59   : > { %381 = vmatmul.mubr.msk.f32.vlgmr.msra.gmra.mrb[0].mxu0 %vm177_vm0, %v175_v2  ;;  %s503_s4 = scalar_lea.vmem %s748_s22, 256  ;;  %s579_s13 = smov [#allocation7]  }
  0x5a   : > { %p504_p11 = scmp.ne.s32.totalorder %s748_s22, %s503_s4  ;;  %s507_s5 = sshll.u32 %s579_s13, 4  ;;  %s508_s5 = int_to_ptr.vmem [resolvable:$false] %s507_s5 }
  0x5b   : > { %s509_s6 = scalar_lea.vmem %s508_s5, 512  ;;  %p510_p10 = scmp.lt.s32.totalorder %s748_s22, %s508_s5 }
  0x5c   : > { %p505_p6 = pnand %p504_p11, %p689_p12  ;;  %p511_p13 = scmp.lt.s32.totalorder %s509_s6, %s503_s4 }
  0x5e   : > { %p506_p8 = pneg %p505_p6  ;;  %p512_p3 = por %p511_p13, %p510_p10 }
  0x60   : > { %p513_p7 = pnand %p512_p3, %p506_p8 }
 0x12c   : > { %v382_v3 = vpop.f32.mrb[0].mxu0 }
 0x12d   : > { %260 = vst [vmem:[%s173_s27 + $0x8] sm:$0xff] %v382_v3  ;;  %v250_v4 = vpop.f32.mrb[1].mxu0 }
 0x12e   : > { %259 = vst [vmem:[%s173_s27] sm:$0xff] %v250_v4 }
 0x12f   : > { %516 = shalt.err (!%p513_p7)
}
 0x130   : > { %s517_s7 = scalar_lea.hbm %s753_s30, 256  ;;  %s521_s25 = scalar_lea.hbm %s799_s2, 512 }
 0x131   : > { %p518_p9 = scmp.ne.s32.totalorder %s753_s30, %s517_s7  ;;  %p522_p0 = scmp.lt.u32.totalorder %s753_s30, %s799_s2 }
 0x132   : > { %p523_p1 = scmp.lt.u32.totalorder %s521_s25, %s517_s7  ;;  %p525_p11 = scmp.lt.u32.totalorder %s517_s7, %s753_s30 }
 0x133   : > { %p519_p2 = pnand %p518_p9, %p689_p12 }
 0x134   : > { %p524_p4 = por %p523_p1, %p522_p0 }
 0x135   : > { %p520_p5 = pneg %p519_p2 }
 0x136   : > { %p526_p6 = por %p525_p11, %p524_p4 }
 0x138   : > { %p527_p8 = pnand %p526_p6, %p520_p5 }
 0x13a   : > { %530 = shalt.err (!%p527_p8)
}
 0x13b   : > { %s580_s23 = smov 128   ;;  %s581_s17 = smov 256  }
 0x13c   : > { %s582_s27 = smov 8  }
 0x13d   : > { %389 = dma.vmem_to_hbm [thread:$0]  (%p689_p12), %s748_s22, 256, %s753_s30, %s262_s3, %s580_s23, %s581_s17, %s582_s27  }
 0x13e PF: > { %s289_s28 = sand.u32 1, %s561_s9   ;;  %p814_p10 = scmp.ne.s32.totalorder %s804_s16, 0 }
 0x13f   : > { %p815_p13 = scmp.ge.s32.totalorder %s573_s12, 2  ;;  %s290_s15 = scalar_lea.sflag [#allocation4], %s289_s28 }
 0x141   : > { %p400_p3 = pnand %p815_p13, %p814_p10 }
 0x143   : > { %556 = dma.done.wait (!%p400_p3), %s290_s15, 256  }
 0x144   : > { %558 = vsyncadd (!%p400_p3), %s290_s15, 4294967040  ;;  %p16_p7 = scmp.ge.s32.totalorder %s654_s21, 4   ;;  %s816_s9 = smov %s565_s10 }
 0x145   : > { %s817_s10 = smov %s569_s11  ;;  %s818_s11 = smov %s685_s8 }
 0x146   : > { %s819_s12 = smov %s654_s21  ;;  %18 = sbr.rel (!%p16_p7) target bundleno = 6 (0x6), region = 78 }
 0x14d   :  { %295 = vsyncpa [#allocation3], 1 }
 0x14e   :  { %297 = vsyncpa [#allocation3 + $0x1], 1 }
 0x14f   :  { %298 = vsyncpa [#allocation6], 1 }
 0x150   :  { %300 = vsyncpa [#allocation6 + $0x1], 1 }
 0x151   :  { %301 = vsyncpa [#allocation4], 1 }
 0x152   :  { %303 = vsyncpa [#allocation4 + $0x1], 1 }

// kernel: a2sn_forward.4
= control target key start
LH: loop header
LB: loop body
LE: loop exit
PB: predicated region body
PF: predicated region fallthrough
CT: control target
= control target key end

     0   :  { %s4891_s0 = inlined_call_operand.hbm [shape: f32[16,256], index: 0, kind: input, shape index: {}]   ;;  %s4892_s1 = inlined_call_operand.hbm [shape: f32[32,256], index: 1, kind: input, shape index: {}]   ;;  %s4893_s2 = inlined_call_operand.hbm [shape: f32[8,16], index: 2, kind: input, shape index: {}]   ;;  %s4894_s3 = inlined_call_operand.hbm [shape: f32[8,1], index: 3, kind: input, shape index: {}]   ;;  %s4895_s4 = inlined_call_operand.hbm [shape: f32[8,8], index: 4, kind: input, shape index: {}]   ;;  %s4896_s5 = inlined_call_operand.hbm [shape: f32[8,1], index: 5, kind: input, shape index: {}]   ;;  %s4897_s6 = inlined_call_operand.hbm [shape: f32[8,16], index: 6, kind: input, shape index: {}]   ;;  %s4898_s7 = inlined_call_operand.hbm [shape: f32[8,1], index: 7, kind: input, shape index: {}]   ;;  %s4899_s8 = inlined_call_operand.hbm [shape: f32[8,24], index: 8, kind: input, shape index: {}]   ;;  %s4900_s9 = inlined_call_operand.hbm [shape: f32[8,1], index: 9, kind: input, shape index: {}]   ;;  %s4901_s10 = inlined_call_operand.hbm [shape: f32[32,32], index: 10, kind: input, shape index: {}]   ;;  %s4902_s11 = inlined_call_operand.hbm [shape: f32[32,1], index: 11, kind: input, shape index: {}]   ;;  %s4903_s12 = inlined_call_operand.hbm [shape: f32[16,1], index: 12, kind: input, shape index: {}]   ;;  %s4904_s13 = inlined_call_operand.hbm [shape: f32[16,1], index: 13, kind: input, shape index: {}]   ;;  %s4905_s14 = inlined_call_operand.hbm [shape: f32[24,1], index: 14, kind: input, shape index: {}]   ;;  %s4906_s15 = inlined_call_operand.hbm [shape: f32[24,1], index: 15, kind: input, shape index: {}]   ;;  %s4907_s16 = inlined_call_operand.hbm [shape: f32[32,1], index: 16, kind: input, shape index: {}]   ;;  %s4908_s17 = inlined_call_operand.hbm [shape: f32[32,1], index: 17, kind: input, shape index: {}]   ;;  %s4909_s18 = inlined_call_operand.hbm [shape: f32[16,64], index: 18, kind: input, shape index: {}]   ;;  %s4910_s19 = inlined_call_operand.hbm [shape: f32[16,1], index: 19, kind: input, shape index: {}]   ;;  %s4911_s20 = inlined_call_operand.hbm [shape: f32[8,16], index: 20, kind: input, shape index: {}]   ;;  %s4912_s21 = inlined_call_operand.hbm [shape: f32[8,1], index: 21, kind: input, shape index: {}]   ;;  %s4913_s22 = inlined_call_operand.hbm [shape: f32[8,1], index: 22, kind: input, shape index: {}]   ;;  %s4914_s23 = inlined_call_operand.hbm [shape: f32[8,1], index: 23, kind: input, shape index: {}]   ;;  %s4915_s24 = inlined_call_operand.hbm [shape: f32[16,256], index: 24, kind: output, shape index: {0}]   ;;  %s4916_s25 = inlined_call_operand.hbm [shape: f32[8,256], index: 25, kind: output, shape index: {1}]   ;;  %s4917_s26 = inlined_call_operand.hbm [shape: f32[16,8], index: 26, kind: output, shape index: {2}]  }
   0x1   :  { %4956 = sst [smem:[#allocation66_spill]] %s4891_s0 }
   0x2   :  { %4957 = sst [smem:[#allocation67_spill]] %s4892_s1 }
   0x3   :  { %4958 = sst [smem:[#allocation68_spill]] %s4893_s2 }
   0x4   :  { %4959 = sst [smem:[#allocation69_spill]] %s4894_s3 }
   0x5   :  { %4960 = sst [smem:[#allocation70_spill]] %s4895_s4 }
   0x6   :  { %4961 = sst [smem:[#allocation71_spill]] %s4896_s5 }
   0x7   :  { %4962 = sst [smem:[#allocation72_spill]] %s4897_s6 }
   0x8   :  { %4963 = sst [smem:[#allocation73_spill]] %s4898_s7 }
   0x9   :  { %4964 = sst [smem:[#allocation74_spill]] %s4899_s8 }
   0xa   :  { %4965 = sst [smem:[#allocation75_spill]] %s4900_s9 }
   0xb   :  { %4966 = sst [smem:[#allocation76_spill]] %s4901_s10 }
   0xc   :  { %4967 = sst [smem:[#allocation77_spill]] %s4902_s11 }
   0xd   :  { %4968 = sst [smem:[#allocation78_spill]] %s4903_s12 }
   0xe   :  { %4969 = sst [smem:[#allocation79_spill]] %s4904_s13 }
   0xf   :  { %4970 = sst [smem:[#allocation80_spill]] %s4905_s14 }
  0x10   :  { %4971 = sst [smem:[#allocation81_spill]] %s4906_s15 }
  0x11   :  { %4972 = sst [smem:[#allocation82_spill]] %s4907_s16 }
  0x12   :  { %4973 = sst [smem:[#allocation83_spill]] %s4908_s17 }
  0x13   :  { %4974 = sst [smem:[#allocation84_spill]] %s4909_s18 }
  0x14   :  { %4975 = sst [smem:[#allocation85_spill]] %s4910_s19 }
  0x15   :  { %4976 = sst [smem:[#allocation86_spill]] %s4911_s20 }
  0x16   :  { %4977 = sst [smem:[#allocation87_spill]] %s4915_s24 }
  0x17   :  { %4978 = sst [smem:[#allocation88_spill]] %s4916_s25 }
  0x18   :  { %4979 = sst [smem:[#allocation89_spill]] %s4917_s26 }
  0x19   :  { %32 = vsyncpa [#allocation3], 0 }
  0x1a   :  { %34 = vsyncpa [#allocation3 + $0x1], 0 }
  0x1b   :  { %35 = vsyncpa [#allocation6], 0 }
  0x1c   :  { %37 = vsyncpa [#allocation6 + $0x1], 0 }
  0x1d   :  { %38 = vsyncpa [#allocation9], 0 }
  0x1e   :  { %39 = vsyncpa [#allocation12], 0 }
  0x1f   :  { %40 = vsyncpa [#allocation15], 0 }
  0x20   :  { %41 = vsyncpa [#allocation18], 0 }
  0x21   :  { %42 = vsyncpa [#allocation21], 0 }
  0x22   :  { %43 = vsyncpa [#allocation24], 0 }
  0x23   :  { %44 = vsyncpa [#allocation27], 0 }
  0x24   :  { %45 = vsyncpa [#allocation30], 0 }
  0x25   :  { %46 = vsyncpa [#allocation33], 0 }
  0x26   :  { %47 = vsyncpa [#allocation36], 0 }
  0x27   :  { %48 = vsyncpa [#allocation39], 0 }
  0x28   :  { %49 = vsyncpa [#allocation4], 0 }
  0x29   :  { %51 = vsyncpa [#allocation4 + $0x1], 0 }
  0x2a   :  { %52 = vsyncpa [#allocation42], 0 }
  0x2b   :  { %54 = vsyncpa [#allocation42 + $0x1], 0  ;;  %s4029_s27 = smov 0   ;;  %s4031_s3 = smov 0  }
  0x2c   :  { %s4033_s7 = smov 0   ;;  %s4035_s28 = smov 0  }
  0x2d LB: > { %4980 = sst [smem:[#allocation61_spill]] %s3842_s27  ;;  %s3856_s8 = smov [#allocation7]   ;;  %s3854_s28 = sphi %s4035_s28, %s5073_s28   ;;  %s3850_s7 = sphi %s4033_s7, %s5072_s7   ;;  %s3846_s3 = sphi %s4031_s3, %s5071_s3   ;;  %s3842_s27 = sphi %s4029_s27, %s5070_s27  }
  0x2e   : > { %4981 = sst [smem:[#allocation62_spill]] %s3846_s3  ;;  %s665_s4 = sshll.u32 %s3856_s8, 4  ;;  %s4056_s4 = int_to_ptr.vmem [resolvable:$true] %s665_s4 }
  0x2f   : > { %4982 = sst [smem:[#allocation63_spill]] %s3850_s7  ;;  %s4050_s29 = sadd.s32 4294967295, %s3854_s28  }
  0x30   : > { %4983 = sst [smem:[#allocation64_spill]] %s4050_s29  ;;  %p2468_p0 = scmp.ge.s32.totalorder %s3854_s28, 1 }
  0x31   : > { %p4941_p1 = scmp.eq.s32.totalorder %s4050_s29, 0  ;;  %p652_p2 = scmp.lt.s32.totalorder %s3854_s28, 3 }
  0x32   : > { %s3857_s9 = smov [#allocation8]   ;;  %s3858_s2 = smov [#allocation11]  }
  0x33   : > { %p4058_p4 = pnand %p2468_p0, %p652_p2  ;;  %s676_s30 = sshll.u32 %s3857_s9, 4  ;;  %s4065_s30 = int_to_ptr.vmem [resolvable:$true] %s676_s30 }
  0x34   : > { %s698_s5 = sshll.u32 %s3858_s2, 4  ;;  %s3859_s6 = smov [#allocation14]   ;;  %s4073_s5 = int_to_ptr.vmem [resolvable:$true] %s698_s5 }
  0x35   : > { %s4984_s0 = scalar_select %p4058_p4, 1, 0 }
  0x36   : > { %p2789_p6 = pneg %p4058_p4  ;;  %s4075_s1 = sshll.u32 %s3859_s6, 4  ;;  %s721_s1 = int_to_ptr.vmem [resolvable:$true] %s4075_s1 }
  0x37   : > { %4985 = sst [smem:[#allocation65_spill]] %s4984_s0  ;;  %s4987_s25 = sld [smem:[#allocation68_spill]] }
  0x38   : > { %p4069_p7 = pnand %p2789_p6, %p4941_p1 }
  0x3a   : > { %p4085_p9 = pneg %p4069_p7 }
  0x3d   : > { %s2998_s24 = scalar_lea.hbm %s4987_s25, 128 }
  0x3e   : > { %p2999_p8 = scmp.ne.s32.totalorder %s4987_s25, %s2998_s24  ;;  %p3005_p12 = scmp.lt.u32.totalorder %s2998_s24, %s4987_s25 }
  0x40   : > { %p3001_p10 = pnand %p4085_p9, %p2999_p8 }
  0x42   : > { %p3002_p11 = pneg %p3001_p10 }
  0x44   : > { %p3007_p13 = pnand %p3005_p12, %p3002_p11 }
  0x46   : > { %3010 = shalt.err (!%p3007_p13)
}
  0x47   : > { %s3011_s26 = scalar_lea.vmem %s4056_s4, 128  ;;  %p3019_p5 = scmp.lt.s32.totalorder %s4056_s4, %s4056_s4 }
  0x48   : > { %p3012_p0 = scmp.ne.s32.totalorder %s4056_s4, %s3011_s26  ;;  %p3020_p3 = scmp.lt.s32.totalorder %s3011_s26, %s3011_s26 }
  0x4a   : > { %p3014_p2 = pnand %p3012_p0, %p4085_p9  ;;  %p3021_p8 = por %p3020_p3, %p3019_p5 }
  0x4c   : > { %p3015_p6 = pneg %p3014_p2 }
  0x4e   : > { %p3022_p10 = pnand %p3021_p8, %p3015_p6 }
  0x50   : > { %3025 = shalt.err (!%p3022_p10)
}
  0x51   : > { %2792 = dma.hbm_to_vmem [thread:$0]  (!%p4069_p7), %s4987_s25, 128, %s4056_s4, [#allocation6]  }
  0x52   : > { %s4989_s9 = sld [smem:[#allocation69_spill]] }
  0x58   : > { %s3026_s6 = scalar_lea.hbm %s4989_s9, 128 }
  0x59   : > { %p3027_p11 = scmp.ne.s32.totalorder %s4989_s9, %s3026_s6  ;;  %p3033_p12 = scmp.lt.u32.totalorder %s3026_s6, %s4989_s9 }
  0x5b   : > { %p3029_p3 = pnand %p3027_p11, %p4085_p9 }
  0x5d   : > { %p3030_p5 = pneg %p3029_p3 }
  0x5f   : > { %p3035_p13 = pnand %p3033_p12, %p3030_p5 }
  0x61   : > { %3038 = shalt.err (!%p3035_p13)
}
  0x62   : > { %s3039_s4 = scalar_lea.vmem %s4065_s30, 128  ;;  %p3047_p8 = scmp.lt.s32.totalorder %s4065_s30, %s4065_s30 }
  0x63   : > { %p3040_p0 = scmp.ne.s32.totalorder %s4065_s30, %s3039_s4  ;;  %p3048_p10 = scmp.lt.s32.totalorder %s3039_s4, %s3039_s4 }
  0x65   : > { %p3042_p2 = pnand %p3040_p0, %p4085_p9  ;;  %p3049_p11 = por %p3048_p10, %p3047_p8 }
  0x67   : > { %p3043_p6 = pneg %p3042_p2 }
  0x69   : > { %p3050_p3 = pnand %p3049_p11, %p3043_p6 }
  0x6b   : > { %3053 = shalt.err (!%p3050_p3)
}
  0x6c   : > { %2795 = dma.hbm_to_vmem [thread:$0]  (!%p4069_p7), %s4989_s9, 128, %s4065_s30, [#allocation9]  }
  0x6d   : > { %s4990_s29 = sld [smem:[#allocation71_spill]] }
  0x73   : > { %s3054_s0 = scalar_lea.hbm %s4990_s29, 128 }
  0x74   : > { %p3055_p5 = scmp.ne.s32.totalorder %s4990_s29, %s3054_s0  ;;  %p3061_p0 = scmp.lt.u32.totalorder %s3054_s0, %s4990_s29 }
  0x76   : > { %p3057_p12 = pnand %p3055_p5, %p4085_p9 }
  0x78   : > { %p3058_p13 = pneg %p3057_p12 }
  0x7a   : > { %p3063_p2 = pnand %p3061_p0, %p3058_p13 }
  0x7c   : > { %3066 = shalt.err (!%p3063_p2)
}
  0x7d   : > { %s3067_s30 = scalar_lea.vmem %s4073_s5, 128  ;;  %p3075_p11 = scmp.lt.s32.totalorder %s4073_s5, %s4073_s5 }
  0x7e   : > { %p3068_p6 = scmp.ne.s32.totalorder %s4073_s5, %s3067_s30  ;;  %p3076_p3 = scmp.lt.s32.totalorder %s3067_s30, %s3067_s30 }
  0x80   : > { %p3070_p8 = pnand %p3068_p6, %p4085_p9  ;;  %p3077_p5 = por %p3076_p3, %p3075_p11 }
  0x82   : > { %p3071_p10 = pneg %p3070_p8 }
  0x84   : > { %p3078_p12 = pnand %p3077_p5, %p3071_p10 }
  0x86   : > { %3081 = shalt.err (!%p3078_p12)
}
  0x87   : > { %2801 = dma.hbm_to_vmem [thread:$0]  (!%p4069_p7), %s4990_s29, 128, %s4073_s5, [#allocation12]  }
  0x88   : > { %s3860_s7 = smov [#allocation17]   ;;  %s4991_s6 = sld [smem:[#allocation73_spill]] }
  0x89   : > { %s742_s24 = sshll.u32 %s3860_s7, 4  ;;  %s743_s24 = int_to_ptr.vmem [resolvable:$true] %s742_s24 }
  0x8e   : > { %s3082_s26 = scalar_lea.hbm %s4991_s6, 128 }
  0x8f   : > { %p3083_p13 = scmp.ne.s32.totalorder %s4991_s6, %s3082_s26  ;;  %p3089_p6 = scmp.lt.u32.totalorder %s3082_s26, %s4991_s6 }
  0x91   : > { %p3085_p0 = pnand %p3083_p13, %p4085_p9 }
  0x93   : > { %p3086_p2 = pneg %p3085_p0 }
  0x95   : > { %p3091_p8 = pnand %p3089_p6, %p3086_p2 }
  0x97   : > { %3094 = shalt.err (!%p3091_p8)
}
  0x98   : > { %s3095_s5 = scalar_lea.vmem %s721_s1, 128  ;;  %p3103_p5 = scmp.lt.s32.totalorder %s721_s1, %s721_s1 }
  0x99   : > { %p3096_p10 = scmp.ne.s32.totalorder %s721_s1, %s3095_s5  ;;  %p3104_p12 = scmp.lt.s32.totalorder %s3095_s5, %s3095_s5 }
  0x9b   : > { %p3098_p11 = pnand %p3096_p10, %p4085_p9  ;;  %p3105_p1 = por %p3104_p12, %p3103_p5 }
  0x9d   : > { %p3099_p3 = pneg %p3098_p11 }
  0x9f   : > { %p3106_p4 = pnand %p3105_p1, %p3099_p3 }
  0xa1   : > { %3109 = shalt.err (!%p3106_p4)
}
  0xa2   : > { %2807 = dma.hbm_to_vmem [thread:$0]  (!%p4069_p7), %s4991_s6, 128, %s721_s1, [#allocation15]  }
  0xa3   : > { %s4992_s7 = sld [smem:[#allocation75_spill]] }
  0xa9   : > { %s4993_s0 = smov %s4992_s7  ;;  %s3110_s8 = scalar_lea.hbm %s4992_s7, 128 }
  0xaa   : > { %p3111_p13 = scmp.ne.s32.totalorder %s4993_s0, %s3110_s8  ;;  %p3117_p4 = scmp.lt.u32.totalorder %s3110_s8, %s4993_s0 }
  0xac   : > { %p3113_p0 = pnand %p3111_p13, %p4085_p9 }
  0xae   : > { %p3114_p1 = pneg %p3113_p0 }
  0xb0   : > { %p3119_p2 = pnand %p3117_p4, %p3114_p1 }
  0xb2   : > { %3122 = shalt.err (!%p3119_p2)
}
  0xb3   : > { %s3123_s27 = scalar_lea.vmem %s743_s24, 128  ;;  %p3131_p11 = scmp.lt.s32.totalorder %s743_s24, %s743_s24 }
  0xb4   : > { %p3124_p6 = scmp.ne.s32.totalorder %s743_s24, %s3123_s27  ;;  %p3132_p3 = scmp.lt.s32.totalorder %s3123_s27, %s3123_s27 }
  0xb6   : > { %p3126_p8 = pnand %p3124_p6, %p4085_p9  ;;  %p3133_p5 = por %p3132_p3, %p3131_p11 }
  0xb8   : > { %p3127_p10 = pneg %p3126_p8 }
  0xba   : > { %p3134_p12 = pnand %p3133_p5, %p3127_p10 }
  0xbc   : > { %3137 = shalt.err (!%p3134_p12)
}
  0xbd   : > { %2813 = dma.hbm_to_vmem [thread:$0]  (!%p4069_p7), %s4993_s0, 128, %s743_s24, [#allocation18]  }
  0xbe   : > { %s3861_s25 = smov [#allocation20]   ;;  %s3862_s7 = smov [#allocation23]  }
  0xbf   : > { %s765_s9 = sshll.u32 %s3861_s25, 4  ;;  %s791_s8 = sshll.u32 %s3862_s7, 4  ;;  %s766_s9 = int_to_ptr.vmem [resolvable:$true] %s765_s9  ;;  %s792_s8 = int_to_ptr.vmem [resolvable:$true] %s791_s8 }
  0xc0   : > { %s4994_s11 = sld [smem:[#allocation77_spill]] }
  0xc6   : > { %s3138_s30 = scalar_lea.hbm %s4994_s11, 512 }
  0xc7   : > { %p3139_p13 = scmp.ne.s32.totalorder %s4994_s11, %s3138_s30  ;;  %p3145_p4 = scmp.lt.u32.totalorder %s3138_s30, %s4994_s11 }
  0xc9   : > { %p3141_p0 = pnand %p3139_p13, %p4085_p9 }
  0xcb   : > { %p3142_p1 = pneg %p3141_p0 }
  0xcd   : > { %p3147_p2 = pnand %p3145_p4, %p3142_p1 }
  0xcf   : > { %3150 = shalt.err (!%p3147_p2)
}
  0xd0   : > { %s3151_s24 = scalar_lea.vmem %s766_s9, 512  ;;  %p3159_p11 = scmp.lt.s32.totalorder %s766_s9, %s766_s9 }
  0xd1   : > { %p3152_p6 = scmp.ne.s32.totalorder %s766_s9, %s3151_s24  ;;  %p3160_p3 = scmp.lt.s32.totalorder %s3151_s24, %s3151_s24 }
  0xd3   : > { %p3154_p8 = pnand %p3152_p6, %p4085_p9  ;;  %p3161_p5 = por %p3160_p3, %p3159_p11 }
  0xd5   : > { %p3155_p10 = pneg %p3154_p8 }
  0xd7   : > { %p3162_p12 = pnand %p3161_p5, %p3155_p10 }
  0xd9   : > { %3165 = shalt.err (!%p3162_p12)
}
  0xda   : > { %s4945_s3 = smov 128   ;;  %s4947_s25 = smov 8  }
  0xdb   : > { %2819 = dma.hbm_to_vmem [thread:$0]  (!%p4069_p7), %s4994_s11, 512, %s766_s9, [#allocation21], %s4945_s3, %s4945_s3, %s4947_s25  }
  0xdc   : > { %s4995_s13 = sld [smem:[#allocation79_spill]] }
  0xe2   : > { %s3166_s30 = scalar_lea.hbm %s4995_s13, 256 }
  0xe3   : > { %p3167_p13 = scmp.ne.s32.totalorder %s4995_s13, %s3166_s30  ;;  %p3173_p4 = scmp.lt.u32.totalorder %s3166_s30, %s4995_s13 }
  0xe5   : > { %p3169_p0 = pnand %p3167_p13, %p4085_p9 }
  0xe7   : > { %p3170_p1 = pneg %p3169_p0 }
  0xe9   : > { %p3175_p2 = pnand %p3173_p4, %p3170_p1 }
  0xeb   : > { %3178 = shalt.err (!%p3175_p2)
}
  0xec   : > { %s3179_s6 = scalar_lea.vmem %s792_s8, 256  ;;  %p3187_p11 = scmp.lt.s32.totalorder %s792_s8, %s792_s8 }
  0xed   : > { %p3180_p6 = scmp.ne.s32.totalorder %s792_s8, %s3179_s6  ;;  %p3188_p3 = scmp.lt.s32.totalorder %s3179_s6, %s3179_s6 }
  0xef   : > { %p3182_p8 = pnand %p3180_p6, %p4085_p9  ;;  %p3189_p5 = por %p3188_p3, %p3187_p11 }
  0xf1   : > { %p3183_p10 = pneg %p3182_p8 }
  0xf3   : > { %p3190_p12 = pnand %p3189_p5, %p3183_p10 }
  0xf5   : > { %3193 = shalt.err (!%p3190_p12)
}
  0xf6   : > { %2825 = dma.hbm_to_vmem [thread:$0]  (!%p4069_p7), %s4995_s13, 256, %s792_s8, [#allocation24], %s4945_s3, %s4945_s3, %s4947_s25  }
  0xf7   : > { %s3865_s26 = smov [#allocation26]   ;;  %s3866_s30 = smov [#allocation29]  }
  0xf8   : > { %s817_s4 = sshll.u32 %s3865_s26, 4  ;;  %s843_s5 = sshll.u32 %s3866_s30, 4  ;;  %s818_s4 = int_to_ptr.vmem [resolvable:$true] %s817_s4  ;;  %s844_s5 = int_to_ptr.vmem [resolvable:$true] %s843_s5 }
  0xf9   : > { %s4996_s15 = sld [smem:[#allocation81_spill]] }
  0xff   : > { %s3194_s24 = scalar_lea.hbm %s4996_s15, 384 }
 0x100   : > { %p3195_p13 = scmp.ne.s32.totalorder %s4996_s15, %s3194_s24  ;;  %p3201_p4 = scmp.lt.u32.totalorder %s3194_s24, %s4996_s15 }
 0x102   : > { %p3197_p0 = pnand %p3195_p13, %p4085_p9 }
 0x104   : > { %p3198_p1 = pneg %p3197_p0 }
 0x106   : > { %p3203_p2 = pnand %p3201_p4, %p3198_p1 }
 0x108   : > { %3206 = shalt.err (!%p3203_p2)
}
 0x109   : > { %s3207_s8 = scalar_lea.vmem %s818_s4, 384  ;;  %p3215_p11 = scmp.lt.s32.totalorder %s818_s4, %s818_s4 }
 0x10a   : > { %p3208_p6 = scmp.ne.s32.totalorder %s818_s4, %s3207_s8  ;;  %p3216_p3 = scmp.lt.s32.totalorder %s3207_s8, %s3207_s8 }
 0x10c   : > { %p3210_p8 = pnand %p3208_p6, %p4085_p9  ;;  %p3217_p5 = por %p3216_p3, %p3215_p11 }
 0x10e   : > { %p3211_p10 = pneg %p3210_p8 }
 0x110   : > { %p3218_p12 = pnand %p3217_p5, %p3211_p10 }
 0x112   : > { %3221 = shalt.err (!%p3218_p12)
}
 0x113   : > { %2831 = dma.hbm_to_vmem [thread:$0]  (!%p4069_p7), %s4996_s15, 384, %s818_s4, [#allocation27], %s4945_s3, %s4945_s3, %s4947_s25  }
 0x114   : > { %s4997_s17 = sld [smem:[#allocation83_spill]] }
 0x11a   : > { %s3222_s30 = scalar_lea.hbm %s4997_s17, 512 }
 0x11b   : > { %p3223_p13 = scmp.ne.s32.totalorder %s4997_s17, %s3222_s30  ;;  %p3229_p4 = scmp.lt.u32.totalorder %s3222_s30, %s4997_s17 }
 0x11d   : > { %p3225_p0 = pnand %p3223_p13, %p4085_p9 }
 0x11f   : > { %p3226_p1 = pneg %p3225_p0 }
 0x121   : > { %p3231_p2 = pnand %p3229_p4, %p3226_p1 }
 0x123   : > { %3234 = shalt.err (!%p3231_p2)
}
 0x124   : > { %s3235_s9 = scalar_lea.vmem %s844_s5, 512  ;;  %p3243_p11 = scmp.lt.s32.totalorder %s844_s5, %s844_s5 }
 0x125   : > { %p3236_p6 = scmp.ne.s32.totalorder %s844_s5, %s3235_s9  ;;  %p3244_p3 = scmp.lt.s32.totalorder %s3235_s9, %s3235_s9 }
 0x127   : > { %p3238_p8 = pnand %p3236_p6, %p4085_p9  ;;  %p3245_p5 = por %p3244_p3, %p3243_p11 }
 0x129   : > { %p3239_p10 = pneg %p3238_p8 }
 0x12b   : > { %p3246_p12 = pnand %p3245_p5, %p3239_p10 }
 0x12d   : > { %3249 = shalt.err (!%p3246_p12)
}
 0x12e   : > { %2837 = dma.hbm_to_vmem [thread:$0]  (!%p4069_p7), %s4997_s17, 512, %s844_s5, [#allocation30], %s4945_s3, %s4945_s3, %s4947_s25  }
 0x12f   : > { %s3867_s11 = smov [#allocation32]   ;;  %s3868_s7 = smov [#allocation35]  }
 0x130   : > { %s869_s0 = sshll.u32 %s3867_s11, 4  ;;  %s894_s26 = sshll.u32 %s3868_s7, 4  ;;  %s870_s0 = int_to_ptr.vmem [resolvable:$true] %s869_s0  ;;  %s895_s26 = int_to_ptr.vmem [resolvable:$true] %s894_s26 }
 0x131   : > { %s4998_s19 = sld [smem:[#allocation85_spill]] }
 0x137   : > { %s3250_s1 = scalar_lea.hbm %s4998_s19, 256 }
 0x138   : > { %p3251_p13 = scmp.ne.s32.totalorder %s4998_s19, %s3250_s1  ;;  %p3257_p4 = scmp.lt.u32.totalorder %s3250_s1, %s4998_s19 }
 0x13a   : > { %p3253_p0 = pnand %p3251_p13, %p4085_p9 }
 0x13c   : > { %p3254_p1 = pneg %p3253_p0 }
 0x13e   : > { %p3259_p2 = pnand %p3257_p4, %p3254_p1 }
 0x140   : > { %3262 = shalt.err (!%p3259_p2)
}
 0x141   : > { %s3263_s5 = scalar_lea.vmem %s870_s0, 256  ;;  %p3271_p11 = scmp.lt.s32.totalorder %s870_s0, %s870_s0 }
 0x142   : > { %p3264_p6 = scmp.ne.s32.totalorder %s870_s0, %s3263_s5  ;;  %p3272_p3 = scmp.lt.s32.totalorder %s3263_s5, %s3263_s5 }
 0x144   : > { %p3266_p8 = pnand %p3264_p6, %p4085_p9  ;;  %p3273_p5 = por %p3272_p3, %p3271_p11 }
 0x146   : > { %p3267_p10 = pneg %p3266_p8 }
 0x148   : > { %p3274_p12 = pnand %p3273_p5, %p3267_p10 }
 0x14a   : > { %3277 = shalt.err (!%p3274_p12)
}
 0x14b   : > { %2843 = dma.hbm_to_vmem [thread:$0]  (!%p4069_p7), %s4998_s19, 256, %s870_s0, [#allocation33], %s4945_s3, %s4945_s3, %s4947_s25  }
 0x14c   : > { %s3278_s27 = scalar_lea.hbm %s4912_s21, 128 }
 0x14d   : > { %p3279_p13 = scmp.ne.s32.totalorder %s4912_s21, %s3278_s27  ;;  %p3285_p4 = scmp.lt.u32.totalorder %s3278_s27, %s4912_s21 }
 0x14f   : > { %p3281_p0 = pnand %p3279_p13, %p4085_p9 }
 0x151   : > { %p3282_p1 = pneg %p3281_p0 }
 0x153   : > { %p3287_p2 = pnand %p3285_p4, %p3282_p1 }
 0x155   : > { %3290 = shalt.err (!%p3287_p2)
}
 0x156   : > { %s3291_s4 = scalar_lea.vmem %s895_s26, 128  ;;  %p3299_p11 = scmp.lt.s32.totalorder %s895_s26, %s895_s26 }
 0x157   : > { %p3292_p6 = scmp.ne.s32.totalorder %s895_s26, %s3291_s4  ;;  %p3300_p3 = scmp.lt.s32.totalorder %s3291_s4, %s3291_s4 }
 0x159   : > { %p3294_p8 = pnand %p3292_p6, %p4085_p9  ;;  %p3301_p5 = por %p3300_p3, %p3299_p11 }
 0x15b   : > { %p3295_p10 = pneg %p3294_p8 }
 0x15d   : > { %p3302_p12 = pnand %p3301_p5, %p3295_p10 }
 0x15f   : > { %3305 = shalt.err (!%p3302_p12)
}
 0x160   : > { %2849 = dma.hbm_to_vmem [thread:$0]  (!%p4069_p7), %s4912_s21, 128, %s895_s26, [#allocation36]  }
 0x161   : > { %s3869_s8 = smov [#allocation10]   ;;  %s3870_s7 = smov [#allocation13]  }
 0x162   : > { %s687_s11 = sshll.u32 %s3869_s8, 4  ;;  %s709_s30 = sshll.u32 %s3870_s7, 4  ;;  %s688_s11 = int_to_ptr.vmem [resolvable:$true] %s687_s11  ;;  %s710_s30 = int_to_ptr.vmem [resolvable:$true] %s709_s30 }
 0x163   : > { %s4999_s24 = sld [smem:[#allocation70_spill]] }
 0x169   : > { %s3306_s6 = scalar_lea.hbm %s4999_s24, 128 }
 0x16a   : > { %p3307_p13 = scmp.ne.s32.totalorder %s4999_s24, %s3306_s6  ;;  %p3313_p4 = scmp.lt.u32.totalorder %s3306_s6, %s4999_s24 }
 0x16c   : > { %p3309_p0 = pnand %p3307_p13, %p4085_p9 }
 0x16e   : > { %p3310_p1 = pneg %p3309_p0 }
 0x170   : > { %p3315_p2 = pnand %p3313_p4, %p3310_p1 }
 0x172   : > { %3318 = shalt.err (!%p3315_p2)
}
 0x173   : > { %s3319_s26 = scalar_lea.vmem %s688_s11, 128  ;;  %p3327_p11 = scmp.lt.s32.totalorder %s688_s11, %s688_s11 }
 0x174   : > { %p3320_p6 = scmp.ne.s32.totalorder %s688_s11, %s3319_s26  ;;  %p3328_p3 = scmp.lt.s32.totalorder %s3319_s26, %s3319_s26 }
 0x176   : > { %p3322_p8 = pnand %p3320_p6, %p4085_p9  ;;  %p3329_p5 = por %p3328_p3, %p3327_p11 }
 0x178   : > { %p3323_p10 = pneg %p3322_p8 }
 0x17a   : > { %p3330_p12 = pnand %p3329_p5, %p3323_p10 }
 0x17c   : > { %3333 = shalt.err (!%p3330_p12)
}
 0x17d   : > { %2798 = dma.hbm_to_vmem [thread:$0]  (!%p4069_p7), %s4999_s24, 128, %s688_s11, [#allocation9]  }
 0x17e   : > { %s5000_s27 = sld [smem:[#allocation72_spill]] }
 0x184   : > { %s5001_s1 = smov %s5000_s27  ;;  %s3334_s6 = scalar_lea.hbm %s5000_s27, 128 }
 0x185   : > { %p3335_p13 = scmp.ne.s32.totalorder %s5001_s1, %s3334_s6  ;;  %p3341_p4 = scmp.lt.u32.totalorder %s3334_s6, %s5001_s1 }
 0x187   : > { %p3337_p0 = pnand %p3335_p13, %p4085_p9 }
 0x189   : > { %p3338_p1 = pneg %p3337_p0 }
 0x18b   : > { %p3343_p2 = pnand %p3341_p4, %p3338_p1 }
 0x18d   : > { %3346 = shalt.err (!%p3343_p2)
}
 0x18e   : > { %s3347_s5 = scalar_lea.vmem %s710_s30, 128  ;;  %p3355_p11 = scmp.lt.s32.totalorder %s710_s30, %s710_s30 }
 0x18f   : > { %p3348_p6 = scmp.ne.s32.totalorder %s710_s30, %s3347_s5  ;;  %p3356_p3 = scmp.lt.s32.totalorder %s3347_s5, %s3347_s5 }
 0x191   : > { %p3350_p8 = pnand %p3348_p6, %p4085_p9  ;;  %p3357_p5 = por %p3356_p3, %p3355_p11 }
 0x193   : > { %p3351_p10 = pneg %p3350_p8 }
 0x195   : > { %p3358_p12 = pnand %p3357_p5, %p3351_p10 }
 0x197   : > { %3361 = shalt.err (!%p3358_p12)
}
 0x198   : > { %2804 = dma.hbm_to_vmem [thread:$0]  (!%p4069_p7), %s5001_s1, 128, %s710_s30, [#allocation12]  }
 0x199   : > { %s3871_s3 = smov [#allocation16]   ;;  %s3872_s27 = smov [#allocation19]  }
 0x19a   : > { %s731_s7 = sshll.u32 %s3871_s3, 4  ;;  %s752_s6 = sshll.u32 %s3872_s27, 4  ;;  %s732_s7 = int_to_ptr.vmem [resolvable:$true] %s731_s7  ;;  %s753_s6 = int_to_ptr.vmem [resolvable:$true] %s752_s6 }
 0x19b   : > { %s5002_s0 = sld [smem:[#allocation74_spill]] }
 0x1a1   : > { %s3362_s26 = scalar_lea.hbm %s5002_s0, 128 }
 0x1a2   : > { %p3363_p13 = scmp.ne.s32.totalorder %s5002_s0, %s3362_s26  ;;  %p3369_p4 = scmp.lt.u32.totalorder %s3362_s26, %s5002_s0 }
 0x1a4   : > { %p3365_p0 = pnand %p3363_p13, %p4085_p9 }
 0x1a6   : > { %p3366_p1 = pneg %p3365_p0 }
 0x1a8   : > { %p3371_p2 = pnand %p3369_p4, %p3366_p1 }
 0x1aa   : > { %3374 = shalt.err (!%p3371_p2)
}
 0x1ab   : > { %s3375_s30 = scalar_lea.vmem %s732_s7, 128  ;;  %p3383_p11 = scmp.lt.s32.totalorder %s732_s7, %s732_s7 }
 0x1ac   : > { %p3376_p6 = scmp.ne.s32.totalorder %s732_s7, %s3375_s30  ;;  %p3384_p3 = scmp.lt.s32.totalorder %s3375_s30, %s3375_s30 }
 0x1ae   : > { %p3378_p8 = pnand %p3376_p6, %p4085_p9  ;;  %p3385_p5 = por %p3384_p3, %p3383_p11 }
 0x1b0   : > { %p3379_p10 = pneg %p3378_p8 }
 0x1b2   : > { %p3386_p12 = pnand %p3385_p5, %p3379_p10 }
 0x1b4   : > { %3389 = shalt.err (!%p3386_p12)
}
 0x1b5   : > { %2810 = dma.hbm_to_vmem [thread:$0]  (!%p4069_p7), %s5002_s0, 128, %s732_s7, [#allocation15]  }
 0x1b6   : > { %s5003_s27 = sld [smem:[#allocation76_spill]] }
 0x1bc   : > { %s5004_s9 = smov %s5003_s27  ;;  %s3390_s4 = scalar_lea.hbm %s5003_s27, 512 }
 0x1bd   : > { %p3391_p13 = scmp.ne.s32.totalorder %s5004_s9, %s3390_s4  ;;  %p3397_p4 = scmp.lt.u32.totalorder %s3390_s4, %s5004_s9 }
 0x1bf   : > { %p3393_p0 = pnand %p3391_p13, %p4085_p9 }
 0x1c1   : > { %p3394_p1 = pneg %p3393_p0 }
 0x1c3   : > { %p3399_p2 = pnand %p3397_p4, %p3394_p1 }
 0x1c5   : > { %3402 = shalt.err (!%p3399_p2)
}
 0x1c6   : > { %s3403_s25 = scalar_lea.vmem %s753_s6, 512  ;;  %p3411_p11 = scmp.lt.s32.totalorder %s753_s6, %s753_s6 }
 0x1c7   : > { %p3404_p6 = scmp.ne.s32.totalorder %s753_s6, %s3403_s25  ;;  %p3412_p3 = scmp.lt.s32.totalorder %s3403_s25, %s3403_s25 }
 0x1c9   : > { %p3406_p8 = pnand %p3404_p6, %p4085_p9  ;;  %p3413_p5 = por %p3412_p3, %p3411_p11 }
 0x1cb   : > { %p3407_p10 = pneg %p3406_p8 }
 0x1cd   : > { %p3414_p12 = pnand %p3413_p5, %p3407_p10 }
 0x1cf   : > { %3417 = shalt.err (!%p3414_p12)
}
 0x1d0   : > { %s5005_s7 = smov 8   ;;  %s5006_s8 = smov 128  }
 0x1d1   : > { %2816 = dma.hbm_to_vmem [thread:$0]  (!%p4069_p7), %s5004_s9, 512, %s753_s6, [#allocation18], %s5006_s8, %s5006_s8, %s5005_s7  }
 0x1d2   : > { %s3873_s27 = smov [#allocation22]   ;;  %s3874_s26 = smov [#allocation25]  }
 0x1d3   : > { %s778_s4 = sshll.u32 %s3873_s27, 4  ;;  %s804_s5 = sshll.u32 %s3874_s26, 4  ;;  %s779_s4 = int_to_ptr.vmem [resolvable:$true] %s778_s4  ;;  %s805_s5 = int_to_ptr.vmem [resolvable:$true] %s804_s5 }
 0x1d4   : > { %s5007_s12 = sld [smem:[#allocation78_spill]] }
 0x1da   : > { %s3418_s25 = scalar_lea.hbm %s5007_s12, 256 }
 0x1db   : > { %p3419_p13 = scmp.ne.s32.totalorder %s5007_s12, %s3418_s25  ;;  %p3425_p4 = scmp.lt.u32.totalorder %s3418_s25, %s5007_s12 }
 0x1dd   : > { %p3421_p0 = pnand %p3419_p13, %p4085_p9 }
 0x1df   : > { %p3422_p1 = pneg %p3421_p0 }
 0x1e1   : > { %p3427_p2 = pnand %p3425_p4, %p3422_p1 }
 0x1e3   : > { %3430 = shalt.err (!%p3427_p2)
}
 0x1e4   : > { %s3431_s6 = scalar_lea.vmem %s779_s4, 256  ;;  %p3439_p11 = scmp.lt.s32.totalorder %s779_s4, %s779_s4 }
 0x1e5   : > { %p3432_p6 = scmp.ne.s32.totalorder %s779_s4, %s3431_s6  ;;  %p3440_p3 = scmp.lt.s32.totalorder %s3431_s6, %s3431_s6 }
 0x1e7   : > { %p3434_p8 = pnand %p3432_p6, %p4085_p9  ;;  %p3441_p5 = por %p3440_p3, %p3439_p11 }
 0x1e9   : > { %p3435_p10 = pneg %p3434_p8 }
 0x1eb   : > { %p3442_p12 = pnand %p3441_p5, %p3435_p10 }
 0x1ed   : > { %3445 = shalt.err (!%p3442_p12)
}
 0x1ee   : > { %2822 = dma.hbm_to_vmem [thread:$0]  (!%p4069_p7), %s5007_s12, 256, %s779_s4, [#allocation21], %s5006_s8, %s5006_s8, %s5005_s7  }
 0x1ef   : > { %s5008_s14 = sld [smem:[#allocation80_spill]] }
 0x1f5   : > { %s3446_s27 = scalar_lea.hbm %s5008_s14, 384 }
 0x1f6   : > { %p3447_p13 = scmp.ne.s32.totalorder %s5008_s14, %s3446_s27  ;;  %p3453_p4 = scmp.lt.u32.totalorder %s3446_s27, %s5008_s14 }
 0x1f8   : > { %p3449_p0 = pnand %p3447_p13, %p4085_p9 }
 0x1fa   : > { %p3450_p1 = pneg %p3449_p0 }
 0x1fc   : > { %p3455_p2 = pnand %p3453_p4, %p3450_p1 }
 0x1fe   : > { %3458 = shalt.err (!%p3455_p2)
}
 0x1ff   : > { %s3459_s13 = scalar_lea.vmem %s805_s5, 384  ;;  %p3467_p11 = scmp.lt.s32.totalorder %s805_s5, %s805_s5 }
 0x200   : > { %p3460_p6 = scmp.ne.s32.totalorder %s805_s5, %s3459_s13  ;;  %p3468_p3 = scmp.lt.s32.totalorder %s3459_s13, %s3459_s13 }
 0x202   : > { %p3462_p8 = pnand %p3460_p6, %p4085_p9  ;;  %p3469_p5 = por %p3468_p3, %p3467_p11 }
 0x204   : > { %p3463_p10 = pneg %p3462_p8 }
 0x206   : > { %p3470_p12 = pnand %p3469_p5, %p3463_p10 }
 0x208   : > { %3473 = shalt.err (!%p3470_p12)
}
 0x209   : > { %2828 = dma.hbm_to_vmem [thread:$0]  (!%p4069_p7), %s5008_s14, 384, %s805_s5, [#allocation24], %s5006_s8, %s5006_s8, %s5005_s7  }
 0x20a   : > { %s3875_s15 = smov [#allocation28]   ;;  %s3876_s0 = smov [#allocation31]  }
 0x20b   : > { %s830_s1 = sshll.u32 %s3875_s15, 4  ;;  %s856_s3 = sshll.u32 %s3876_s0, 4  ;;  %s831_s1 = int_to_ptr.vmem [resolvable:$true] %s830_s1  ;;  %s857_s3 = int_to_ptr.vmem [resolvable:$true] %s856_s3 }
 0x20c   : > { %s5009_s16 = sld [smem:[#allocation82_spill]] }
 0x212   : > { %s3474_s11 = scalar_lea.hbm %s5009_s16, 512 }
 0x213   : > { %p3475_p13 = scmp.ne.s32.totalorder %s5009_s16, %s3474_s11  ;;  %p3481_p4 = scmp.lt.u32.totalorder %s3474_s11, %s5009_s16 }
 0x215   : > { %p3477_p0 = pnand %p3475_p13, %p4085_p9 }
 0x217   : > { %p3478_p1 = pneg %p3477_p0 }
 0x219   : > { %p3483_p2 = pnand %p3481_p4, %p3478_p1 }
 0x21b   : > { %3486 = shalt.err (!%p3483_p2)
}
 0x21c   : > { %s3487_s5 = scalar_lea.vmem %s831_s1, 512  ;;  %p3495_p11 = scmp.lt.s32.totalorder %s831_s1, %s831_s1 }
 0x21d   : > { %p3488_p6 = scmp.ne.s32.totalorder %s831_s1, %s3487_s5  ;;  %p3496_p3 = scmp.lt.s32.totalorder %s3487_s5, %s3487_s5 }
 0x21f   : > { %p3490_p8 = pnand %p3488_p6, %p4085_p9  ;;  %p3497_p5 = por %p3496_p3, %p3495_p11 }
 0x221   : > { %p3491_p10 = pneg %p3490_p8 }
 0x223   : > { %p3498_p12 = pnand %p3497_p5, %p3491_p10 }
 0x225   : > { %3501 = shalt.err (!%p3498_p12)
}
 0x226   : > { %2834 = dma.hbm_to_vmem [thread:$0]  (!%p4069_p7), %s5009_s16, 512, %s831_s1, [#allocation27], %s5006_s8, %s5006_s8, %s5005_s7  }
 0x227   : > { %s5010_s18 = sld [smem:[#allocation84_spill]] }
 0x22d   : > { %s3502_s26 = scalar_lea.hbm %s5010_s18, 256 }
 0x22e   : > { %p3503_p13 = scmp.ne.s32.totalorder %s5010_s18, %s3502_s26  ;;  %p3509_p4 = scmp.lt.u32.totalorder %s3502_s26, %s5010_s18 }
 0x230   : > { %p3505_p0 = pnand %p3503_p13, %p4085_p9 }
 0x232   : > { %p3506_p1 = pneg %p3505_p0 }
 0x234   : > { %p3511_p2 = pnand %p3509_p4, %p3506_p1 }
 0x236   : > { %3514 = shalt.err (!%p3511_p2)
}
 0x237   : > { %s3515_s4 = scalar_lea.vmem %s857_s3, 256  ;;  %p3523_p11 = scmp.lt.s32.totalorder %s857_s3, %s857_s3 }
 0x238   : > { %p3516_p6 = scmp.ne.s32.totalorder %s857_s3, %s3515_s4  ;;  %p3524_p3 = scmp.lt.s32.totalorder %s3515_s4, %s3515_s4 }
 0x23a   : > { %p3518_p8 = pnand %p3516_p6, %p4085_p9  ;;  %p3525_p5 = por %p3524_p3, %p3523_p11 }
 0x23c   : > { %p3519_p10 = pneg %p3518_p8 }
 0x23e   : > { %p3526_p12 = pnand %p3525_p5, %p3519_p10 }
 0x240   : > { %3529 = shalt.err (!%p3526_p12)
}
 0x241   : > { %2840 = dma.hbm_to_vmem [thread:$0]  (!%p4069_p7), %s5010_s18, 256, %s857_s3, [#allocation30], %s5006_s8, %s5006_s8, %s5005_s7  }
 0x242   : > { %s3877_s6 = smov [#allocation34]   ;;  %s3878_s0 = smov [#allocation37]  }
 0x243   : > { %s883_s15 = sshll.u32 %s3877_s6, 4  ;;  %s905_s27 = sshll.u32 %s3878_s0, 4  ;;  %s884_s15 = int_to_ptr.vmem [resolvable:$true] %s883_s15  ;;  %s906_s27 = int_to_ptr.vmem [resolvable:$true] %s905_s27 }
 0x244   : > { %s5011_s20 = sld [smem:[#allocation86_spill]] }
 0x24a   : > { %s3530_s30 = scalar_lea.hbm %s5011_s20, 128 }
 0x24b   : > { %p3531_p13 = scmp.ne.s32.totalorder %s5011_s20, %s3530_s30  ;;  %p3537_p4 = scmp.lt.u32.totalorder %s3530_s30, %s5011_s20 }
 0x24d   : > { %p3533_p0 = pnand %p3531_p13, %p4085_p9 }
 0x24f   : > { %p3534_p1 = pneg %p3533_p0 }
 0x251   : > { %p3539_p2 = pnand %p3537_p4, %p3534_p1 }
 0x253   : > { %3542 = shalt.err (!%p3539_p2)
}
 0x254   : > { %s3543_s3 = scalar_lea.vmem %s884_s15, 128  ;;  %p3551_p11 = scmp.lt.s32.totalorder %s884_s15, %s884_s15 }
 0x255   : > { %p3544_p6 = scmp.ne.s32.totalorder %s884_s15, %s3543_s3  ;;  %p3552_p3 = scmp.lt.s32.totalorder %s3543_s3, %s3543_s3 }
 0x257   : > { %p3546_p8 = pnand %p3544_p6, %p4085_p9  ;;  %p3553_p5 = por %p3552_p3, %p3551_p11 }
 0x259   : > { %p3547_p10 = pneg %p3546_p8 }
 0x25b   : > { %p3554_p12 = pnand %p3553_p5, %p3547_p10 }
 0x25d   : > { %3557 = shalt.err (!%p3554_p12)
}
 0x25e   : > { %2846 = dma.hbm_to_vmem [thread:$0]  (!%p4069_p7), %s5011_s20, 128, %s884_s15, [#allocation33]  }
 0x25f   : > { %s3558_s11 = scalar_lea.hbm %s4913_s22, 128 }
 0x260   : > { %p3559_p13 = scmp.ne.s32.totalorder %s4913_s22, %s3558_s11  ;;  %p3565_p4 = scmp.lt.u32.totalorder %s3558_s11, %s4913_s22 }
 0x262   : > { %p3561_p0 = pnand %p3559_p13, %p4085_p9 }
 0x264   : > { %p3562_p1 = pneg %p3561_p0 }
 0x266   : > { %p3567_p2 = pnand %p3565_p4, %p3562_p1 }
 0x268   : > { %3570 = shalt.err (!%p3567_p2)
}
 0x269   : > { %s3571_s1 = scalar_lea.vmem %s906_s27, 128  ;;  %p3579_p11 = scmp.lt.s32.totalorder %s906_s27, %s906_s27 }
 0x26a   : > { %p3572_p6 = scmp.ne.s32.totalorder %s906_s27, %s3571_s1  ;;  %p3580_p3 = scmp.lt.s32.totalorder %s3571_s1, %s3571_s1 }
 0x26c   : > { %p3574_p8 = pnand %p3572_p6, %p4085_p9  ;;  %p3581_p5 = por %p3580_p3, %p3579_p11 }
 0x26e   : > { %p3575_p10 = pneg %p3574_p8 }
 0x270   : > { %p3582_p12 = pnand %p3581_p5, %p3575_p10 }
 0x272   : > { %3585 = shalt.err (!%p3582_p12)
}
 0x273   : > { %2852 = dma.hbm_to_vmem [thread:$0]  (!%p4069_p7), %s4913_s22, 128, %s906_s27, [#allocation36]  }
 0x274   : > { %s3879_s5 = smov [#allocation38]   ;;  %s3586_s11 = scalar_lea.hbm %s4914_s23, 128 }
 0x275   : > { %s916_s6 = sshll.u32 %s3879_s5, 4  ;;  %p3587_p13 = scmp.ne.s32.totalorder %s4914_s23, %s3586_s11  ;;  %s917_s6 = int_to_ptr.vmem [resolvable:$true] %s916_s6 }
 0x276   : > { %p3593_p4 = scmp.lt.u32.totalorder %s3586_s11, %s4914_s23 }
 0x277   : > { %p3589_p0 = pnand %p3587_p13, %p4085_p9 }
 0x279   : > { %p3590_p1 = pneg %p3589_p0 }
 0x27b   : > { %p3595_p2 = pnand %p3593_p4, %p3590_p1 }
 0x27d   : > { %3598 = shalt.err (!%p3595_p2)
}
 0x27e   : > { %s3599_s27 = scalar_lea.vmem %s917_s6, 128  ;;  %p3607_p11 = scmp.lt.s32.totalorder %s917_s6, %s917_s6 }
 0x27f   : > { %p3600_p6 = scmp.ne.s32.totalorder %s917_s6, %s3599_s27  ;;  %p3608_p3 = scmp.lt.s32.totalorder %s3599_s27, %s3599_s27 }
 0x281   : > { %p3602_p8 = pnand %p3600_p6, %p4085_p9  ;;  %p3609_p5 = por %p3608_p3, %p3607_p11 }
 0x283   : > { %p3603_p10 = pneg %p3602_p8 }
 0x285   : > { %p3610_p12 = pnand %p3609_p5, %p3603_p10 }
 0x287   : > { %3613 = shalt.err (!%p3610_p12)
}
 0x288   : > { %s5012_s3 = sld [smem:[#allocation63_spill]]  ;;  %s5013_s5 = sld [smem:[#allocation62_spill]] }
 0x289   : > { %s5014_s2 = sld [smem:[#allocation61_spill]]  ;;  %s5015_s0 = sld [smem:[#allocation64_spill]] }
 0x28a   : > { %2855 = dma.hbm_to_vmem [thread:$0]  (!%p4069_p7), %s4914_s23, 128, %s917_s6, [#allocation39]  }
 0x28b   : > { %s4951_s10 = sadd.s32 4294967294, %s3854_s28   ;;  %s4527_s26 = sadd.s32 1, %s3854_s28  }
 0x28c   : > { %s64_s11 = ssub.s32 %s3854_s28, %s4527_s26  ;;  %p75_p0 = scmp.eq.s32.totalorder %s3854_s28, 0 }
 0x28d   : > { %p65_p9 = scmp.eq.s32.totalorder %s64_s11, 0  ;;  %p598_p8 = scmp.eq.s32.totalorder %s4951_s10, 1 }
 0x28e   : > { %s67_s30 = sadd.s32 1, %s5012_s3  ;;  %p74_p13 = scmp.ne.s32.totalorder %s5012_s3, %s5013_s5 }
 0x28f   : > { %p80_p1 = scmp.ne.s32.totalorder %s5013_s5, %s5014_s2  ;;  %p5017_p7 = scmp.eq.s32.totalorder %s5015_s0, 0 }
 0x290   : > { %s4538_s25 = scalar_select %p65_p9, %s5012_s3, %s67_s30  }
 0x291   : > { %p4540_p4 = por %p75_p0, %p74_p13  ;;  %p4546_p2 = por %p5017_p7, %p80_p1 }
 0x292   : > { %p4954_p6 = scmp.eq.s32.totalorder %s5015_s0, 1  ;;  %p2892_p10 = scmp.lt.s32.totalorder %s3854_s28, 2 }
 0x293   : > { %s4555_s4 = sand.u32 1, %s5012_s3   ;;  %p4563_p3 = por %p598_p8, %p80_p1 }
 0x294   : > { %p4559_p11 = por %p4954_p6, %p74_p13  ;;  %s2492_s15 = sshll.u32 %s4555_s4, 4 }
 0x295   : > { %s5020_s1 = scalar_select %p4563_p3, 1, 0 }
 0x296   : > { %s5019_s27 = scalar_select %p4559_p11, 1, 0 }
 0x297   : > { %s4953_s5 = sshll.u32 %s3854_s28, 7  ;;  %s5021_s30 = sld [smem:[#allocation66_spill]] }
 0x298   : > { %s931_s3 = scalar_lea.vmem [#allocation2], %s2492_s15  ;;  %p4580_p5 = pnand %p2892_p10, %p4540_p4 }
 0x299   : > { %s937_s0 = sshll.u32 %s931_s3, 4  ;;  %s928_s14 = scalar_lea.sflag [#allocation3], %s4555_s4  ;;  %s4576_s0 = int_to_ptr.vmem [resolvable:$true] %s937_s0 }
 0x29a   : > { %p3616_p9 = pneg %p4580_p5 }
 0x29d   : > { %s4574_s10 = scalar_lea.hbm %s5021_s30, %s4953_s5  ;;  %s3619_s13 = scalar_lea.hbm %s5021_s30, 512 }
 0x29e   : > { %s3614_s2 = scalar_lea.hbm %s4574_s10, 256  ;;  %p3620_p1 = scmp.lt.u32.totalorder %s4574_s10, %s5021_s30 }
 0x29f   : > { %p3615_p12 = scmp.ne.s32.totalorder %s4574_s10, %s3614_s2  ;;  %p3621_p4 = scmp.lt.u32.totalorder %s3619_s13, %s3614_s2 }
 0x2a0   : > { %p3623_p8 = scmp.lt.u32.totalorder %s3614_s2, %s4574_s10 }
 0x2a1   : > { %p3617_p13 = pnand %p3616_p9, %p3615_p12  ;;  %p3622_p7 = por %p3621_p4, %p3620_p1 }
 0x2a3   : > { %p3618_p0 = pneg %p3617_p13  ;;  %p3624_p10 = por %p3623_p8, %p3622_p7 }
 0x2a5   : > { %p3625_p6 = pnand %p3624_p10, %p3618_p0 }
 0x2a7   : > { %3628 = shalt.err (!%p3625_p6)
}
 0x2a8   : > { %s3629_s12 = scalar_lea.vmem %s4576_s0, 256  ;;  %s3880_s15 = smov [#allocation2]  }
 0x2a9   : > { %p3630_p12 = scmp.ne.s32.totalorder %s4576_s0, %s3629_s12  ;;  %s3634_s11 = sshll.u32 %s3880_s15, 4  ;;  %s3635_s11 = int_to_ptr.vmem [resolvable:$false] %s3634_s11 }
 0x2aa   : > { %s3636_s5 = scalar_lea.vmem %s3635_s11, 512  ;;  %p3637_p11 = scmp.lt.s32.totalorder %s4576_s0, %s3635_s11 }
 0x2ab   : > { %p3632_p13 = pnand %p3630_p12, %p3616_p9  ;;  %p3638_p1 = scmp.lt.s32.totalorder %s3636_s5, %s3629_s12 }
 0x2ad   : > { %p3633_p3 = pneg %p3632_p13  ;;  %p3639_p4 = por %p3638_p1, %p3637_p11 }
 0x2af   : > { %p3640_p7 = pnand %p3639_p4, %p3633_p3 }
 0x2b1   : > { %3643 = shalt.err (!%p3640_p7)
}
 0x2b2   : > { %s3881_s2 = smov 256   ;;  %s5023_s13 = sshll.u32 %s3854_s28, 7 }
 0x2b3   : > { %2859 = dma.hbm_to_vmem [thread:$0]  (!%p4580_p5), %s4574_s10, 256, %s4576_s0, %s928_s14, %s3881_s2, %s5006_s8, %s5005_s7  }
 0x2b4   : > { %s5024_s15 = sld [smem:[#allocation67_spill]]  ;;  %s2494_s5 = sshll.u32 %s4555_s4, 5 }
 0x2b5   : > { %s951_s16 = scalar_lea.vmem [#allocation5], %s2494_s5  ;;  %s5025_s18 = sand.u32 1, %s3854_s28  }
 0x2b6   : > { %s957_s17 = sshll.u32 %s951_s16, 4  ;;  %s4628_s19 = scalar_lea.sflag [#allocation6], %s5025_s18  ;;  %s4624_s17 = int_to_ptr.vmem [resolvable:$true] %s957_s17 }
 0x2ba   : > { %s4621_s11 = scalar_lea.hbm %s5024_s15, %s5023_s13  ;;  %s3649_s0 = scalar_lea.hbm %s5024_s15, 1024 }
 0x2bb   : > { %s3644_s20 = scalar_lea.hbm %s4621_s11, 512  ;;  %p3650_p0 = scmp.lt.u32.totalorder %s4621_s11, %s5024_s15 }
 0x2bc   : > { %p3645_p6 = scmp.ne.s32.totalorder %s4621_s11, %s3644_s20  ;;  %p3651_p8 = scmp.lt.u32.totalorder %s3649_s0, %s3644_s20 }
 0x2bd   : > { %p3653_p12 = scmp.lt.u32.totalorder %s3644_s20, %s4621_s11 }
 0x2be   : > { %p3647_p11 = pnand %p3645_p6, %p3616_p9  ;;  %p3652_p10 = por %p3651_p8, %p3650_p0 }
 0x2c0   : > { %p3648_p3 = pneg %p3647_p11  ;;  %p3654_p13 = por %p3653_p12, %p3652_p10 }
 0x2c2   : > { %p3655_p1 = pnand %p3654_p13, %p3648_p3 }
 0x2c4   : > { %3658 = shalt.err (!%p3655_p1)
}
 0x2c5   : > { %s3659_s16 = scalar_lea.vmem %s4624_s17, 512  ;;  %s3882_s18 = smov [#allocation5]  }
 0x2c6   : > { %p3660_p4 = scmp.ne.s32.totalorder %s4624_s17, %s3659_s16  ;;  %s3664_s4 = sshll.u32 %s3882_s18, 4  ;;  %s3665_s4 = int_to_ptr.vmem [resolvable:$false] %s3664_s4 }
 0x2c7   : > { %s3666_s3 = scalar_lea.vmem %s3665_s4, 1024  ;;  %p3667_p11 = scmp.lt.s32.totalorder %s4624_s17, %s3665_s4 }
 0x2c8   : > { %p3662_p7 = pnand %p3660_p4, %p3616_p9  ;;  %p3668_p0 = scmp.lt.s32.totalorder %s3666_s3, %s3659_s16 }
 0x2ca   : > { %p3663_p6 = pneg %p3662_p7  ;;  %p3669_p8 = por %p3668_p0, %p3667_p11 }
 0x2cc   : > { %p3670_p10 = pnand %p3669_p8, %p3663_p6 }
 0x2ce   : > { %3673 = shalt.err (!%p3670_p10)
}
 0x2cf   : > { %2862 = dma.hbm_to_vmem [thread:$0]  (!%p4580_p5), %s4621_s11, 512, %s4624_s17, %s4628_s19, %s3881_s2, %s5006_s8, %s5005_s7  }
 0x2d0   : > { %s5026_s20 = sld [smem:[#allocation65_spill]] }
 0x2d6   : > { %p5027_p9 = scmp.ne.s32.totalorder %s5026_s20, 0 }
 0x2d7   : > { %s5028_s5 = sld [smem:[#allocation62_spill]] (!%p5027_p9) }
 0x2d8   : > { %969 = sbr.rel (%p5027_p9) target bundleno = 2779 (0xadb), region = 116 }
 0x2dd   : > { %s4660_s14 = sand.u32 (!%p5027_p9), 1, %s5028_s5  }
 0x2de   : > { %s2497_s10 = sshll.u32 (!%p5027_p9), %s4660_s14, 4  ;;  %s972_s0 = scalar_lea.sflag (!%p5027_p9), [#allocation3], %s4660_s14 }
 0x2df   : > { %s4666_s9 = scalar_lea.vmem [#allocation2], %s2497_s10 }
 0x2e0   : > { %3773 = dma.done.wait (%p4546_p2), %s972_s0, 256  }
 0x2e1   : > { %3775 = vsyncadd (%p4546_p2), %s972_s0, 4294967040  ;;  %s5029_s17 = sld [smem:[#allocation64_spill]]  ;;  %s2498_s7 = sshll.u32 %s4660_s14, 5 }
 0x2e2   : > { %s4676_s2 = scalar_lea.vmem [#allocation5], %s2498_s7 }
 0x2e7   : > { %s980_s19 = sand.u32 1, %s5029_s17  }
 0x2e8   : > { %s981_s8 = scalar_lea.sflag [#allocation6], %s980_s19 }
 0x2e9   : > { %3777 = dma.done.wait (%p4546_p2), %s981_s8, 512  }
 0x2ea   : > { %3779 = vsyncadd (%p4546_p2), %s981_s8, 4294966784  ;;  %p5030_p5 = scmp.eq.s32.totalorder %s5029_s17, 0 }
 0x2ec   : > { %3781 = dma.done.wait (%p5030_p5), [#allocation6], 128   ;;  %p5031_p3 = pmov %p5030_p5 }
 0x2ee   : > { %3783 = vsyncadd (%p5031_p3), [#allocation6], 4294967168  ;;  %p5032_p12 = pmov %p5031_p3 }
 0x2ef   : > { %p5033_p13 = pmov %p5031_p3 }
 0x2f0   : > { %3785 = dma.done.wait (%p5032_p12), [#allocation9], 256  }
 0x2f1   : > { %3787 = vsyncadd (%p5033_p13), [#allocation9], 4294967040  ;;  %p5034_p1 = pmov %p5031_p3 }
 0x2f3   : > { %3789 = dma.done.wait (%p5034_p1), [#allocation12], 256   ;;  %p5035_p4 = pmov %p5034_p1 }
 0x2f4   : > { %p5036_p2 = pmov %p5034_p1 }
 0x2f5   : > { %3791 = vsyncadd (%p5035_p4), [#allocation12], 4294967040 }
 0x2f6   : > { %3793 = dma.done.wait (%p5036_p2), [#allocation15], 256   ;;  %p5037_p7 = pmov %p5034_p1 }
 0x2f7   : > { %p5038_p6 = pmov %p5034_p1 }
 0x2f8   : > { %3795 = vsyncadd (%p5037_p7), [#allocation15], 4294967040 }
 0x2f9   : > { %3797 = dma.done.wait (%p5038_p6), [#allocation18], 640   ;;  %p5039_p11 = pmov %p5034_p1 }
 0x2fa   : > { %p5040_p0 = pmov %p5034_p1 }
 0x2fb   : > { %3799 = vsyncadd (%p5039_p11), [#allocation18], 4294966656 }
 0x2fc   : > { %3801 = dma.done.wait (%p5040_p0), [#allocation21], 768   ;;  %p5041_p8 = pmov %p5040_p0 }
 0x2fd   : > { %p5042_p10 = pmov %p5040_p0 }
 0x2fe   : > { %3803 = vsyncadd (%p5041_p8), [#allocation21], 4294966528 }
 0x2ff   : > { %3805 = dma.done.wait (%p5042_p10), [#allocation24], 640   ;;  %p5043_p9 = pmov %p5040_p0 }
 0x300   : > { %p5044_p5 = pmov %p5040_p0 }
 0x301   : > { %3807 = vsyncadd (%p5043_p9), [#allocation24], 4294966656 }
 0x302   : > { %3809 = dma.done.wait (%p5044_p5), [#allocation27], 896   ;;  %p5045_p3 = pmov %p5040_p0 }
 0x303   : > { %p5046_p12 = pmov %p5040_p0 }
 0x304   : > { %3811 = vsyncadd (%p5045_p3), [#allocation27], 4294966400 }
 0x305   : > { %3813 = dma.done.wait (%p5046_p12), [#allocation30], 768   ;;  %p5047_p13 = pmov %p5040_p0 }
 0x306   : > { %p5048_p1 = pmov %p5040_p0 }
 0x307   : > { %3815 = vsyncadd (%p5047_p13), [#allocation30], 4294966528 }
 0x308   : > { %3817 = dma.done.wait (%p5048_p1), [#allocation33], 384   ;;  %p5049_p4 = pmov %p5040_p0 }
 0x309   : > { %p5050_p2 = pmov %p5040_p0 }
 0x30a   : > { %3819 = vsyncadd (%p5049_p4), [#allocation33], 4294966912 }
 0x30b   : > { %3821 = dma.done.wait (%p5050_p2), [#allocation36], 256   ;;  %p5051_p7 = pmov %p5040_p0 }
 0x30c   : > { %p5052_p6 = pmov %p5040_p0 }
 0x30d   : > { %3823 = vsyncadd (%p5051_p7), [#allocation36], 4294967040 }
 0x30e   : > { %3825 = dma.done.wait (%p5052_p6), [#allocation39], 128   ;;  %p5053_p11 = pmov %p5040_p0 }
 0x30f   : > { %v3883_v0 = vmov 0.0|0.0   ;;  %vm3884_vm0 = vmmov 0   ;;  %v3885_v1 = vmov 0.0   ;;  %v3886_v2 = vmov 0   ;;  %v1151_v3 = vld [vmem:[%s4666_s9] sm:$0xff]  ;;  %v1152_v4 = vld [vmem:[%s4666_s9 + $0x8] sm:$0xff] }
 0x310   : > { %3827 = vsyncadd (%p5053_p11), [#allocation39], 4294967168  ;;  %2653 = vmatprep.subr.bf16.mxu0 %v3883_v0  ;;  %2584 = vmatprep.mubr.msk.f32.mxu0 %vm3884_vm0, %v3885_v1  ;;  %v2654_v5 = vpack.c.bf16 %v1152_v4, %v1151_v3  ;;  %v1154_v6 = vld [vmem:[#allocation8] sm:$0xff]  ;;  %v1153_v7 = vld [vmem:[#allocation7] sm:$0xff]  ;;  %vm1160_vm1 = vcmask 130048   ;;  %vm1241_vm2 = vcmask 64512  }
 0x311   : > { %2984 = vset.pattern.permute.xlu0 %v3886_v2  ;;  %2985 = vset.pattern.permute.xlu1 %v3886_v2  ;;  %v1235_v8 = vld [vmem:[#allocation11] sm:$0xff]  ;;  %v1315_v9 = vld [vmem:[#allocation22] sm:$0xff]  ;;  %v1316_v10 = vld [vmem:[#allocation22 + $0x8] sm:$0xff]  ;;  %vm1477_vm3 = vcmask 195584   ;;  %vm1639_vm4 = vcmask 261120   ;;  %vm1755_vm5 = vcmask 523264  }
 0x312   : > { %2587 = vmatprep.subr.mxu1 %v3885_v1  ;;  %2589 = vmatprep.mubr.msk.f32.mxu1 %vm3884_vm0, %v3885_v1  ;;  %v1329_v11 = vld [vmem:[#allocation23] sm:$0xff]  ;;  %v1330_v12 = vld [vmem:[#allocation23 + $0x8] sm:$0xff]  ;;  %v1425_v13 = vld [vmem:[#allocation25] sm:$0xff]  ;;  %s4763_s6 = scalar_lea.vmem [#allocation40], %s2497_s10  ;;  %s2522_s11 = sshll.u32 %s4660_s14, 3 }
 0x313   : > { %1157 = vperm.xlu0 %2984, %v1154_v6   ;;  %2655 = vmatpush3.bf16.msra.mxu0 %v2654_v5  ;;  %v1426_v14 = vld [vmem:[#allocation25 + $0x8] sm:$0xff]  ;;  %v1446_v15 = vld [vmem:[#allocation26] sm:$0xff]  ;;  %v1447_v16 = vld [vmem:[#allocation26 + $0x8] sm:$0xff]  ;;  %s4769_s13 = scalar_lea.vmem [#allocation41], %s2522_s11  ;;  %p5054_p0 = scmp.ne.s32.totalorder %s5029_s17, 0 }
 0x314   : > { %2659 = vmatprep.subr.bf16.mxu0 %v3883_v0  ;;  %1319 = vperm.xlu1 %2985, %v1315_v9   ;;  %v1346_v17 = vld [vmem:[#allocation14] sm:$0xff]  ;;  %v1427_v18 = vld [vmem:[#allocation25 + $0x10] sm:$0xff]  ;;  %v1552_v21 = vld [vmem:[#allocation28 + $0x8] sm:$0xff] }
 0x315   : > { %v1448_v19 = vld [vmem:[#allocation26 + $0x10] sm:$0xff]  ;;  %v1551_v20 = vld [vmem:[#allocation28] sm:$0xff]  ;;  %v1553_v23 = vld [vmem:[#allocation28 + $0x10] sm:$0xff] }
 0x316   : > { %2585 = vmatmul.mubr.msk.f32.vlgmr.msra.gmra.mrb[0].mxu0 %vm1160_vm1, %v1153_v7  ;;  %v1579_v22 = vld [vmem:[#allocation29] sm:$0xff]  ;;  %v1581_v24 = vld [vmem:[#allocation29 + $0x10] sm:$0xff]  ;;  %v1846_v28 = vld [vmem:[#allocation35] sm:$0xff] }
 0x317   : > { %1238 = vperm.xlu0 %2984, %v1235_v8   ;;  %2605 = vmatprep.mubr.msk.f32.mxu0 %vm3884_vm0, %v3885_v1  ;;  %v1615_v25 = vld [vmem:[#allocation20] sm:$0xff]  ;;  %v1617_v26 = vld [vmem:[#allocation20 + $0x10] sm:$0xff]  ;;  %v1932_v29 = vld [vmem:[#allocation38] sm:$0xff] }
 0x318   : > { %1324 = vperm.xlu1 %2985, %v1316_v10   ;;  %v1743_v27 = vld [vmem:[#allocation32] sm:$0xff]  ;;  %v1471_v30 = vld [vmem:[#allocation17] sm:$0xff]  ;;  %v1554_v32 = vld [vmem:[#allocation28 + $0x18] sm:$0xff] }
 0x319   : > { %v1580_v31 = vld [vmem:[#allocation29 + $0x8] sm:$0xff]  ;;  %v1582_v33 = vld [vmem:[#allocation29 + $0x18] sm:$0xff]  ;;  %v1925_v37 = vld [vmem:[#allocation37] sm:$0xff] }
 0x31a   : > { %v1616_v34 = vld [vmem:[#allocation20 + $0x8] sm:$0xff]  ;;  %v1618_v35 = vld [vmem:[#allocation20 + $0x18] sm:$0xff]  ;;  %v1234_v42 = vld [vmem:[#allocation10] sm:$0xff] }
 0x31b   : > { %1333 = vperm.xlu0 %2984, %v1329_v11   ;;  %v1744_v36 = vld [vmem:[#allocation32 + $0x8] sm:$0xff] }
 0x31c   : > { %1338 = vperm.xlu1 %2985, %v1330_v12  }
 0x31f   : > { %1430 = vperm.xlu0 %2984, %v1425_v13  }
 0x320   : > { %1435 = vperm.xlu1 %2985, %v1426_v14  }
 0x323   : > { %1451 = vperm.xlu0 %2984, %v1446_v15  }
 0x324   : > { %1456 = vperm.xlu1 %2985, %v1447_v16  }
 0x327   : > { %1349 = vperm.xlu0 %2984, %v1346_v17  }
 0x328   : > { %1440 = vperm.xlu1 %2985, %v1427_v18  }
 0x32b   : > { %1461 = vperm.xlu0 %2984, %v1448_v19  }
 0x32c   : > { %1557 = vperm.xlu1 %2985, %v1551_v20  }
 0x32f   : > { %1562 = vperm.xlu0 %2984, %v1552_v21  }
 0x330   : > { %1474 = vperm.xlu1 %2985, %v1471_v30   ;;  %v1611_v30 = vld [vmem:[#allocation19] sm:$0xff] }
 0x333   : > { %1585 = vperm.xlu0 %2984, %v1579_v22   ;;  %v1345_v22 = vld [vmem:[#allocation13] sm:$0xff] }
 0x334   : > { %1590 = vperm.xlu1 %2985, %v1580_v31  }
 0x337   : > { %1567 = vperm.xlu0 %2984, %v1553_v23  }
 0x338   : > { %1572 = vperm.xlu1 %2985, %v1554_v32  }
 0x33b   : > { %1595 = vperm.xlu0 %2984, %v1581_v24  }
 0x33c   : > { %1600 = vperm.xlu1 %2985, %v1582_v33  }
 0x33f   : > { %1621 = vperm.xlu0 %2984, %v1615_v25  }
 0x340   : > { %1626 = vperm.xlu1 %2985, %v1616_v34  }
 0x343   : > { %1631 = vperm.xlu0 %2984, %v1617_v26  }
 0x344   : > { %1636 = vperm.xlu1 %2985, %v1618_v35  }
 0x347   : > { %1747 = vperm.xlu0 %2984, %v1743_v27  }
 0x348   : > { %1752 = vperm.xlu1 %2985, %v1744_v36  }
 0x34b   : > { %1849 = vperm.xlu0 %2984, %v1846_v28  }
 0x34c   : > { %1928 = vperm.xlu1 %2985, %v1925_v37  }
 0x34f   : > { %1935 = vperm.xlu0 %2984, %v1932_v29   ;;  %v1470_v29 = vld [vmem:[#allocation16] sm:$0xff] }
 0x392   : > { %v1158_v38 = vpop.permute.xlu0 %1157 }
 0x393   : > { %v1320_v43 = vpop.permute.xlu1 %1319 }
 0x396   : > { %v1239_v44 = vpop.permute.xlu0 %1238 }
 0x397   : > { %v1325_v45 = vpop.permute.xlu1 %1324 }
 0x39a   : > { %v1334_v46 = vpop.permute.xlu0 %1333 }
 0x39b   : > { %v1339_v47 = vpop.permute.xlu1 %1338 }
 0x39e   : > { %v1431_v48 = vpop.permute.xlu0 %1430 }
 0x39f   : > { %v1436_v49 = vpop.permute.xlu1 %1435 }
 0x3a2   : > { %v1452_v50 = vpop.permute.xlu0 %1451 }
 0x3a3   : > { %v1457_v51 = vpop.permute.xlu1 %1456 }
 0x3a6   : > { %v1350_v52 = vpop.permute.xlu0 %1349 }
 0x3a7   : > { %v1441_v53 = vpop.permute.xlu1 %1440 }
 0x3aa   : > { %v1462_v54 = vpop.permute.xlu0 %1461 }
 0x3ab   : > { %v1558_v55 = vpop.permute.xlu1 %1557 }
 0x3ae   : > { %v1563_v56 = vpop.permute.xlu0 %1562 }
 0x3af   : > { %v1475_v59 = vpop.permute.xlu1 %1474 }
 0x3b2   : > { %v1586_v62 = vpop.permute.xlu0 %1585 }
 0x3b3   : > { %v1591_v9 = vpop.permute.xlu1 %1590 }
 0x3b6   : > { %v1568_v31 = vpop.permute.xlu0 %1567 }
 0x3b7   : > { %v1573_v32 = vpop.permute.xlu1 %1572 }
 0x3ba   : > { %v1596_v37 = vpop.permute.xlu0 %1595 }
 0x3e9   : > { %v1230_v39 = vpop.f32.mrb[0].mxu0 }
 0x3ea   : > { %v1231_v40 = vadd.f32 %v1230_v39, %v1158_v38  ;;  %v2586_v41 = vpop.f32.mrb[1].mxu0 }
 0x3ec   : > { %2588 = vmatpush3.msra.mxu1 %v1231_v40  ;;  %v1327_v57 = vmul.f32 %v1320_v43, %v1231_v40  ;;  %v1575_v58 = vmul.f32 %v1558_v55, %v1231_v40  ;;  %v1443_v60 = vmul.f32 %v1431_v48, %v1231_v40  ;;  %v1601_v40 = vpop.permute.xlu1 %1600  ;;  %v1741_v48 = vld [vmem:[#allocation31] sm:$0xff] }
 0x3ed   : > { %2590 = vmatmul.mubr.msk.f32.vlgmr.msra.gmra.mrb[0].mxu1 %vm1241_vm2, %v1234_v42  ;;  %2656 = vmatprep.subr.bf16.mxu1 %v3883_v0 }
 0x3ee   : > { %2596 = vmatprep.mubr.msk.f32.mxu1 %vm3884_vm0, %v3885_v1  ;;  %v1603_v3 = vadd.f32 %v1586_v62, %v1575_v58  ;;  %v1341_v4 = vadd.f32 %v1334_v46, %v1327_v57  ;;  %v1464_v8 = vadd.f32 %v1452_v50, %v1443_v60  ;;  %v1613_v46 = vld [vmem:[#allocation19 + $0x10] sm:$0xff]  ;;  %v1622_v50 = vpop.permute.xlu0 %1621  ;;  %v1738_v60 = vld [vmem:[%s4676_s2 + $0x8] sm:$0xff] }
 0x3f0   : > { %v1607_v13 = vmax.f32 %v1603_v3, 0.0  ;;  %v1343_v14 = vmax.f32 %v1341_v4, 0.0  ;;  %v1467_v17 = vmax.f32 %v1464_v8, 0.0  ;;  %v1740_v3 = vld [vmem:[%s4676_s2 + $0x18] sm:$0xff] }
 0x3f2   : > { %v1632_v57 = vpop.permute.xlu0 %1631 }
 0x3f6   : > { %v1748_v8 = vpop.permute.xlu0 %1747 }
 0x4c0   : > { %v1311_v61 = vpop.f32.mrb[0].mxu1 }
 0x4c1   : > { %v1312_v63 = vadd.f32 %v1311_v61, %v1239_v44  ;;  %v2591_v2 = vpop.f32.mrb[1].mxu1 }
 0x4c2   : > { %v1739_v2 = vld [vmem:[%s4676_s2 + $0x10] sm:$0xff] }
 0x4c3   : > { %v1328_v5 = vmul.f32 %v1325_v45, %v1312_v63  ;;  %v1444_v6 = vmul.f32 %v1436_v49, %v1312_v63  ;;  %v1576_v7 = vmul.f32 %v1563_v56, %v1312_v63  ;;  %v1612_v45 = vld [vmem:[#allocation19 + $0x8] sm:$0xff]  ;;  %v1627_v49 = vpop.permute.xlu1 %1626  ;;  %v2682_v4 = vpack.c.bf16 %v1740_v3, %v1739_v2 }
 0x4c5   : > { %v1342_v10 = vadd.f32 %v1339_v47, %v1328_v5  ;;  %v1465_v11 = vadd.f32 %v1457_v51, %v1444_v6  ;;  %v1604_v12 = vadd.f32 %v1591_v9, %v1576_v7  ;;  %v1614_v47 = vld [vmem:[#allocation19 + $0x18] sm:$0xff] }
 0x4c6   : > { %v1742_v5 = vld [vmem:[#allocation31 + $0x8] sm:$0xff] }
 0x4c7   : > { %v1344_v15 = vmax.f32 %v1342_v10, 0.0  ;;  %v1468_v16 = vmax.f32 %v1465_v11, 0.0  ;;  %v1608_v18 = vmax.f32 %v1604_v12, 0.0 }
 0x4c9   : > { %v2657_v19 = vpack.c.bf16 %v1344_v15, %v1343_v14  ;;  %v2660_v20 = vpack.c.bf16 %v1468_v16, %v1467_v17  ;;  %v2662_v21 = vpack.c.bf16 %v1608_v18, %v1607_v13 }
 0x4cb   : > { %2658 = vmatpush3.bf16.msra.mxu1 %v2657_v19  ;;  %2661 = vmatpush3.bf16.msra.mxu0 %v2660_v20 }
 0x4cc   : > { %2663 = vmatprep.subr.bf16.mxu1 %v2662_v21  ;;  %2603 = vmatprep.subr.mxu0 %v3885_v1 }
 0x4ce   : > { %2597 = vmatmul.mubr.msk.f32.vlgmr.msra.gmra.mrb[2].mxu1 %vm1160_vm1, %v1345_v22  ;;  %v1850_v22 = vpop.permute.xlu0 %1849 }
 0x4cf   : > { %2665 = vmatpush3.bf16.msra.mxu1 %v2662_v21  ;;  %2616 = vmatprep.mubr.msk.f32.mxu1 %vm1639_vm4, %v1611_v30  ;;  %v1845_v21 = vld [vmem:[#allocation34] sm:$0xff] }
 0x5a1   : > { %v1421_v23 = vpop.f32.mrb[2].mxu1 }
 0x5a2   : > { %v1422_v24 = vadd.f32 %v1421_v23, %v1350_v52  ;;  %v2598_v25 = vpop.f32.mrb[3].mxu1 }
 0x5a4   : > { %v1445_v26 = vmul.f32 %v1441_v53, %v1422_v24  ;;  %v1577_v33 = vmul.f32 %v1568_v31, %v1422_v24 }
 0x5a6   : > { %v1466_v27 = vadd.f32 %v1462_v54, %v1445_v26  ;;  %v1605_v38 = vadd.f32 %v1596_v37, %v1577_v33  ;;  %v1637_v54 = vpop.permute.xlu1 %1636 }
 0x5a8   : > { %v1469_v28 = vmax.f32 %v1466_v27, 0.0  ;;  %v1609_v42 = vmax.f32 %v1605_v38, 0.0 }
 0x5aa   : > { %2604 = vmatpush3.msra.mxu0 %v1469_v28  ;;  %v1753_v6 = vpop.permute.xlu1 %1752  ;;  %v1936_v28 = vpop.permute.xlu0 %1935 }
 0x5ab   : > { %2606 = vmatmul.mubr.msk.f32.vlgmr.msra.gmra.mrb[2].mxu0 %vm1477_vm3, %v1470_v29 }
 0x5ac   : > { %2638 = vmatprep.mubr.msk.f32.mxu0 %vm1755_vm5, %v1741_v48 }
 0x5ae   : > { %v1929_v26 = vpop.permute.xlu1 %1928 }
 0x67e   : > { %v1547_v34 = vpop.f32.mrb[2].mxu0 }
 0x67f   : > { %v1548_v35 = vadd.f32 %v1547_v34, %v1475_v59  ;;  %v2607_v36 = vpop.f32.mrb[3].mxu0  ;;  %v1737_v59 = vld [vmem:[%s4676_s2] sm:$0xff] }
 0x680   : > { %v2678_v63 = vpack.c.bf16 %v1738_v60, %v1737_v59 }
 0x681   : > { %v1578_v39 = vmul.f32 %v1573_v32, %v1548_v35 }
 0x683   : > { %v1606_v41 = vadd.f32 %v1601_v40, %v1578_v39 }
 0x685   : > { %v1610_v43 = vmax.f32 %v1606_v41, 0.0 }
 0x687   : > { %v2666_v44 = vpack.c.bf16 %v1610_v43, %v1609_v42 }
 0x689   : > { %2667 = vmatprep.subr.bf16.mxu1 %v2666_v44 }
 0x68a   : > { %2669 = vmatpush3.bf16.msra.mxu1 %v2666_v44 }
 0x68b   : > { %2686 = vmatprep.subr.bf16.mxu1 %v3883_v0 }
 0x68d   : > { %2617 = vmatmul.mubr.msk.f32.vlgmr.msra.gmra.mrb[4].mxu1 %vm1639_vm4, %v1612_v45 }
 0x68e   : > { %2619 = vmatprep.mubr.msk.f32.mxu1 %vm1639_vm4, %v1613_v46 }
 0x691   : > { %2620 = vmatmul.mubr.msk.f32.gmra.mrb[6].mxu1 %vm1639_vm4, %v1614_v47  ;;  %v3887_v47 = vmov (!%p5054_p0), 0.0  }
 0x692   : > { %2645 = vmatprep.mubr.msk.f32.mxu1 %vm3884_vm0, %v3885_v1  ;;  %1963 = vst.msk [vmem:[#allocation43] sm:$0xff] (!%p5054_p0), %vm1241_vm2, %v3887_v47  ;;  %1964 = vst.msk [vmem:[#allocation43 + $0x8] sm:$0xff] (!%p5054_p0), %vm1241_vm2, %v3887_v47 }
 0x760   : > { %v2618_v51 = vpop.f32.mrb[4].mxu1 }
 0x761   : > { %v1724_v0 = vadd.f32 %v2618_v51, %v1627_v49  ;;  %v1718_v52 = vpop.f32.mrb[5].mxu1 }
 0x762   : > { %v1719_v53 = vadd.f32 %v1718_v52, %v1622_v50 }
 0x764   : > { %v2670_v55 = vpack.c.bf16 %v1724_v0, %v1719_v53  ;;  %v2621_v56 = vpop.f32.mrb[6].mxu1 }
 0x765   : > { %v1734_v58 = vadd.f32 %v2621_v56, %v1637_v54  ;;  %v1728_v1 = vpop.f32.mrb[7].mxu1 }
 0x766   : > { %v1729_v61 = vadd.f32 %v1728_v1, %v1632_v57  ;;  %2671 = vmatprep.subr.bf16.mxu0 %v2670_v55 }
 0x767   : > { %2673 = vmatpush3.bf16.msra.mxu0 %v2670_v55 }
 0x768   : > { %v2674_v62 = vpack.c.bf16 %v1734_v58, %v1729_v61 }
 0x76a   : > { %2675 = vmatprep.subr.bf16.mxu0 %v2674_v62 }
 0x76b   : > { %2677 = vmatpush3.bf16.msra.mxu0 %v2674_v62 }
 0x76c   : > { %2679 = vmatprep.subr.bf16.mxu0 %v2678_v63 }
 0x76f   : > { %2681 = vmatpush3.bf16.msra.mxu0 %v2678_v63 }
 0x770   : > { %2683 = vmatprep.subr.bf16.mxu0 %v2682_v4 }
 0x773   : > { %2685 = vmatpush3.bf16.msra.mxu0 %v2682_v4 }
 0x776   : > { %2639 = vmatmul.mubr.msk.f32.vlgmr.msra.gmra.mrb[4].mxu0 %vm1755_vm5, %v1742_v5 }
 0x849   : > { %v2640_v7 = vpop.f32.mrb[4].mxu0 }
 0x84a   : > { %v1834_v9 = vadd.f32 %v2640_v7, %v1753_v6  ;;  %v1828_v10 = vpop.f32.mrb[5].mxu0 }
 0x84b   : > { %v1829_v11 = vadd.f32 %v1828_v10, %v1748_v8 }
 0x84c   : > { %v1838_v12 = vmul.f32 0.5, %v1834_v9 }
 0x84d   : > { %v1837_v13 = vmul.f32 0.5, %v1829_v11 }
 0x84e   : > { %2986 = vtanh.f32 %v1838_v12 }
 0x84f   : > { %2988 = vtanh.f32 %v1837_v13 }
 0x858   : > { %v2987_v14 = vpop.eup %2986 }
 0x859   : > { %v2989_v15 = vpop.eup %2988  ;;  %v1842_v16 = vadd.f32 1.0, %v2987_v14 }
 0x85a   : > { %v1841_v17 = vadd.f32 1.0, %v2989_v15 }
 0x85b   : > { %v1844_v18 = vmul.f32 0.5, %v1842_v16 }
 0x85c   : > { %v1843_v19 = vmul.f32 0.5, %v1841_v17 }
 0x85d   : > { %1957 = vst [vmem:[%s4763_s6 + $0x8] sm:$0xff] %v1844_v18 }
 0x85e   : > { %v2687_v20 = vpack.c.bf16 %v1844_v18, %v1843_v19  ;;  %1956 = vst [vmem:[%s4763_s6] sm:$0xff] %v1843_v19 }
 0x860   : > { %2688 = vmatpush3.bf16.msra.mxu1 %v2687_v20 }
 0x863   : > { %2646 = vmatmul.mubr.msk.f32.vlgmr.msra.gmra.mrb[8].mxu1 %vm1160_vm1, %v1845_v21 }
 0x936   : > { %v1921_v23 = vpop.f32.mrb[8].mxu1 }
 0x937   : > { %v1922_v24 = vadd.f32 %v1921_v23, %v1850_v22  ;;  %v2647_v25 = vpop.f32.mrb[9].mxu1 }
 0x939   : > { %v1931_v27 = vmul.f32 %v1929_v26, %v1922_v24 }
 0x93b   : > { %v1938_v29 = vadd.f32 %v1936_v28, %v1931_v27 }
 0x93d   : > { %v1939_v30 = vrot.slane %v1938_v29, 4 }
 0x93f   : > { %v1940_v31 = vmax.f32 %v1938_v29, %v1939_v30 }
 0x941   : > { %v1941_v32 = vrot.slane %v1940_v31, 2 }
 0x943   : > { %v1942_v33 = vmax.f32 %v1940_v31, %v1941_v32 }
 0x945   : > { %v1943_v34 = vrot.slane %v1942_v33, 1 }
 0x947   : > { %v1944_v35 = vmax.f32 %v1942_v33, %v1943_v34 }
 0x949   : > { %v1945_v36 = vsub.f32 %v1938_v29, %v1944_v35 }
 0x94b   : > { %v1946_v37 = vmul.f32 1.442695, %v1945_v36 }
 0x94d   : > { %2990 = vpow2.f32 %v1946_v37 }
 0x957   : > { %v2991_v38 = vpop.eup %2990 }
 0x958   : > { %v1948_v39 = vrot.slane %v2991_v38, 4 }
 0x95a   : > { %v1949_v40 = vadd.f32 %v2991_v38, %v1948_v39 }
 0x95c   : > { %v1950_v41 = vrot.slane %v1949_v40, 2 }
 0x95e   : > { %v1951_v42 = vadd.f32 %v1950_v41, %v1949_v40 }
 0x960   : > { %v1952_v43 = vrot.slane %v1951_v42, 1 }
 0x962   : > { %v1953_v44 = vadd.f32 %v1952_v43, %v1951_v42 }
 0x964   : > { %2992 = vrcp.f32 %v1953_v44 }
 0x96b   : > { %1962 = sbr.rel (%p5054_p0) target bundleno = 2418 (0x972), region = 216 }
 0x96e   : > { %v2993_v45 = vpop.eup %2992 }
 0x96f   : > { %v1955_v46 = vmul.f32 %v2993_v45, %v2991_v38 }
 0x971   : > { %1958 = vst [vmem:[%s4769_s13] sm:$0xff] %v1955_v46 }
 0x972 PF: > { %2648 = vmatprep.subr.mxu1 %v1955_v46  ;;  %2650 = vmatprep.mubr.f32.mxu1 %v1843_v19  ;;  %v1966_v48 = vld [vmem:[#allocation43 + $0x8] sm:$0xff]  ;;  %v1965_v49 = vld [vmem:[#allocation43] sm:$0xff]  ;;  %s5055_s12 = sld [smem:[#allocation64_spill]] }
 0x973   : > { %2649 = vmatpush3.xpose.msra.mxu1 %v1955_v46 }
 0x976   : > { %2651 = vmatmul.mubr.f32.vlgmr.msra.gmra.mrb[10].mxu1 %v1844_v18 }
 0x978   : > { %p2535_p8 = scmp.ne.s32.totalorder %s5055_s12, 1 }
 0xa47   : > { %2049 = sbr.rel (%p2535_p8) target bundleno = 2693 (0xa85), region = 220 }
 0xa49   : > { %v2652_v50 = vpop.f32.mrb[10].mxu1 }
 0xa4a   : > { %v2043_v51 = vadd.f32 %v2652_v50, %v1966_v48  ;;  %v2033_v0 = vpop.f32.mrb[11].mxu1 }
 0xa4b   : > { %v2042_v52 = vadd.f32 %v2033_v0, %v1965_v49 }
 0xa4c   : > { %2045 = vst.msk [vmem:[#allocation43 + $0x8] sm:$0xff] %vm1241_vm2, %v2043_v51 }
 0xa4d   : > { %2044 = vst.msk [vmem:[#allocation43] sm:$0xff] %vm1241_vm2, %v2042_v52 }
 0xa53   : > { %v2051_v54 = vld [vmem:[#allocation43 + $0x8] sm:$0xff] }
 0xa54   : > { %v2050_v53 = vld [vmem:[#allocation43] sm:$0xff]  ;;  %v2053_v56 = vmul.f32 %v2051_v54, %v2051_v54 }
 0xa55   : > { %v2052_v55 = vmul.f32 %v2050_v53, %v2050_v53 }
 0xa56   : > { %v2055_v58 = vsel %vm1241_vm2, %v2053_v56, 0.0 }
 0xa57   : > { %v2054_v57 = vsel %vm1241_vm2, %v2052_v55, 0.0 }
 0xa58   : > { %v2056_v1 = vadd.f32 %v2055_v58, %v2054_v57 }
 0xa5a   : > { %v2057_v59 = vrot.slane %v2056_v1, 4 }
 0xa5c   : > { %v2058_v60 = vadd.f32 %v2057_v59, %v2056_v1 }
 0xa5e   : > { %v2059_v61 = vrot.slane %v2058_v60, 2 }
 0xa60   : > { %v2060_v62 = vadd.f32 %v2059_v61, %v2058_v60 }
 0xa62   : > { %v2061_v63 = vrot.slane %v2060_v62, 1 }
 0xa64   : > { %v2062_v2 = vadd.f32 %v2061_v63, %v2060_v62 }
 0xa66   : > { %2994 = vrsqrt.f32 %v2062_v2  ;;  %vm2065_vm6 = vcmp.eq.f32.partialorder %v2062_v2, inf  ;;  %v2068_v4 = vand.u32 2147483648, %v2062_v2  ;;  %vm2067_vm7 = vcmp.eq.f32.partialorder %v2062_v2, 0.0 }
 0xa70   : > { %v2995_v3 = vpop.eup %2994 }
 0xa71   : > { %v2064_v5 = vmul.f32 %v2995_v3, %v2062_v2 }
 0xa73   : > { %v2066_v6 = vsel %vm2065_vm6, %v2062_v2, %v2064_v5 }
 0xa74   : > { %v2069_v7 = vsel %vm2067_vm7, %v2068_v4, %v2066_v6 }
 0xa75   : > { %v2070_v8 = vmax.f32 %v2069_v7, 1e-12 }
 0xa77   : > { %2996 = vrcp.f32 %v2070_v8 }
 0xa81   : > { %v2997_v9 = vpop.eup %2996 }
 0xa82   : > { %v2072_v10 = vmul.f32 %v2997_v9, %v2050_v53  ;;  %v2073_v11 = vmul.f32 %v2997_v9, %v2051_v54 }
 0xa84   : > { %2074 = vst.msk [vmem:[#allocation43] sm:$0xff] %vm1241_vm2, %v2072_v10  ;;  %2075 = vst.msk [vmem:[#allocation43 + $0x8] sm:$0xff] %vm1241_vm2, %v2073_v11 }
 0xa85 PF: > { %s5056_s16 = sld [smem:[#allocation64_spill]]  ;;  %s5057_s20 = sld [smem:[#allocation87_spill]] }
 0xa86   : > { %s5058_s9 = sld [smem:[#allocation88_spill]]  ;;  %s2110_s7 = sshll.u32 %s4769_s13, 4  ;;  %s4795_s7 = int_to_ptr.vmem [resolvable:$true] %s2110_s7 }
 0xa87   : > { %s2094_s8 = sshll.u32 %s4763_s6, 4  ;;  %s2082_s2 = scalar_lea.sflag [#allocation42], %s980_s19  ;;  %s4823_s8 = int_to_ptr.vmem [resolvable:$true] %s2094_s8 }
 0xa88   : > { %s3674_s11 = scalar_lea.vmem %s4795_s7, 128  ;;  %p5059_p9 = scmp.ne.s32.totalorder %s5019_s27, 0 }
 0xa89   : > { %p3675_p10 = scmp.ne.s32.totalorder %s4795_s7, %s3674_s11  ;;  %s3888_s12 = smov [#allocation41]  }
 0xa8a   : > { %s3678_s4 = sshll.u32 %s3888_s12, 4  ;;  %s3679_s4 = int_to_ptr.vmem [resolvable:$false] %s3678_s4 }
 0xa8b   : > { %s2538_s18 = sshll.u32 %s5056_s16, 7  ;;  %p3676_p5 = pnand %p3675_p10, %p5059_p9 }
 0xa8c   : > { %s4787_s5 = scalar_lea.hbm %s5057_s20, %s2538_s18  ;;  %s4792_s17 = scalar_lea.hbm %s5058_s9, %s2538_s18 }
 0xa8d   : > { %p3677_p3 = pneg %p3676_p5  ;;  %s3680_s3 = scalar_lea.vmem %s3679_s4, 256 }
 0xa8e   : > { %p3681_p12 = scmp.lt.s32.totalorder %s4795_s7, %s3679_s4  ;;  %p3682_p13 = scmp.lt.s32.totalorder %s3680_s3, %s3674_s11 }
 0xa90   : > { %p3683_p1 = por %p3682_p13, %p3681_p12 }
 0xa92   : > { %p3684_p4 = pnand %p3683_p1, %p3677_p3 }
 0xa94   : > { %3687 = shalt.err (!%p3684_p4)
}
 0xa95   : > { %s3688_s19 = scalar_lea.hbm %s4792_s17, 128  ;;  %s3692_s10 = scalar_lea.hbm %s5058_s9, 256 }
 0xa96   : > { %p3689_p2 = scmp.ne.s32.totalorder %s4792_s17, %s3688_s19  ;;  %p3693_p11 = scmp.lt.u32.totalorder %s4792_s17, %s5058_s9 }
 0xa97   : > { %p3694_p0 = scmp.lt.u32.totalorder %s3692_s10, %s3688_s19  ;;  %p3696_p10 = scmp.lt.u32.totalorder %s3688_s19, %s4792_s17 }
 0xa98   : > { %p3690_p7 = pnand %p3689_p2, %p5059_p9 }
 0xa99   : > { %p3695_p8 = por %p3694_p0, %p3693_p11 }
 0xa9a   : > { %p3691_p6 = pneg %p3690_p7 }
 0xa9b   : > { %p3697_p5 = por %p3696_p10, %p3695_p8 }
 0xa9d   : > { %p3698_p3 = pnand %p3697_p5, %p3691_p6 }
 0xa9f   : > { %3701 = shalt.err (!%p3698_p3)
}
 0xaa0   : > { %2782 = dma.vmem_to_hbm [thread:$0]  (%p5059_p9), %s4795_s7, 128, %s4792_s17, %s2082_s2  }
 0xaa1   : > { %s2077_s11 = scalar_lea.sflag [#allocation4], %s4660_s14  ;;  %s3702_s4 = scalar_lea.vmem %s4823_s8, 256 }
 0xaa2   : > { %p3703_p12 = scmp.ne.s32.totalorder %s4823_s8, %s3702_s4  ;;  %s3889_s3 = smov [#allocation40]  }
 0xaa3   : > { %s3706_s19 = sshll.u32 %s3889_s3, 4  ;;  %s3707_s19 = int_to_ptr.vmem [resolvable:$false] %s3706_s19 }
 0xaa4   : > { %p3704_p13 = pnand %p3703_p12, %p5059_p9  ;;  %s3708_s13 = scalar_lea.vmem %s3707_s19, 512 }
 0xaa5   : > { %p3709_p4 = scmp.lt.s32.totalorder %s4823_s8, %s3707_s19  ;;  %p3710_p2 = scmp.lt.s32.totalorder %s3708_s13, %s3702_s4 }
 0xaa6   : > { %p3705_p1 = pneg %p3704_p13 }
 0xaa7   : > { %p3711_p7 = por %p3710_p2, %p3709_p4 }
 0xaa9   : > { %p3712_p6 = pnand %p3711_p7, %p3705_p1 }
 0xaab   : > { %3715 = shalt.err (!%p3712_p6)
}
 0xaac   : > { %s3716_s6 = scalar_lea.hbm %s4787_s5, 256  ;;  %s3720_s2 = scalar_lea.hbm %s5057_s20, 512 }
 0xaad   : > { %p3717_p11 = scmp.ne.s32.totalorder %s4787_s5, %s3716_s6  ;;  %p3721_p10 = scmp.lt.u32.totalorder %s4787_s5, %s5057_s20 }
 0xaae   : > { %p3722_p5 = scmp.lt.u32.totalorder %s3720_s2, %s3716_s6  ;;  %p3724_p12 = scmp.lt.u32.totalorder %s3716_s6, %s4787_s5 }
 0xaaf   : > { %p3718_p0 = pnand %p3717_p11, %p5059_p9 }
 0xab0   : > { %p3723_p3 = por %p3722_p5, %p3721_p10 }
 0xab1   : > { %p3719_p8 = pneg %p3718_p0 }
 0xab2   : > { %p3725_p13 = por %p3724_p12, %p3723_p3 }
 0xab4   : > { %p3726_p1 = pnand %p3725_p13, %p3719_p8 }
 0xab6   : > { %3729 = shalt.err (!%p3726_p1)
}
 0xab7   : > { %s3890_s0 = smov 128   ;;  %s3891_s12 = smov 256  }
 0xab8   : > { %s3892_s4 = smov 8   ;;  %s3893_s3 = smov [#allocation43]  }
 0xab9   : > { %2781 = dma.vmem_to_hbm [thread:$0]  (%p5059_p9), %s4823_s8, 256, %s4787_s5, %s2077_s11, %s3890_s0, %s3891_s12, %s3892_s4  }
 0xaba   : > { %s2120_s19 = sshll.u32 %s3893_s3, 4  ;;  %p5060_p2 = scmp.eq.s32.totalorder %s5056_s16, 1  ;;  %s2121_s19 = int_to_ptr.vmem [resolvable:$true] %s2120_s19 }
 0xabb   : > { %s3730_s13 = scalar_lea.vmem %s2121_s19, 256  ;;  %p3737_p11 = scmp.lt.s32.totalorder %s2121_s19, %s2121_s19 }
 0xabc   : > { %p3731_p4 = scmp.ne.s32.totalorder %s2121_s19, %s3730_s13  ;;  %p3738_p0 = scmp.lt.s32.totalorder %s3730_s13, %s3730_s13 }
 0xabe   : > { %p3732_p7 = pnand %p3731_p4, %p5060_p2  ;;  %p3739_p8 = por %p3738_p0, %p3737_p11 }
 0xac0   : > { %p3733_p6 = pneg %p3732_p7 }
 0xac2   : > { %p3740_p10 = pnand %p3739_p8, %p3733_p6 }
 0xac4   : > { %3743 = shalt.err (!%p3740_p10)
}
 0xac5   : > { %s5061_s7 = sld [smem:[#allocation89_spill]]  ;;  %p5063_p5 = pmov %p5060_p2 }
 0xacb   : > { %s5062_s2 = smov %s5061_s7  ;;  %s3744_s27 = scalar_lea.hbm %s5061_s7, 256 }
 0xacc   : > { %p3745_p9 = scmp.ne.s32.totalorder %s5062_s2, %s3744_s27  ;;  %p3750_p13 = scmp.lt.u32.totalorder %s3744_s27, %s5062_s2 }
 0xace   : > { %p3746_p3 = pnand %p3745_p9, %p5063_p5 }
 0xad0   : > { %p3747_p12 = pneg %p3746_p3 }
 0xad2   : > { %p3752_p1 = pnand %p3750_p13, %p3747_p12 }
 0xad4   : > { %3755 = shalt.err (!%p3752_p1)
}
 0xad5   : > { %p5064_p4 = pmov %p5060_p2 }
 0xad7   : > { %2784 = dma.vmem_to_hbm [thread:$0]  (%p5064_p4), %s2121_s19, 256, %s5062_s2, [#allocation42], %s3890_s0, %s3890_s0, %s3892_s4  }
 0xad8   : > { %3829 = dma.done.wait (%p5060_p2), [#allocation42], 256   ;;  %p5065_p7 = pmov %p5060_p2 }
 0xada   : > { %3831 = vsyncadd (%p5065_p7), [#allocation42], 4294967040 }
 0xadb PF: > { %s5066_s12 = sld [smem:[#allocation61_spill]]  ;;  %p5067_p6 = scmp.ne.s32.totalorder %s5020_s1, 0 }
 0xadc   : > { %p5068_p11 = scmp.ge.s32.totalorder %s3854_s28, 2 }
 0xade   : > { %p2864_p0 = pnand %p5068_p11, %p5067_p6 }
 0xae1   : > { %s2139_s3 = sand.u32 1, %s5066_s12  }
 0xae2   : > { %s2140_s13 = scalar_lea.sflag [#allocation4], %s2139_s3 }
 0xae3   : > { %3833 = dma.done.wait (!%p2864_p0), %s2140_s13, 256  }
 0xae4   : > { %3835 = vsyncadd (!%p2864_p0), %s2140_s13, 4294967040  ;;  %s5069_s6 = sadd.s32 4294967294, %s3854_s28  }
 0xae5   : > { %s2148_s17 = sand.u32 1, %s5069_s6  }
 0xae6   : > { %s2149_s0 = scalar_lea.sflag [#allocation42], %s2148_s17 }
 0xae7   : > { %3837 = dma.done.wait (!%p2864_p0), %s2149_s0, 128  }
 0xae8   : > { %3839 = vsyncadd (!%p2864_p0), %s2149_s0, 4294967168  ;;  %s5070_s27 = sld [smem:[#allocation62_spill]]  ;;  %s5071_s3 = sld [smem:[#allocation63_spill]] }
 0xae9   : > { %p57_p8 = scmp.ge.s32.totalorder %s4527_s26, 4   ;;  %s5072_s7 = smov %s4538_s25 }
 0xaea   : > { %s5073_s28 = smov %s4527_s26 }
 0xaeb   :  { %59 = sbr.rel (!%p57_p8) target bundleno = 45 (0x2d), region = 295 }
 0xaf2   :  { %2154 = vsyncpa [#allocation3], 1 }
 0xaf3   :  { %2156 = vsyncpa [#allocation3 + $0x1], 1 }
 0xaf4   :  { %2157 = vsyncpa [#allocation6], 1 }
 0xaf5   :  { %2159 = vsyncpa [#allocation6 + $0x1], 1 }
 0xaf6   :  { %2160 = vsyncpa [#allocation9], 1 }
 0xaf7   :  { %2161 = vsyncpa [#allocation12], 1 }
 0xaf8   :  { %2162 = vsyncpa [#allocation15], 1 }
 0xaf9   :  { %2163 = vsyncpa [#allocation18], 1 }
 0xafa   :  { %2164 = vsyncpa [#allocation21], 1 }
 0xafb   :  { %2165 = vsyncpa [#allocation24], 1 }
 0xafc   :  { %2166 = vsyncpa [#allocation27], 1 }
 0xafd   :  { %2167 = vsyncpa [#allocation30], 1 }
 0xafe   :  { %2168 = vsyncpa [#allocation33], 1 }
 0xaff   :  { %2169 = vsyncpa [#allocation36], 1 }
 0xb00   :  { %2170 = vsyncpa [#allocation39], 1 }
 0xb01   :  { %2171 = vsyncpa [#allocation4], 1 }
 0xb02   :  { %2173 = vsyncpa [#allocation4 + $0x1], 1 }
 0xb03   :  { %2174 = vsyncpa [#allocation42], 1 }
 0xb04   :  { %2176 = vsyncpa [#allocation42 + $0x1], 1 }

// kernel: a2sn_forward.3
= control target key start
LH: loop header
LB: loop body
LE: loop exit
PB: predicated region body
PF: predicated region fallthrough
CT: control target
= control target key end

     0   :  { %s9175_s0 = inlined_call_operand.hbm [shape: f32[2,16,384], index: 0, kind: input, shape index: {}]   ;;  %s9176_s1 = inlined_call_operand.hbm [shape: s32[1,384], index: 1, kind: input, shape index: {}]   ;;  %s9177_s2 = inlined_call_operand.hbm [shape: f32[1,384], index: 2, kind: input, shape index: {}]   ;;  %s9178_s3 = inlined_call_operand.hbm [shape: f32[3,8,48], index: 3, kind: input, shape index: {}]   ;;  %s9179_s4 = inlined_call_operand.hbm [shape: f32[8,1], index: 4, kind: input, shape index: {}]   ;;  %s9180_s5 = inlined_call_operand.hbm [shape: f32[3,8,24], index: 5, kind: input, shape index: {}]   ;;  %s9181_s6 = inlined_call_operand.hbm [shape: f32[8,1], index: 6, kind: input, shape index: {}]   ;;  %s9182_s7 = inlined_call_operand.hbm [shape: f32[3,8,48], index: 7, kind: input, shape index: {}]   ;;  %s9183_s8 = inlined_call_operand.hbm [shape: f32[8,1], index: 8, kind: input, shape index: {}]   ;;  %s9184_s9 = inlined_call_operand.hbm [shape: f32[3,8,72], index: 9, kind: input, shape index: {}]   ;;  %s9185_s10 = inlined_call_operand.hbm [shape: f32[8,1], index: 10, kind: input, shape index: {}]   ;;  %s9186_s11 = inlined_call_operand.hbm [shape: f32[3,32,96], index: 11, kind: input, shape index: {}]   ;;  %s9187_s12 = inlined_call_operand.hbm [shape: f32[32,1], index: 12, kind: input, shape index: {}]   ;;  %s9188_s13 = inlined_call_operand.hbm [shape: f32[16,1], index: 13, kind: input, shape index: {}]   ;;  %s9189_s14 = inlined_call_operand.hbm [shape: f32[16,1], index: 14, kind: input, shape index: {}]   ;;  %s9190_s15 = inlined_call_operand.hbm [shape: f32[24,1], index: 15, kind: input, shape index: {}]   ;;  %s9191_s16 = inlined_call_operand.hbm [shape: f32[24,1], index: 16, kind: input, shape index: {}]   ;;  %s9192_s17 = inlined_call_operand.hbm [shape: f32[32,1], index: 17, kind: input, shape index: {}]   ;;  %s9193_s18 = inlined_call_operand.hbm [shape: f32[32,1], index: 18, kind: input, shape index: {}]   ;;  %s9194_s19 = inlined_call_operand.hbm [shape: f32[32,256], index: 19, kind: output, shape index: {}]  }
   0x1   :  { %9217 = sst [smem:[#allocation50_spill]] %s9175_s0 }
   0x2   :  { %9218 = sst [smem:[#allocation51_spill]] %s9176_s1 }
   0x3   :  { %9219 = sst [smem:[#allocation52_spill]] %s9177_s2 }
   0x4   :  { %9220 = sst [smem:[#allocation53_spill]] %s9178_s3 }
   0x5   :  { %9221 = sst [smem:[#allocation54_spill]] %s9179_s4 }
   0x6   :  { %9222 = sst [smem:[#allocation55_spill]] %s9180_s5 }
   0x7   :  { %9223 = sst [smem:[#allocation56_spill]] %s9181_s6 }
   0x8   :  { %9224 = sst [smem:[#allocation57_spill]] %s9182_s7 }
   0x9   :  { %9225 = sst [smem:[#allocation58_spill]] %s9193_s18 }
   0xa   :  { %9226 = sst [smem:[#allocation59_spill]] %s9194_s19 }
   0xb   :  { %24 = vsyncpa [#allocation3], 0 }
   0xc   :  { %26 = vsyncpa [#allocation3 + $0x1], 0 }
   0xd   :  { %27 = vsyncpa [#allocation6], 0 }
   0xe   :  { %28 = vsyncpa [#allocation9], 0 }
   0xf   :  { %29 = vsyncpa [#allocation12], 0 }
  0x10   :  { %30 = vsyncpa [#allocation15], 0 }
  0x11   :  { %31 = vsyncpa [#allocation18], 0 }
  0x12   :  { %32 = vsyncpa [#allocation21], 0 }
  0x13   :  { %33 = vsyncpa [#allocation24], 0 }
  0x14   :  { %34 = vsyncpa [#allocation27], 0 }
  0x15   :  { %35 = vsyncpa [#allocation30], 0 }
  0x16   :  { %36 = vsyncpa [#allocation4], 0 }
  0x17   :  { %38 = vsyncpa [#allocation4 + $0x1], 0  ;;  %s6898_s0 = smov 0   ;;  %s6900_s30 = smov 0  }
  0x18   :  { %s6902_s20 = smov 0   ;;  %s6904_s21 = smov 0  }
  0x19 LB: > { %9227 = sst [smem:[#allocation44_spill]] %s6741_s0  ;;  %s6755_s1 = smov [#allocation5]   ;;  %s6753_s21 = sphi %s6904_s21, %s7327_s21   ;;  %s6749_s20 = sphi %s6902_s20, %s9300_s20   ;;  %s6745_s30 = sphi %s6900_s30, %s9299_s30   ;;  %s6741_s0 = sphi %s6898_s0, %s9298_s0  }
  0x1a   : > { %9228 = sst [smem:[#allocation45_spill]] %s6745_s30  ;;  %s492_s22 = sshll.u32 %s6755_s1, 4  ;;  %s6924_s22 = int_to_ptr.vmem [resolvable:$true] %s492_s22 }
  0x1b   : > { %9229 = sst [smem:[#allocation46_spill]] %s6749_s20  ;;  %s6919_s2 = sadd.s32 4294967295, %s6753_s21  }
  0x1c   : > { %9230 = sst [smem:[#allocation47_spill]] %s6753_s21  ;;  %p4540_p0 = scmp.ge.s32.totalorder %s6753_s21, 1 }
  0x1d   : > { %9231 = sst [smem:[#allocation48_spill]] %s6919_s2  ;;  %p9211_p1 = scmp.eq.s32.totalorder %s6919_s2, 0 }
  0x1e   : > { %p479_p2 = scmp.lt.s32.totalorder %s6753_s21, 3  ;;  %s6756_s24 = smov [#allocation8]  }
  0x1f   : > { %s513_s25 = sshll.u32 %s6756_s24, 4  ;;  %s6757_s26 = smov [#allocation11]   ;;  %s6933_s25 = int_to_ptr.vmem [resolvable:$true] %s513_s25 }
  0x20   : > { %p6926_p3 = pnand %p4540_p0, %p479_p2  ;;  %s537_s27 = sshll.u32 %s6757_s26, 4  ;;  %s6941_s27 = int_to_ptr.vmem [resolvable:$true] %s537_s27 }
  0x21   : > { %s9235_s1 = sld [smem:[#allocation51_spill]] }
  0x22   : > { %s9232_s23 = scalar_select %p6926_p3, 1, 0 }
  0x23   : > { %p5301_p5 = pneg %p6926_p3 }
  0x24   : > { %9233 = sst [smem:[#allocation49_spill]] %s9232_s23 }
  0x25   : > { %p6937_p6 = pnand %p5301_p5, %p9211_p1 }
  0x27   : > { %s6117_s19 = scalar_lea.hbm %s9235_s1, 48  ;;  %p6951_p8 = pneg %p6937_p6 }
  0x28   : > { %p6118_p7 = scmp.ne.s32.totalorder %s9235_s1, %s6117_s19  ;;  %p6124_p11 = scmp.lt.u32.totalorder %s6117_s19, %s9235_s1 }
  0x2a   : > { %p6120_p9 = pnand %p6951_p8, %p6118_p7 }
  0x2c   : > { %p6121_p10 = pneg %p6120_p9 }
  0x2e   : > { %p6126_p12 = pnand %p6124_p11, %p6121_p10 }
  0x30   : > { %6129 = shalt.err (!%p6126_p12)
}
  0x31   : > { %s6130_s0 = scalar_lea.vmem %s6924_s22, 48  ;;  %s6137_s23 = scalar_lea.vmem %s6924_s22, 64 }
  0x32   : > { %p6131_p13 = scmp.ne.s32.totalorder %s6924_s22, %s6130_s0  ;;  %p6138_p5 = scmp.lt.s32.totalorder %s6924_s22, %s6924_s22 }
  0x33   : > { %p6139_p7 = scmp.lt.s32.totalorder %s6137_s23, %s6130_s0 }
  0x34   : > { %p6133_p0 = pnand %p6131_p13, %p6951_p8 }
  0x35   : > { %p6140_p9 = por %p6139_p7, %p6138_p5 }
  0x36   : > { %p6134_p2 = pneg %p6133_p0 }
  0x38   : > { %p6141_p4 = pnand %p6140_p9, %p6134_p2 }
  0x3a   : > { %6144 = shalt.err (!%p6141_p4)
}
  0x3b   : > { %5304 = dma.hbm_to_vmem [thread:$0]  (!%p6937_p6), %s9235_s1, 48, %s6924_s22, [#allocation6]  }
  0x3c   : > { %s9237_s26 = sld [smem:[#allocation53_spill]] }
  0x42   : > { %s6145_s30 = scalar_lea.hbm %s9237_s26, 384 }
  0x43   : > { %p6146_p10 = scmp.ne.s32.totalorder %s9237_s26, %s6145_s30  ;;  %p6152_p4 = scmp.lt.u32.totalorder %s6145_s30, %s9237_s26 }
  0x45   : > { %p6148_p11 = pnand %p6146_p10, %p6951_p8 }
  0x47   : > { %p6149_p12 = pneg %p6148_p11 }
  0x49   : > { %p6154_p13 = pnand %p6152_p4, %p6149_p12 }
  0x4b   : > { %6157 = shalt.err (!%p6154_p13)
}
  0x4c   : > { %s6158_s22 = scalar_lea.vmem %s6933_s25, 384  ;;  %p6166_p7 = scmp.lt.s32.totalorder %s6933_s25, %s6933_s25 }
  0x4d   : > { %p6159_p0 = scmp.ne.s32.totalorder %s6933_s25, %s6158_s22  ;;  %p6167_p9 = scmp.lt.s32.totalorder %s6158_s22, %s6158_s22 }
  0x4f   : > { %p6161_p2 = pnand %p6159_p0, %p6951_p8  ;;  %p6168_p10 = por %p6167_p9, %p6166_p7 }
  0x51   : > { %p6162_p5 = pneg %p6161_p2 }
  0x53   : > { %p6169_p11 = pnand %p6168_p10, %p6162_p5 }
  0x55   : > { %6172 = shalt.err (!%p6169_p11)
}
  0x56   : > { %s6758_s20 = smov 128   ;;  %s6759_s30 = smov 8  }
  0x57   : > { %5310 = dma.hbm_to_vmem [thread:$0]  (!%p6937_p6), %s9237_s26, 384, %s6933_s25, [#allocation9], %s6758_s20, %s6758_s20, %s6759_s30  }
  0x58   : > { %s9238_s5 = sld [smem:[#allocation55_spill]] }
  0x5e   : > { %s6173_s29 = scalar_lea.hbm %s9238_s5, 384 }
  0x5f   : > { %p6174_p12 = scmp.ne.s32.totalorder %s9238_s5, %s6173_s29  ;;  %p6180_p0 = scmp.lt.u32.totalorder %s6173_s29, %s9238_s5 }
  0x61   : > { %p6176_p4 = pnand %p6174_p12, %p6951_p8 }
  0x63   : > { %p6177_p13 = pneg %p6176_p4 }
  0x65   : > { %p6182_p2 = pnand %p6180_p0, %p6177_p13 }
  0x67   : > { %6185 = shalt.err (!%p6182_p2)
}
  0x68   : > { %s6186_s25 = scalar_lea.vmem %s6941_s27, 384  ;;  %p6194_p10 = scmp.lt.s32.totalorder %s6941_s27, %s6941_s27 }
  0x69   : > { %p6187_p5 = scmp.ne.s32.totalorder %s6941_s27, %s6186_s25  ;;  %p6195_p11 = scmp.lt.s32.totalorder %s6186_s25, %s6186_s25 }
  0x6b   : > { %p6189_p7 = pnand %p6187_p5, %p6951_p8  ;;  %p6196_p12 = por %p6195_p11, %p6194_p10 }
  0x6d   : > { %p6190_p9 = pneg %p6189_p7 }
  0x6f   : > { %p6197_p4 = pnand %p6196_p12, %p6190_p9 }
  0x71   : > { %6200 = shalt.err (!%p6197_p4)
}
  0x72   : > { %5316 = dma.hbm_to_vmem [thread:$0]  (!%p6937_p6), %s9238_s5, 384, %s6941_s27, [#allocation12], %s6758_s20, %s6758_s20, %s6759_s30  }
  0x73   : > { %s6760_s19 = smov [#allocation14]   ;;  %s6761_s28 = smov [#allocation17]  }
  0x74   : > { %s561_s2 = sshll.u32 %s6760_s19, 4  ;;  %s585_s29 = sshll.u32 %s6761_s28, 4  ;;  %s562_s2 = int_to_ptr.vmem [resolvable:$true] %s561_s2  ;;  %s586_s29 = int_to_ptr.vmem [resolvable:$true] %s585_s29 }
  0x75   : > { %s9239_s7 = sld [smem:[#allocation57_spill]] }
  0x7b   : > { %s6201_s22 = scalar_lea.hbm %s9239_s7, 384 }
  0x7c   : > { %p6202_p13 = scmp.ne.s32.totalorder %s9239_s7, %s6201_s22  ;;  %p6208_p5 = scmp.lt.u32.totalorder %s6201_s22, %s9239_s7 }
  0x7e   : > { %p6204_p0 = pnand %p6202_p13, %p6951_p8 }
  0x80   : > { %p6205_p2 = pneg %p6204_p0 }
  0x82   : > { %p6210_p7 = pnand %p6208_p5, %p6205_p2 }
  0x84   : > { %6213 = shalt.err (!%p6210_p7)
}
  0x85   : > { %s6214_s27 = scalar_lea.vmem %s562_s2, 384  ;;  %p6222_p12 = scmp.lt.s32.totalorder %s562_s2, %s562_s2 }
  0x86   : > { %p6215_p9 = scmp.ne.s32.totalorder %s562_s2, %s6214_s27  ;;  %p6223_p4 = scmp.lt.s32.totalorder %s6214_s27, %s6214_s27 }
  0x88   : > { %p6217_p10 = pnand %p6215_p9, %p6951_p8  ;;  %p6224_p1 = por %p6223_p4, %p6222_p12 }
  0x8a   : > { %p6218_p11 = pneg %p6217_p10 }
  0x8c   : > { %p6225_p3 = pnand %p6224_p1, %p6218_p11 }
  0x8e   : > { %6228 = shalt.err (!%p6225_p3)
}
  0x8f   : > { %5322 = dma.hbm_to_vmem [thread:$0]  (!%p6937_p6), %s9239_s7, 384, %s562_s2, [#allocation15], %s6758_s20, %s6758_s20, %s6759_s30  }
  0x90   : > { %s6229_s28 = scalar_lea.hbm %s9184_s9, 384 }
  0x91   : > { %p6230_p1 = scmp.ne.s32.totalorder %s9184_s9, %s6229_s28  ;;  %p6236_p0 = scmp.lt.u32.totalorder %s6229_s28, %s9184_s9 }
  0x93   : > { %p6232_p3 = pnand %p6230_p1, %p6951_p8 }
  0x95   : > { %p6233_p13 = pneg %p6232_p3 }
  0x97   : > { %p6238_p2 = pnand %p6236_p0, %p6233_p13 }
  0x99   : > { %6241 = shalt.err (!%p6238_p2)
}
  0x9a   : > { %s6242_s1 = scalar_lea.vmem %s586_s29, 384  ;;  %p6250_p10 = scmp.lt.s32.totalorder %s586_s29, %s586_s29 }
  0x9b   : > { %p6243_p5 = scmp.ne.s32.totalorder %s586_s29, %s6242_s1  ;;  %p6251_p11 = scmp.lt.s32.totalorder %s6242_s1, %s6242_s1 }
  0x9d   : > { %p6245_p7 = pnand %p6243_p5, %p6951_p8  ;;  %p6252_p12 = por %p6251_p11, %p6250_p10 }
  0x9f   : > { %p6246_p9 = pneg %p6245_p7 }
  0xa1   : > { %p6253_p4 = pnand %p6252_p12, %p6246_p9 }
  0xa3   : > { %6256 = shalt.err (!%p6253_p4)
}
  0xa4   : > { %5328 = dma.hbm_to_vmem [thread:$0]  (!%p6937_p6), %s9184_s9, 384, %s586_s29, [#allocation18], %s6758_s20, %s6758_s20, %s6759_s30  }
  0xa5   : > { %s6762_s18 = smov [#allocation20]   ;;  %s6763_s21 = smov [#allocation23]  }
  0xa6   : > { %s609_s26 = sshll.u32 %s6762_s18, 4  ;;  %s635_s19 = sshll.u32 %s6763_s21, 4  ;;  %s610_s26 = int_to_ptr.vmem [resolvable:$true] %s609_s26  ;;  %s636_s19 = int_to_ptr.vmem [resolvable:$true] %s635_s19 }
  0xa7   : > { %s6257_s23 = scalar_lea.hbm %s9186_s11, 1536 }
  0xa8   : > { %p6258_p1 = scmp.ne.s32.totalorder %s9186_s11, %s6257_s23  ;;  %p6264_p0 = scmp.lt.u32.totalorder %s6257_s23, %s9186_s11 }
  0xaa   : > { %p6260_p3 = pnand %p6258_p1, %p6951_p8 }
  0xac   : > { %p6261_p13 = pneg %p6260_p3 }
  0xae   : > { %p6266_p2 = pnand %p6264_p0, %p6261_p13 }
  0xb0   : > { %6269 = shalt.err (!%p6266_p2)
}
  0xb1   : > { %s6270_s29 = scalar_lea.vmem %s610_s26, 1536  ;;  %p6278_p10 = scmp.lt.s32.totalorder %s610_s26, %s610_s26 }
  0xb2   : > { %p6271_p5 = scmp.ne.s32.totalorder %s610_s26, %s6270_s29  ;;  %p6279_p11 = scmp.lt.s32.totalorder %s6270_s29, %s6270_s29 }
  0xb4   : > { %p6273_p7 = pnand %p6271_p5, %p6951_p8  ;;  %p6280_p12 = por %p6279_p11, %p6278_p10 }
  0xb6   : > { %p6274_p9 = pneg %p6273_p7 }
  0xb8   : > { %p6281_p4 = pnand %p6280_p12, %p6274_p9 }
  0xba   : > { %6284 = shalt.err (!%p6281_p4)
}
  0xbb   : > { %5334 = dma.hbm_to_vmem [thread:$0]  (!%p6937_p6), %s9186_s11, 1536, %s610_s26, [#allocation21], %s6758_s20, %s6758_s20, %s6759_s30  }
  0xbc   : > { %s6285_s0 = scalar_lea.hbm %s9188_s13, 256 }
  0xbd   : > { %p6286_p1 = scmp.ne.s32.totalorder %s9188_s13, %s6285_s0  ;;  %p6292_p0 = scmp.lt.u32.totalorder %s6285_s0, %s9188_s13 }
  0xbf   : > { %p6288_p3 = pnand %p6286_p1, %p6951_p8 }
  0xc1   : > { %p6289_p13 = pneg %p6288_p3 }
  0xc3   : > { %p6294_p2 = pnand %p6292_p0, %p6289_p13 }
  0xc5   : > { %6297 = shalt.err (!%p6294_p2)
}
  0xc6   : > { %s6298_s2 = scalar_lea.vmem %s636_s19, 256  ;;  %p6306_p10 = scmp.lt.s32.totalorder %s636_s19, %s636_s19 }
  0xc7   : > { %p6299_p5 = scmp.ne.s32.totalorder %s636_s19, %s6298_s2  ;;  %p6307_p11 = scmp.lt.s32.totalorder %s6298_s2, %s6298_s2 }
  0xc9   : > { %p6301_p7 = pnand %p6299_p5, %p6951_p8  ;;  %p6308_p12 = por %p6307_p11, %p6306_p10 }
  0xcb   : > { %p6302_p9 = pneg %p6301_p7 }
  0xcd   : > { %p6309_p4 = pnand %p6308_p12, %p6302_p9 }
  0xcf   : > { %6312 = shalt.err (!%p6309_p4)
}
  0xd0   : > { %5340 = dma.hbm_to_vmem [thread:$0]  (!%p6937_p6), %s9188_s13, 256, %s636_s19, [#allocation24], %s6758_s20, %s6758_s20, %s6759_s30  }
  0xd1   : > { %s6764_s27 = smov [#allocation26]   ;;  %s6765_s21 = smov [#allocation29]  }
  0xd2   : > { %s661_s18 = sshll.u32 %s6764_s27, 4  ;;  %s687_s28 = sshll.u32 %s6765_s21, 4  ;;  %s662_s18 = int_to_ptr.vmem [resolvable:$true] %s661_s18  ;;  %s688_s28 = int_to_ptr.vmem [resolvable:$true] %s687_s28 }
  0xd3   : > { %s6313_s22 = scalar_lea.hbm %s9190_s15, 384 }
  0xd4   : > { %p6314_p1 = scmp.ne.s32.totalorder %s9190_s15, %s6313_s22  ;;  %p6320_p0 = scmp.lt.u32.totalorder %s6313_s22, %s9190_s15 }
  0xd6   : > { %p6316_p3 = pnand %p6314_p1, %p6951_p8 }
  0xd8   : > { %p6317_p13 = pneg %p6316_p3 }
  0xda   : > { %p6322_p2 = pnand %p6320_p0, %p6317_p13 }
  0xdc   : > { %6325 = shalt.err (!%p6322_p2)
}
  0xdd   : > { %s6326_s19 = scalar_lea.vmem %s662_s18, 384  ;;  %p6334_p10 = scmp.lt.s32.totalorder %s662_s18, %s662_s18 }
  0xde   : > { %p6327_p5 = scmp.ne.s32.totalorder %s662_s18, %s6326_s19  ;;  %p6335_p11 = scmp.lt.s32.totalorder %s6326_s19, %s6326_s19 }
  0xe0   : > { %p6329_p7 = pnand %p6327_p5, %p6951_p8  ;;  %p6336_p12 = por %p6335_p11, %p6334_p10 }
  0xe2   : > { %p6330_p9 = pneg %p6329_p7 }
  0xe4   : > { %p6337_p4 = pnand %p6336_p12, %p6330_p9 }
  0xe6   : > { %6340 = shalt.err (!%p6337_p4)
}
  0xe7   : > { %5346 = dma.hbm_to_vmem [thread:$0]  (!%p6937_p6), %s9190_s15, 384, %s662_s18, [#allocation27], %s6758_s20, %s6758_s20, %s6759_s30  }
  0xe8   : > { %s6341_s23 = scalar_lea.hbm %s9192_s17, 512 }
  0xe9   : > { %p6342_p1 = scmp.ne.s32.totalorder %s9192_s17, %s6341_s23  ;;  %p6348_p0 = scmp.lt.u32.totalorder %s6341_s23, %s9192_s17 }
  0xeb   : > { %p6344_p3 = pnand %p6342_p1, %p6951_p8 }
  0xed   : > { %p6345_p13 = pneg %p6344_p3 }
  0xef   : > { %p6350_p2 = pnand %p6348_p0, %p6345_p13 }
  0xf1   : > { %6353 = shalt.err (!%p6350_p2)
}
  0xf2   : > { %s6354_s26 = scalar_lea.vmem %s688_s28, 512  ;;  %p6362_p10 = scmp.lt.s32.totalorder %s688_s28, %s688_s28 }
  0xf3   : > { %p6355_p5 = scmp.ne.s32.totalorder %s688_s28, %s6354_s26  ;;  %p6363_p11 = scmp.lt.s32.totalorder %s6354_s26, %s6354_s26 }
  0xf5   : > { %p6357_p7 = pnand %p6355_p5, %p6951_p8  ;;  %p6364_p12 = por %p6363_p11, %p6362_p10 }
  0xf7   : > { %p6358_p9 = pneg %p6357_p7 }
  0xf9   : > { %p6365_p4 = pnand %p6364_p12, %p6358_p9 }
  0xfb   : > { %6368 = shalt.err (!%p6365_p4)
}
  0xfc   : > { %5352 = dma.hbm_to_vmem [thread:$0]  (!%p6937_p6), %s9192_s17, 512, %s688_s28, [#allocation30], %s6758_s20, %s6758_s20, %s6759_s30  }
  0xfd   : > { %s6766_s29 = smov [#allocation7]   ;;  %s6767_s21 = smov [#allocation10]  }
  0xfe   : > { %s503_s27 = sshll.u32 %s6766_s29, 4  ;;  %s527_s0 = sshll.u32 %s6767_s21, 4  ;;  %s504_s27 = int_to_ptr.vmem [resolvable:$true] %s503_s27  ;;  %s528_s0 = int_to_ptr.vmem [resolvable:$true] %s527_s0 }
  0xff   : > { %s9240_s25 = sld [smem:[#allocation52_spill]] }
 0x105   : > { %s6369_s1 = scalar_lea.hbm %s9240_s25, 48 }
 0x106   : > { %p6370_p1 = scmp.ne.s32.totalorder %s9240_s25, %s6369_s1  ;;  %p6376_p0 = scmp.lt.u32.totalorder %s6369_s1, %s9240_s25 }
 0x108   : > { %p6372_p3 = pnand %p6370_p1, %p6951_p8 }
 0x10a   : > { %p6373_p13 = pneg %p6372_p3 }
 0x10c   : > { %p6378_p2 = pnand %p6376_p0, %p6373_p13 }
 0x10e   : > { %6381 = shalt.err (!%p6378_p2)
}
 0x10f   : > { %s6382_s28 = scalar_lea.vmem %s504_s27, 48  ;;  %s6389_s19 = scalar_lea.vmem %s504_s27, 64 }
 0x110   : > { %p6383_p5 = scmp.ne.s32.totalorder %s504_s27, %s6382_s28  ;;  %p6390_p10 = scmp.lt.s32.totalorder %s504_s27, %s504_s27 }
 0x111   : > { %p6391_p11 = scmp.lt.s32.totalorder %s6389_s19, %s6382_s28 }
 0x112   : > { %p6385_p7 = pnand %p6383_p5, %p6951_p8 }
 0x113   : > { %p6392_p12 = por %p6391_p11, %p6390_p10 }
 0x114   : > { %p6386_p9 = pneg %p6385_p7 }
 0x116   : > { %p6393_p4 = pnand %p6392_p12, %p6386_p9 }
 0x118   : > { %6396 = shalt.err (!%p6393_p4)
}
 0x119   : > { %5307 = dma.hbm_to_vmem [thread:$0]  (!%p6937_p6), %s9240_s25, 48, %s504_s27, [#allocation6]  }
 0x11a   : > { %s9241_s4 = sld [smem:[#allocation54_spill]] }
 0x120   : > { %s6397_s22 = scalar_lea.hbm %s9241_s4, 128 }
 0x121   : > { %p6398_p1 = scmp.ne.s32.totalorder %s9241_s4, %s6397_s22  ;;  %p6404_p0 = scmp.lt.u32.totalorder %s6397_s22, %s9241_s4 }
 0x123   : > { %p6400_p3 = pnand %p6398_p1, %p6951_p8 }
 0x125   : > { %p6401_p13 = pneg %p6400_p3 }
 0x127   : > { %p6406_p2 = pnand %p6404_p0, %p6401_p13 }
 0x129   : > { %6409 = shalt.err (!%p6406_p2)
}
 0x12a   : > { %s6410_s28 = scalar_lea.vmem %s528_s0, 128  ;;  %p6418_p10 = scmp.lt.s32.totalorder %s528_s0, %s528_s0 }
 0x12b   : > { %p6411_p5 = scmp.ne.s32.totalorder %s528_s0, %s6410_s28  ;;  %p6419_p11 = scmp.lt.s32.totalorder %s6410_s28, %s6410_s28 }
 0x12d   : > { %p6413_p7 = pnand %p6411_p5, %p6951_p8  ;;  %p6420_p12 = por %p6419_p11, %p6418_p10 }
 0x12f   : > { %p6414_p9 = pneg %p6413_p7 }
 0x131   : > { %p6421_p4 = pnand %p6420_p12, %p6414_p9 }
 0x133   : > { %6424 = shalt.err (!%p6421_p4)
}
 0x134   : > { %5313 = dma.hbm_to_vmem [thread:$0]  (!%p6937_p6), %s9241_s4, 128, %s528_s0, [#allocation9]  }
 0x135   : > { %s6768_s29 = smov [#allocation13]   ;;  %s6769_s5 = smov [#allocation16]  }
 0x136   : > { %s551_s21 = sshll.u32 %s6768_s29, 4  ;;  %s575_s23 = sshll.u32 %s6769_s5, 4  ;;  %s552_s21 = int_to_ptr.vmem [resolvable:$true] %s551_s21  ;;  %s576_s23 = int_to_ptr.vmem [resolvable:$true] %s575_s23 }
 0x137   : > { %s9242_s6 = sld [smem:[#allocation56_spill]] }
 0x13d   : > { %s6425_s2 = scalar_lea.hbm %s9242_s6, 128 }
 0x13e   : > { %p6426_p1 = scmp.ne.s32.totalorder %s9242_s6, %s6425_s2  ;;  %p6432_p0 = scmp.lt.u32.totalorder %s6425_s2, %s9242_s6 }
 0x140   : > { %p6428_p3 = pnand %p6426_p1, %p6951_p8 }
 0x142   : > { %p6429_p13 = pneg %p6428_p3 }
 0x144   : > { %p6434_p2 = pnand %p6432_p0, %p6429_p13 }
 0x146   : > { %6437 = shalt.err (!%p6434_p2)
}
 0x147   : > { %s6438_s0 = scalar_lea.vmem %s552_s21, 128  ;;  %p6446_p10 = scmp.lt.s32.totalorder %s552_s21, %s552_s21 }
 0x148   : > { %p6439_p5 = scmp.ne.s32.totalorder %s552_s21, %s6438_s0  ;;  %p6447_p11 = scmp.lt.s32.totalorder %s6438_s0, %s6438_s0 }
 0x14a   : > { %p6441_p7 = pnand %p6439_p5, %p6951_p8  ;;  %p6448_p12 = por %p6447_p11, %p6446_p10 }
 0x14c   : > { %p6442_p9 = pneg %p6441_p7 }
 0x14e   : > { %p6449_p4 = pnand %p6448_p12, %p6442_p9 }
 0x150   : > { %6452 = shalt.err (!%p6449_p4)
}
 0x151   : > { %5319 = dma.hbm_to_vmem [thread:$0]  (!%p6937_p6), %s9242_s6, 128, %s552_s21, [#allocation12]  }
 0x152   : > { %s6453_s1 = scalar_lea.hbm %s9183_s8, 128 }
 0x153   : > { %p6454_p1 = scmp.ne.s32.totalorder %s9183_s8, %s6453_s1  ;;  %p6460_p0 = scmp.lt.u32.totalorder %s6453_s1, %s9183_s8 }
 0x155   : > { %p6456_p3 = pnand %p6454_p1, %p6951_p8 }
 0x157   : > { %p6457_p13 = pneg %p6456_p3 }
 0x159   : > { %p6462_p2 = pnand %p6460_p0, %p6457_p13 }
 0x15b   : > { %6465 = shalt.err (!%p6462_p2)
}
 0x15c   : > { %s6466_s27 = scalar_lea.vmem %s576_s23, 128  ;;  %p6474_p10 = scmp.lt.s32.totalorder %s576_s23, %s576_s23 }
 0x15d   : > { %p6467_p5 = scmp.ne.s32.totalorder %s576_s23, %s6466_s27  ;;  %p6475_p11 = scmp.lt.s32.totalorder %s6466_s27, %s6466_s27 }
 0x15f   : > { %p6469_p7 = pnand %p6467_p5, %p6951_p8  ;;  %p6476_p12 = por %p6475_p11, %p6474_p10 }
 0x161   : > { %p6470_p9 = pneg %p6469_p7 }
 0x163   : > { %p6477_p4 = pnand %p6476_p12, %p6470_p9 }
 0x165   : > { %6480 = shalt.err (!%p6477_p4)
}
 0x166   : > { %5325 = dma.hbm_to_vmem [thread:$0]  (!%p6937_p6), %s9183_s8, 128, %s576_s23, [#allocation15]  }
 0x167   : > { %s6770_s19 = smov [#allocation19]   ;;  %s6771_s5 = smov [#allocation22]  }
 0x168   : > { %s599_s29 = sshll.u32 %s6770_s19, 4  ;;  %s622_s22 = sshll.u32 %s6771_s5, 4  ;;  %s600_s29 = int_to_ptr.vmem [resolvable:$true] %s599_s29  ;;  %s623_s22 = int_to_ptr.vmem [resolvable:$true] %s622_s22 }
 0x169   : > { %s6481_s26 = scalar_lea.hbm %s9185_s10, 128 }
 0x16a   : > { %p6482_p1 = scmp.ne.s32.totalorder %s9185_s10, %s6481_s26  ;;  %p6488_p0 = scmp.lt.u32.totalorder %s6481_s26, %s9185_s10 }
 0x16c   : > { %p6484_p3 = pnand %p6482_p1, %p6951_p8 }
 0x16e   : > { %p6485_p13 = pneg %p6484_p3 }
 0x170   : > { %p6490_p2 = pnand %p6488_p0, %p6485_p13 }
 0x172   : > { %6493 = shalt.err (!%p6490_p2)
}
 0x173   : > { %s6494_s23 = scalar_lea.vmem %s600_s29, 128  ;;  %p6502_p10 = scmp.lt.s32.totalorder %s600_s29, %s600_s29 }
 0x174   : > { %p6495_p5 = scmp.ne.s32.totalorder %s600_s29, %s6494_s23  ;;  %p6503_p11 = scmp.lt.s32.totalorder %s6494_s23, %s6494_s23 }
 0x176   : > { %p6497_p7 = pnand %p6495_p5, %p6951_p8  ;;  %p6504_p12 = por %p6503_p11, %p6502_p10 }
 0x178   : > { %p6498_p9 = pneg %p6497_p7 }
 0x17a   : > { %p6505_p4 = pnand %p6504_p12, %p6498_p9 }
 0x17c   : > { %6508 = shalt.err (!%p6505_p4)
}
 0x17d   : > { %5331 = dma.hbm_to_vmem [thread:$0]  (!%p6937_p6), %s9185_s10, 128, %s600_s29, [#allocation18]  }
 0x17e   : > { %s6509_s2 = scalar_lea.hbm %s9187_s12, 512 }
 0x17f   : > { %p6510_p1 = scmp.ne.s32.totalorder %s9187_s12, %s6509_s2  ;;  %p6516_p0 = scmp.lt.u32.totalorder %s6509_s2, %s9187_s12 }
 0x181   : > { %p6512_p3 = pnand %p6510_p1, %p6951_p8 }
 0x183   : > { %p6513_p13 = pneg %p6512_p3 }
 0x185   : > { %p6518_p2 = pnand %p6516_p0, %p6513_p13 }
 0x187   : > { %6521 = shalt.err (!%p6518_p2)
}
 0x188   : > { %s6522_s21 = scalar_lea.vmem %s623_s22, 512  ;;  %p6530_p10 = scmp.lt.s32.totalorder %s623_s22, %s623_s22 }
 0x189   : > { %p6523_p5 = scmp.ne.s32.totalorder %s623_s22, %s6522_s21  ;;  %p6531_p11 = scmp.lt.s32.totalorder %s6522_s21, %s6522_s21 }
 0x18b   : > { %p6525_p7 = pnand %p6523_p5, %p6951_p8  ;;  %p6532_p12 = por %p6531_p11, %p6530_p10 }
 0x18d   : > { %p6526_p9 = pneg %p6525_p7 }
 0x18f   : > { %p6533_p4 = pnand %p6532_p12, %p6526_p9 }
 0x191   : > { %6536 = shalt.err (!%p6533_p4)
}
 0x192   : > { %5337 = dma.hbm_to_vmem [thread:$0]  (!%p6937_p6), %s9187_s12, 512, %s623_s22, [#allocation21], %s6758_s20, %s6758_s20, %s6759_s30  }
 0x193   : > { %s6772_s0 = smov [#allocation25]   ;;  %s6773_s5 = smov [#allocation28]  }
 0x194   : > { %s648_s19 = sshll.u32 %s6772_s0, 4  ;;  %s674_s1 = sshll.u32 %s6773_s5, 4  ;;  %s649_s19 = int_to_ptr.vmem [resolvable:$true] %s648_s19  ;;  %s675_s1 = int_to_ptr.vmem [resolvable:$true] %s674_s1 }
 0x195   : > { %s6537_s18 = scalar_lea.hbm %s9189_s14, 256 }
 0x196   : > { %p6538_p1 = scmp.ne.s32.totalorder %s9189_s14, %s6537_s18  ;;  %p6544_p0 = scmp.lt.u32.totalorder %s6537_s18, %s9189_s14 }
 0x198   : > { %p6540_p3 = pnand %p6538_p1, %p6951_p8 }
 0x19a   : > { %p6541_p13 = pneg %p6540_p3 }
 0x19c   : > { %p6546_p2 = pnand %p6544_p0, %p6541_p13 }
 0x19e   : > { %6549 = shalt.err (!%p6546_p2)
}
 0x19f   : > { %s6550_s22 = scalar_lea.vmem %s649_s19, 256  ;;  %p6558_p10 = scmp.lt.s32.totalorder %s649_s19, %s649_s19 }
 0x1a0   : > { %p6551_p5 = scmp.ne.s32.totalorder %s649_s19, %s6550_s22  ;;  %p6559_p11 = scmp.lt.s32.totalorder %s6550_s22, %s6550_s22 }
 0x1a2   : > { %p6553_p7 = pnand %p6551_p5, %p6951_p8  ;;  %p6560_p12 = por %p6559_p11, %p6558_p10 }
 0x1a4   : > { %p6554_p9 = pneg %p6553_p7 }
 0x1a6   : > { %p6561_p4 = pnand %p6560_p12, %p6554_p9 }
 0x1a8   : > { %6564 = shalt.err (!%p6561_p4)
}
 0x1a9   : > { %5343 = dma.hbm_to_vmem [thread:$0]  (!%p6937_p6), %s9189_s14, 256, %s649_s19, [#allocation24], %s6758_s20, %s6758_s20, %s6759_s30  }
 0x1aa   : > { %s6565_s26 = scalar_lea.hbm %s9191_s16, 384 }
 0x1ab   : > { %p6566_p1 = scmp.ne.s32.totalorder %s9191_s16, %s6565_s26  ;;  %p6572_p0 = scmp.lt.u32.totalorder %s6565_s26, %s9191_s16 }
 0x1ad   : > { %p6568_p3 = pnand %p6566_p1, %p6951_p8 }
 0x1af   : > { %p6569_p13 = pneg %p6568_p3 }
 0x1b1   : > { %p6574_p2 = pnand %p6572_p0, %p6569_p13 }
 0x1b3   : > { %6577 = shalt.err (!%p6574_p2)
}
 0x1b4   : > { %s6578_s29 = scalar_lea.vmem %s675_s1, 384  ;;  %p6586_p10 = scmp.lt.s32.totalorder %s675_s1, %s675_s1 }
 0x1b5   : > { %p6579_p5 = scmp.ne.s32.totalorder %s675_s1, %s6578_s29  ;;  %p6587_p11 = scmp.lt.s32.totalorder %s6578_s29, %s6578_s29 }
 0x1b7   : > { %p6581_p7 = pnand %p6579_p5, %p6951_p8  ;;  %p6588_p12 = por %p6587_p11, %p6586_p10 }
 0x1b9   : > { %p6582_p9 = pneg %p6581_p7 }
 0x1bb   : > { %p6589_p4 = pnand %p6588_p12, %p6582_p9 }
 0x1bd   : > { %6592 = shalt.err (!%p6589_p4)
}
 0x1be   : > { %5349 = dma.hbm_to_vmem [thread:$0]  (!%p6937_p6), %s9191_s16, 384, %s675_s1, [#allocation27], %s6758_s20, %s6758_s20, %s6759_s30  }
 0x1bf   : > { %s6774_s23 = smov [#allocation31]   ;;  %s9243_s26 = sld [smem:[#allocation58_spill]] }
 0x1c0   : > { %s700_s0 = sshll.u32 %s6774_s23, 4  ;;  %s701_s0 = int_to_ptr.vmem [resolvable:$true] %s700_s0 }
 0x1c5   : > { %s6593_s18 = scalar_lea.hbm %s9243_s26, 512 }
 0x1c6   : > { %p6594_p1 = scmp.ne.s32.totalorder %s9243_s26, %s6593_s18  ;;  %p6600_p0 = scmp.lt.u32.totalorder %s6593_s18, %s9243_s26 }
 0x1c8   : > { %p6596_p3 = pnand %p6594_p1, %p6951_p8 }
 0x1ca   : > { %p6597_p13 = pneg %p6596_p3 }
 0x1cc   : > { %p6602_p2 = pnand %p6600_p0, %p6597_p13 }
 0x1ce   : > { %6605 = shalt.err (!%p6602_p2)
}
 0x1cf   : > { %s6606_s1 = scalar_lea.vmem %s701_s0, 512  ;;  %p6614_p10 = scmp.lt.s32.totalorder %s701_s0, %s701_s0 }
 0x1d0   : > { %p6607_p5 = scmp.ne.s32.totalorder %s701_s0, %s6606_s1  ;;  %p6615_p11 = scmp.lt.s32.totalorder %s6606_s1, %s6606_s1 }
 0x1d2   : > { %p6609_p7 = pnand %p6607_p5, %p6951_p8  ;;  %p6616_p12 = por %p6615_p11, %p6614_p10 }
 0x1d4   : > { %p6610_p9 = pneg %p6609_p7 }
 0x1d6   : > { %p6617_p4 = pnand %p6616_p12, %p6610_p9 }
 0x1d8   : > { %6620 = shalt.err (!%p6617_p4)
}
 0x1d9   : > { %s9244_s23 = sld [smem:[#allocation47_spill]]  ;;  %s9245_s5 = sld [smem:[#allocation46_spill]] }
 0x1da   : > { %s9246_s24 = sld [smem:[#allocation45_spill]]  ;;  %s9247_s2 = sld [smem:[#allocation44_spill]] }
 0x1db   : > { %s9248_s18 = sld [smem:[#allocation48_spill]] }
 0x1dc   : > { %5355 = dma.hbm_to_vmem [thread:$0]  (!%p6937_p6), %s9243_s26, 512, %s701_s0, [#allocation30], %s6758_s20, %s6758_s20, %s6759_s30  }
 0x1df   : > { %s4539_s3 = sadd.s32 4294967294, %s9244_s23   ;;  %s7327_s21 = sadd.s32 1, %s9244_s23  }
 0x1e0   : > { %s48_s28 = ssub.s32 %s9244_s23, %s7327_s21  ;;  %s51_s27 = sadd.s32 1, %s9245_s5 }
 0x1e1   : > { %p49_p8 = scmp.eq.s32.totalorder %s48_s28, 0  ;;  %p58_p1 = scmp.ne.s32.totalorder %s9245_s5, %s9246_s24 }
 0x1e2   : > { %p59_p3 = scmp.eq.s32.totalorder %s9244_s23, 0  ;;  %p64_p13 = scmp.ne.s32.totalorder %s9246_s24, %s9247_s2 }
 0x1e3   : > { %s7338_s29 = scalar_select %p49_p8, %s9245_s5, %s51_s27  }
 0x1e4   : > { %p60_p0 = por %p59_p3, %p58_p1  ;;  %p9249_p2 = scmp.eq.s32.totalorder %s9248_s18, 0 }
 0x1e5   : > { %p466_p6 = scmp.eq.s32.totalorder %s9248_s18, 1  ;;  %p472_p7 = scmp.eq.s32.totalorder %s4539_s3, 1 }
 0x1e6   : > { %p7342_p5 = por %p9249_p2, %p64_p13  ;;  %p5382_p9 = scmp.lt.s32.totalorder %s9244_s23, 2 }
 0x1e7   : > { %s714_s20 = sand.u32 1, %s9245_s5   ;;  %p7349_p10 = por %p466_p6, %p58_p1 }
 0x1e8   : > { %p7353_p11 = por %p472_p7, %p64_p13  ;;  %s5222_s19 = smul.u32 48, %s714_s20 }
 0x1e9   : > { %s9251_s30 = scalar_select %p7349_p10, 1, 0 }
 0x1ea   : > { %s9252_s0 = scalar_select %p7353_p11, 1, 0 }
 0x1eb   : > { %s5223_s22 = smul.u32 768, %s9244_s23  ;;  %p7358_p12 = pnand %p5382_p9, %p60_p0 }
 0x1ec   : > { %s9254_s18 = sld [smem:[#allocation50_spill]]  ;;  %s718_s3 = scalar_lea.vmem [#allocation2], %s5222_s19 }
 0x1ed   : > { %s725_s27 = sshll.u32 %s718_s3, 4  ;;  %s7369_s23 = scalar_lea.sflag [#allocation3], %s714_s20  ;;  %s7367_s27 = int_to_ptr.vmem [resolvable:$true] %s725_s27 }
 0x1ee   : > { %p6623_p8 = pneg %p7358_p12 }
 0x1f2   : > { %s7365_s5 = scalar_lea.hbm %s9254_s18, %s5223_s22  ;;  %s6626_s28 = scalar_lea.hbm %s9254_s18, 1536 }
 0x1f3   : > { %s6621_s4 = scalar_lea.hbm %s7365_s5, 768  ;;  %p6627_p13 = scmp.lt.u32.totalorder %s7365_s5, %s9254_s18 }
 0x1f4   : > { %p6622_p4 = scmp.ne.s32.totalorder %s7365_s5, %s6621_s4  ;;  %p6628_p0 = scmp.lt.u32.totalorder %s6626_s28, %s6621_s4 }
 0x1f5   : > { %p6630_p6 = scmp.lt.u32.totalorder %s6621_s4, %s7365_s5 }
 0x1f6   : > { %p6624_p1 = pnand %p6623_p8, %p6622_p4  ;;  %p6629_p2 = por %p6628_p0, %p6627_p13 }
 0x1f8   : > { %p6625_p3 = pneg %p6624_p1  ;;  %p6631_p7 = por %p6630_p6, %p6629_p2 }
 0x1fa   : > { %p6632_p9 = pnand %p6631_p7, %p6625_p3 }
 0x1fc   : > { %6635 = shalt.err (!%p6632_p9)
}
 0x1fd   : > { %s6636_s20 = scalar_lea.vmem %s7367_s27, 768  ;;  %s6775_s19 = smov [#allocation2]  }
 0x1fe   : > { %p6637_p4 = scmp.ne.s32.totalorder %s7367_s27, %s6636_s20  ;;  %s6641_s3 = sshll.u32 %s6775_s19, 4  ;;  %s6642_s3 = int_to_ptr.vmem [resolvable:$false] %s6641_s3 }
 0x1ff   : > { %s6643_s6 = scalar_lea.vmem %s6642_s3, 1536  ;;  %p6644_p10 = scmp.lt.s32.totalorder %s7367_s27, %s6642_s3 }
 0x200   : > { %p6639_p1 = pnand %p6637_p4, %p6623_p8  ;;  %p6645_p13 = scmp.lt.s32.totalorder %s6643_s6, %s6636_s20 }
 0x202   : > { %p6640_p11 = pneg %p6639_p1  ;;  %p6646_p0 = por %p6645_p13, %p6644_p10 }
 0x204   : > { %p6647_p2 = pnand %p6646_p0, %p6640_p11 }
 0x206   : > { %6650 = shalt.err (!%p6647_p2)
}
 0x207   : > { %s6776_s4 = smov 384   ;;  %s6777_s7 = smov 24  }
 0x208   : > { %5359 = dma.hbm_to_vmem [thread:$0]  (!%p7358_p12), %s7365_s5, 768, %s7367_s27, %s7369_s23, %s6776_s4, %s6776_s4, %s6777_s7  }
 0x209   : > { %s9255_s22 = sld [smem:[#allocation49_spill]] }
 0x20f   : > { %p9256_p8 = scmp.ne.s32.totalorder %s9255_s22, 0 }
 0x210   : > { %s9257_s2 = sld [smem:[#allocation45_spill]] (!%p9256_p8) }
 0x211   : > { %737 = sbr.rel (%p9256_p8) target bundleno = 3272 (0xcc8), region = 96 }
 0x216   : > { %s7400_s28 = sand.u32 (!%p9256_p8), 1, %s9257_s2  }
 0x217   : > { %s5224_s20 = smul.u32 (!%p9256_p8), 48, %s7400_s28  ;;  %s740_s19 = scalar_lea.sflag (!%p9256_p8), [#allocation3], %s7400_s28 }
 0x219   : > { %s743_s3 = scalar_lea.vmem [#allocation2], %s5224_s20 }
 0x21a   : > { %6696 = dma.done.wait (%p7342_p5), %s740_s19, 768  }
 0x21b   : > { %6698 = vsyncadd (%p7342_p5), %s740_s19, 4294966528  ;;  %s9258_s6 = sld [smem:[#allocation48_spill]] }
 0x221   : > { %p9259_p10 = scmp.eq.s32.totalorder %s9258_s6, 0 }
 0x223   : > { %6700 = dma.done.wait (%p9259_p10), [#allocation6], 96   ;;  %p9260_p11 = pmov %p9259_p10 }
 0x224   : > { %p9261_p12 = pmov %p9259_p10 }
 0x225   : > { %6702 = vsyncadd (%p9260_p11), [#allocation6], 4294967200 }
 0x226   : > { %6704 = dma.done.wait (%p9261_p12), [#allocation9], 512   ;;  %p9262_p3 = pmov %p9259_p10 }
 0x228   : > { %6706 = vsyncadd (%p9262_p3), [#allocation9], 4294966784  ;;  %p9263_p6 = pmov %p9262_p3 }
 0x229   : > { %p9264_p7 = pmov %p9262_p3 }
 0x22a   : > { %6708 = dma.done.wait (%p9263_p6), [#allocation12], 512  }
 0x22b   : > { %6710 = vsyncadd (%p9264_p7), [#allocation12], 4294966784  ;;  %p9265_p5 = pmov %p9262_p3 }
 0x22c   : > { %p9266_p9 = pmov %p9262_p3 }
 0x22d   : > { %6712 = dma.done.wait (%p9265_p5), [#allocation15], 512  }
 0x22e   : > { %6714 = vsyncadd (%p9266_p9), [#allocation15], 4294966784  ;;  %p9267_p4 = pmov %p9262_p3 }
 0x22f   : > { %p9268_p1 = pmov %p9262_p3 }
 0x230   : > { %6716 = dma.done.wait (%p9267_p4), [#allocation18], 512  }
 0x231   : > { %6718 = vsyncadd (%p9268_p1), [#allocation18], 4294966784  ;;  %p9269_p13 = pmov %p9268_p1 }
 0x232   : > { %p9270_p0 = pmov %p9268_p1 }
 0x233   : > { %6720 = dma.done.wait (%p9269_p13), [#allocation21], 2048  }
 0x234   : > { %6722 = vsyncadd (%p9270_p0), [#allocation21], 4294965248  ;;  %p9271_p2 = pmov %p9270_p0 }
 0x235   : > { %p9272_p8 = pmov %p9270_p0 }
 0x236   : > { %6724 = dma.done.wait (%p9271_p2), [#allocation24], 512  }
 0x237   : > { %6726 = vsyncadd (%p9272_p8), [#allocation24], 4294966784  ;;  %p9273_p10 = pmov %p9270_p0 }
 0x238   : > { %p9274_p11 = pmov %p9270_p0 }
 0x239   : > { %6728 = dma.done.wait (%p9273_p10), [#allocation27], 768  }
 0x23a   : > { %6730 = vsyncadd (%p9274_p11), [#allocation27], 4294966528  ;;  %p9275_p12 = pmov %p9270_p0 }
 0x23b   : > { %p9276_p3 = pmov %p9270_p0 }
 0x23c   : > { %6732 = dma.done.wait (%p9275_p12), [#allocation30], 1024  }
 0x23d   : > { %6734 = vsyncadd (%p9276_p3), [#allocation30], 4294966272  ;;  %v7444_v0 = vld [vmem:[%s743_s3 + $0x10] sm:$0xff]  ;;  %v7446_v1 = vld [vmem:[%s743_s3 + $0x28] sm:$0xff]  ;;  %s6778_s1 = smov 18   ;;  %s6779_s24 = smov 110   ;;  %v899_v13 = vlaneseq }
 0x23e   : > { %v7448_v2 = vld [vmem:[%s743_s3] sm:$0xff]  ;;  %v5485_v3 = vpack.i.bf16 %v7446_v1, %v7444_v0  ;;  %v7452_v4 = vld [vmem:[%s743_s3 + $0x18] sm:$0xff]  ;;  %v7454_v5 = vld [vmem:[%s743_s3 + $0x8] sm:$0xff]  ;;  %s6780_s5 = smov 1   ;;  %s6781_s27 = smov 127   ;;  %v9214_v11 = vmov 0.0   ;;  %v4903_v12 = vpack.c.bf16 %v7446_v1, %v7444_v0 }
 0x23f   : > { %v7456_v6 = vld [vmem:[%s743_s3 + $0x20] sm:$0xff]  ;;  %v5475_v7 = vpack.i.bf16 %v7452_v4, %v7448_v2  ;;  %v4893_v10 = vpack.c.bf16 %v7452_v4, %v7448_v2  ;;  %1053 = vmatprep.mubr.f32.mxu1 %v9214_v11  ;;  %1197 = vmatprep.mubr.f32.mxu0 %v9214_v11  ;;  %v7483_v14 = vand.u32 127, %v899_v13  ;;  %vm985_vm4 = vcmask 392192   ;;  %s4581_s23 = sshll.u32 %s9258_s6, 3  ;;  %s6786_s4 = smov 37  }
 0x240   : > { %5486 = vrot.lane.b32.xlu1 %v5485_v3, %s6778_s1  ;;  %v5480_v8 = vpack.i.bf16 %v7456_v6, %v7454_v5  ;;  %v4891_v9 = vpack.c.bf16 %v7456_v6, %v7454_v5  ;;  %v6784_v4 = vmov 0.0|0.0   ;;  %vm6785_vm5 = vmmov 0   ;;  %s6787_s7 = smov 33   ;;  %s6788_s22 = smov 35  }
 0x241   : > { %5476 = vrot.lane.b32.xlu0 %v5475_v7, %s6778_s1  ;;  %vm901_vm0 = vcmp.lt.s32.totalorder %v7483_v14, 18  ;;  %vm1286_vm1 = vcmp.lt.s32.totalorder %v7483_v14, 110  ;;  %vm920_vm2 = vcmp.lt.s32.totalorder %v7483_v14, 1  ;;  %vm939_vm3 = vcmp.lt.s32.totalorder %v7483_v14, 127  ;;  %v3675_v14 = vld [vmem:[#allocation20 + $0x38] sm:$0xff]  ;;  %s6789_s2 = smov 31  }
 0x242   : > { %vm1554_vm9 = vcmask 195584   ;;  %vm2879_vm10 = vcmask 588800   ;;  %vm3676_vm11 = vcmask 785408   ;;  %s6790_s20 = smov 29   ;;  %s6791_s19 = smov 27   ;;  %vm4141_vm12 = vcmask 130048  }
 0x243   : > { %s6792_s3 = smov 25   ;;  %vm4158_vm13 = vcmask 261248   ;;  %vm4183_vm14 = vcmask 269312   ;;  %vm4192_vm15 = vcmask 392448   ;;  %p9293_p7 = scmp.ne.s32.totalorder %s9251_s30, 0 }
 0x244   : > { %5491 = vrot.lane.b32.xlu1 %v5475_v7, %s6779_s24 }
 0x245   : > { %5481 = vrot.lane.b32.xlu0 %v5480_v8, %s6778_s1 }
 0x248   : > { %5501 = vrot.lane.b32.xlu1 %v5485_v3, %s6779_s24 }
 0x249   : > { %5496 = vrot.lane.b32.xlu0 %v5480_v8, %s6779_s24 }
 0x24c   : > { %5511 = vrot.lane.b32.xlu1 %v5480_v8, %s6780_s5 }
 0x24d   : > { %5506 = vrot.lane.b32.xlu0 %v5475_v7, %s6780_s5 }
 0x250   : > { %5521 = vrot.lane.b32.xlu1 %v5480_v8, %s6781_s27 }
 0x251   : > { %5516 = vrot.lane.b32.xlu0 %v5485_v3, %s6780_s5 }
 0x254   : > { %5531 = vrot.lane.b32.xlu1 %v5475_v7, %s6781_s27 }
 0x255   : > { %5526 = vrot.lane.b32.xlu0 %v5485_v3, %s6781_s27 }
 0x2b2   : > { %v5487_v15 = vpop.permute.xlu1 %5486 }
 0x2b3   : > { %v5489_v16 = vunpack.i.h.bf16 %v5487_v15  ;;  %v5488_v17 = vunpack.i.l.bf16 %v5487_v15  ;;  %v5477_v18 = vpop.permute.xlu0 %5476 }
 0x2b4   : > { %v5479_v19 = vunpack.i.h.bf16 %v5477_v18  ;;  %v5478_v20 = vunpack.i.l.bf16 %v5477_v18 }
 0x2b6   : > { %v7488_v21 = vsel %vm901_vm0, %v5488_v17, %v5478_v20  ;;  %v7492_v22 = vsel %vm901_vm0, %v5489_v16, %v5479_v19  ;;  %v5492_v23 = vpop.permute.xlu1 %5491 }
 0x2b7   : > { %v5482_v24 = vpop.permute.xlu0 %5481  ;;  %v5535_v25 = vpack.i.bf16 %v7492_v22, %v7488_v21  ;;  %v4914_v28 = vpack.c.bf16 %v7492_v22, %v7488_v21  ;;  %v5494_v29 = vunpack.i.h.bf16 %v5492_v23  ;;  %v5493_v30 = vunpack.i.l.bf16 %v5492_v23 }
 0x2b8   : > { %v5484_v26 = vunpack.i.h.bf16 %v5482_v24  ;;  %v5483_v27 = vunpack.i.l.bf16 %v5482_v24 }
 0x2b9   : > { %5536 = vrot.lane.b32.xlu0 %v5535_v25, %s6780_s5 }
 0x2ba   : > { %v7502_v31 = vsel %vm901_vm0, %v5483_v27, %v5488_v17  ;;  %v7506_v32 = vsel %vm901_vm0, %v5484_v26, %v5489_v16  ;;  %v7510_v33 = vsel %vm901_vm0, %v5478_v20, %v5483_v27  ;;  %v7514_v34 = vsel %vm901_vm0, %v5479_v19, %v5484_v26  ;;  %v5502_v35 = vpop.permute.xlu1 %5501 }
 0x2bb   : > { %v5545_v36 = vpack.i.bf16 %v7506_v32, %v7502_v31  ;;  %v5540_v37 = vpack.i.bf16 %v7514_v34, %v7510_v33  ;;  %v5504_v38 = vunpack.i.h.bf16 %v5502_v35  ;;  %v5503_v39 = vunpack.i.l.bf16 %v5502_v35  ;;  %v5497_v40 = vpop.permute.xlu0 %5496 }
 0x2bc   : > { %v5499_v41 = vunpack.i.h.bf16 %v5497_v40  ;;  %v5498_v42 = vunpack.i.l.bf16 %v5497_v40  ;;  %v4912_v43 = vpack.c.bf16 %v7514_v34, %v7510_v33  ;;  %v4924_v57 = vpack.c.bf16 %v7506_v32, %v7502_v31 }
 0x2bd   : > { %5546 = vrot.lane.b32.xlu0 %v5545_v36, %s6780_s5  ;;  %5541 = vrot.lane.b32.xlu1 %v5540_v37, %s6780_s5  ;;  %v7538_v48 = vsel %vm1286_vm1, %v5503_v39, %v5493_v30  ;;  %v7542_v49 = vsel %vm1286_vm1, %v5504_v38, %v5494_v29 }
 0x2be   : > { %v7526_v44 = vsel %vm1286_vm1, %v5493_v30, %v5498_v42  ;;  %v7530_v45 = vsel %vm1286_vm1, %v5494_v29, %v5499_v41  ;;  %v7534_v46 = vsel %vm1286_vm1, %v5498_v42, %v5503_v39  ;;  %v5512_v47 = vpop.permute.xlu1 %5511  ;;  %v7546_v50 = vsel %vm1286_vm1, %v5499_v41, %v5504_v38 }
 0x2bf   : > { %v5507_v51 = vpop.permute.xlu0 %5506  ;;  %v5565_v52 = vpack.i.bf16 %v7530_v45, %v7526_v44  ;;  %v5514_v55 = vunpack.i.h.bf16 %v5512_v47  ;;  %v5513_v56 = vunpack.i.l.bf16 %v5512_v47  ;;  %v4933_v58 = vpack.c.bf16 %v7546_v50, %v7534_v46  ;;  %v984_v47 = vld [vmem:[#allocation8 + $0x8] sm:$0xff] }
 0x2c0   : > { %v5509_v53 = vunpack.i.h.bf16 %v5507_v51  ;;  %v5508_v54 = vunpack.i.l.bf16 %v5507_v51  ;;  %v4945_v60 = vpack.c.bf16 %v7542_v49, %v7538_v48  ;;  %v4935_v61 = vpack.c.bf16 %v7530_v45, %v7526_v44 }
 0x2c1   : > { %5556 = vrot.lane.b32.xlu0 %v5545_v36, %s6781_s27  ;;  %5551 = vrot.lane.b32.xlu1 %v5540_v37, %s6781_s27  ;;  %v5575_v16 = vpack.i.bf16 %v7542_v49, %v7538_v48  ;;  %v5570_v24 = vpack.i.bf16 %v7546_v50, %v7534_v46  ;;  %v6783_v42 = vmov 0   ;;  %v1330_v49 = vld [vmem:[#allocation8 + $0x10] sm:$0xff] }
 0x2c2   : > { %v5522_v59 = vpop.permute.xlu1 %5521  ;;  %v961_v63 = vsel %vm920_vm2, %v5508_v54, %v5513_v56  ;;  %v962_v3 = vsel %vm920_vm2, %v5509_v53, %v5514_v55  ;;  %5595 = vset.pattern.permute.xlu0 %v6783_v42  ;;  %5616 = vset.pattern.permute.xlu1 %v6783_v42 }
 0x2c3   : > { %v5517_v62 = vpop.permute.xlu0 %5516  ;;  %v4887_v15 = vpack.c.bf16 %v962_v3, %v961_v63  ;;  %v5524_v17 = vunpack.i.h.bf16 %v5522_v59  ;;  %v5523_v18 = vunpack.i.l.bf16 %v5522_v59 }
 0x2c4   : > { %v5519_v7 = vunpack.i.h.bf16 %v5517_v62  ;;  %v5518_v8 = vunpack.i.l.bf16 %v5517_v62 }
 0x2c5   : > { %5566 = vrot.lane.b32.xlu0 %v5565_v52, %s6780_s5  ;;  %5561 = vrot.lane.b32.xlu1 %v5535_v25, %s6781_s27 }
 0x2c6   : > { %4888 = vmatprep.subr.bf16.mxu1 %v4887_v15  ;;  %v963_v19 = vsel %vm920_vm2, %v5518_v8, %v5508_v54  ;;  %v964_v20 = vsel %vm920_vm2, %v5519_v7, %v5509_v53  ;;  %v5532_v23 = vpop.permute.xlu1 %5531  ;;  %v960_v5 = vsel %vm920_vm2, %v5514_v55, %v5519_v7  ;;  %v959_v6 = vsel %vm920_vm2, %v5513_v56, %v5518_v8 }
 0x2c7   : > { %v4889_v26 = vpack.c.bf16 %v964_v20, %v963_v19  ;;  %v5527_v27 = vpop.permute.xlu0 %5526  ;;  %v5534_v29 = vunpack.i.h.bf16 %v5532_v23  ;;  %v5533_v25 = vunpack.i.l.bf16 %v5532_v23  ;;  %v4900_v2 = vpack.c.bf16 %v960_v5, %v959_v6 }
 0x2c8   : > { %v5529_v30 = vunpack.i.h.bf16 %v5527_v27  ;;  %v5528_v35 = vunpack.i.l.bf16 %v5527_v27 }
 0x2c9   : > { %5576 = vrot.lane.b32.xlu0 %v5575_v16, %s6780_s5  ;;  %5571 = vrot.lane.b32.xlu1 %v5570_v24, %s6780_s5  ;;  %v979_v39 = vsel %vm939_vm3, %v5533_v25, %v5523_v18  ;;  %v980_v40 = vsel %vm939_vm3, %v5534_v29, %v5524_v17 }
 0x2ca   : > { %4890 = vmatpush1.bf16.msra.mxu1 %v4889_v26  ;;  %v977_v36 = vsel %vm939_vm3, %v5523_v18, %v5528_v35  ;;  %v978_v37 = vsel %vm939_vm3, %v5524_v17, %v5529_v30  ;;  %v4897_v41 = vpack.c.bf16 %v980_v40, %v979_v39  ;;  %v982_v51 = vsel %vm939_vm3, %v5529_v30, %v5534_v29 }
 0x2cb   : > { %4892 = vmatprep.subr.bf16.mxu1 %v4891_v9  ;;  %v4895_v38 = vpack.c.bf16 %v978_v37, %v977_v36  ;;  %v1478_v9 = vld [vmem:[#allocation10] sm:$0xff] }
 0x2cd   : > { %5586 = vrot.lane.b32.xlu0 %v5575_v16, %s6781_s27  ;;  %5581 = vrot.lane.b32.xlu1 %v5570_v24, %s6781_s27 }
 0x2ce   : > { %4894 = vmatpush1.bf16.msra.mxu1 %v4893_v10  ;;  %v981_v10 = vsel %vm939_vm3, %v5528_v35, %v5533_v25 }
 0x2cf   : > { %4896 = vmatprep.subr.bf16.mxu1 %v4895_v38 }
 0x2d1   : > { %5591 = vrot.lane.b32.xlu1 %v5565_v52, %s6781_s27  ;;  %1481 = vperm.xlu0 %5595, %v1478_v9   ;;  %v4906_v52 = vpack.c.bf16 %v982_v51, %v981_v10  ;;  %v946_v10 = vld [vmem:[#allocation8] sm:$0xff] }
 0x2d2   : > { %4898 = vmatpush1.bf16.msra.mxu1 %v4897_v41 }
 0x2d3   : > { %4899 = vmatprep.subr.bf16.mxu1 %v6784_v4 }
 0x2d5   : > { %4583 = vmatmul.mubr.msk.f32.vlgmr.msra.gmra.mrb[0].mxu1 %vm985_vm4, %v984_v47 }
 0x2d6   : > { %4901 = vmatpush3.bf16.msra.mxu1 %v4900_v2  ;;  %4719 = vmatprep.mubr.msk.f32.mxu1 %vm6785_vm5, %v9214_v11 }
 0x2d7   : > { %4902 = vmatprep.subr.bf16.mxu1 %v6784_v4 }
 0x2da   : > { %4904 = vmatpush3.bf16.msra.mxu1 %v4903_v12 }
 0x2db   : > { %4905 = vmatprep.subr.bf16.mxu1 %v6784_v4 }
 0x2de   : > { %4907 = vmatpush3.bf16.msra.mxu1 %v4906_v52 }
 0x2df   : > { %4920 = vmatprep.subr.bf16.mxu1 %v6784_v4 }
 0x2e1   : > { %4720 = vmatmul.mubr.msk.f32.vlgmr.msra.gmra.mrb[2].mxu1 %vm985_vm4, %v984_v47 }
 0x2e2   : > { %4734 = vmatprep.mubr.msk.f32.mxu1 %vm6785_vm5, %v9214_v11 }
 0x32b   : > { %v5537_v53 = vpop.permute.xlu0 %5536 }
 0x32c   : > { %v5539_v54 = vunpack.i.h.bf16 %v5537_v53  ;;  %v5538_v55 = vunpack.i.l.bf16 %v5537_v53 }
 0x32f   : > { %v5547_v56 = vpop.permute.xlu0 %5546  ;;  %v5542_v59 = vpop.permute.xlu1 %5541 }
 0x330   : > { %v5549_v62 = vunpack.i.h.bf16 %v5547_v56  ;;  %v5548_v63 = vunpack.i.l.bf16 %v5547_v56  ;;  %v5544_v0 = vunpack.i.h.bf16 %v5542_v59  ;;  %v5543_v1 = vunpack.i.l.bf16 %v5542_v59 }
 0x332   : > { %v922_v12 = vsel %vm920_vm2, %v5544_v0, %v5549_v62  ;;  %v921_v3 = vsel %vm920_vm2, %v5543_v1, %v5548_v63  ;;  %v923_v7 = vsel %vm920_vm2, %v5538_v55, %v5543_v1  ;;  %v924_v8 = vsel %vm920_vm2, %v5539_v54, %v5544_v0 }
 0x333   : > { %v5557_v15 = vpop.permute.xlu0 %5556  ;;  %v5552_v16 = vpop.permute.xlu1 %5551  ;;  %v4908_v17 = vpack.c.bf16 %v924_v8, %v923_v7  ;;  %v4921_v18 = vpack.c.bf16 %v922_v12, %v921_v3  ;;  %v925_v19 = vsel %vm920_vm2, %v5548_v63, %v5538_v55  ;;  %v926_v20 = vsel %vm920_vm2, %v5549_v62, %v5539_v54 }
 0x334   : > { %v5559_v23 = vunpack.i.h.bf16 %v5557_v15  ;;  %v5558_v24 = vunpack.i.l.bf16 %v5557_v15  ;;  %v5554_v26 = vunpack.i.h.bf16 %v5552_v16  ;;  %v5553_v27 = vunpack.i.l.bf16 %v5552_v16 }
 0x335   : > { %4909 = vmatprep.subr.bf16.mxu0 %v4908_v17  ;;  %4922 = vmatpush3.bf16.msra.mxu1 %v4921_v18  ;;  %v4910_v29 = vpack.c.bf16 %v926_v20, %v925_v19 }
 0x336   : > { %4923 = vmatprep.subr.bf16.mxu1 %v6784_v4  ;;  %v940_v25 = vsel %vm939_vm3, %v5553_v27, %v5558_v24  ;;  %v941_v30 = vsel %vm939_vm3, %v5554_v26, %v5559_v23 }
 0x337   : > { %4911 = vmatpush1.bf16.msra.mxu0 %v4910_v29  ;;  %v5567_v35 = vpop.permute.xlu0 %5566  ;;  %v5562_v36 = vpop.permute.xlu1 %5561  ;;  %v4916_v39 = vpack.c.bf16 %v941_v30, %v940_v25  ;;  %v1489_v25 = vshrl.u32 %v899_v13, 7  ;;  %v874_v30 = vld [vmem:[#allocation7] sm:$0x7] }
 0x338   : > { %v5564_v37 = vunpack.i.h.bf16 %v5562_v36  ;;  %v5563_v38 = vunpack.i.l.bf16 %v5562_v36  ;;  %4913 = vmatprep.subr.bf16.mxu0 %v4912_v43  ;;  %v5569_v34 = vunpack.i.h.bf16 %v5567_v35  ;;  %v5568_v43 = vunpack.i.l.bf16 %v5567_v35 }
 0x339   : > { %4925 = vmatpush3.bf16.msra.mxu1 %v4924_v57 }
 0x33a   : > { %v945_v40 = vsel %vm939_vm3, %v5559_v23, %v5564_v37  ;;  %v944_v41 = vsel %vm939_vm3, %v5558_v24, %v5563_v38  ;;  %4926 = vmatprep.subr.bf16.mxu1 %v6784_v4  ;;  %v942_v5 = vsel %vm939_vm3, %v5563_v38, %v5553_v27  ;;  %v943_v33 = vsel %vm939_vm3, %v5564_v37, %v5554_v26 }
 0x33b   : > { %4915 = vmatpush1.bf16.msra.mxu0 %v4914_v28  ;;  %v5577_v31 = vpop.permute.xlu0 %5576  ;;  %v5572_v32 = vpop.permute.xlu1 %5571  ;;  %v4927_v57 = vpack.c.bf16 %v945_v40, %v944_v41  ;;  %v4918_v6 = vpack.c.bf16 %v943_v33, %v942_v5  ;;  %v872_v23 = vstv %s4581_s23  ;;  %v1498_v37 = vsub.s32 2, %v1489_v25 }
 0x33c   : > { %v5579_v9 = vunpack.i.h.bf16 %v5577_v31  ;;  %v5578_v42 = vunpack.i.l.bf16 %v5577_v31  ;;  %v5574_v47 = vunpack.i.h.bf16 %v5572_v32  ;;  %v5573_v2 = vunpack.i.l.bf16 %v5572_v32  ;;  %4917 = vmatprep.subr.bf16.mxu0 %v4916_v39 }
 0x33d   : > { %4928 = vmatpush3.bf16.msra.mxu1 %v4927_v57  ;;  %v1490_v40 = vsub.s32 0, %v1489_v25  ;;  %v1494_v33 = vsub.s32 1, %v1489_v25 }
 0x33e   : > { %v1309_v51 = vsel %vm920_vm2, %v5578_v42, %v5568_v43  ;;  %v1310_v52 = vsel %vm920_vm2, %v5579_v9, %v5569_v34  ;;  %v1306_v21 = vsel %vm920_vm2, %v5574_v47, %v5579_v9  ;;  %v1305_v22 = vsel %vm920_vm2, %v5573_v2, %v5578_v42  ;;  %4941 = vmatprep.subr.bf16.mxu1 %v6784_v4 }
 0x33f   : > { %4919 = vmatpush1.bf16.msra.mxu0 %v4918_v6  ;;  %v5587_v28 = vpop.permute.xlu0 %5586  ;;  %v5582_v53 = vpop.permute.xlu1 %5581  ;;  %v1307_v54 = vsel %vm920_vm2, %v5568_v43, %v5573_v2  ;;  %v1308_v55 = vsel %vm920_vm2, %v5569_v34, %v5574_v47  ;;  %v4942_v56 = vpack.c.bf16 %v1306_v21, %v1305_v22  ;;  %v4931_v59 = vpack.c.bf16 %v1310_v52, %v1309_v51 }
 0x340   : > { %v5589_v62 = vunpack.i.h.bf16 %v5587_v28  ;;  %v5588_v63 = vunpack.i.l.bf16 %v5587_v28  ;;  %v5584_v0 = vunpack.i.h.bf16 %v5582_v53  ;;  %v5583_v1 = vunpack.i.l.bf16 %v5582_v53  ;;  %4735 = vmatmul.mubr.msk.f32.vlgmr.msra.gmra.mrb[4].mxu1 %vm985_vm4, %v946_v10 }
 0x341   : > { %v4929_v12 = vpack.c.bf16 %v1308_v55, %v1307_v54  ;;  %4943 = vmatpush3.bf16.msra.mxu1 %v4942_v56  ;;  %4749 = vmatprep.mubr.msk.f32.mxu1 %vm6785_vm5, %v9214_v11 }
 0x342   : > { %4585 = vmatmul.mubr.msk.f32.vlgmr.msra.gmra.mrb[0].mxu0 %vm985_vm4, %v946_v10  ;;  %4944 = vmatprep.subr.bf16.mxu1 %v6784_v4  ;;  %v1323_v15 = vsel %vm939_vm3, %v5583_v1, %v5588_v63  ;;  %v1324_v16 = vsel %vm939_vm3, %v5584_v0, %v5589_v62 }
 0x343   : > { %4930 = vmatprep.subr.bf16.mxu0 %v4929_v12  ;;  %v5592_v3 = vpop.permute.xlu1 %5591  ;;  %1398 = vmatprep.mubr.f32.mxu0 %v9214_v11  ;;  %v4937_v46 = vpack.c.bf16 %v1324_v16, %v1323_v15 }
 0x344   : > { %4932 = vmatpush1.bf16.msra.mxu0 %v4931_v59  ;;  %v5594_v7 = vunpack.i.h.bf16 %v5592_v3  ;;  %v5593_v8 = vunpack.i.l.bf16 %v5592_v3 }
 0x345   : > { %4934 = vmatprep.subr.bf16.mxu0 %v4933_v58  ;;  %4946 = vmatpush3.bf16.msra.mxu1 %v4945_v60 }
 0x346   : > { %v1328_v17 = vsel %vm939_vm3, %v5589_v62, %v5594_v7  ;;  %v1325_v18 = vsel %vm939_vm3, %v5593_v8, %v5583_v1  ;;  %v1326_v19 = vsel %vm939_vm3, %v5594_v7, %v5584_v0  ;;  %v1327_v20 = vsel %vm939_vm3, %v5588_v63, %v5593_v8  ;;  %4947 = vmatprep.subr.bf16.mxu1 %v6784_v4 }
 0x347   : > { %v4948_v50 = vpack.c.bf16 %v1328_v17, %v1327_v20  ;;  %v4939_v48 = vpack.c.bf16 %v1326_v19, %v1325_v18  ;;  %v2019_v19 = vld [vmem:[#allocation13] sm:$0xff]  ;;  %v2029_v20 = vld [vmem:[#allocation23 + $0x8] sm:$0xff] }
 0x348   : > { %4936 = vmatpush1.bf16.msra.mxu0 %v4935_v61  ;;  %v870_v61 = vld [vmem:[#allocation5] sm:$0x7] }
 0x349   : > { %4938 = vmatprep.subr.bf16.mxu0 %v4937_v46  ;;  %4949 = vmatpush3.bf16.msra.mxu1 %v4948_v50  ;;  %v873_v24 = vadd.s32 %v872_v23, %v870_v61  ;;  %v2047_v46 = vld [vmem:[#allocation25 + $0x8] sm:$0xff]  ;;  %v2028_v50 = vld [vmem:[#allocation23] sm:$0xff] }
 0x34a   : > { %4954 = vmatprep.subr.bf16.mxu1 %v6784_v4 }
 0x34b   : > { %vm875_vm6 = vcmp.ge.s32.totalorder %v873_v24, 5  ;;  %vm876_vm7 = vcmp.lt.s32.totalorder %v873_v24, 21 }
 0x34c   : > { %4940 = vmatpush1.bf16.msra.mxu0 %v4939_v48  ;;  %4750 = vmatmul.mubr.msk.f32.vlgmr.msra.gmra.mrb[6].mxu1 %vm985_vm4, %v1330_v49  ;;  %vm877_vm8 = vmand %vm875_vm6, %vm876_vm7  ;;  %v2046_v48 = vld [vmem:[#allocation25] sm:$0xff] }
 0x34d   : > { %4758 = vmatprep.mubr.msk.f32.mxu1 %vm6785_vm5, %v9214_v11  ;;  %v4582_v35 = vsel %vm877_vm8, 1.0, %v9214_v11 }
 0x34e   : > { %v880_v36 = vmul.f32 %v4582_v35, %v874_v30  ;;  %v1553_v35 = vld [vmem:[#allocation11 + $0x8] sm:$0xff] }
 0x34f   : > { %4587 = vmatmul.mubr.msk.f32.vlgmr.msra.gmra.mrb[0].mxu0 %vm985_vm4, %v1330_v49 }
 0x350   : > { %1622 = vmatprep.mubr.f32.mxu0 %v9214_v11  ;;  %v1482_v39 = vpop.permute.xlu0 %1481  ;;  %v7701_v34 = vrot.slane %v880_v36, %v1498_v37  ;;  %v7705_v6 = vrot.slane %v880_v36, %v1490_v40  ;;  %v7707_v9 = vrot.slane %v880_v36, %v1494_v33 }
 0x3a8   : > { %v1055_v58 = vpop.f32.mrb[0].mxu1 }
 0x3a9   : > { %v1057_v44 = vpop.f32.mrb[1].mxu1 }
 0x3b4   : > { %v1126_v45 = vpop.f32.mrb[2].mxu1 }
 0x3b5   : > { %v4721_v60 = vpop.f32.mrb[3].mxu1 }
 0x413   : > { %v1270_v26 = vpop.f32.mrb[4].mxu1 }
 0x414   : > { %v1271_v27 = vadd.f32 %v1270_v26, %v1126_v45  ;;  %v4736_v29 = vpop.f32.mrb[5].mxu1 }
 0x41f   : > { %v1471_v38 = vpop.f32.mrb[6].mxu1 }
 0x420   : > { %v1477_v41 = vadd.f32 %v1471_v38, %v1271_v27  ;;  %v4751_v5 = vpop.f32.mrb[7].mxu1 }
 0x422   : > { %v1400_v43 = vpop.f32.mrb[0].mxu0  ;;  %v7703_v31 = vadd.f32 %v1482_v39, %v1477_v41 }
 0x423   : > { %v5190_v32 = vadd.f32 %v1400_v43, %v1055_v58  ;;  %v1402_v57 = vpop.f32.mrb[1].mxu0 }
 0x424   : > { %v5191_v13 = vadd.f32 %v1402_v57, %v1057_v44  ;;  %v7711_v42 = vmul.f32 %v7701_v34, %v7703_v31 }
 0x425   : > { %v7713_v47 = vadd.f32 %v5190_v32, %v1482_v39 }
 0x426   : > { %v7715_v2 = vadd.f32 %v5191_v13, %v1482_v39  ;;  %1510 = vrot.lane.b32.xlu0 %v7711_v42, %s6778_s1 }
 0x427   : > { %v7721_v10 = vmul.f32 %v7705_v6, %v7713_v47 }
 0x428   : > { %v1504_v51 = vmul.f32 %v7707_v9, %v7715_v2 }
 0x429   : > { %1506 = vrot.lane.b32.xlu1 %v7721_v10, %s6778_s1 }
 0x42a   : > { %1845 = vrot.lane.b32.xlu0 %v1504_v51, %s6779_s24  ;;  %v5596_v52 = vpack.i.bf16 %v1504_v51, %v7721_v10 }
 0x42d   : > { %1508 = vrot.lane.b32.xlu1 %v1504_v51, %s6778_s1 }
 0x42e   : > { %5597 = vrot.lane.b32.xlu0 %v5596_v52, %s6780_s5 }
 0x431   : > { %1843 = vrot.lane.b32.xlu1 %v7721_v10, %s6779_s24 }
 0x432   : > { %1545 = vrot.lane.b32.xlu0 %v1504_v51, %s6781_s27 }
 0x435   : > { %1847 = vrot.lane.b32.xlu1 %v7711_v42, %s6779_s24 }
 0x436   : > { %1543 = vrot.lane.b32.xlu0 %v7721_v10, %s6781_s27 }
 0x498   : > { %v1511_v21 = vpop.permute.xlu0 %1510 }
 0x49b   : > { %v1507_v22 = vpop.permute.xlu1 %1506 }
 0x49c   : > { %v7740_v28 = vsel %vm901_vm0, %v1511_v21, %v1507_v22  ;;  %v1846_v53 = vpop.permute.xlu0 %1845 }
 0x49d   : > { %1524 = vrot.lane.b32.xlu0 %v7740_v28, %s6781_s27  ;;  %v5601_v54 = vpack.i.bf16 %v7740_v28, %v7711_v42 }
 0x49f   : > { %5602 = vrot.lane.b32.xlu1 %v5601_v54, %s6780_s5  ;;  %v1509_v55 = vpop.permute.xlu1 %1508 }
 0x4a0   : > { %v7749_v56 = vsel %vm901_vm0, %v1507_v22, %v1509_v55  ;;  %v5598_v59 = vpop.permute.xlu0 %5597  ;;  %v7755_v0 = vsel %vm901_vm0, %v1509_v55, %v1511_v21 }
 0x4a1   : > { %1526 = vrot.lane.b32.xlu0 %v7749_v56, %s6781_s27  ;;  %v5600_v62 = vunpack.i.h.bf16 %v5598_v59  ;;  %v5599_v63 = vunpack.i.l.bf16 %v5598_v59  ;;  %v5606_v7 = vpack.i.bf16 %v7755_v0, %v7749_v56 }
 0x4a3   : > { %1547 = vrot.lane.b32.xlu1 %v7711_v42, %s6781_s27  ;;  %v1844_v1 = vpop.permute.xlu1 %1843  ;;  %v1541_v12 = vsel %vm920_vm2, %v5599_v63, %v5600_v62 }
 0x4a4   : > { %v4950_v3 = vpack.c.bf16 %v1504_v51, %v1541_v12  ;;  %v7778_v17 = vsel %vm1286_vm1, %v1844_v1, %v1846_v53  ;;  %v1546_v49 = vpop.permute.xlu0 %1545  ;;  %v1533_v51 = vld [vmem:[#allocation11] sm:$0xff] }
 0x4a6   : > { %4951 = vmatprep.subr.bf16.mxu0 %v4950_v3  ;;  %v1871_v3 = vld [vmem:[#allocation11 + $0x10] sm:$0xff] }
 0x4a7   : > { %5607 = vrot.lane.b32.xlu1 %v5606_v7, %s6780_s5  ;;  %v1848_v8 = vpop.permute.xlu1 %1847 }
 0x4a8   : > { %v7766_v15 = vsel %vm1286_vm1, %v1848_v8, %v1844_v1  ;;  %v7772_v16 = vsel %vm1286_vm1, %v1846_v53, %v1848_v8  ;;  %v1544_v61 = vpop.permute.xlu0 %1543 }
 0x4a9   : > { %1856 = vrot.lane.b32.xlu0 %v7766_v15, %s6780_s5  ;;  %v5611_v18 = vpack.i.bf16 %v7772_v16, %v7778_v17  ;;  %v1550_v30 = vsel %vm939_vm3, %v1544_v61, %v1546_v49 }
 0x4ab   : > { %1528 = vrot.lane.b32.xlu1 %v7755_v0, %s6781_s27 }
 0x4ad   : > { %1863 = vrot.lane.b32.xlu0 %v7772_v16, %s6781_s27 }
 0x4af   : > { %5612 = vrot.lane.b32.xlu1 %v5611_v18, %s6780_s5 }
 0x4b1   : > { %2022 = vperm.xlu0 %5595, %v2019_v19  }
 0x4b3   : > { %1861 = vrot.lane.b32.xlu1 %v7778_v17, %s6781_s27 }
 0x4b5   : > { %2037 = vperm.xlu0 %5595, %v2029_v20  }
 0x4b7   : > { %1865 = vrot.lane.b32.xlu1 %v7766_v15, %s6781_s27 }
 0x4b9   : > { %2055 = vperm.xlu0 %5595, %v2047_v46  }
 0x4bb   : > { %2032 = vperm.xlu1 %5616, %v2028_v50  }
 0x4bf   : > { %2050 = vperm.xlu1 %5616, %v2046_v48  }
 0x50f   : > { %v1525_v29 = vpop.permute.xlu0 %1524 }
 0x511   : > { %v5603_v58 = vpop.permute.xlu1 %5602 }
 0x512   : > { %v5604_v44 = vunpack.i.l.bf16 %v5603_v58  ;;  %v5605_v36 = vunpack.i.h.bf16 %v5603_v58 }
 0x513   : > { %v1527_v13 = vpop.permute.xlu0 %1526 }
 0x514   : > { %v1540_v45 = vsel %vm920_vm2, %v5600_v62, %v5604_v44  ;;  %v1542_v60 = vsel %vm920_vm2, %v5604_v44, %v5599_v63  ;;  %v1531_v53 = vsel %vm939_vm3, %v1525_v29, %v1527_v13 }
 0x515   : > { %v1548_v23 = vpop.permute.xlu1 %1547  ;;  %v4952_v24 = vpack.c.bf16 %v7721_v10, %v1542_v60  ;;  %v4955_v26 = vpack.c.bf16 %v7711_v42, %v1540_v45 }
 0x516   : > { %v1549_v27 = vsel %vm939_vm3, %v1546_v49, %v1548_v23  ;;  %v1551_v39 = vsel %vm939_vm3, %v1548_v23, %v1544_v61 }
 0x517   : > { %4953 = vmatpush1.bf16.msra.mxu0 %v4952_v24  ;;  %4956 = vmatpush3.bf16.msra.mxu1 %v4955_v26 }
 0x518   : > { %1562 = vmatprep.subr.mxu0 %v1549_v27  ;;  %4756 = vmatprep.subr.mxu1 %v9214_v11 }
 0x519   : > { %v5608_v25 = vpop.permute.xlu1 %5607 }
 0x51a   : > { %v5610_v37 = vunpack.i.h.bf16 %v5608_v25  ;;  %v5609_v38 = vunpack.i.l.bf16 %v5608_v25 }
 0x51b   : > { %1563 = vmatpush1.msra.mxu0 %v1550_v30  ;;  %4757 = vmatpush3.msra.mxu1 %v1551_v39 }
 0x51c   : > { %v1521_v40 = vsel %vm920_vm2, %v5609_v38, %v5610_v37  ;;  %v1523_v41 = vsel %vm920_vm2, %v5610_v37, %v5605_v36  ;;  %4589 = vmatmul.mubr.msk.f32.vlgmr.msra.gmra.mrb[2].mxu0 %vm1554_vm9, %v1553_v35  ;;  %4961 = vmatprep.subr.bf16.mxu1 %v6784_v4  ;;  %v1522_v5 = vsel %vm920_vm2, %v5605_v36, %v5609_v38 }
 0x51d   : > { %v1529_v33 = vpop.permute.xlu1 %1528  ;;  %4759 = vmatmul.mubr.msk.f32.vlgmr.msra.gmra.mrb[8].mxu1 %vm1554_vm9, %v1553_v35  ;;  %v4957_v43 = vpack.c.bf16 %v7749_v56, %v1522_v5  ;;  %v4962_v32 = vpack.c.bf16 %v7755_v0, %v1521_v40  ;;  %v4959_v57 = vpack.c.bf16 %v7740_v28, %v1523_v41  ;;  %1766 = vmatprep.mubr.f32.mxu0 %v9214_v11  ;;  %v1857_v28 = vpop.permute.xlu0 %1856 }
 0x51e   : > { %4767 = vmatprep.mubr.msk.f32.mxu1 %vm6785_vm5, %v9214_v11  ;;  %v1530_v42 = vsel %vm939_vm3, %v1527_v13, %v1529_v33  ;;  %v1532_v22 = vsel %vm939_vm3, %v1529_v33, %v1525_v29 }
 0x51f   : > { %4958 = vmatprep.subr.bf16.mxu0 %v4957_v43  ;;  %4963 = vmatpush3.bf16.msra.mxu1 %v4962_v32 }
 0x520   : > { %4960 = vmatpush1.bf16.msra.mxu0 %v4959_v57  ;;  %4765 = vmatprep.subr.mxu1 %v9214_v11 }
 0x521   : > { %v5613_v10 = vpop.permute.xlu1 %5612  ;;  %1706 = vmatprep.subr.mxu0 %v1530_v42  ;;  %v1864_v1 = vpop.permute.xlu0 %1863 }
 0x522   : > { %v5615_v52 = vunpack.i.h.bf16 %v5613_v10  ;;  %v5614_v21 = vunpack.i.l.bf16 %v5613_v10 }
 0x523   : > { %4766 = vmatpush3.msra.mxu1 %v1532_v22 }
 0x524   : > { %v1858_v54 = vsel %vm920_vm2, %v5615_v52, %v1857_v28  ;;  %v1860_v55 = vsel %vm920_vm2, %v1857_v28, %v5614_v21  ;;  %1707 = vmatpush1.msra.mxu0 %v1531_v53  ;;  %4768 = vmatmul.mubr.msk.f32.vlgmr.msra.gmra.mrb[10].mxu1 %vm1554_vm9, %v1533_v51  ;;  %v1859_v56 = vsel %vm920_vm2, %v5614_v21, %v5615_v52 }
 0x525   : > { %v1862_v59 = vpop.permute.xlu1 %1861  ;;  %4591 = vmatmul.mubr.msk.f32.vlgmr.msra.gmra.mrb[2].mxu0 %vm1554_vm9, %v1533_v51  ;;  %4968 = vmatprep.subr.bf16.mxu1 %v6784_v4  ;;  %v4964_v62 = vpack.c.bf16 %v7772_v16, %v1859_v56  ;;  %v4969_v63 = vpack.c.bf16 %v7766_v15, %v1858_v54  ;;  %v4966_v0 = vpack.c.bf16 %v7778_v17, %v1860_v55 }
 0x526   : > { %4776 = vmatprep.mubr.msk.f32.mxu1 %vm6785_vm5, %v9214_v11  ;;  %1939 = vmatprep.mubr.f32.mxu0 %v9214_v11  ;;  %v1868_v15 = vsel %vm939_vm3, %v1862_v59, %v1864_v1 }
 0x527   : > { %4965 = vmatprep.subr.bf16.mxu0 %v4964_v62  ;;  %4970 = vmatpush3.bf16.msra.mxu1 %v4969_v63 }
 0x528   : > { %4967 = vmatpush1.bf16.msra.mxu0 %v4966_v0  ;;  %4774 = vmatprep.subr.mxu1 %v9214_v11 }
 0x529   : > { %v1866_v12 = vpop.permute.xlu1 %1865 }
 0x52a   : > { %v1867_v7 = vsel %vm939_vm3, %v1864_v1, %v1866_v12  ;;  %v1869_v8 = vsel %vm939_vm3, %v1866_v12, %v1862_v59 }
 0x52b   : > { %1879 = vmatprep.subr.mxu0 %v1867_v7  ;;  %4775 = vmatpush3.msra.mxu1 %v1869_v8 }
 0x52c   : > { %1880 = vmatpush1.msra.mxu0 %v1868_v15  ;;  %4777 = vmatmul.mubr.msk.f32.vlgmr.msra.gmra.mrb[12].mxu1 %vm1554_vm9, %v1871_v3 }
 0x52d   : > { %4593 = vmatmul.mubr.msk.f32.vlgmr.msra.gmra.mrb[2].mxu0 %vm1554_vm9, %v1871_v3  ;;  %4983 = vmatprep.subr.bf16.mxu1 %v6784_v4 }
 0x52e   : > { %2236 = vmatprep.mubr.f32.mxu0 %v9214_v11  ;;  %4791 = vmatprep.mubr.msk.f32.mxu1 %vm6785_vm5, %v9214_v11 }
 0x530   : > { %v2023_v18 = vpop.permute.xlu0 %2022 }
 0x534   : > { %v2038_v48 = vpop.permute.xlu0 %2037 }
 0x538   : > { %v2056_v37 = vpop.permute.xlu0 %2055 }
 0x53a   : > { %v2033_v20 = vpop.permute.xlu1 %2032 }
 0x53b   : > { %v2040_v58 = vmul.f32 %v2033_v20, %v7713_v47  ;;  %v2041_v45 = vmul.f32 %v2033_v20, %v7715_v2  ;;  %v2042_v29 = vmul.f32 %v2033_v20, %v7703_v31 }
 0x53e   : > { %v2051_v49 = vpop.permute.xlu1 %2050 }
 0x53f   : > { %v2058_v24 = vadd.f32 %v2051_v49, %v2040_v58  ;;  %v2059_v25 = vadd.f32 %v2051_v49, %v2041_v45  ;;  %v2060_v38 = vadd.f32 %v2051_v49, %v2042_v29 }
 0x541   : > { %v2064_v41 = vmax.f32 %v2058_v24, 0.0  ;;  %v2065_v33 = vmax.f32 %v2059_v25, 0.0  ;;  %v2066_v13 = vmax.f32 %v2060_v38, 0.0 }
 0x543   : > { %v7865_v51 = vmul.f32 %v2064_v41, %v7705_v6  ;;  %v7871_v21 = vmul.f32 %v2065_v33, %v7707_v9  ;;  %v7882_v54 = vmul.f32 %v2066_v13, %v7701_v34 }
 0x5f0   : > { %v1695_v16 = vpop.f32.mrb[8].mxu1 }
 0x5f1   : > { %v4760_v17 = vpop.f32.mrb[9].mxu1 }
 0x5f7   : > { %v1839_v19 = vpop.f32.mrb[10].mxu1 }
 0x5f8   : > { %v1840_v46 = vadd.f32 %v1839_v19, %v1695_v16  ;;  %v4769_v50 = vpop.f32.mrb[11].mxu1 }
 0x5ff   : > { %v2012_v44 = vpop.f32.mrb[12].mxu1 }
 0x600   : > { %v2018_v60 = vadd.f32 %v2012_v44, %v1840_v46  ;;  %v1941_v61 = vpop.f32.mrb[2].mxu0  ;;  %v4778_v23 = vpop.f32.mrb[13].mxu1 }
 0x601   : > { %v7854_v26 = vadd.f32 %v2023_v18, %v1941_v61  ;;  %v1943_v27 = vpop.f32.mrb[3].mxu0 }
 0x602   : > { %v7857_v30 = vadd.f32 %v2023_v18, %v2018_v60  ;;  %v7859_v35 = vadd.f32 %v2023_v18, %v1943_v27 }
 0x603   : > { %v2043_v36 = vmul.f32 %v2038_v48, %v7854_v26 }
 0x604   : > { %v2045_v39 = vmul.f32 %v2038_v48, %v7857_v30  ;;  %v2044_v40 = vmul.f32 %v2038_v48, %v7859_v35 }
 0x605   : > { %v2061_v5 = vadd.f32 %v2056_v37, %v2043_v36 }
 0x606   : > { %v2063_v43 = vadd.f32 %v2056_v37, %v2045_v39  ;;  %v2062_v32 = vadd.f32 %v2056_v37, %v2044_v40 }
 0x607   : > { %v2067_v57 = vmax.f32 %v2061_v5, 0.0 }
 0x608   : > { %v2069_v42 = vmax.f32 %v2063_v43, 0.0  ;;  %v2068_v10 = vmax.f32 %v2062_v32, 0.0 }
 0x609   : > { %v7868_v52 = vmul.f32 %v2067_v57, %v7705_v6 }
 0x60a   : > { %v7874_v22 = vmul.f32 %v2069_v42, %v7701_v34  ;;  %v7877_v28 = vmul.f32 %v2068_v10, %v7707_v9 }
 0x60b   : > { %v5617_v53 = vpack.i.bf16 %v7868_v52, %v7865_v51  ;;  %v4977_v59 = vpack.c.bf16 %v7868_v52, %v7865_v51  ;;  %v2669_v51 = vld [vmem:[#allocation26] sm:$0xff]  ;;  %v2696_v52 = vld [vmem:[#allocation28] sm:$0xff] }
 0x60c   : > { %v5622_v55 = vpack.i.bf16 %v7877_v28, %v7871_v21  ;;  %v4975_v56 = vpack.c.bf16 %v7877_v28, %v7871_v21  ;;  %v4987_v62 = vpack.c.bf16 %v7874_v22, %v7882_v54  ;;  %v5627_v63 = vpack.i.bf16 %v7874_v22, %v7882_v54  ;;  %v2660_v22 = vld [vmem:[#allocation16] sm:$0xff]  ;;  %v2671_v54 = vld [vmem:[#allocation26 + $0x10] sm:$0xff] }
 0x60d   : > { %5618 = vrot.lane.b32.xlu1 %v5617_v53, %s6778_s1 }
 0x60e   : > { %5623 = vrot.lane.b32.xlu0 %v5622_v55, %s6778_s1 }
 0x611   : > { %5628 = vrot.lane.b32.xlu1 %v5627_v63, %s6778_s1 }
 0x612   : > { %5633 = vrot.lane.b32.xlu0 %v5617_v53, %s6779_s24 }
 0x615   : > { %5638 = vrot.lane.b32.xlu1 %v5622_v55, %s6779_s24 }
 0x616   : > { %5643 = vrot.lane.b32.xlu0 %v5627_v63, %s6779_s24 }
 0x619   : > { %5648 = vrot.lane.b32.xlu1 %v5617_v53, %s6780_s5 }
 0x61a   : > { %5658 = vrot.lane.b32.xlu0 %v5622_v55, %s6780_s5 }
 0x61d   : > { %5653 = vrot.lane.b32.xlu1 %v5627_v63, %s6780_s5 }
 0x61e   : > { %5663 = vrot.lane.b32.xlu0 %v5617_v53, %s6781_s27 }
 0x621   : > { %5673 = vrot.lane.b32.xlu1 %v5622_v55, %s6781_s27 }
 0x622   : > { %5668 = vrot.lane.b32.xlu0 %v5627_v63, %s6781_s27 }
 0x67f   : > { %v5619_v0 = vpop.permute.xlu1 %5618 }
 0x680   : > { %v5621_v1 = vunpack.i.h.bf16 %v5619_v0  ;;  %v5620_v12 = vunpack.i.l.bf16 %v5619_v0  ;;  %v5624_v3 = vpop.permute.xlu0 %5623 }
 0x681   : > { %v5626_v7 = vunpack.i.h.bf16 %v5624_v3  ;;  %v5625_v8 = vunpack.i.l.bf16 %v5624_v3 }
 0x683   : > { %v5629_v15 = vpop.permute.xlu1 %5628  ;;  %v7908_v16 = vsel %vm901_vm0, %v5620_v12, %v5625_v8  ;;  %v7912_v17 = vsel %vm901_vm0, %v5621_v1, %v5626_v7 }
 0x684   : > { %v5631_v18 = vunpack.i.h.bf16 %v5629_v15  ;;  %v5630_v19 = vunpack.i.l.bf16 %v5629_v15  ;;  %v5634_v20 = vpop.permute.xlu0 %5633  ;;  %v5682_v46 = vpack.i.bf16 %v7912_v17, %v7908_v16  ;;  %v4996_v50 = vpack.c.bf16 %v7912_v17, %v7908_v16 }
 0x685   : > { %v5636_v25 = vunpack.i.h.bf16 %v5634_v20  ;;  %v5635_v36 = vunpack.i.l.bf16 %v5634_v20 }
 0x686   : > { %5683 = vrot.lane.b32.xlu0 %v5682_v46, %s6780_s5  ;;  %v7921_v48 = vsel %vm901_vm0, %v5630_v19, %v5620_v12  ;;  %v7925_v49 = vsel %vm901_vm0, %v5631_v18, %v5621_v1  ;;  %v7929_v58 = vsel %vm901_vm0, %v5625_v8, %v5630_v19  ;;  %v7933_v44 = vsel %vm901_vm0, %v5626_v7, %v5631_v18 }
 0x687   : > { %v5639_v45 = vpop.permute.xlu1 %5638  ;;  %v5677_v60 = vpack.i.bf16 %v7925_v49, %v7921_v48  ;;  %v4998_v27 = vpack.c.bf16 %v7925_v49, %v7921_v48  ;;  %v5008_v29 = vpack.c.bf16 %v7933_v44, %v7929_v58  ;;  %v5692_v39 = vpack.i.bf16 %v7933_v44, %v7929_v58  ;;  %v2130_v49 = vld [vmem:[#allocation14] sm:$0xff] }
 0x688   : > { %v5641_v61 = vunpack.i.h.bf16 %v5639_v45  ;;  %v5640_v23 = vunpack.i.l.bf16 %v5639_v45  ;;  %v5644_v24 = vpop.permute.xlu0 %5643 }
 0x689   : > { %v5646_v37 = vunpack.i.h.bf16 %v5644_v24  ;;  %v5645_v38 = vunpack.i.l.bf16 %v5644_v24  ;;  %5678 = vrot.lane.b32.xlu1 %v5677_v60, %s6780_s5 }
 0x68a   : > { %5688 = vrot.lane.b32.xlu0 %v5677_v60, %s6781_s27  ;;  %v7955_v33 = vsel %vm1286_vm1, %v5635_v36, %v5640_v23  ;;  %v7959_v43 = vsel %vm1286_vm1, %v5636_v25, %v5641_v61 }
 0x68b   : > { %v5649_v40 = vpop.permute.xlu1 %5648  ;;  %v7947_v41 = vsel %vm1286_vm1, %v5640_v23, %v5645_v38  ;;  %v7951_v5 = vsel %vm1286_vm1, %v5641_v61, %v5646_v37  ;;  %v7963_v42 = vsel %vm1286_vm1, %v5645_v38, %v5635_v36  ;;  %v7968_v55 = vsel %vm1286_vm1, %v5646_v37, %v5636_v25 }
 0x68c   : > { %v5651_v32 = vunpack.i.h.bf16 %v5649_v40  ;;  %v5650_v57 = vunpack.i.l.bf16 %v5649_v40  ;;  %v5659_v13 = vpop.permute.xlu0 %5658  ;;  %v5017_v63 = vpack.c.bf16 %v7951_v5, %v7947_v41  ;;  %v5019_v0 = vpack.c.bf16 %v7959_v43, %v7955_v33 }
 0x68d   : > { %v5661_v10 = vunpack.i.h.bf16 %v5659_v13  ;;  %v5660_v53 = vunpack.i.l.bf16 %v5659_v13  ;;  %5693 = vrot.lane.b32.xlu1 %v5692_v39, %s6780_s5  ;;  %v5029_v7 = vpack.c.bf16 %v7968_v55, %v7963_v42  ;;  %v5717_v20 = vpack.i.bf16 %v7951_v5, %v7947_v41 }
 0x68e   : > { %5703 = vrot.lane.b32.xlu0 %v5692_v39, %s6781_s27  ;;  %v5707_v39 = vpack.i.bf16 %v7959_v43, %v7955_v33 }
 0x68f   : > { %v5654_v1 = vpop.permute.xlu1 %5653  ;;  %v2145_v12 = vsel %vm920_vm2, %v5650_v57, %v5660_v53  ;;  %v2146_v3 = vsel %vm920_vm2, %v5651_v32, %v5661_v10 }
 0x690   : > { %v5656_v8 = vunpack.i.h.bf16 %v5654_v1  ;;  %v5655_v15 = vunpack.i.l.bf16 %v5654_v1  ;;  %v5664_v18 = vpop.permute.xlu0 %5663  ;;  %v4971_v19 = vpack.c.bf16 %v2146_v3, %v2145_v12 }
 0x691   : > { %5698 = vrot.lane.b32.xlu1 %v5682_v46, %s6781_s27  ;;  %v5666_v40 = vunpack.i.h.bf16 %v5664_v18 }
 0x692   : > { %v2144_v45 = vsel %vm920_vm2, %v5661_v10, %v5656_v8  ;;  %v2143_v60 = vsel %vm920_vm2, %v5660_v53, %v5655_v15  ;;  %v2147_v61 = vsel %vm920_vm2, %v5655_v15, %v5650_v57  ;;  %v2148_v23 = vsel %vm920_vm2, %v5656_v8, %v5651_v32  ;;  %4972 = vmatprep.subr.bf16.mxu0 %v4971_v19  ;;  %v2168_v19 = vld [vmem:[#allocation14 + $0x8] sm:$0xff] }
 0x693   : > { %5718 = vrot.lane.b32.xlu0 %v5717_v20, %s6780_s5  ;;  %v5674_v24 = vpop.permute.xlu1 %5673  ;;  %v4973_v46 = vpack.c.bf16 %v2148_v23, %v2147_v61  ;;  %v4984_v25 = vpack.c.bf16 %v2144_v45, %v2143_v60  ;;  %v5665_v57 = vunpack.i.l.bf16 %v5664_v18  ;;  %v5712_v53 = vpack.i.bf16 %v7968_v55, %v7963_v42  ;;  %v2670_v18 = vld [vmem:[#allocation26 + $0x8] sm:$0xff] }
 0x694   : > { %v5676_v36 = vunpack.i.h.bf16 %v5674_v24  ;;  %v5675_v37 = vunpack.i.l.bf16 %v5674_v24  ;;  %v5669_v38 = vpop.permute.xlu0 %5668 }
 0x695   : > { %v5671_v13 = vunpack.i.h.bf16 %v5669_v38  ;;  %v5670_v10 = vunpack.i.l.bf16 %v5669_v38  ;;  %4974 = vmatpush1.bf16.msra.mxu0 %v4973_v46  ;;  %4985 = vmatpush3.bf16.msra.mxu1 %v4984_v25 }
 0x696   : > { %5708 = vrot.lane.b32.xlu1 %v5707_v39, %s6780_s5  ;;  %4976 = vmatprep.subr.bf16.mxu0 %v4975_v56  ;;  %v2164_v32 = vsel %vm939_vm3, %v5666_v40, %v5676_v36  ;;  %v2163_v12 = vsel %vm939_vm3, %v5665_v57, %v5675_v37 }
 0x697   : > { %5723 = vrot.lane.b32.xlu0 %v5707_v39, %s6781_s27  ;;  %4986 = vmatprep.subr.bf16.mxu1 %v6784_v4  ;;  %v2161_v1 = vsel %vm939_vm3, %v5675_v37, %v5670_v10  ;;  %v2165_v21 = vsel %vm939_vm3, %v5670_v10, %v5665_v57  ;;  %v2166_v28 = vsel %vm939_vm3, %v5671_v13, %v5666_v40 }
 0x698   : > { %v2162_v56 = vsel %vm939_vm3, %v5676_v36, %v5671_v13  ;;  %v4981_v8 = vpack.c.bf16 %v2164_v32, %v2163_v12  ;;  %v4990_v15 = vpack.c.bf16 %v2166_v28, %v2165_v21 }
 0x699   : > { %4978 = vmatpush1.bf16.msra.mxu0 %v4977_v59  ;;  %4988 = vmatpush3.bf16.msra.mxu1 %v4987_v62  ;;  %v4979_v3 = vpack.c.bf16 %v2162_v56, %v2161_v1  ;;  %v2697_v59 = vld [vmem:[#allocation28 + $0x8] sm:$0xff]  ;;  %v2698_v62 = vld [vmem:[#allocation28 + $0x10] sm:$0xff] }
 0x69a   : > { %5713 = vrot.lane.b32.xlu1 %v5712_v53, %s6780_s5  ;;  %4989 = vmatprep.subr.bf16.mxu1 %v6784_v4 }
 0x69b   : > { %4980 = vmatprep.subr.bf16.mxu0 %v4979_v3  ;;  %5733 = vrot.lane.b32.xlu0 %v5712_v53, %s6781_s27 }
 0x69d   : > { %4982 = vmatpush1.bf16.msra.mxu0 %v4981_v8  ;;  %4991 = vmatpush3.bf16.msra.mxu1 %v4990_v15 }
 0x69e   : > { %5728 = vrot.lane.b32.xlu1 %v5717_v20, %s6781_s27  ;;  %5004 = vmatprep.subr.bf16.mxu1 %v6784_v4 }
 0x69f   : > { %2679 = vperm.xlu0 %5595, %v2670_v18  }
 0x6a0   : > { %4595 = vmatmul.mubr.msk.f32.vlgmr.msra.gmra.mrb[4].mxu0 %vm985_vm4, %v2168_v19  ;;  %4792 = vmatmul.mubr.msk.f32.vlgmr.msra.gmra.mrb[14].mxu1 %vm985_vm4, %v2168_v19 }
 0x6a1   : > { %4806 = vmatprep.mubr.msk.f32.mxu1 %vm6785_vm5, %v9214_v11  ;;  %2380 = vmatprep.mubr.f32.mxu0 %v9214_v11 }
 0x6a2   : > { %2674 = vperm.xlu1 %5616, %v2669_v51  }
 0x6a3   : > { %2701 = vperm.xlu0 %5595, %v2696_v52  }
 0x6a6   : > { %2663 = vperm.xlu1 %5616, %v2660_v22  }
 0x6a7   : > { %2684 = vperm.xlu0 %5595, %v2671_v54  }
 0x6aa   : > { %2706 = vperm.xlu1 %5616, %v2697_v59  }
 0x6ae   : > { %2711 = vperm.xlu1 %5616, %v2698_v62  }
 0x6f8   : > { %v5684_v20 = vpop.permute.xlu0 %5683 }
 0x6f9   : > { %v5686_v60 = vunpack.i.h.bf16 %v5684_v20  ;;  %v5685_v61 = vunpack.i.l.bf16 %v5684_v20 }
 0x6fb   : > { %v5679_v45 = vpop.permute.xlu1 %5678 }
 0x6fc   : > { %v5681_v23 = vunpack.i.h.bf16 %v5679_v45  ;;  %v5680_v24 = vunpack.i.l.bf16 %v5679_v45  ;;  %v5689_v46 = vpop.permute.xlu0 %5688 }
 0x6fd   : > { %v5691_v15 = vunpack.i.h.bf16 %v5689_v46  ;;  %v5690_v19 = vunpack.i.l.bf16 %v5689_v46 }
 0x6fe   : > { %v2108_v25 = vsel %vm920_vm2, %v5680_v24, %v5685_v61  ;;  %v2109_v36 = vsel %vm920_vm2, %v5681_v23, %v5686_v60 }
 0x6ff   : > { %v5694_v37 = vpop.permute.xlu1 %5693  ;;  %v4992_v38 = vpack.c.bf16 %v2109_v36, %v2108_v25 }
 0x700   : > { %v5696_v39 = vunpack.i.h.bf16 %v5694_v37  ;;  %v5695_v40 = vunpack.i.l.bf16 %v5694_v37  ;;  %v5704_v13 = vpop.permute.xlu0 %5703 }
 0x701   : > { %4993 = vmatprep.subr.bf16.mxu0 %v4992_v38  ;;  %v5706_v1 = vunpack.i.h.bf16 %v5704_v13  ;;  %v5705_v56 = vunpack.i.l.bf16 %v5704_v13 }
 0x702   : > { %v2107_v10 = vsel %vm920_vm2, %v5686_v60, %v5696_v39  ;;  %v2111_v57 = vsel %vm920_vm2, %v5696_v39, %v5681_v23  ;;  %v2106_v32 = vsel %vm920_vm2, %v5685_v61, %v5695_v40  ;;  %v2110_v53 = vsel %vm920_vm2, %v5695_v40, %v5680_v24 }
 0x703   : > { %v5699_v12 = vpop.permute.xlu1 %5698  ;;  %v4994_v21 = vpack.c.bf16 %v2111_v57, %v2110_v53  ;;  %v5005_v28 = vpack.c.bf16 %v2107_v10, %v2106_v32  ;;  %v2129_v51 = vsel %vm939_vm3, %v5706_v1, %v5691_v15  ;;  %v2128_v54 = vsel %vm939_vm3, %v5705_v56, %v5690_v19 }
 0x704   : > { %v5701_v3 = vunpack.i.h.bf16 %v5699_v12  ;;  %v5700_v8 = vunpack.i.l.bf16 %v5699_v12  ;;  %v5011_v24 = vpack.c.bf16 %v2129_v51, %v2128_v54 }
 0x705   : > { %v5719_v18 = vpop.permute.xlu0 %5718  ;;  %4995 = vmatpush1.bf16.msra.mxu0 %v4994_v21  ;;  %5006 = vmatpush3.bf16.msra.mxu1 %v5005_v28 }
 0x706   : > { %4997 = vmatprep.subr.bf16.mxu0 %v4996_v50  ;;  %5007 = vmatprep.subr.bf16.mxu1 %v6784_v4  ;;  %v2124_v52 = vsel %vm939_vm3, %v5700_v8, %v5705_v56  ;;  %v2125_v22 = vsel %vm939_vm3, %v5701_v3, %v5706_v1  ;;  %v2127_v59 = vsel %vm939_vm3, %v5691_v15, %v5701_v3  ;;  %v5721_v62 = vunpack.i.h.bf16 %v5719_v18 }
 0x707   : > { %v2126_v16 = vsel %vm939_vm3, %v5690_v19, %v5700_v8  ;;  %v5000_v50 = vpack.c.bf16 %v2125_v22, %v2124_v52  ;;  %v5720_v20 = vunpack.i.l.bf16 %v5719_v18  ;;  %v2512_v19 = vld [vmem:[#allocation14 + $0x10] sm:$0xff] }
 0x708   : > { %v5709_v17 = vpop.permute.xlu1 %5708  ;;  %v5002_v23 = vpack.c.bf16 %v2127_v59, %v2126_v16 }
 0x709   : > { %v5711_v45 = vunpack.i.h.bf16 %v5709_v17  ;;  %v5710_v60 = vunpack.i.l.bf16 %v5709_v17  ;;  %v5724_v61 = vpop.permute.xlu0 %5723  ;;  %4999 = vmatpush1.bf16.msra.mxu0 %v4998_v27  ;;  %5009 = vmatpush3.bf16.msra.mxu1 %v5008_v29 }
 0x70a   : > { %5001 = vmatprep.subr.bf16.mxu0 %v5000_v50  ;;  %5010 = vmatprep.subr.bf16.mxu1 %v6784_v4  ;;  %v5726_v12 = vunpack.i.h.bf16 %v5724_v61  ;;  %v5725_v21 = vunpack.i.l.bf16 %v5724_v61 }
 0x70b   : > { %v2489_v46 = vsel %vm920_vm2, %v5710_v60, %v5720_v20  ;;  %v2490_v25 = vsel %vm920_vm2, %v5711_v45, %v5721_v62 }
 0x70c   : > { %v5714_v36 = vpop.permute.xlu1 %5713  ;;  %v5013_v37 = vpack.c.bf16 %v2490_v25, %v2489_v46 }
 0x70d   : > { %v5716_v38 = vunpack.i.h.bf16 %v5714_v36  ;;  %v5715_v48 = vunpack.i.l.bf16 %v5714_v36  ;;  %5003 = vmatpush1.bf16.msra.mxu0 %v5002_v23  ;;  %5012 = vmatpush3.bf16.msra.mxu1 %v5011_v24  ;;  %v5734_v58 = vpop.permute.xlu0 %5733 }
 0x70e   : > { %5014 = vmatprep.subr.bf16.mxu0 %v5013_v37  ;;  %5025 = vmatprep.subr.bf16.mxu1 %v6784_v4  ;;  %v5735_v10 = vunpack.i.l.bf16 %v5734_v58  ;;  %v5736_v1 = vunpack.i.h.bf16 %v5734_v58 }
 0x70f   : > { %v2488_v44 = vsel %vm920_vm2, %v5721_v62, %v5716_v38  ;;  %v2487_v27 = vsel %vm920_vm2, %v5720_v20, %v5715_v48  ;;  %v2491_v29 = vsel %vm920_vm2, %v5715_v48, %v5710_v60  ;;  %v2492_v39 = vsel %vm920_vm2, %v5716_v38, %v5711_v45 }
 0x710   : > { %v5729_v40 = vpop.permute.xlu1 %5728  ;;  %4807 = vmatmul.mubr.msk.f32.vlgmr.msra.gmra.mrb[16].mxu1 %vm985_vm4, %v2130_v49  ;;  %4597 = vmatmul.mubr.msk.f32.vlgmr.msra.gmra.mrb[4].mxu0 %vm985_vm4, %v2130_v49  ;;  %v5015_v13 = vpack.c.bf16 %v2492_v39, %v2491_v29  ;;  %v5026_v53 = vpack.c.bf16 %v2488_v44, %v2487_v27  ;;  %v2509_v18 = vsel %vm939_vm3, %v5735_v10, %v5725_v21 }
 0x711   : > { %v5731_v57 = vunpack.i.h.bf16 %v5729_v40  ;;  %v5730_v32 = vunpack.i.l.bf16 %v5729_v40  ;;  %2580 = vmatprep.mubr.f32.mxu0 %v9214_v11  ;;  %4821 = vmatprep.mubr.msk.f32.mxu1 %vm6785_vm5, %v9214_v11  ;;  %v2510_v41 = vsel %vm939_vm3, %v5736_v1, %v5726_v12 }
 0x712   : > { %5016 = vmatpush1.bf16.msra.mxu0 %v5015_v13  ;;  %5027 = vmatpush3.bf16.msra.mxu1 %v5026_v53 }
 0x713   : > { %5018 = vmatprep.subr.bf16.mxu0 %v5017_v63  ;;  %v2505_v28 = vsel %vm939_vm3, %v5730_v32, %v5735_v10  ;;  %5028 = vmatprep.subr.bf16.mxu1 %v6784_v4  ;;  %v2506_v56 = vsel %vm939_vm3, %v5731_v57, %v5736_v1  ;;  %v2508_v3 = vsel %vm939_vm3, %v5726_v12, %v5731_v57 }
 0x714   : > { %v2507_v8 = vsel %vm939_vm3, %v5725_v21, %v5730_v32  ;;  %v5021_v15 = vpack.c.bf16 %v2506_v56, %v2505_v28  ;;  %v5032_v63 = vpack.c.bf16 %v2510_v41, %v2509_v18 }
 0x715   : > { %v5023_v5 = vpack.c.bf16 %v2508_v3, %v2507_v8 }
 0x716   : > { %5020 = vmatpush1.bf16.msra.mxu0 %v5019_v0  ;;  %5030 = vmatpush3.bf16.msra.mxu1 %v5029_v7 }
 0x717   : > { %5022 = vmatprep.subr.bf16.mxu0 %v5021_v15  ;;  %5031 = vmatprep.subr.bf16.mxu1 %v6784_v4 }
 0x71a   : > { %5024 = vmatpush1.bf16.msra.mxu0 %v5023_v5  ;;  %5033 = vmatpush3.bf16.msra.mxu1 %v5032_v63 }
 0x71b   : > { %5050 = vmatprep.subr.bf16.mxu1 %v6784_v4 }
 0x71d   : > { %4599 = vmatmul.mubr.msk.f32.vlgmr.msra.gmra.mrb[4].mxu0 %vm985_vm4, %v2512_v19  ;;  %4822 = vmatmul.mubr.msk.f32.vlgmr.msra.gmra.mrb[18].mxu1 %vm985_vm4, %v2512_v19  ;;  %vm4277_vm4 = vcmask 1048448  }
 0x71e   : > { %v2680_v33 = vpop.permute.xlu0 %2679  ;;  %2947 = vmatprep.mubr.f32.mxu0 %v9214_v11  ;;  %4842 = vmatprep.mubr.msk.f32.mxu1 %vm6785_vm5, %v9214_v11 }
 0x71f   : > { %v2690_v54 = vmul.f32 %v2680_v33, %v7854_v26  ;;  %v2691_v59 = vmul.f32 %v2680_v33, %v7859_v35  ;;  %v2692_v16 = vmul.f32 %v2680_v33, %v7857_v30 }
 0x721   : > { %v2675_v43 = vpop.permute.xlu1 %2674 }
 0x722   : > { %v2687_v42 = vmul.f32 %v2675_v43, %v7713_v47  ;;  %v2688_v55 = vmul.f32 %v2675_v43, %v7715_v2  ;;  %v2702_v0 = vpop.permute.xlu0 %2701  ;;  %v2689_v7 = vmul.f32 %v2675_v43, %v7703_v31 }
 0x724   : > { %v2714_v51 = vadd.f32 %v2702_v0, %v2687_v42  ;;  %v2715_v22 = vadd.f32 %v2702_v0, %v2688_v55  ;;  %v2716_v17 = vadd.f32 %v2702_v0, %v2689_v7 }
 0x725   : > { %v2664_v52 = vpop.permute.xlu1 %2663 }
 0x726   : > { %v2723_v50 = vmax.f32 %v2714_v51, 0.0  ;;  %v2724_v20 = vmax.f32 %v2715_v22, 0.0  ;;  %v2725_v25 = vmax.f32 %v2716_v17, 0.0  ;;  %v2685_v21 = vpop.permute.xlu0 %2684 }
 0x728   : > { %v8120_v36 = vmul.f32 %v2723_v50, %v7705_v6  ;;  %v8123_v37 = vmul.f32 %v2724_v20, %v7707_v9  ;;  %v8139_v27 = vmul.f32 %v2725_v25, %v7701_v34 }
 0x729   : > { %v2707_v62 = vpop.permute.xlu1 %2706 }
 0x72a   : > { %v2717_v45 = vadd.f32 %v2707_v62, %v2690_v54  ;;  %v2718_v60 = vadd.f32 %v2707_v62, %v2691_v59  ;;  %v2719_v61 = vadd.f32 %v2707_v62, %v2692_v16 }
 0x72c   : > { %v2726_v23 = vmax.f32 %v2717_v45, 0.0  ;;  %v2727_v24 = vmax.f32 %v2718_v60, 0.0  ;;  %v2728_v46 = vmax.f32 %v2719_v61, 0.0 }
 0x72d   : > { %v2712_v15 = vpop.permute.xlu1 %2711 }
 0x72e   : > { %v8126_v38 = vmul.f32 %v2726_v23, %v7705_v6  ;;  %v8129_v48 = vmul.f32 %v2727_v24, %v7707_v9  ;;  %v8132_v49 = vmul.f32 %v2728_v46, %v7701_v34 }
 0x730   : > { %v5742_v58 = vpack.i.bf16 %v8129_v48, %v8123_v37  ;;  %v5737_v44 = vpack.i.bf16 %v8126_v38, %v8120_v36  ;;  %v5747_v29 = vpack.i.bf16 %v8132_v49, %v8139_v27 }
 0x732   : > { %5743 = vrot.lane.b32.xlu1 %v5742_v58, %s6778_s1  ;;  %5738 = vrot.lane.b32.xlu0 %v5737_v44, %s6778_s1 }
 0x736   : > { %5748 = vrot.lane.b32.xlu0 %v5747_v29, %s6778_s1 }
 0x773   : > { %v2309_v39 = vpop.f32.mrb[14].mxu1 }
 0x774   : > { %v4793_v40 = vpop.f32.mrb[15].mxu1 }
 0x7a4   : > { %v5744_v59 = vpop.permute.xlu1 %5743 }
 0x7a5   : > { %v5745_v62 = vunpack.i.l.bf16 %v5744_v59  ;;  %v5746_v61 = vunpack.i.h.bf16 %v5744_v59 }
 0x7e3   : > { %v2453_v13 = vpop.f32.mrb[16].mxu1 }
 0x7e4   : > { %v2454_v10 = vadd.f32 %v2453_v13, %v2309_v39  ;;  %v4808_v57 = vpop.f32.mrb[17].mxu1 }
 0x7f0   : > { %v2582_v32 = vpop.f32.mrb[4].mxu0  ;;  %v2653_v1 = vpop.f32.mrb[18].mxu1 }
 0x7f1   : > { %v8146_v53 = vadd.f32 %v2664_v52, %v2582_v32  ;;  %v2584_v12 = vpop.f32.mrb[5].mxu0  ;;  %v2659_v28 = vadd.f32 %v2653_v1, %v2454_v10  ;;  %v4823_v3 = vpop.f32.mrb[19].mxu1 }
 0x7f2   : > { %v8148_v56 = vadd.f32 %v2664_v52, %v2584_v12 }
 0x7f3   : > { %v2693_v8 = vmul.f32 %v2685_v21, %v8146_v53  ;;  %v8151_v18 = vadd.f32 %v2664_v52, %v2659_v28  ;;  %v5739_v52 = vpop.permute.xlu0 %5738 }
 0x7f4   : > { %v2694_v41 = vmul.f32 %v2685_v21, %v8148_v56  ;;  %v5740_v16 = vunpack.i.l.bf16 %v5739_v52  ;;  %v5741_v50 = vunpack.i.h.bf16 %v5739_v52 }
 0x7f5   : > { %v2720_v5 = vadd.f32 %v2712_v15, %v2693_v8  ;;  %v2695_v63 = vmul.f32 %v2685_v21, %v8151_v18 }
 0x7f6   : > { %v2721_v19 = vadd.f32 %v2712_v15, %v2694_v41  ;;  %v8198_v23 = vsel %vm901_vm0, %v5740_v16, %v5745_v62 }
 0x7f7   : > { %v2729_v33 = vmax.f32 %v2720_v5, 0.0  ;;  %v2722_v43 = vadd.f32 %v2712_v15, %v2695_v63  ;;  %v5749_v22 = vpop.permute.xlu0 %5748 }
 0x7f8   : > { %v2730_v42 = vmax.f32 %v2721_v19, 0.0  ;;  %v5750_v54 = vunpack.i.l.bf16 %v5749_v22  ;;  %v5751_v17 = vunpack.i.h.bf16 %v5749_v22 }
 0x7f9   : > { %v8156_v55 = vmul.f32 %v2729_v33, %v7705_v6  ;;  %v2731_v0 = vmax.f32 %v2722_v43, 0.0 }
 0x7fa   : > { %v8159_v7 = vmul.f32 %v2730_v42, %v7707_v9  ;;  %v8186_v20 = vsel %vm901_vm0, %v5750_v54, %v5740_v16  ;;  %v8192_v60 = vsel %vm901_vm0, %v5751_v17, %v5741_v50  ;;  %v8204_v46 = vsel %vm901_vm0, %v5745_v62, %v5750_v54 }
 0x7fb   : > { %2745 = vrot.lane.b32.xlu1 %v8156_v55, %s6778_s1  ;;  %v8166_v51 = vmul.f32 %v2731_v0, %v7701_v34  ;;  %v5807_v25 = vpack.i.bf16 %v8198_v23, %v8192_v60  ;;  %v8227_v39 = vsel %vm901_vm0, %v5746_v61, %v5751_v17 }
 0x7fc   : > { %2751 = vrot.lane.b32.xlu0 %v8159_v7, %s6778_s1  ;;  %v5797_v24 = vpack.i.bf16 %v8159_v7, %v8156_v55  ;;  %v5837_v40 = vpack.i.bf16 %v8227_v39, %v8204_v46 }
 0x7fd   : > { %v5802_v45 = vpack.i.bf16 %v8186_v20, %v8166_v51 }
 0x7ff   : > { %2757 = vrot.lane.b32.xlu1 %v8166_v51, %s6778_s1 }
 0x800   : > { %5753 = vrot.lane.b32.xlu0 %v5737_v44, %s6779_s24 }
 0x803   : > { %5758 = vrot.lane.b32.xlu1 %v5742_v58, %s6779_s24 }
 0x804   : > { %5763 = vrot.lane.b32.xlu0 %v5747_v29, %s6779_s24 }
 0x807   : > { %3172 = vrot.lane.b32.xlu1 %v8156_v55, %s6779_s24 }
 0x808   : > { %3178 = vrot.lane.b32.xlu0 %v8159_v7, %s6779_s24 }
 0x80b   : > { %3184 = vrot.lane.b32.xlu1 %v8166_v51, %s6779_s24 }
 0x80c   : > { %5768 = vrot.lane.b32.xlu0 %v5737_v44, %s6780_s5 }
 0x80f   : > { %5773 = vrot.lane.b32.xlu1 %v5742_v58, %s6780_s5 }
 0x810   : > { %5778 = vrot.lane.b32.xlu0 %v5747_v29, %s6780_s5 }
 0x813   : > { %5783 = vrot.lane.b32.xlu1 %v5737_v44, %s6781_s27 }
 0x814   : > { %5788 = vrot.lane.b32.xlu0 %v5742_v58, %s6781_s27  ;;  %v8211_v58 = vsel %vm901_vm0, %v5741_v50, %v5746_v61 }
 0x815   : > { %v5812_v44 = vpack.i.bf16 %v8204_v46, %v8211_v58  ;;  %v5832_v50 = vpack.i.bf16 %v8211_v58, %v8198_v23 }
 0x817   : > { %5793 = vrot.lane.b32.xlu1 %v5747_v29, %s6781_s27  ;;  %v5817_v29 = vpack.i.bf16 %v8192_v60, %v8186_v20 }
 0x818   : > { %5803 = vrot.lane.b32.xlu0 %v5802_v45, %s6780_s5 }
 0x81b   : > { %5798 = vrot.lane.b32.xlu1 %v5797_v24, %s6780_s5 }
 0x81c   : > { %5808 = vrot.lane.b32.xlu0 %v5807_v25, %s6780_s5 }
 0x81f   : > { %5813 = vrot.lane.b32.xlu1 %v5812_v44, %s6780_s5 }
 0x820   : > { %2860 = vrot.lane.b32.xlu0 %v8159_v7, %s6781_s27 }
 0x823   : > { %2854 = vrot.lane.b32.xlu1 %v8156_v55, %s6781_s27 }
 0x827   : > { %2866 = vrot.lane.b32.xlu1 %v8166_v51, %s6781_s27 }
 0x82b   : > { %5818 = vrot.lane.b32.xlu1 %v5817_v29, %s6781_s27 }
 0x82f   : > { %5838 = vrot.lane.b32.xlu1 %v5837_v40, %s6781_s27 }
 0x86d   : > { %v2746_v13 = vpop.permute.xlu1 %2745 }
 0x86e   : > { %v2752_v10 = vpop.permute.xlu0 %2751 }
 0x86f   : > { %v8245_v28 = vsel %vm901_vm0, %v2746_v13, %v2752_v10 }
 0x871   : > { %v2758_v57 = vpop.permute.xlu1 %2757 }
 0x872   : > { %v8235_v32 = vsel %vm901_vm0, %v2758_v57, %v2746_v13  ;;  %v5754_v1 = vpop.permute.xlu0 %5753  ;;  %v8241_v21 = vsel %vm901_vm0, %v2752_v10, %v2758_v57 }
 0x873   : > { %v5822_v12 = vpack.i.bf16 %v8235_v32, %v8227_v39  ;;  %v5756_v8 = vunpack.i.h.bf16 %v5754_v1  ;;  %v5755_v15 = vunpack.i.l.bf16 %v5754_v1  ;;  %v5827_v19 = vpack.i.bf16 %v8241_v21, %v8245_v28 }
 0x875   : > { %5823 = vrot.lane.b32.xlu0 %v5822_v12, %s6780_s5  ;;  %v5759_v3 = vpop.permute.xlu1 %5758 }
 0x876   : > { %v5761_v41 = vunpack.i.h.bf16 %v5759_v3  ;;  %v5760_v5 = vunpack.i.l.bf16 %v5759_v3  ;;  %v5764_v63 = vpop.permute.xlu0 %5763 }
 0x877   : > { %v5766_v33 = vunpack.i.h.bf16 %v5764_v63  ;;  %v5765_v43 = vunpack.i.l.bf16 %v5764_v63 }
 0x878   : > { %v8252_v42 = vsel %vm1286_vm1, %v5755_v15, %v5760_v5  ;;  %v8256_v0 = vsel %vm1286_vm1, %v5756_v8, %v5761_v41 }
 0x879   : > { %5828 = vrot.lane.b32.xlu0 %v5827_v19, %s6780_s5  ;;  %v3173_v52 = vpop.permute.xlu1 %3172  ;;  %v8261_v54 = vpack.i.bf16 %v8256_v0, %v8252_v42  ;;  %v8265_v59 = vsel %vm1286_vm1, %v5765_v43, %v5755_v15  ;;  %v8269_v16 = vsel %vm1286_vm1, %v5766_v33, %v5756_v8  ;;  %v8279_v62 = vsel %vm1286_vm1, %v5760_v5, %v5765_v43 }
 0x87a   : > { %v3179_v22 = vpop.permute.xlu0 %3178  ;;  %v8283_v45 = vsel %vm1286_vm1, %v5761_v41, %v5766_v33  ;;  %v8296_v29 = vpack.i.bf16 %v8269_v16, %v8265_v59 }
 0x87b   : > { %v8273_v17 = vsel %vm1286_vm1, %v3173_v52, %v3179_v22  ;;  %5843 = vrot.lane.b32.xlu1 %v8261_v54, %s6780_s5  ;;  %v5847_v13 = vpack.i.bf16 %v8283_v45, %v8279_v62 }
 0x87d   : > { %5833 = vrot.lane.b32.xlu0 %v5832_v50, %s6781_s27  ;;  %v3185_v24 = vpop.permute.xlu1 %3184 }
 0x87e   : > { %v8292_v25 = vsel %vm1286_vm1, %v3179_v22, %v3185_v24  ;;  %v5769_v44 = vpop.permute.xlu0 %5768  ;;  %v8300_v40 = vsel %vm1286_vm1, %v3185_v24, %v3173_v52 }
 0x87f   : > { %v5113_v10 = vpack.c.bf16 %v8300_v40, %v8269_v16  ;;  %5853 = vrot.lane.b32.xlu1 %v8296_v29, %s6780_s5  ;;  %v5098_v57 = vpack.c.bf16 %v8292_v25, %v8283_v45  ;;  %v5771_v12 = vunpack.i.h.bf16 %v5769_v44  ;;  %v5770_v3 = vunpack.i.l.bf16 %v5769_v44 }
 0x880   : > { %v9277_v45 = vpack.c.bf16 %v8273_v17, %v8256_v0 }
 0x881   : > { %v5774_v1 = vpop.permute.xlu1 %5773  ;;  %5848 = vrot.lane.b32.xlu0 %v5847_v13, %s6780_s5 }
 0x882   : > { %v5776_v8 = vunpack.i.h.bf16 %v5774_v1  ;;  %v5775_v15 = vunpack.i.l.bf16 %v5774_v1  ;;  %v5779_v41 = vpop.permute.xlu0 %5778 }
 0x883   : > { %v5781_v5 = vunpack.i.h.bf16 %v5779_v41  ;;  %v5780_v63 = vunpack.i.l.bf16 %v5779_v41  ;;  %2805 = vrot.lane.b32.xlu1 %v8245_v28, %s6781_s27 }
 0x884   : > { %v2844_v19 = vsel %vm920_vm2, %v5770_v3, %v5775_v15  ;;  %v2845_v33 = vsel %vm920_vm2, %v5771_v12, %v5776_v8 }
 0x885   : > { %v2841_v43 = vsel %vm920_vm2, %v5775_v15, %v5780_v63  ;;  %v2842_v52 = vsel %vm920_vm2, %v5776_v8, %v5781_v5  ;;  %v2847_v22 = vsel %vm920_vm2, %v5780_v63, %v5770_v3  ;;  %v2848_v50 = vsel %vm920_vm2, %v5781_v5, %v5771_v12  ;;  %v5784_v24 = vpop.permute.xlu1 %5783  ;;  %2799 = vrot.lane.b32.xlu0 %v8235_v32, %s6781_s27 }
 0x886   : > { %v5789_v44 = vpop.permute.xlu0 %5788  ;;  %v5034_v1 = vpack.c.bf16 %v2845_v33, %v2844_v19  ;;  %v5036_v41 = vpack.c.bf16 %v2848_v50, %v2847_v22  ;;  %v5051_v61 = vpack.c.bf16 %v2842_v52, %v2841_v43  ;;  %v5857_v3 = vpack.i.bf16 %v8292_v25, %v8273_v17 }
 0x887   : > { %3211 = vrot.lane.b32.xlu1 %v8300_v40, %s6780_s5 }
 0x888   : > { %5035 = vmatprep.subr.bf16.mxu0 %v5034_v1  ;;  %5052 = vmatpush3.bf16.msra.mxu1 %v5051_v61 }
 0x889   : > { %5037 = vmatpush1.bf16.msra.mxu0 %v5036_v41  ;;  %v5794_v8 = vpop.permute.xlu1 %5793  ;;  %2811 = vrot.lane.b32.xlu0 %v8241_v21, %s6781_s27 }
 0x88a   : > { %5053 = vmatprep.subr.bf16.mxu1 %v6784_v4  ;;  %v8332_v12 = vpop.permute.xlu0 %5803  ;;  %v5796_v61 = vunpack.i.h.bf16 %v5794_v8  ;;  %v5795_v33 = vunpack.i.l.bf16 %v5794_v8  ;;  %v5791_v8 = vunpack.i.h.bf16 %v5789_v44 }
 0x88b   : > { %5868 = vrot.lane.b32.xlu1 %v5847_v13, %s6781_s27  ;;  %v5805_v5 = vunpack.i.l.bf16 %v8332_v12 }
 0x88d   : > { %v5799_v15 = vpop.permute.xlu1 %5798  ;;  %5858 = vrot.lane.b32.xlu0 %v5857_v3, %s6780_s5  ;;  %v5790_v3 = vunpack.i.l.bf16 %v5789_v44 }
 0x88e   : > { %v5801_v63 = vunpack.i.h.bf16 %v5799_v15  ;;  %v5800_v19 = vunpack.i.l.bf16 %v5799_v15  ;;  %v5786_v15 = vunpack.i.h.bf16 %v5784_v24 }
 0x88f   : > { %3226 = vrot.lane.b32.xlu1 %v8273_v17, %s6781_s27 }
 0x890   : > { %v2843_v43 = vsel %vm920_vm2, %v5801_v63, %v5805_v5  ;;  %v2849_v52 = vsel %vm920_vm2, %v5805_v5, %v5800_v19  ;;  %v2846_v13 = vsel %vm920_vm2, %v5800_v19, %v5801_v63  ;;  %v5785_v5 = vunpack.i.l.bf16 %v5784_v24  ;;  %v3408_v24 = vld [vmem:[#allocation29 + $0x8] sm:$0xff] }
 0x891   : > { %v8347_v22 = vpop.permute.xlu1 %5813  ;;  %v5038_v50 = vpack.c.bf16 %v8123_v37, %v2846_v13  ;;  %v5054_v1 = vpack.c.bf16 %v8139_v27, %v2843_v43  ;;  %v5040_v41 = vpack.c.bf16 %v8120_v36, %v2849_v52  ;;  %5863 = vrot.lane.b32.xlu0 %v8261_v54, %s6781_s27  ;;  %v5042_v63 = vpack.c.bf16 %v8159_v7, %v8129_v48  ;;  %v8362_v27 = vpop.permute.xlu0 %5808 }
 0x892   : > { %v2868_v37 = vsel %vm939_vm3, %v5790_v3, %v5795_v33  ;;  %v2869_v36 = vsel %vm939_vm3, %v5791_v8, %v5796_v61  ;;  %v5057_v48 = vpack.c.bf16 %v8166_v51, %v8132_v49  ;;  %v2874_v7 = vsel %vm939_vm3, %v5795_v33, %v5785_v5 }
 0x893   : > { %5039 = vmatprep.subr.bf16.mxu0 %v5038_v50  ;;  %5055 = vmatpush3.bf16.msra.mxu1 %v5054_v1  ;;  %v2875_v44 = vsel %vm939_vm3, %v5796_v61, %v5786_v15  ;;  %v5044_v19 = vpack.c.bf16 %v8156_v55, %v8126_v38  ;;  %v2871_v43 = vsel %vm939_vm3, %v5785_v5, %v5790_v3  ;;  %v5815_v51 = vunpack.i.l.bf16 %v8347_v22  ;;  %v3407_v1 = vld [vmem:[#allocation29] sm:$0xff] }
 0x894   : > { %3238 = vrot.lane.b32.xlu1 %v8300_v40, %s6781_s27  ;;  %5041 = vmatpush1.bf16.msra.mxu0 %v5040_v41  ;;  %v2872_v52 = vsel %vm939_vm3, %v5786_v15, %v5791_v8  ;;  %v5046_v49 = vpack.c.bf16 %v2869_v36, %v2868_v37  ;;  %v5060_v61 = vpack.c.bf16 %v2875_v44, %v2874_v7  ;;  %v5811_v38 = vunpack.i.h.bf16 %v8362_v27  ;;  %v3409_v15 = vld [vmem:[#allocation29 + $0x10] sm:$0xff]  ;;  %v3398_v36 = vld [vmem:[#allocation19] sm:$0xff]  ;;  %v3446_v7 = vld [vmem:[#allocation31 + $0x18] sm:$0xff] }
 0x895   : > { %v2855_v54 = vpop.permute.xlu1 %2854  ;;  %5043 = vmatprep.subr.bf16.mxu0 %v5042_v63  ;;  %5056 = vmatprep.subr.bf16.mxu1 %v6784_v4  ;;  %v5810_v55 = vunpack.i.l.bf16 %v8362_v27  ;;  %v5048_v13 = vpack.c.bf16 %v2872_v52, %v2871_v43  ;;  %v2861_v50 = vpop.permute.xlu0 %2860  ;;  %v5806_v41 = vunpack.i.h.bf16 %v8332_v12  ;;  %v2878_v27 = vld [vmem:[#allocation17 + $0x8] sm:$0xff] }
 0x896   : > { %5873 = vrot.lane.b32.xlu0 %v8296_v29, %s6781_s27  ;;  %v3443_v29 = vld [vmem:[#allocation31] sm:$0xff]  ;;  %v2873_v12 = vsel %vm939_vm3, %v2855_v54, %v2861_v50 }
 0x897   : > { %5058 = vmatpush3.bf16.msra.mxu1 %v5057_v48  ;;  %v2790_v3 = vsel %vm920_vm2, %v5810_v55, %v5815_v51  ;;  %v2789_v63 = vsel %vm920_vm2, %v5806_v41, %v5811_v38  ;;  %v3444_v48 = vld [vmem:[#allocation31 + $0x8] sm:$0xff] }
 0x898   : > { %3418 = vperm.xlu1 %5616, %v3408_v24   ;;  %5045 = vmatpush1.bf16.msra.mxu0 %v5044_v19  ;;  %v5062_v37 = vpack.c.bf16 %v2790_v3, %v2789_v63  ;;  %v3445_v24 = vld [vmem:[#allocation31 + $0x10] sm:$0xff]  ;;  %v5816_v19 = vunpack.i.h.bf16 %v8347_v22 }
 0x899   : > { %v2867_v33 = vpop.permute.xlu1 %2866  ;;  %5047 = vmatprep.subr.bf16.mxu0 %v5046_v49  ;;  %5059 = vmatprep.subr.bf16.mxu1 %v6784_v4 }
 0x89a   : > { %3232 = vrot.lane.b32.xlu0 %v8292_v25, %s6781_s27  ;;  %v2870_v8 = vsel %vm939_vm3, %v2861_v50, %v2867_v33  ;;  %v2876_v5 = vsel %vm939_vm3, %v2867_v33, %v2855_v54  ;;  %v3410_v54 = vld [vmem:[#allocation29 + $0x18] sm:$0xff]  ;;  %v2786_v49 = vsel %vm920_vm2, %v5811_v38, %v5816_v19  ;;  %v2792_v33 = vsel %vm920_vm2, %v5816_v19, %v5806_v41 }
 0x89b   : > { %5061 = vmatpush3.bf16.msra.mxu1 %v5060_v61 }
 0x89c   : > { %3449 = vperm.xlu1 %5616, %v3443_v29   ;;  %5049 = vmatpush1.bf16.msra.mxu0 %v5048_v13 }
 0x89d   : > { %2899 = vmatprep.subr.mxu0 %v2870_v8  ;;  %4840 = vmatprep.subr.mxu1 %v9214_v11  ;;  %v5819_v44 = vpop.permute.xlu1 %5818 }
 0x89e   : > { %3413 = vperm.xlu0 %5595, %v3407_v1   ;;  %v5820_v19 = vunpack.i.l.bf16 %v5819_v44 }
 0x89f   : > { %4841 = vmatpush3.msra.mxu1 %v2876_v5 }
 0x8a0   : > { %3423 = vperm.xlu1 %5616, %v3409_v15   ;;  %2900 = vmatpush1.msra.mxu0 %v2873_v12 }
 0x8a1   : > { %5063 = vmatprep.subr.bf16.mxu0 %v5062_v37  ;;  %5078 = vmatprep.subr.bf16.mxu1 %v6784_v4  ;;  %v5839_v29 = vpop.permute.xlu1 %5838 }
 0x8a2   : > { %3401 = vperm.xlu0 %5595, %v3398_v36   ;;  %4601 = vmatmul.mubr.msk.f32.vlgmr.msra.gmra.mrb[6].mxu0 %vm2879_vm10, %v2878_v27  ;;  %v5840_v36 = vunpack.i.l.bf16 %v5839_v29 }
 0x8a3   : > { %4843 = vmatmul.mubr.msk.f32.vlgmr.msra.gmra.mrb[20].mxu1 %vm2879_vm10, %v2878_v27  ;;  %3091 = vmatprep.mubr.f32.mxu0 %v9214_v11 }
 0x8a4   : > { %3459 = vperm.xlu1 %5616, %v3445_v24   ;;  %4863 = vmatprep.mubr.msk.f32.mxu1 %vm6785_vm5, %v9214_v11 }
 0x8a6   : > { %3454 = vperm.xlu0 %5595, %v3444_v48  }
 0x8aa   : > { %3428 = vperm.xlu0 %5595, %v3410_v54   ;;  %v5070_v54 = vpack.c.bf16 %v8245_v28, %v8211_v58  ;;  %v5072_v58 = vpack.c.bf16 %v8235_v32, %v8192_v60  ;;  %v2819_v28 = vsel %vm939_vm3, %v5840_v36, %v5820_v19 }
 0x8ae   : > { %3464 = vperm.xlu0 %5595, %v3446_v7   ;;  %v5821_v7 = vunpack.i.h.bf16 %v5819_v44 }
 0x8e7   : > { %v5824_v43 = vpop.permute.xlu0 %5823 }
 0x8e8   : > { %v5825_v52 = vunpack.i.l.bf16 %v5824_v43  ;;  %v5826_v3 = vunpack.i.h.bf16 %v5824_v43 }
 0x8ea   : > { %v2787_v61 = vsel %vm920_vm2, %v5815_v51, %v5825_v52  ;;  %v2793_v13 = vsel %vm920_vm2, %v5825_v52, %v5810_v55  ;;  %v5841_v55 = vunpack.i.h.bf16 %v5839_v29 }
 0x8eb   : > { %v5829_v50 = vpop.permute.xlu0 %5828  ;;  %v5064_v1 = vpack.c.bf16 %v2793_v13, %v2792_v33  ;;  %v5079_v8 = vpack.c.bf16 %v2787_v61, %v2786_v49 }
 0x8ec   : > { %v5831_v22 = vunpack.i.h.bf16 %v5829_v50  ;;  %v5830_v15 = vunpack.i.l.bf16 %v5829_v50  ;;  %v2820_v44 = vsel %vm939_vm3, %v5841_v55, %v5821_v7 }
 0x8ed   : > { %5065 = vmatpush1.bf16.msra.mxu0 %v5064_v1  ;;  %5080 = vmatpush3.bf16.msra.mxu1 %v5079_v8  ;;  %v5844_v5 = vpop.permute.xlu1 %5843  ;;  %v5088_v61 = vpack.c.bf16 %v2820_v44, %v2819_v28 }
 0x8ee   : > { %v2794_v38 = vsel %vm920_vm2, %v5831_v22, %v5826_v3  ;;  %v2788_v41 = vsel %vm920_vm2, %v5830_v15, %v5831_v22  ;;  %5081 = vmatprep.subr.bf16.mxu1 %v6784_v4  ;;  %v2791_v51 = vsel %vm920_vm2, %v5826_v3, %v5830_v15  ;;  %v5846_v50 = vunpack.i.h.bf16 %v5844_v5 }
 0x8ef   : > { %v5834_v63 = vpop.permute.xlu0 %5833  ;;  %v5066_v12 = vpack.c.bf16 %v8198_v23, %v2791_v51  ;;  %v5082_v37 = vpack.c.bf16 %v8204_v46, %v2788_v41  ;;  %v5068_v48 = vpack.c.bf16 %v8186_v20, %v2794_v38  ;;  %v5085_v46 = vpack.c.bf16 %v8241_v21, %v8227_v39 }
 0x8f0   : > { %v5836_v27 = vunpack.i.h.bf16 %v5834_v63  ;;  %v5835_v24 = vunpack.i.l.bf16 %v5834_v63  ;;  %v5845_v1 = vunpack.i.l.bf16 %v5844_v5 }
 0x8f1   : > { %5067 = vmatprep.subr.bf16.mxu0 %v5066_v12  ;;  %5083 = vmatpush3.bf16.msra.mxu1 %v5082_v37  ;;  %v5854_v43 = vpop.permute.xlu1 %5853 }
 0x8f2   : > { %5069 = vmatpush1.bf16.msra.mxu0 %v5068_v48  ;;  %5084 = vmatprep.subr.bf16.mxu1 %v6784_v4  ;;  %v2813_v23 = vsel %vm939_vm3, %v5835_v24, %v5840_v36  ;;  %v2814_v20 = vsel %vm939_vm3, %v5836_v27, %v5841_v55  ;;  %v2816_v49 = vsel %vm939_vm3, %v5820_v19, %v5835_v24  ;;  %v5856_v8 = vunpack.i.h.bf16 %v5854_v43  ;;  %v2822_v55 = vld [vmem:[#allocation17] sm:$0xff] }
 0x8f3   : > { %5071 = vmatprep.subr.bf16.mxu0 %v5070_v54  ;;  %v5849_v52 = vpop.permute.xlu0 %5848  ;;  %v2817_v39 = vsel %vm939_vm3, %v5821_v7, %v5836_v27  ;;  %v5074_v21 = vpack.c.bf16 %v2814_v20, %v2813_v23  ;;  %v5855_v3 = vunpack.i.l.bf16 %v5854_v43 }
 0x8f4   : > { %v5851_v29 = vunpack.i.h.bf16 %v5849_v52  ;;  %v5850_v60 = vunpack.i.l.bf16 %v5849_v52  ;;  %v5076_v13 = vpack.c.bf16 %v2817_v39, %v2816_v49  ;;  %v3220_v12 = vsel %vm920_vm2, %v5856_v8, %v5846_v50 }
 0x8f5   : > { %5086 = vmatpush3.bf16.msra.mxu1 %v5085_v46  ;;  %v2806_v33 = vpop.permute.xlu1 %2805  ;;  %v3219_v63 = vsel %vm920_vm2, %v5855_v3, %v5845_v1 }
 0x8f6   : > { %5073 = vmatpush1.bf16.msra.mxu0 %v5072_v58  ;;  %5087 = vmatprep.subr.bf16.mxu1 %v6784_v4  ;;  %v3216_v22 = vsel %vm920_vm2, %v5845_v1, %v5850_v60  ;;  %v3217_v15 = vsel %vm920_vm2, %v5846_v50, %v5851_v29  ;;  %v3214_v38 = vsel %vm920_vm2, %v5851_v29, %v5856_v8 }
 0x8f7   : > { %5075 = vmatprep.subr.bf16.mxu0 %v5074_v21  ;;  %v2800_v32 = vpop.permute.xlu0 %2799  ;;  %v3213_v41 = vsel %vm920_vm2, %v5850_v60, %v5855_v3  ;;  %v5090_v24 = vpack.c.bf16 %v3217_v15, %v3216_v22  ;;  %v5092_v7 = vpack.c.bf16 %v3220_v12, %v3219_v63 }
 0x8f8   : > { %v2818_v27 = vsel %vm939_vm3, %v2800_v32, %v2806_v33  ;;  %v5107_v48 = vpack.c.bf16 %v3214_v38, %v3213_v41 }
 0x8f9   : > { %5089 = vmatpush3.bf16.msra.mxu1 %v5088_v61  ;;  %v3212_v51 = vpop.permute.xlu1 %3211 }
 0x8fa   : > { %5077 = vmatpush1.bf16.msra.mxu0 %v5076_v13  ;;  %4861 = vmatprep.subr.mxu1 %v9214_v11 }
 0x8fb   : > { %v2812_v5 = vpop.permute.xlu0 %2811 }
 0x8fc   : > { %v2815_v37 = vsel %vm939_vm3, %v2806_v33, %v2812_v5  ;;  %v2821_v36 = vsel %vm939_vm3, %v2812_v5, %v2800_v32 }
 0x8fd   : > { %3043 = vmatprep.subr.mxu0 %v2815_v37  ;;  %4862 = vmatpush3.msra.mxu1 %v2821_v36  ;;  %v5869_v23 = vpop.permute.xlu1 %5868 }
 0x8fe   : > { %3044 = vmatpush1.msra.mxu0 %v2818_v27  ;;  %4864 = vmatmul.mubr.msk.f32.vlgmr.msra.gmra.mrb[22].mxu1 %vm2879_vm10, %v2822_v55  ;;  %v5871_v33 = vunpack.i.h.bf16 %v5869_v23  ;;  %v5870_v29 = vunpack.i.l.bf16 %v5869_v23 }
 0x8ff   : > { %5106 = vmatprep.subr.bf16.mxu1 %v6784_v4  ;;  %v5859_v54 = vpop.permute.xlu0 %5858  ;;  %5091 = vmatprep.subr.bf16.mxu0 %v5090_v24 }
 0x900   : > { %v5861_v19 = vunpack.i.h.bf16 %v5859_v54  ;;  %v5860_v43 = vunpack.i.l.bf16 %v5859_v54  ;;  %5108 = vmatpush3.bf16.msra.mxu1 %v5107_v48  ;;  %4603 = vmatmul.mubr.msk.f32.vlgmr.msra.gmra.mrb[6].mxu0 %vm2879_vm10, %v2822_v55 }
 0x901   : > { %5093 = vmatpush1.bf16.msra.mxu0 %v5092_v7  ;;  %5109 = vmatprep.subr.bf16.mxu1 %v6784_v4  ;;  %v3227_v60 = vpop.permute.xlu1 %3226 }
 0x902   : > { %v3215_v46 = vsel %vm920_vm2, %v5861_v19, %v3212_v51  ;;  %v3221_v52 = vsel %vm920_vm2, %v3212_v51, %v5860_v43  ;;  %v3218_v20 = vsel %vm920_vm2, %v5860_v43, %v5861_v19  ;;  %4884 = vmatprep.mubr.msk.f32.mxu1 %vm6785_vm5, %v9214_v11  ;;  %3318 = vmatprep.mubr.f32.mxu0 %v9214_v11 }
 0x903   : > { %v5864_v58 = vpop.permute.xlu0 %5863  ;;  %v5094_v28 = vpack.c.bf16 %v8279_v62, %v3218_v20  ;;  %v5110_v44 = vpack.c.bf16 %v8265_v59, %v3215_v46  ;;  %v5096_v49 = vpack.c.bf16 %v8252_v42, %v3221_v52 }
 0x904   : > { %v5866_v39 = vunpack.i.h.bf16 %v5864_v58  ;;  %v5865_v21 = vunpack.i.l.bf16 %v5864_v58 }
 0x905   : > { %5095 = vmatprep.subr.bf16.mxu0 %v5094_v28  ;;  %5111 = vmatpush3.bf16.msra.mxu1 %v5110_v44 }
 0x906   : > { %5097 = vmatpush1.bf16.msra.mxu0 %v5096_v49  ;;  %5112 = vmatprep.subr.bf16.mxu1 %v6784_v4  ;;  %v3244_v42 = vsel %vm939_vm3, %v5866_v39, %v5871_v33  ;;  %v3243_v59 = vsel %vm939_vm3, %v5865_v21, %v5870_v29  ;;  %v3239_v1 = vpop.permute.xlu1 %3238 }
 0x907   : > { %5099 = vmatprep.subr.bf16.mxu0 %v5098_v57  ;;  %v5104_v8 = vpack.c.bf16 %v3244_v42, %v3243_v59  ;;  %v3248_v17 = vsel %vm939_vm3, %v3239_v1, %v3227_v60 }
 0x908   : > { %v5874_v32 = vpop.permute.xlu0 %5873 }
 0x909   : > { %v5876_v62 = vunpack.i.h.bf16 %v5874_v32  ;;  %v5875_v61 = vunpack.i.l.bf16 %v5874_v32  ;;  %5114 = vmatpush3.bf16.msra.mxu1 %v5113_v10 }
 0x90a   : > { %5101 = vmatpush1.bf16.msra.mxu0 %v9277_v45  ;;  %5115 = vmatprep.subr.bf16.mxu1 %v6784_v4  ;;  %v3250_v4 = vld [vmem:[#allocation17 + $0x10] sm:$0xff] }
 0x90b   : > { %v3246_v13 = vsel %vm939_vm3, %v5875_v61, %v5865_v21  ;;  %v3247_v50 = vsel %vm939_vm3, %v5876_v62, %v5866_v39  ;;  %v3240_v25 = vsel %vm939_vm3, %v5870_v29, %v5875_v61  ;;  %v3241_v57 = vsel %vm939_vm3, %v5871_v33, %v5876_v62 }
 0x90c   : > { %v5116_v16 = vpack.c.bf16 %v3247_v50, %v3246_v13  ;;  %v3233_v40 = vpop.permute.xlu0 %3232  ;;  %v5102_v10 = vpack.c.bf16 %v3241_v57, %v3240_v25 }
 0x90d   : > { %v3242_v0 = vsel %vm939_vm3, %v3233_v40, %v3239_v1  ;;  %v3245_v3 = vsel %vm939_vm3, %v3227_v60, %v3233_v40 }
 0x90e   : > { %5117 = vmatpush3.bf16.msra.mxu1 %v5116_v16  ;;  %5103 = vmatprep.subr.bf16.mxu0 %v5102_v10 }
 0x90f   : > { %4882 = vmatprep.subr.mxu1 %v9214_v11  ;;  %5105 = vmatpush1.bf16.msra.mxu0 %v5104_v8 }
 0x910   : > { %3270 = vmatprep.subr.mxu0 %v3242_v0 }
 0x912   : > { %4883 = vmatpush3.msra.mxu1 %v3248_v17 }
 0x913   : > { %4885 = vmatmul.mubr.msk.f32.vlgmr.msra.gmra.mrb[24].mxu1 %vm2879_vm10, %v3250_v4  ;;  %3271 = vmatpush1.msra.mxu0 %v3245_v3 }
 0x914   : > { %3753 = vmatprep.mubr.f32.mxu1 %v9214_v11  ;;  %4605 = vmatmul.mubr.msk.f32.vlgmr.msra.gmra.mrb[6].mxu0 %vm2879_vm10, %v3250_v4 }
 0x915   : > { %3854 = vmatprep.mubr.f32.mxu0 %v9214_v11 }
 0x917   : > { %v3419_v22 = vpop.permute.xlu1 %3418 }
 0x918   : > { %v3434_v36 = vmul.f32 %v3419_v22, %v7854_v26  ;;  %v3435_v27 = vmul.f32 %v3419_v22, %v7859_v35  ;;  %v3436_v24 = vmul.f32 %v3419_v22, %v7857_v30 }
 0x91b   : > { %v3450_v5 = vpop.permute.xlu1 %3449 }
 0x91d   : > { %v3414_v15 = vpop.permute.xlu0 %3413 }
 0x91e   : > { %v3431_v38 = vmul.f32 %v3414_v15, %v7713_v47  ;;  %v3432_v41 = vmul.f32 %v3414_v15, %v7715_v2  ;;  %v3433_v51 = vmul.f32 %v3414_v15, %v7703_v31 }
 0x91f   : > { %v3424_v60 = vpop.permute.xlu1 %3423 }
 0x920   : > { %v3467_v55 = vadd.f32 %v3450_v5, %v3431_v38  ;;  %v3468_v12 = vadd.f32 %v3450_v5, %v3432_v41  ;;  %v3469_v37 = vadd.f32 %v3450_v5, %v3433_v51  ;;  %v3437_v41 = vmul.f32 %v3424_v60, %v8146_v53 }
 0x921   : > { %v8514_v63 = vpop.permute.xlu0 %3401 }
 0x922   : > { %v3479_v48 = vmax.f32 %v3467_v55, 0.0  ;;  %v3480_v7 = vmax.f32 %v3468_v12, 0.0  ;;  %v3481_v43 = vmax.f32 %v3469_v37, 0.0  ;;  %v3438_v55 = vmul.f32 %v3424_v60, %v8148_v56 }
 0x923   : > { %v3460_v62 = vpop.permute.xlu1 %3459  ;;  %v3439_v37 = vmul.f32 %v3424_v60, %v8151_v18 }
 0x924   : > { %v8520_v52 = vmul.f32 %v3479_v48, %v7705_v6  ;;  %v8523_v20 = vmul.f32 %v3480_v7, %v7707_v9  ;;  %v3493_v58 = vmul.f32 %v3481_v43, %v7701_v34 }
 0x925   : > { %v3455_v54 = vpop.permute.xlu0 %3454 }
 0x926   : > { %v3470_v47 = vadd.f32 %v3455_v54, %v3434_v36  ;;  %v3471_v19 = vadd.f32 %v3455_v54, %v3435_v27  ;;  %v3472_v2 = vadd.f32 %v3455_v54, %v3436_v24  ;;  %v3473_v36 = vadd.f32 %v3460_v62, %v3437_v41 }
 0x927   : > { %v3474_v54 = vadd.f32 %v3460_v62, %v3438_v55 }
 0x928   : > { %v3482_v31 = vmax.f32 %v3470_v47, 0.0  ;;  %v3483_v23 = vmax.f32 %v3471_v19, 0.0  ;;  %v3484_v46 = vmax.f32 %v3472_v2, 0.0  ;;  %v3475_v47 = vadd.f32 %v3460_v62, %v3439_v37 }
 0x929   : > { %v3429_v32 = vpop.permute.xlu0 %3428  ;;  %v3485_v43 = vmax.f32 %v3473_v36, 0.0  ;;  %v3486_v56 = vmax.f32 %v3474_v54, 0.0 }
 0x92a   : > { %v8526_v26 = vmul.f32 %v3482_v31, %v7705_v6  ;;  %v8529_v30 = vmul.f32 %v3483_v23, %v7707_v9  ;;  %v3496_v35 = vmul.f32 %v3484_v46, %v7701_v34 }
 0x92b   : > { %v8591_v62 = vmul.f32 %v3486_v56, %v7707_v9 }
 0x92c   : > { %v8535_v28 = vpack.i.bf16 %v8529_v30, %v8523_v20  ;;  %v8539_v44 = vpack.i.bf16 %v8526_v26, %v8520_v52  ;;  %v8541_v49 = vpack.i.bf16 %v3496_v35, %v3493_v58  ;;  %v3487_v35 = vmax.f32 %v3475_v47, 0.0 }
 0x92d   : > { %v3465_v61 = vpop.permute.xlu0 %3464 }
 0x92e   : > { %5883 = vrot.lane.b32.xlu0 %v8535_v28, %s6778_s1  ;;  %5878 = vrot.lane.b32.xlu1 %v8539_v44, %s6778_s1 }
 0x932   : > { %5888 = vrot.lane.b32.xlu1 %v8541_v49, %s6778_s1 }
 0x976   : > { %v3020_v33 = vpop.f32.mrb[20].mxu1 }
 0x977   : > { %v4844_v29 = vpop.f32.mrb[21].mxu1 }
 0x978   : > { %v8584_v29 = vmul.f32 %v3485_v43, %v7705_v6 }
 0x9a0   : > { %v5879_v42 = vpop.permute.xlu1 %5878  ;;  %v8553_v59 = vpop.permute.xlu0 %5883 }
 0x9a1   : > { %v5881_v13 = vunpack.i.h.bf16 %v5879_v42  ;;  %v5880_v50 = vunpack.i.l.bf16 %v5879_v42  ;;  %v5886_v45 = vunpack.i.h.bf16 %v8553_v59  ;;  %v5885_v25 = vunpack.i.l.bf16 %v8553_v59 }
 0x9a3   : > { %v8559_v57 = vsel %vm901_vm0, %v5881_v13, %v5886_v45  ;;  %v8563_v16 = vsel %vm901_vm0, %v5880_v50, %v5885_v25 }
 0x9a4   : > { %v5889_v40 = vpop.permute.xlu1 %5888 }
 0x9a5   : > { %v5891_v1 = vunpack.i.h.bf16 %v5889_v40  ;;  %v5890_v8 = vunpack.i.l.bf16 %v5889_v40 }
 0x9a7   : > { %v8569_v0 = vsel %vm901_vm0, %v5890_v8, %v5880_v50  ;;  %v8573_v4 = vsel %vm901_vm0, %v5891_v1, %v5881_v13  ;;  %v3527_v50 = vsel %vm901_vm0, %v5885_v25, %v5890_v8  ;;  %v3528_v40 = vsel %vm901_vm0, %v5886_v45, %v5891_v1 }
 0x9a8   : > { %v5937_v13 = vpack.i.bf16 %v8573_v4, %v8569_v0 }
 0x9d1   : > { %v3164_v3 = vpop.f32.mrb[22].mxu1 }
 0x9d2   : > { %v3165_v22 = vadd.f32 %v3164_v3, %v3020_v33  ;;  %v4865_v15 = vpop.f32.mrb[23].mxu1  ;;  %v5942_v3 = vpack.i.bf16 %v8559_v57, %v8563_v16 }
 0x9e6   : > { %v3391_v38 = vpop.f32.mrb[24].mxu1 }
 0x9e7   : > { %v3397_v51 = vadd.f32 %v3391_v38, %v3165_v22  ;;  %v4886_v5 = vpop.f32.mrb[25].mxu1  ;;  %v3320_v12 = vpop.f32.mrb[6].mxu0  ;;  %v5947_v22 = vpack.i.bf16 %v3528_v40, %v3527_v50 }
 0x9e8   : > { %v3404_v24 = vadd.f32 %v8514_v63, %v3320_v12  ;;  %v3322_v48 = vpop.f32.mrb[7].mxu0 }
 0x9e9   : > { %v3406_v27 = vadd.f32 %v8514_v63, %v3397_v51  ;;  %v3405_v7 = vadd.f32 %v8514_v63, %v3322_v48 }
 0x9ea   : > { %v3440_v2 = vmul.f32 %v3429_v32, %v3404_v24 }
 0x9eb   : > { %v3442_v19 = vmul.f32 %v3429_v32, %v3406_v27  ;;  %v3441_v53 = vmul.f32 %v3429_v32, %v3405_v7 }
 0x9ec   : > { %v3476_v23 = vadd.f32 %v3465_v61, %v3440_v2 }
 0x9ed   : > { %v3478_v31 = vadd.f32 %v3465_v61, %v3442_v19  ;;  %v3477_v46 = vadd.f32 %v3465_v61, %v3441_v53  ;;  %v3499_v61 = vmul.f32 %v3487_v35, %v7701_v34 }
 0x9ee   : > { %v3488_v58 = vmax.f32 %v3476_v23, 0.0 }
 0x9ef   : > { %v3490_v18 = vmax.f32 %v3478_v31, 0.0  ;;  %v3489_v33 = vmax.f32 %v3477_v46, 0.0 }
 0x9f0   : > { %v8588_v63 = vmul.f32 %v3488_v58, %v7705_v6 }
 0x9f1   : > { %v3502_v60 = vmul.f32 %v3490_v18, %v7701_v34  ;;  %v8594_v32 = vmul.f32 %v3489_v33, %v7707_v9 }
 0x9f2   : > { %v8599_v42 = vpack.i.bf16 %v8588_v63, %v8584_v29 }
 0x9f3   : > { %v8603_v59 = vpack.i.bf16 %v8594_v32, %v8591_v62  ;;  %v8607_v6 = vpack.i.bf16 %v3502_v60, %v3499_v61 }
 0x9f4   : > { %5893 = vrot.lane.b32.xlu0 %v8599_v42, %s6778_s1 }
 0x9f5   : > { %5898 = vrot.lane.b32.xlu1 %v8603_v59, %s6778_s1 }
 0x9f8   : > { %5903 = vrot.lane.b32.xlu0 %v8607_v6, %s6778_s1  ;;  %s6793_s1 = smov 23  }
 0x9f9   : > { %5908 = vrot.lane.b32.xlu1 %v8539_v44, %s6779_s24 }
 0x9fc   : > { %5913 = vrot.lane.b32.xlu0 %v8535_v28, %s6779_s24 }
 0x9fd   : > { %5918 = vrot.lane.b32.xlu1 %v8541_v49, %s6779_s24 }
 0xa00   : > { %5923 = vrot.lane.b32.xlu0 %v8599_v42, %s6779_s24 }
 0xa01   : > { %5928 = vrot.lane.b32.xlu1 %v8603_v59, %s6779_s24 }
 0xa04   : > { %5933 = vrot.lane.b32.xlu0 %v8607_v6, %s6779_s24  ;;  %s4580_s24 = sshll.u32 %s7400_s28, 5 }
 0xa05   : > { %5938 = vrot.lane.b32.xlu1 %v5937_v13, %s6780_s5 }
 0xa08   : > { %5943 = vrot.lane.b32.xlu0 %v5942_v3, %s6780_s5 }
 0xa09   : > { %5948 = vrot.lane.b32.xlu1 %v5947_v22, %s6780_s5 }
 0xa0c   : > { %5958 = vrot.lane.b32.xlu0 %v5947_v22, %s6781_s27 }
 0xa0d   : > { %5953 = vrot.lane.b32.xlu1 %v5942_v3, %s6781_s27 }
 0xa10   : > { %5973 = vrot.lane.b32.xlu0 %v8535_v28, %s6780_s5 }
 0xa11   : > { %5963 = vrot.lane.b32.xlu1 %v5937_v13, %s6781_s27 }
 0xa15   : > { %5968 = vrot.lane.b32.xlu1 %v8539_v44, %s6780_s5 }
 0xa66   : > { %v5894_v45 = vpop.permute.xlu0 %5893 }
 0xa67   : > { %v5896_v25 = vunpack.i.h.bf16 %v5894_v45  ;;  %v5895_v1 = vunpack.i.l.bf16 %v5894_v45  ;;  %v8647_v8 = vpop.permute.xlu1 %5898 }
 0xa68   : > { %v5901_v15 = vunpack.i.h.bf16 %v8647_v8  ;;  %v5900_v38 = vunpack.i.l.bf16 %v8647_v8 }
 0xa6a   : > { %v8655_v41 = vsel %vm901_vm0, %v5896_v25, %v5901_v15  ;;  %v8661_v51 = vsel %vm901_vm0, %v5895_v1, %v5900_v38  ;;  %v8663_v5 = vpop.permute.xlu0 %5903 }
 0xa6b   : > { %v5906_v55 = vunpack.i.h.bf16 %v8663_v5  ;;  %v5905_v12 = vunpack.i.l.bf16 %v8663_v5  ;;  %v5909_v37 = vpop.permute.xlu1 %5908 }
 0xa6c   : > { %v5911_v48 = vunpack.i.h.bf16 %v5909_v37  ;;  %v5910_v7 = vunpack.i.l.bf16 %v5909_v37 }
 0xa6d   : > { %v8673_v27 = vsel %vm901_vm0, %v5906_v55, %v5896_v25  ;;  %v8679_v24 = vsel %vm901_vm0, %v5905_v12, %v5895_v1 }
 0xa6e   : > { %v5914_v54 = vpop.permute.xlu0 %5913 }
 0xa6f   : > { %v5916_v47 = vunpack.i.h.bf16 %v5914_v54  ;;  %v5915_v19 = vunpack.i.l.bf16 %v5914_v54  ;;  %v5919_v2 = vpop.permute.xlu1 %5918 }
 0xa70   : > { %v5921_v43 = vunpack.i.h.bf16 %v5919_v2  ;;  %v5920_v31 = vunpack.i.l.bf16 %v5919_v2  ;;  %v8739_v2 = vpack.i.bf16 %v8673_v27, %v8679_v24 }
 0xa71   : > { %v8685_v23 = vsel %vm1286_vm1, %v5911_v48, %v5916_v47  ;;  %v8689_v56 = vsel %vm1286_vm1, %v5910_v7, %v5915_v19 }
 0xa72   : > { %v8693_v46 = vsel %vm1286_vm1, %v5915_v19, %v5920_v31  ;;  %v8697_v35 = vsel %vm1286_vm1, %v5916_v47, %v5921_v43  ;;  %v8699_v18 = vpop.permute.xlu0 %5923  ;;  %v8705_v50 = vpack.i.bf16 %v8685_v23, %v8689_v56  ;;  %v5992_v19 = vpack.i.bf16 %v8655_v41, %v8661_v51 }
 0xa73   : > { %v5926_v58 = vunpack.i.h.bf16 %v8699_v18  ;;  %v5925_v33 = vunpack.i.l.bf16 %v8699_v18  ;;  %v5929_v60 = vpop.permute.xlu1 %5928  ;;  %v8709_v40 = vpack.i.bf16 %v8697_v35, %v8693_v46  ;;  %v3911_v22 = vsel %vm1286_vm1, %v5920_v31, %v5910_v7  ;;  %v4095_v18 = vld [vmem:[#allocation22 + $0x10] sm:$0xff] }
 0xa74   : > { %v5931_v61 = vunpack.i.h.bf16 %v5929_v60  ;;  %v5930_v13 = vunpack.i.l.bf16 %v5929_v60  ;;  %5978 = vrot.lane.b32.xlu1 %v8705_v50, %s6780_s5  ;;  %v3912_v3 = vsel %vm1286_vm1, %v5921_v43, %v5911_v48 }
 0xa75   : > { %5983 = vrot.lane.b32.xlu0 %v8709_v40, %s6780_s5  ;;  %v6002_v36 = vpack.i.bf16 %v3912_v3, %v3911_v22 }
 0xa76   : > { %v8719_v45 = vsel %vm1286_vm1, %v5925_v33, %v5930_v13  ;;  %v8725_v25 = vsel %vm1286_vm1, %v5926_v58, %v5931_v61  ;;  %v8731_v1 = vpop.permute.xlu0 %5933 }
 0xa77   : > { %v9216_v37 = vunpack.i.h.bf16 %v8731_v1  ;;  %v5935_v54 = vunpack.i.l.bf16 %v8731_v1  ;;  %v5939_v47 = vpop.permute.xlu1 %5938 }
 0xa78   : > { %v5941_v34 = vunpack.i.h.bf16 %v5939_v47  ;;  %5993 = vrot.lane.b32.xlu1 %v5992_v19, %s6780_s5  ;;  %v5940_v48 = vunpack.i.l.bf16 %v5939_v47 }
 0xa79   : > { %v8751_v11 = vsel %vm1286_vm1, %v5931_v61, %v9216_v37  ;;  %v8757_v53 = vsel %vm1286_vm1, %v5930_v13, %v5935_v54  ;;  %5988 = vrot.lane.b32.xlu0 %v8739_v2, %s6780_s5 }
 0xa7a   : > { %v5944_v7 = vpop.permute.xlu0 %5943 }
 0xa7b   : > { %v5946_v43 = vunpack.i.h.bf16 %v5944_v7  ;;  %v5945_v31 = vunpack.i.l.bf16 %v5944_v7  ;;  %v5949_v60 = vpop.permute.xlu1 %5948 }
 0xa7c   : > { %v5951_v9 = vunpack.i.h.bf16 %v5949_v60  ;;  %v5950_v17 = vunpack.i.l.bf16 %v5949_v60  ;;  %5998 = vrot.lane.b32.xlu1 %v8541_v49, %s6780_s5 }
 0xa7d   : > { %v3563_v13 = vsel %vm920_vm2, %v5940_v48, %v5945_v31  ;;  %v3564_v21 = vsel %vm920_vm2, %v5941_v34, %v5946_v43  ;;  %6003 = vrot.lane.b32.xlu0 %v6002_v36, %s6780_s5 }
 0xa7e   : > { %v3567_v10 = vsel %vm920_vm2, %v5950_v17, %v5940_v48  ;;  %v3568_v47 = vsel %vm920_vm2, %v5951_v9, %v5941_v34  ;;  %v5959_v3 = vpop.permute.xlu0 %5958  ;;  %v5142_v22 = vpack.c.bf16 %v3564_v21, %v3563_v13  ;;  %v3530_v17 = vsel %vm901_vm0, %v5901_v15, %v5906_v55 }
 0xa7f   : > { %v5144_v60 = vpack.c.bf16 %v3568_v47, %v3567_v10  ;;  %v5961_v7 = vunpack.i.h.bf16 %v5959_v3  ;;  %v5960_v61 = vunpack.i.l.bf16 %v5959_v3  ;;  %v5954_v31 = vpop.permute.xlu1 %5953  ;;  %v3529_v21 = vsel %vm901_vm0, %v5900_v38, %v5905_v12 }
 0xa80   : > { %v5956_v39 = vunpack.i.h.bf16 %v5954_v31  ;;  %v5955_v37 = vunpack.i.l.bf16 %v5954_v31  ;;  %5143 = vmatprep.subr.bf16.mxu0 %v5142_v22  ;;  %6008 = vrot.lane.b32.xlu1 %v8599_v42, %s6780_s5  ;;  %v6022_v15 = vpack.i.bf16 %v3530_v17, %v3529_v21  ;;  %vm4209_vm0 = vcmask 523648  }
 0xa81   : > { %5145 = vmatpush1.bf16.msra.mxu0 %v5144_v60  ;;  %6013 = vrot.lane.b32.xlu0 %v8603_v59, %s6780_s5 }
 0xa82   : > { %v8793_v10 = vsel %vm939_vm3, %v5955_v37, %v5960_v61  ;;  %v8797_v9 = vsel %vm939_vm3, %v5956_v39, %v5961_v7  ;;  %v5974_v55 = vpop.permute.xlu0 %5973  ;;  %v6052_v7 = vpack.i.bf16 %v8725_v25, %v8719_v45 }
 0xa83   : > { %v5964_v34 = vpop.permute.xlu1 %5963  ;;  %v5158_v8 = vpack.c.bf16 %v8797_v9, %v8793_v10  ;;  %v5976_v13 = vunpack.i.h.bf16 %v5974_v55  ;;  %v5975_v47 = vunpack.i.l.bf16 %v5974_v55 }
 0xa84   : > { %v5966_v38 = vunpack.i.h.bf16 %v5964_v34  ;;  %v5965_v5 = vunpack.i.l.bf16 %v5964_v34  ;;  %6018 = vrot.lane.b32.xlu1 %v8607_v6, %s6780_s5 }
 0xa85   : > { %6023 = vrot.lane.b32.xlu0 %v6022_v15, %s6780_s5 }
 0xa86   : > { %v8803_v12 = vsel %vm939_vm3, %v5965_v5, %v5955_v37  ;;  %v8807_v48 = vsel %vm939_vm3, %v5966_v38, %v5956_v39 }
 0xa87   : > { %v5160_v43 = vpack.c.bf16 %v8807_v48, %v8803_v12  ;;  %v5969_v61 = vpop.permute.xlu1 %5968  ;;  %v3603_v12 = vld [vmem:[#allocation20] sm:$0xff] }
 0xa88   : > { %v5971_v3 = vunpack.i.h.bf16 %v5969_v61  ;;  %v5970_v22 = vunpack.i.l.bf16 %v5969_v61  ;;  %6033 = vrot.lane.b32.xlu1 %v6022_v15, %s6781_s27 }
 0xa89   : > { %6028 = vrot.lane.b32.xlu0 %v5992_v19, %s6781_s27  ;;  %v6072_v19 = vpack.i.bf16 %v8751_v11, %v8757_v53 }
 0xa8a   : > { %v3631_v39 = vsel %vm920_vm2, %v5970_v22, %v5975_v47  ;;  %v3632_v37 = vsel %vm920_vm2, %v5971_v3, %v5976_v13 }
 0xa8b   : > { %v5118_v60 = vpack.c.bf16 %v3632_v37, %v3631_v39 }
 0xa8c   : > { %6038 = vrot.lane.b32.xlu1 %v8535_v28, %s6781_s27  ;;  %v3913_v28 = vsel %vm1286_vm1, %v5935_v54, %v5925_v33 }
 0xa8d   : > { %5119 = vmatprep.subr.bf16.mxu1 %v5118_v60  ;;  %6043 = vrot.lane.b32.xlu0 %v8541_v49, %s6781_s27  ;;  %v9278_v49 = vunpack.i.h.bf16 %v8731_v1 }
 0xa90   : > { %6053 = vrot.lane.b32.xlu1 %v6052_v7, %s6780_s5 }
 0xa91   : > { %6048 = vrot.lane.b32.xlu0 %v8739_v2, %s6781_s27  ;;  %v3914_v2 = vsel %vm1286_vm1, %v9278_v49, %v5926_v58  ;;  %v4096_v58 = vld [vmem:[#allocation22 + $0x18] sm:$0xff]  ;;  %vm4226_vm1 = vcmask 654848  }
 0xa94   : > { %6058 = vrot.lane.b32.xlu1 %v8709_v40, %s6781_s27 }
 0xa95   : > { %6063 = vrot.lane.b32.xlu0 %v6002_v36, %s6781_s27  ;;  %v6077_v36 = vpack.i.bf16 %v3914_v2, %v3913_v28 }
 0xa98   : > { %6068 = vrot.lane.b32.xlu1 %v8539_v44, %s6781_s27  ;;  %v4093_v44 = vld [vmem:[#allocation22] sm:$0xff] }
 0xa99   : > { %6073 = vrot.lane.b32.xlu0 %v6072_v19, %s6780_s5 }
 0xa9c   : > { %6088 = vrot.lane.b32.xlu1 %v8603_v59, %s6781_s27  ;;  %v4094_v59 = vld [vmem:[#allocation22 + $0x8] sm:$0xff] }
 0xa9d   : > { %6078 = vrot.lane.b32.xlu0 %v6077_v36, %s6780_s5  ;;  %s9054_s5 = scalar_lea.vmem [#allocation32], %s4580_s24 }
 0xa9e   : > { %s4295_s23 = sshll.u32 %s9054_s5, 4  ;;  %s9127_s23 = int_to_ptr.vmem [resolvable:$true] %s4295_s23 }
 0xaa0   : > { %6098 = vrot.lane.b32.xlu1 %v6072_v19, %s6781_s27 }
 0xaa1   : > { %6083 = vrot.lane.b32.xlu0 %v8705_v50, %s6781_s27 }
 0xaa4   : > { %6103 = vrot.lane.b32.xlu1 %v8599_v42, %s6781_s27 }
 0xaa5   : > { %6093 = vrot.lane.b32.xlu0 %v8607_v6, %s6781_s27 }
 0xaa8   : > { %4099 = vperm.xlu1 %5616, %v4093_v44  }
 0xaa9   : > { %6108 = vrot.lane.b32.xlu0 %v6077_v36, %s6781_s27 }
 0xaac   : > { %4109 = vperm.xlu1 %5616, %v4095_v18  }
 0xaad   : > { %6113 = vrot.lane.b32.xlu0 %v6052_v7, %s6781_s27  ;;  %s4620_s27 = sshll.u32 %s9258_s6, 7  ;;  %s4283_s6 = scalar_lea.sflag [#allocation4], %s7400_s28 }
 0xab1   : > { %4104 = vperm.xlu0 %5595, %v4094_v59  }
 0xab5   : > { %4114 = vperm.xlu0 %5595, %v4096_v58  }
 0xae6   : > { %v8861_v33 = vpop.permute.xlu1 %5978 }
 0xae7   : > { %v8863_v50 = vpop.permute.xlu0 %5983 }
 0xaea   : > { %v5994_v42 = vpop.permute.xlu1 %5993 }
 0xaeb   : > { %v5989_v40 = vpop.permute.xlu0 %5988  ;;  %v5996_v1 = vunpack.i.h.bf16 %v5994_v42  ;;  %v5995_v6 = vunpack.i.l.bf16 %v5994_v42 }
 0xaec   : > { %v5991_v54 = vunpack.i.h.bf16 %v5989_v40  ;;  %v5990_v31 = vunpack.i.l.bf16 %v5989_v40 }
 0xaee   : > { %v3565_v17 = vsel %vm920_vm2, %v5990_v31, %v5995_v6  ;;  %v3566_v21 = vsel %vm920_vm2, %v5991_v54, %v5996_v1  ;;  %v5999_v34 = vpop.permute.xlu1 %5998 }
 0xaef   : > { %v8869_v15 = vpop.permute.xlu0 %6003  ;;  %v5146_v38 = vpack.c.bf16 %v3566_v21, %v3565_v17  ;;  %v6001_v5 = vunpack.i.h.bf16 %v5999_v34  ;;  %v6000_v55 = vunpack.i.l.bf16 %v5999_v34 }
 0xaf1   : > { %5147 = vmatprep.subr.bf16.mxu0 %v5146_v38  ;;  %v3636_v61 = vsel %vm920_vm2, %v6001_v5, %v5971_v3  ;;  %v3635_v13 = vsel %vm920_vm2, %v6000_v55, %v5970_v22  ;;  %v9279_v5 = vpack.c.bf16 %v8529_v30, %v8523_v20  ;;  %v9280_v55 = vpack.c.bf16 %v8559_v57, %v8563_v16 }
 0xaf2   : > { %v5120_v47 = vpack.c.bf16 %v3636_v61, %v3635_v13  ;;  %v6009_v39 = vpop.permute.xlu1 %6008  ;;  %v9282_v20 = vpack.c.bf16 %v8573_v4, %v8569_v0  ;;  %v5981_v30 = vunpack.i.h.bf16 %v8861_v33  ;;  %v9283_v57 = vpack.c.bf16 %v8594_v32, %v8591_v62 }
 0xaf3   : > { %v6014_v37 = vpop.permute.xlu0 %6013  ;;  %v6011_v60 = vunpack.i.h.bf16 %v6009_v39  ;;  %v6010_v7 = vunpack.i.l.bf16 %v6009_v39  ;;  %v9284_v16 = vpack.c.bf16 %v8655_v41, %v8661_v51  ;;  %v5986_v0 = vunpack.i.h.bf16 %v8863_v50 }
 0xaf4   : > { %v6016_v19 = vunpack.i.h.bf16 %v6014_v37  ;;  %v6015_v28 = vunpack.i.l.bf16 %v6014_v37  ;;  %5121 = vmatpush1.bf16.msra.mxu1 %v5120_v47  ;;  %v5985_v4 = vunpack.i.l.bf16 %v8863_v50  ;;  %v9285_v41 = vpack.c.bf16 %v8588_v63, %v8584_v29 }
 0xaf5   : > { %v9286_v51 = vpack.c.bf16 %v8673_v27, %v8679_v24  ;;  %v6006_v50 = vunpack.i.h.bf16 %v8869_v15  ;;  %v6005_v29 = vunpack.i.l.bf16 %v8869_v15  ;;  %v3940_v24 = vsel %vm920_vm2, %v5981_v30, %v5986_v0  ;;  %v3605_v0 = vld [vmem:[#allocation20 + $0x10] sm:$0xff] }
 0xaf6   : > { %v3633_v49 = vsel %vm920_vm2, %v6010_v7, %v6015_v28  ;;  %v3634_v2 = vsel %vm920_vm2, %v6011_v60, %v6016_v19  ;;  %v6019_v36 = vpop.permute.xlu1 %6018  ;;  %v9281_v28 = vpack.c.bf16 %v8526_v26, %v8520_v52  ;;  %v5980_v26 = vunpack.i.l.bf16 %v8861_v33 }
 0xaf7   : > { %v6024_v44 = vpop.permute.xlu0 %6023  ;;  %v5122_v3 = vpack.c.bf16 %v3634_v2, %v3633_v49  ;;  %v6021_v18 = vunpack.i.h.bf16 %v6019_v36  ;;  %v6020_v59 = vunpack.i.l.bf16 %v6019_v36  ;;  %v3944_v10 = vsel %vm920_vm2, %v6006_v50, %v5981_v30 }
 0xaf8   : > { %v6026_v22 = vunpack.i.h.bf16 %v6024_v44  ;;  %v6025_v58 = vunpack.i.l.bf16 %v6024_v44  ;;  %v3939_v27 = vsel %vm920_vm2, %v5980_v26, %v5985_v4  ;;  %v9288_v4 = vpack.c.bf16 %v8697_v35, %v8693_v46 }
 0xaf9   : > { %5123 = vmatprep.subr.bf16.mxu1 %v5122_v3  ;;  %v3637_v42 = vsel %vm920_vm2, %v6020_v59, %v6010_v7  ;;  %v3638_v40 = vsel %vm920_vm2, %v6021_v18, %v6011_v60  ;;  %v5166_v9 = vpack.c.bf16 %v3940_v24, %v3939_v27  ;;  %v9289_v46 = vpack.c.bf16 %v8685_v23, %v8689_v56 }
 0xafa   : > { %v3570_v1 = vsel %vm920_vm2, %v6026_v22, %v5991_v54  ;;  %v3569_v6 = vsel %vm920_vm2, %v6025_v58, %v5990_v31  ;;  %v5124_v17 = vpack.c.bf16 %v3638_v40, %v3637_v42  ;;  %v6034_v34 = vpop.permute.xlu1 %6033 }
 0xafb   : > { %v5148_v21 = vpack.c.bf16 %v3570_v1, %v3569_v6  ;;  %v6029_v38 = vpop.permute.xlu0 %6028  ;;  %v6036_v37 = vunpack.i.h.bf16 %v6034_v34  ;;  %v6035_v60 = vunpack.i.l.bf16 %v6034_v34 }
 0xafc   : > { %5125 = vmatpush1.bf16.msra.mxu1 %v5124_v17  ;;  %v6031_v7 = vunpack.i.h.bf16 %v6029_v38  ;;  %v6030_v19 = vunpack.i.l.bf16 %v6029_v38 }
 0xafd   : > { %5149 = vmatpush1.bf16.msra.mxu0 %v5148_v21  ;;  %5127 = vmatprep.subr.bf16.mxu1 %v9279_v5 }
 0xafe   : > { %5151 = vmatprep.subr.bf16.mxu0 %v9280_v55  ;;  %v6039_v61 = vpop.permute.xlu1 %6038  ;;  %v3597_v33 = vsel %vm939_vm3, %v6030_v19, %v6035_v60  ;;  %v3598_v3 = vsel %vm939_vm3, %v6031_v7, %v6036_v37 }
 0xaff   : > { %v6044_v13 = vpop.permute.xlu0 %6043  ;;  %v6041_v54 = vunpack.i.h.bf16 %v6039_v61  ;;  %v6040_v47 = vunpack.i.l.bf16 %v6039_v61  ;;  %v5162_v58 = vpack.c.bf16 %v3598_v3, %v3597_v33 }
 0xb00   : > { %v6046_v39 = vunpack.i.h.bf16 %v6044_v13  ;;  %v6045_v31 = vunpack.i.l.bf16 %v6044_v13  ;;  %5129 = vmatpush1.bf16.msra.mxu1 %v9281_v28 }
 0xb01   : > { %5153 = vmatpush1.bf16.msra.mxu0 %v9282_v20  ;;  %5131 = vmatprep.subr.bf16.mxu1 %v9283_v57 }
 0xb02   : > { %5155 = vmatprep.subr.bf16.mxu0 %v9284_v16  ;;  %v3663_v49 = vsel %vm939_vm3, %v6040_v47, %v6045_v31  ;;  %v3664_v52 = vsel %vm939_vm3, %v6041_v54, %v6046_v39  ;;  %v6054_v2 = vpop.permute.xlu1 %6053  ;;  %v9287_v16 = vmov 0.0  }
 0xb03   : > { %v6049_v36 = vpop.permute.xlu0 %6048  ;;  %v5134_v62 = vpack.c.bf16 %v3664_v52, %v3663_v49  ;;  %v6056_v15 = vunpack.i.h.bf16 %v6054_v2  ;;  %v6055_v42 = vunpack.i.l.bf16 %v6054_v2 }
 0xb04   : > { %v6051_v32 = vunpack.i.h.bf16 %v6049_v36  ;;  %v6050_v44 = vunpack.i.l.bf16 %v6049_v36  ;;  %5133 = vmatpush1.bf16.msra.mxu1 %v9285_v41 }
 0xb05   : > { %5157 = vmatpush1.bf16.msra.mxu0 %v9286_v51  ;;  %5135 = vmatprep.subr.bf16.mxu1 %v5134_v62 }
 0xb06   : > { %5159 = vmatprep.subr.bf16.mxu0 %v5158_v8  ;;  %v8928_v63 = vpop.permute.xlu1 %6058  ;;  %v3601_v59 = vsel %vm939_vm3, %v6050_v44, %v6030_v19  ;;  %v3602_v22 = vsel %vm939_vm3, %v6051_v32, %v6031_v7  ;;  %v3943_v8 = vsel %vm920_vm2, %v6005_v29, %v5980_v26  ;;  %v3604_v19 = vld [vmem:[#allocation20 + $0x8] sm:$0xff] }
 0xb07   : > { %v6064_v18 = vpop.permute.xlu0 %6063  ;;  %v5164_v40 = vpack.c.bf16 %v3602_v22, %v3601_v59  ;;  %v5168_v61 = vpack.c.bf16 %v3944_v10, %v3943_v8  ;;  %v9290_v59 = vpack.c.bf16 %v8751_v11, %v8757_v53  ;;  %v9291_v53 = vpack.c.bf16 %v8725_v25, %v8719_v45 }
 0xb08   : > { %v6066_v28 = vunpack.i.h.bf16 %v6064_v18  ;;  %v6065_v20 = vunpack.i.l.bf16 %v6064_v18  ;;  %v3606_v18 = vld [vmem:[#allocation20 + $0x18] sm:$0xff] }
 0xb09   : > { %5161 = vmatpush1.bf16.msra.mxu0 %v5160_v43 }
 0xb0a   : > { %5163 = vmatprep.subr.bf16.mxu0 %v5162_v58  ;;  %v6069_v1 = vpop.permute.xlu1 %6068 }
 0xb0b   : > { %v6074_v6 = vpop.permute.xlu0 %6073  ;;  %v6071_v17 = vunpack.i.h.bf16 %v6069_v1  ;;  %v6070_v21 = vunpack.i.l.bf16 %v6069_v1 }
 0xb0c   : > { %v6076_v34 = vunpack.i.h.bf16 %v6074_v6  ;;  %v6075_v38 = vunpack.i.l.bf16 %v6074_v6 }
 0xb0d   : > { %5165 = vmatpush1.bf16.msra.mxu0 %v5164_v40  ;;  %v3667_v48 = vsel %vm939_vm3, %v6070_v21, %v6040_v47  ;;  %v3668_v43 = vsel %vm939_vm3, %v6071_v17, %v6041_v54  ;;  %v6061_v47 = vunpack.i.h.bf16 %v8928_v63  ;;  %v6060_v54 = vunpack.i.l.bf16 %v8928_v63  ;;  %v3672_v17 = vld [vmem:[#allocation20 + $0x20] sm:$0xff] }
 0xb0e   : > { %5167 = vmatprep.subr.bf16.mxu0 %v5166_v9  ;;  %v3941_v5 = vsel %vm920_vm2, %v6055_v42, %v6075_v38  ;;  %v3942_v55 = vsel %vm920_vm2, %v6056_v15, %v6076_v34  ;;  %v5136_v13 = vpack.c.bf16 %v3668_v43, %v3667_v48  ;;  %v6089_v39 = vpop.permute.xlu1 %6088  ;;  %v3673_v43 = vld [vmem:[#allocation20 + $0x28] sm:$0xff] }
 0xb0f   : > { %v6079_v31 = vpop.permute.xlu0 %6078  ;;  %v5170_v37 = vpack.c.bf16 %v3942_v55, %v3941_v5  ;;  %v3971_v2 = vsel %vm939_vm3, %v6060_v54, %v6065_v20  ;;  %v3972_v36 = vsel %vm939_vm3, %v6061_v47, %v6066_v28  ;;  %v6091_v62 = vunpack.i.h.bf16 %v6089_v39  ;;  %v3980_v55 = vld [vmem:[#allocation20 + $0x40] sm:$0xff] }
 0xb10   : > { %v6081_v60 = vunpack.i.h.bf16 %v6079_v31  ;;  %v6080_v7 = vunpack.i.l.bf16 %v6079_v31  ;;  %4611 = vmatmul.mubr.msk.f32.vlgmr.msra.gmra.mrb[8].mxu0 %vm3676_vm11, %v3603_v12  ;;  %5137 = vmatpush1.bf16.msra.mxu1 %v5136_v13  ;;  %v6090_v32 = vunpack.i.l.bf16 %v6089_v39  ;;  %v5182_v35 = vpack.c.bf16 %v3972_v36, %v3971_v2  ;;  %v3981_v13 = vld [vmem:[#allocation20 + $0x48] sm:$0xff]  ;;  %v3982_v39 = vld [vmem:[#allocation20 + $0x50] sm:$0xff]  ;;  %v3983_v31 = vld [vmem:[#allocation20 + $0x58] sm:$0xff] }
 0xb11   : > { %5169 = vmatpush1.bf16.msra.mxu0 %v5168_v61  ;;  %3860 = vmatprep.mubr.f32.mxu0 %v9287_v16  ;;  %v3674_v61 = vld [vmem:[#allocation20 + $0x30] sm:$0xff] }
 0xb12   : > { %v3946_v30 = vsel %vm920_vm2, %v6081_v60, %v6056_v15  ;;  %v3945_v57 = vsel %vm920_vm2, %v6080_v7, %v6055_v42  ;;  %5171 = vmatprep.subr.bf16.mxu0 %v5170_v37  ;;  %v6099_v52 = vpop.permute.xlu1 %6098  ;;  %vm4243_vm2 = vcmask 786048  }
 0xb13   : > { %v5172_v49 = vpack.c.bf16 %v3946_v30, %v3945_v57  ;;  %v6084_v26 = vpop.permute.xlu0 %6083  ;;  %v6101_v56 = vunpack.i.h.bf16 %v6099_v52  ;;  %v6100_v58 = vunpack.i.l.bf16 %v6099_v52 }
 0xb14   : > { %4612 = vmatmul.mubr.msk.f32.gmra.mrb[10].mxu0 %vm3676_vm11, %v3604_v19  ;;  %v6086_v44 = vunpack.i.h.bf16 %v6084_v26  ;;  %v6085_v41 = vunpack.i.l.bf16 %v6084_v26 }
 0xb15   : > { %5173 = vmatpush1.bf16.msra.mxu0 %v5172_v49  ;;  %3866 = vmatprep.mubr.f32.mxu0 %v9287_v16 }
 0xb16   : > { %5175 = vmatprep.subr.bf16.mxu0 %v9288_v4  ;;  %v6104_v51 = vpop.permute.xlu1 %6103  ;;  %v3976_v10 = vsel %vm939_vm3, %v6086_v44, %v6061_v47  ;;  %v3975_v15 = vsel %vm939_vm3, %v6085_v41, %v6060_v54 }
 0xb17   : > { %v6094_v33 = vpop.permute.xlu0 %6093  ;;  %v6106_v3 = vunpack.i.h.bf16 %v6104_v51  ;;  %v6105_v50 = vunpack.i.l.bf16 %v6104_v51  ;;  %v5184_v21 = vpack.c.bf16 %v3976_v10, %v3975_v15 }
 0xb18   : > { %v6096_v29 = vunpack.i.h.bf16 %v6094_v33  ;;  %v6095_v63 = vunpack.i.l.bf16 %v6094_v33  ;;  %4613 = vmatmul.mubr.msk.f32.gmra.mrb[12].mxu0 %vm3676_vm11, %v3605_v0 }
 0xb19   : > { %5177 = vmatpush1.bf16.msra.mxu0 %v9289_v46  ;;  %3872 = vmatprep.mubr.f32.mxu0 %v9287_v16  ;;  %v3669_v27 = vsel %vm939_vm3, %v6105_v50, %v6090_v32  ;;  %v3670_v24 = vsel %vm939_vm3, %v6106_v3, %v6091_v62 }
 0xb1a   : > { %5179 = vmatprep.subr.bf16.mxu0 %v9290_v59  ;;  %v3665_v22 = vsel %vm939_vm3, %v6090_v32, %v6095_v63  ;;  %v3666_v23 = vsel %vm939_vm3, %v6091_v62, %v6096_v29  ;;  %v5140_v42 = vpack.c.bf16 %v3670_v24, %v3669_v27 }
 0xb1b   : > { %v6109_v9 = vpop.permute.xlu0 %6108  ;;  %v5138_v8 = vpack.c.bf16 %v3666_v23, %v3665_v22 }
 0xb1c   : > { %v6111_v40 = vunpack.i.h.bf16 %v6109_v9  ;;  %v6110_v11 = vunpack.i.l.bf16 %v6109_v9  ;;  %4614 = vmatmul.mubr.msk.f32.gmra.mrb[14].mxu0 %vm3676_vm11, %v3606_v18 }
 0xb1d   : > { %5139 = vmatprep.subr.bf16.mxu1 %v5138_v8  ;;  %5181 = vmatpush1.bf16.msra.mxu0 %v9291_v53 }
 0xb1e   : > { %5141 = vmatpush1.bf16.msra.mxu1 %v5140_v42  ;;  %5183 = vmatprep.subr.bf16.mxu0 %v5182_v35  ;;  %v3973_v1 = vsel %vm939_vm3, %v6100_v58, %v6110_v11  ;;  %v3974_v6 = vsel %vm939_vm3, %v6101_v56, %v6111_v40 }
 0xb1f   : > { %v6114_v34 = vpop.permute.xlu0 %6113  ;;  %v5186_v38 = vpack.c.bf16 %v3974_v6, %v3973_v1  ;;  %4060 = vmatprep.mubr.f32.mxu0 %v9287_v16 }
 0xb20   : > { %v6116_v12 = vunpack.i.h.bf16 %v6114_v34  ;;  %v6115_v48 = vunpack.i.l.bf16 %v6114_v34 }
 0xb21   : > { %5185 = vmatpush1.bf16.msra.mxu0 %v5184_v21  ;;  %4607 = vmatmul.mubr.msk.f32.vlgmr.msra.gmra.mrb[26].mxu1 %vm3676_vm11, %v3672_v17 }
 0xb22   : > { %v3978_v45 = vsel %vm939_vm3, %v6116_v12, %v6101_v56  ;;  %v3977_v25 = vsel %vm939_vm3, %v6115_v48, %v6100_v58  ;;  %5187 = vmatprep.subr.bf16.mxu0 %v5186_v38  ;;  %3759 = vmatprep.mubr.f32.mxu1 %v9287_v16  ;;  %vm4260_vm3 = vcmask 917248  }
 0xb23   : > { %v5188_v5 = vpack.c.bf16 %v3978_v45, %v3977_v25 }
 0xb25   : > { %5189 = vmatpush1.bf16.msra.mxu0 %v5188_v5  ;;  %4608 = vmatmul.mubr.msk.f32.gmra.mrb[28].mxu1 %vm3676_vm11, %v3673_v43 }
 0xb26   : > { %3765 = vmatprep.mubr.f32.mxu1 %v9287_v16 }
 0xb27   : > { %v4100_v30 = vpop.permute.xlu1 %4099 }
 0xb28   : > { %4615 = vmatmul.mubr.msk.f32.vlgmr.msra.gmra.mrb[8].mxu0 %vm3676_vm11, %v3980_v55 }
 0xb29   : > { %4066 = vmatprep.mubr.f32.mxu0 %v9287_v16  ;;  %4609 = vmatmul.mubr.msk.f32.gmra.mrb[30].mxu1 %vm3676_vm11, %v3674_v61 }
 0xb2a   : > { %3771 = vmatprep.mubr.f32.mxu1 %v9287_v16 }
 0xb2b   : > { %v4110_v18 = vpop.permute.xlu1 %4109 }
 0xb2c   : > { %4616 = vmatmul.mubr.msk.f32.gmra.mrb[10].mxu0 %vm3676_vm11, %v3981_v13 }
 0xb2d   : > { %4072 = vmatprep.mubr.f32.mxu0 %v9287_v16  ;;  %4610 = vmatmul.mubr.msk.f32.gmra.mrb[32].mxu1 %vm3676_vm11, %v3675_v14 }
 0xb30   : > { %4617 = vmatmul.mubr.msk.f32.gmra.mrb[12].mxu0 %vm3676_vm11, %v3982_v39  ;;  %v4105_v36 = vpop.permute.xlu0 %4104 }
 0xb31   : > { %4078 = vmatprep.mubr.f32.mxu0 %v9287_v16 }
 0xb34   : > { %4618 = vmatmul.mubr.msk.f32.gmra.mrb[14].mxu0 %vm3676_vm11, %v3983_v31  ;;  %v4115_v59 = vpop.permute.xlu0 %4114 }
 0xbf4   : > { %v3755_v37 = vpop.f32.mrb[26].mxu1 }
 0xbf5   : > { %v3757_v60 = vpop.f32.mrb[27].mxu1 }
 0xbf8   : > { %v3761_v7 = vpop.f32.mrb[28].mxu1 }
 0xbf9   : > { %v3763_v47 = vpop.f32.mrb[29].mxu1 }
 0xbfb   : > { %v4062_v54 = vpop.f32.mrb[8].mxu0 }
 0xbfc   : > { %v5192_v19 = vadd.f32 %v4062_v54, %v3755_v37  ;;  %v4064_v28 = vpop.f32.mrb[9].mxu0  ;;  %v3767_v20 = vpop.f32.mrb[30].mxu1 }
 0xbfd   : > { %v5193_v57 = vadd.f32 %v4064_v28, %v3757_v60  ;;  %v3769_v49 = vpop.f32.mrb[31].mxu1 }
 0xbfe   : > { %v4117_v52 = vadd.f32 %v5192_v19, %v4100_v30 }
 0xbff   : > { %v9017_v26 = vadd.f32 %v5193_v57, %v4100_v30  ;;  %v4068_v0 = vpop.f32.mrb[10].mxu0 }
 0xc00   : > { %v5194_v4 = vadd.f32 %v4068_v0, %v3761_v7  ;;  %v4070_v16 = vpop.f32.mrb[11].mxu0  ;;  %4129 = vrot.lane.b32.xlu1 %v4117_v52, %s6786_s4  ;;  %v3773_v2 = vpop.f32.mrb[32].mxu1 }
 0xc01   : > { %v5195_v62 = vadd.f32 %v4070_v16, %v3763_v47  ;;  %4169 = vrot.lane.b32.xlu0 %v9017_v26, %s6787_s7  ;;  %v3775_v32 = vpop.f32.mrb[33].mxu1 }
 0xc02   : > { %v4119_v44 = vadd.f32 %v5194_v4, %v4105_v36 }
 0xc03   : > { %v4074_v41 = vpop.f32.mrb[12].mxu0  ;;  %v4120_v35 = vadd.f32 %v5195_v62, %v4105_v36 }
 0xc04   : > { %v5196_v51 = vadd.f32 %v4074_v41, %v3767_v20  ;;  %v4076_v33 = vpop.f32.mrb[13].mxu0  ;;  %4146 = vrot.lane.b32.xlu1 %v4117_v52, %s6788_s22 }
 0xc05   : > { %v5197_v3 = vadd.f32 %v4076_v33, %v3769_v49  ;;  %4131 = vrot.lane.b32.xlu0 %v4119_v44, %s6786_s4 }
 0xc06   : > { %v4121_v27 = vadd.f32 %v5196_v51, %v4110_v18 }
 0xc07   : > { %v4080_v50 = vpop.f32.mrb[14].mxu0  ;;  %v4122_v24 = vadd.f32 %v5197_v3, %v4110_v18 }
 0xc08   : > { %v5198_v29 = vadd.f32 %v4080_v50, %v3773_v2  ;;  %v4082_v63 = vpop.f32.mrb[15].mxu0  ;;  %4167 = vrot.lane.b32.xlu1 %v4117_v52, %s6787_s7 }
 0xc09   : > { %v5199_v46 = vadd.f32 %v4082_v63, %v3775_v32  ;;  %4148 = vrot.lane.b32.xlu0 %v4119_v44, %s6788_s22 }
 0xc0a   : > { %v4123_v22 = vadd.f32 %v5198_v29, %v4115_v59 }
 0xc0b   : > { %v4124_v23 = vadd.f32 %v5199_v46, %v4115_v59 }
 0xc0c   : > { %4197 = vrot.lane.b32.xlu1 %v9017_v26, %s6789_s2 }
 0xc0d   : > { %4173 = vrot.lane.b32.xlu0 %v4120_v35, %s6787_s7 }
 0xc10   : > { %4214 = vrot.lane.b32.xlu1 %v9017_v26, %s6790_s20 }
 0xc11   : > { %4199 = vrot.lane.b32.xlu0 %v4120_v35, %s6789_s2 }
 0xc14   : > { %4231 = vrot.lane.b32.xlu1 %v9017_v26, %s6791_s19 }
 0xc15   : > { %4216 = vrot.lane.b32.xlu0 %v4120_v35, %s6790_s20 }
 0xc18   : > { %4248 = vrot.lane.b32.xlu1 %v9017_v26, %s6792_s3 }
 0xc19   : > { %4233 = vrot.lane.b32.xlu0 %v4120_v35, %s6791_s19 }
 0xc1c   : > { %4171 = vrot.lane.b32.xlu1 %v4119_v44, %s6787_s7 }
 0xc1d   : > { %4250 = vrot.lane.b32.xlu0 %v4120_v35, %s6792_s3 }
 0xc20   : > { %4133 = vrot.lane.b32.xlu1 %v4121_v27, %s6786_s4 }
 0xc21   : > { %4177 = vrot.lane.b32.xlu0 %v4122_v24, %s6787_s7 }
 0xc24   : > { %4150 = vrot.lane.b32.xlu1 %v4121_v27, %s6788_s22 }
 0xc25   : > { %4135 = vrot.lane.b32.xlu0 %v4123_v22, %s6786_s4 }
 0xc28   : > { %4175 = vrot.lane.b32.xlu1 %v4121_v27, %s6787_s7 }
 0xc29   : > { %4152 = vrot.lane.b32.xlu0 %v4123_v22, %s6788_s22  ;;  %s9292_s22 = sld [smem:[#allocation59_spill]] }
 0xc2c   : > { %4201 = vrot.lane.b32.xlu1 %v4122_v24, %s6789_s2 }
 0xc2d   : > { %4267 = vrot.lane.b32.xlu0 %v4120_v35, %s6793_s1 }
 0xc30   : > { %4218 = vrot.lane.b32.xlu1 %v4122_v24, %s6790_s20 }
 0xc31   : > { %4181 = vrot.lane.b32.xlu0 %v4124_v23, %s6787_s7 }
 0xc34   : > { %4235 = vrot.lane.b32.xlu1 %v4122_v24, %s6791_s19 }
 0xc35   : > { %4203 = vrot.lane.b32.xlu0 %v4124_v23, %s6789_s2  ;;  %s9125_s2 = scalar_lea.hbm %s9292_s22, %s4620_s27 }
 0xc38   : > { %4252 = vrot.lane.b32.xlu1 %v4122_v24, %s6792_s3 }
 0xc39   : > { %4220 = vrot.lane.b32.xlu0 %v4124_v23, %s6790_s20  ;;  %s6651_s20 = scalar_lea.vmem %s9127_s23, 512 }
 0xc3a   : > { %p6652_p6 = scmp.ne.s32.totalorder %s9127_s23, %s6651_s20 }
 0xc3c   : > { %4179 = vrot.lane.b32.xlu1 %v4123_v22, %s6787_s7  ;;  %p6653_p5 = pnand %p6652_p6, %p9293_p7 }
 0xc3d   : > { %4237 = vrot.lane.b32.xlu0 %v4124_v23, %s6791_s19  ;;  %s6794_s19 = smov [#allocation32]  }
 0xc3e   : > { %p6654_p9 = pneg %p6653_p5 }
 0xc40   : > { %4265 = vrot.lane.b32.xlu1 %v9017_v26, %s6793_s1 }
 0xc41   : > { %4254 = vrot.lane.b32.xlu0 %v4124_v23, %s6792_s3  ;;  %s6655_s3 = sshll.u32 %s6794_s19, 4  ;;  %s6656_s3 = int_to_ptr.vmem [resolvable:$false] %s6655_s3 }
 0xc42   : > { %p6658_p4 = scmp.lt.s32.totalorder %s9127_s23, %s6656_s3 }
 0xc44   : > { %4269 = vrot.lane.b32.xlu1 %v4122_v24, %s6793_s1 }
 0xc45   : > { %4271 = vrot.lane.b32.xlu0 %v4124_v23, %s6793_s1  ;;  %s6657_s1 = scalar_lea.vmem %s6656_s3, 1024 }
 0xc46   : > { %p6659_p1 = scmp.lt.s32.totalorder %s6657_s1, %s6651_s20 }
 0xc48   : > { %p6660_p13 = por %p6659_p1, %p6658_p4 }
 0xc4a   : > { %p6661_p0 = pnand %p6660_p13, %p6654_p9 }
 0xc72   : > { %v4130_v56 = vpop.permute.xlu1 %4129 }
 0xc73   : > { %4142 = vst.msk [vmem:[%s9054_s5] sm:$0xff] %vm4141_vm12, %v4130_v56  ;;  %v4170_v58 = vpop.permute.xlu0 %4169 }
 0xc76   : > { %v4147_v10 = vpop.permute.xlu1 %4146 }
 0xc77   : > { %4159 = vst.msk [vmem:[%s9054_s5] sm:$0xff] %vm4158_vm13, %v4147_v10  ;;  %v4132_v9 = vpop.permute.xlu0 %4131 }
 0xc78   : > { %4143 = vst.msk [vmem:[%s9054_s5 + $0x8] sm:$0xff] %vm4141_vm12, %v4132_v9 }
 0xc7a   : > { %v4168_v8 = vpop.permute.xlu1 %4167 }
 0xc7b   : > { %v4184_v15 = vsel %vm4183_vm14, %v4168_v8, %v4170_v58  ;;  %v4149_v42 = vpop.permute.xlu0 %4148 }
 0xc7c   : > { %4193 = vst.msk [vmem:[%s9054_s5] sm:$0xff] %vm4192_vm15, %v4184_v15 }
 0xc7d   : > { %4160 = vst.msk [vmem:[%s9054_s5 + $0x8] sm:$0xff] %vm4158_vm13, %v4149_v42 }
 0xc7e   : > { %v4198_v40 = vpop.permute.xlu1 %4197 }
 0xc7f   : > { %4210 = vst.msk [vmem:[%s9054_s5] sm:$0xff] %vm4209_vm0, %v4198_v40  ;;  %v4174_v11 = vpop.permute.xlu0 %4173 }
 0xc82   : > { %v4215_v53 = vpop.permute.xlu1 %4214 }
 0xc83   : > { %4227 = vst.msk [vmem:[%s9054_s5] sm:$0xff] %vm4226_vm1, %v4215_v53  ;;  %v4200_v1 = vpop.permute.xlu0 %4199 }
 0xc86   : > { %v4232_v6 = vpop.permute.xlu1 %4231 }
 0xc87   : > { %4244 = vst.msk [vmem:[%s9054_s5] sm:$0xff] %vm4243_vm2, %v4232_v6  ;;  %v4217_v17 = vpop.permute.xlu0 %4216 }
 0xc8a   : > { %v4249_v21 = vpop.permute.xlu1 %4248 }
 0xc8b   : > { %4261 = vst.msk [vmem:[%s9054_s5] sm:$0xff] %vm4260_vm3, %v4249_v21  ;;  %v4234_v34 = vpop.permute.xlu0 %4233 }
 0xc8e   : > { %v4172_v38 = vpop.permute.xlu1 %4171 }
 0xc8f   : > { %v4185_v12 = vsel %vm4183_vm14, %v4172_v38, %v4174_v11  ;;  %v4251_v48 = vpop.permute.xlu0 %4250 }
 0xc90   : > { %4194 = vst.msk [vmem:[%s9054_s5 + $0x8] sm:$0xff] %vm4192_vm15, %v4185_v12 }
 0xc91   : > { %4211 = vst.msk [vmem:[%s9054_s5 + $0x8] sm:$0xff] %vm4209_vm0, %v4200_v1 }
 0xc92   : > { %4228 = vst.msk [vmem:[%s9054_s5 + $0x8] sm:$0xff] %vm4226_vm1, %v4217_v17  ;;  %v4134_v45 = vpop.permute.xlu1 %4133 }
 0xc93   : > { %4245 = vst.msk [vmem:[%s9054_s5 + $0x8] sm:$0xff] %vm4243_vm2, %v4234_v34  ;;  %v4178_v25 = vpop.permute.xlu0 %4177 }
 0xc94   : > { %4144 = vst.msk [vmem:[%s9054_s5 + $0x10] sm:$0xff] %vm4141_vm12, %v4134_v45 }
 0xc95   : > { %4262 = vst.msk [vmem:[%s9054_s5 + $0x8] sm:$0xff] %vm4260_vm3, %v4251_v48 }
 0xc96   : > { %v4151_v43 = vpop.permute.xlu1 %4150 }
 0xc97   : > { %4161 = vst.msk [vmem:[%s9054_s5 + $0x10] sm:$0xff] %vm4158_vm13, %v4151_v43  ;;  %v4136_v5 = vpop.permute.xlu0 %4135 }
 0xc98   : > { %4145 = vst.msk [vmem:[%s9054_s5 + $0x18] sm:$0xff] %vm4141_vm12, %v4136_v5 }
 0xc9a   : > { %v4176_v55 = vpop.permute.xlu1 %4175 }
 0xc9b   : > { %v4186_v61 = vsel %vm4183_vm14, %v4176_v55, %v4178_v25  ;;  %v4153_v13 = vpop.permute.xlu0 %4152 }
 0xc9c   : > { %4195 = vst.msk [vmem:[%s9054_s5 + $0x10] sm:$0xff] %vm4192_vm15, %v4186_v61 }
 0xc9d   : > { %4162 = vst.msk [vmem:[%s9054_s5 + $0x18] sm:$0xff] %vm4158_vm13, %v4153_v13 }
 0xc9e   : > { %v4202_v14 = vpop.permute.xlu1 %4201 }
 0xc9f   : > { %4212 = vst.msk [vmem:[%s9054_s5 + $0x10] sm:$0xff] %vm4209_vm0, %v4202_v14  ;;  %v4268_v39 = vpop.permute.xlu0 %4267 }
 0xca0   : > { %4279 = vst.msk [vmem:[%s9054_s5 + $0x8] sm:$0xff] %vm4277_vm4, %v4268_v39 }
 0xca2   : > { %v4219_v31 = vpop.permute.xlu1 %4218 }
 0xca3   : > { %4229 = vst.msk [vmem:[%s9054_s5 + $0x10] sm:$0xff] %vm4226_vm1, %v4219_v31  ;;  %v4182_v37 = vpop.permute.xlu0 %4181 }
 0xca6   : > { %v4236_v60 = vpop.permute.xlu1 %4235 }
 0xca7   : > { %4246 = vst.msk [vmem:[%s9054_s5 + $0x10] sm:$0xff] %vm4243_vm2, %v4236_v60  ;;  %v4204_v7 = vpop.permute.xlu0 %4203 }
 0xcaa   : > { %v4253_v47 = vpop.permute.xlu1 %4252 }
 0xcab   : > { %4263 = vst.msk [vmem:[%s9054_s5 + $0x10] sm:$0xff] %vm4260_vm3, %v4253_v47  ;;  %v4221_v54 = vpop.permute.xlu0 %4220 }
 0xcae   : > { %v4180_v19 = vpop.permute.xlu1 %4179 }
 0xcaf   : > { %v4187_v28 = vsel %vm4183_vm14, %v4180_v19, %v4182_v37  ;;  %v4238_v20 = vpop.permute.xlu0 %4237 }
 0xcb0   : > { %4196 = vst.msk [vmem:[%s9054_s5 + $0x18] sm:$0xff] %vm4192_vm15, %v4187_v28 }
 0xcb1   : > { %4213 = vst.msk [vmem:[%s9054_s5 + $0x18] sm:$0xff] %vm4209_vm0, %v4204_v7 }
 0xcb2   : > { %4230 = vst.msk [vmem:[%s9054_s5 + $0x18] sm:$0xff] %vm4226_vm1, %v4221_v54  ;;  %v4266_v30 = vpop.permute.xlu1 %4265 }
 0xcb3   : > { %4247 = vst.msk [vmem:[%s9054_s5 + $0x18] sm:$0xff] %vm4243_vm2, %v4238_v20  ;;  %v4255_v57 = vpop.permute.xlu0 %4254 }
 0xcb4   : > { %4278 = vst.msk [vmem:[%s9054_s5] sm:$0xff] %vm4277_vm4, %v4266_v30 }
 0xcb5   : > { %4264 = vst.msk [vmem:[%s9054_s5 + $0x18] sm:$0xff] %vm4260_vm3, %v4255_v57 }
 0xcb6   : > { %v4270_v49 = vpop.permute.xlu1 %4269 }
 0xcb7   : > { %4280 = vst.msk [vmem:[%s9054_s5 + $0x10] sm:$0xff] %vm4277_vm4, %v4270_v49  ;;  %v4272_v52 = vpop.permute.xlu0 %4271 }
 0xcb8   : > { %4281 = vst.msk [vmem:[%s9054_s5 + $0x18] sm:$0xff] %vm4277_vm4, %v4272_v52 }
 0xcb9   : > { %6664 = shalt.err (!%p6661_p0)
}
 0xcba   : > { %s6665_s24 = scalar_lea.hbm %s9125_s2, 512  ;;  %s6669_s4 = scalar_lea.hbm %s9292_s22, 1024 }
 0xcbb   : > { %p6666_p2 = scmp.ne.s32.totalorder %s9125_s2, %s6665_s24  ;;  %p6670_p11 = scmp.lt.u32.totalorder %s9125_s2, %s9292_s22 }
 0xcbc   : > { %p6671_p12 = scmp.lt.u32.totalorder %s6669_s4, %s6665_s24  ;;  %p6673_p6 = scmp.lt.u32.totalorder %s6665_s24, %s9125_s2 }
 0xcbd   : > { %p6667_p8 = pnand %p6666_p2, %p9293_p7 }
 0xcbe   : > { %p6672_p3 = por %p6671_p12, %p6670_p11 }
 0xcbf   : > { %p6668_p10 = pneg %p6667_p8 }
 0xcc0   : > { %p6674_p5 = por %p6673_p6, %p6672_p3 }
 0xcc2   : > { %p6675_p9 = pnand %p6674_p5, %p6668_p10 }
 0xcc4   : > { %6678 = shalt.err (!%p6675_p9)
}
 0xcc5   : > { %s6795_s20 = smov 128   ;;  %s6796_s3 = smov 256  }
 0xcc6   : > { %s6797_s1 = smov 8  }
 0xcc7   : > { %5299 = dma.vmem_to_hbm [thread:$0]  (%p9293_p7), %s9127_s23, 512, %s9125_s2, %s4283_s6, %s6795_s20, %s6796_s3, %s6797_s1  }
 0xcc8 PF: > { %s9294_s5 = sld [smem:[#allocation44_spill]]  ;;  %s9295_s27 = sld [smem:[#allocation47_spill]] }
 0xcc9   : > { %p9296_p4 = scmp.ne.s32.totalorder %s9252_s0, 0 }
 0xcce   : > { %s4310_s4 = sand.u32 1, %s9294_s5   ;;  %p9297_p1 = scmp.ge.s32.totalorder %s9295_s27, 2 }
 0xccf   : > { %s4311_s24 = scalar_lea.sflag [#allocation4], %s4310_s4 }
 0xcd0   : > { %p5361_p13 = pnand %p9297_p1, %p9296_p4 }
 0xcd2   : > { %6736 = dma.done.wait (!%p5361_p13), %s4311_s24, 512  }
 0xcd3   : > { %6738 = vsyncadd (!%p5361_p13), %s4311_s24, 4294966784  ;;  %s9298_s0 = sld [smem:[#allocation45_spill]]  ;;  %s9299_s30 = sld [smem:[#allocation46_spill]] }
 0xcd4   : > { %p41_p0 = scmp.ge.s32.totalorder %s7327_s21, 4   ;;  %s9300_s20 = smov %s7338_s29 }
 0xcd6   :  { %43 = sbr.rel (!%p41_p0) target bundleno = 25 (0x19), region = 223 }
 0xcdd   :  { %4316 = vsyncpa [#allocation3], 1 }
 0xcde   :  { %4318 = vsyncpa [#allocation3 + $0x1], 1 }
 0xcdf   :  { %4319 = vsyncpa [#allocation6], 1 }
 0xce0   :  { %4320 = vsyncpa [#allocation9], 1 }
 0xce1   :  { %4321 = vsyncpa [#allocation12], 1 }
 0xce2   :  { %4322 = vsyncpa [#allocation15], 1 }
 0xce3   :  { %4323 = vsyncpa [#allocation18], 1 }
 0xce4   :  { %4324 = vsyncpa [#allocation21], 1 }
 0xce5   :  { %4325 = vsyncpa [#allocation24], 1 }
 0xce6   :  { %4326 = vsyncpa [#allocation27], 1 }
 0xce7   :  { %4327 = vsyncpa [#allocation30], 1 }
 0xce8   :  { %4328 = vsyncpa [#allocation4], 1 }
 0xce9   :  { %4330 = vsyncpa [#allocation4 + $0x1], 1 }

</bundles_post_ra>
